<compile_context>
chip_gen: v5e
topology: v5e:2x2
jax: 0.10.0
libtpu: 0.0.40
codegen_flags: <defaults>
</compile_context>

<pallas_src>
import functools

import jax
import jax.numpy as jnp
from jax.experimental import pallas as pl
from jax.experimental.pallas import tpu as pltpu

NEG_SLOPE = 0.01                 # nn.LeakyReLU default
BN_EPS = 1e-5                    # nn.BatchNorm2d default
TM = 512                         # GEMM row tile
VMEM_LIMIT = 32 * 1024 * 1024    # safe on v5e/v6e/v7x


def _round_up(x, m):
    return ((x + m - 1) // m) * m


# ----------------------------------------------------------------------------
# Fused Pallas kernels
# ----------------------------------------------------------------------------
def _conv_bn_lrelu_kernel(a_ref, w_ref, gamma_ref, beta_ref, o_ref,
                          y_sc, sum_sc, sq_sc, *, inv_m):
    """ConvTranspose-as-GEMM (bf16 MXU, f32 acc) + batch stats, with the
    BatchNorm(train-mode) affine + LeakyReLU epilogue fused on the last step."""
    i = pl.program_id(0)

    @pl.when(i == 0)
    def _():
        sum_sc[...] = jnp.zeros_like(sum_sc)
        sq_sc[...] = jnp.zeros_like(sq_sc)

    y = jnp.dot(a_ref[...], w_ref[...], preferred_element_type=jnp.float32)
    row = pl.multiple_of(i * TM, TM)
    y_sc[pl.ds(row, TM), :] = y                      # whole-layer y stays in VMEM
    sum_sc[...] += jnp.sum(y, axis=0, keepdims=True)
    sq_sc[...] += jnp.sum(y * y, axis=0, keepdims=True)

    @pl.when(i == pl.num_programs(0) - 1)
    def _():
        mean = sum_sc[...] * inv_m
        var = jnp.maximum(sq_sc[...] * inv_m - mean * mean, 0.0)  # guard cancellation
        scale = gamma_ref[...] * jax.lax.rsqrt(var + BN_EPS)
        shift = beta_ref[...] - mean * scale
        z = y_sc[...] * scale + shift
        o_ref[...] = jnp.where(z >= 0, z, NEG_SLOPE * z).astype(o_ref.dtype)


def _conv_bias_sigmoid_kernel(a_ref, w_ref, bias_ref, o_ref, y_sc):
    """Final 1x1 conv GEMM with fused output_bias add + sigmoid epilogue."""
    i = pl.program_id(0)
    y = jnp.dot(a_ref[...], w_ref[...], preferred_element_type=jnp.float32)
    row = pl.multiple_of(i * TM, TM)
    y_sc[pl.ds(row, TM), :] = y

    @pl.when(i == pl.num_programs(0) - 1)
    def _():
        v = y_sc[...] + bias_ref[...]
        o_ref[...] = 1.0 / (1.0 + jnp.exp(-v))


# ----------------------------------------------------------------------------
# Pallas wrappers
# ----------------------------------------------------------------------------
def conv_bn_lrelu(patches, wmat, gamma, beta, m_real):
    """patches: (Mpad, Kdim) bf16, wmat: (Kdim, C) bf16 -> bf16 (Mpad, C)."""
    Mpad, Kdim = patches.shape
    C = wmat.shape[1]
    grid = (Mpad // TM,)
    kernel = functools.partial(_conv_bn_lrelu_kernel, inv_m=1.0 / float(m_real))
    return pl.pallas_call(
        kernel,
        out_shape=jax.ShapeDtypeStruct((Mpad, C), jnp.bfloat16),
        grid_spec=pltpu.PrefetchScalarGridSpec(
            num_scalar_prefetch=0,
            grid=grid,
            in_specs=[
                pl.BlockSpec((TM, Kdim), lambda i: (i, 0)),
                pl.BlockSpec((Kdim, C), lambda i: (0, 0)),
                pl.BlockSpec((1, C), lambda i: (0, 0)),
                pl.BlockSpec((1, C), lambda i: (0, 0)),
            ],
            out_specs=pl.BlockSpec((Mpad, C), lambda i: (0, 0)),   # resident output
            scratch_shapes=[
                pltpu.VMEM((Mpad, C), jnp.float32),   # full-layer y (f32)
                pltpu.VMEM((1, C), jnp.float32),      # per-channel sum
                pltpu.VMEM((1, C), jnp.float32),      # per-channel sumsq
            ],
        ),
        compiler_params=pltpu.CompilerParams(
            dimension_semantics=("arbitrary",),
            vmem_limit_bytes=VMEM_LIMIT,
        ),
    )(patches, wmat, gamma.reshape(1, C), beta.reshape(1, C))


def conv_bias_sigmoid(patches, wmat, bias_full):
    """patches: (Mpad, Kdim) bf16, wmat: (Kdim, C) bf16, bias_full: (Mpad, C) f32."""
    Mpad, Kdim = patches.shape
    C = wmat.shape[1]
    grid = (Mpad // TM,)
    return pl.pallas_call(
        _conv_bias_sigmoid_kernel,
        out_shape=jax.ShapeDtypeStruct((Mpad, C), jnp.float32),
        grid_spec=pltpu.PrefetchScalarGridSpec(
            num_scalar_prefetch=0,
            grid=grid,
            in_specs=[
                pl.BlockSpec((TM, Kdim), lambda i: (i, 0)),
                pl.BlockSpec((Kdim, C), lambda i: (0, 0)),
                pl.BlockSpec((Mpad, C), lambda i: (0, 0)),
            ],
            out_specs=pl.BlockSpec((Mpad, C), lambda i: (0, 0)),
            scratch_shapes=[pltpu.VMEM((Mpad, C), jnp.float32)],
        ),
        compiler_params=pltpu.CompilerParams(
            dimension_semantics=("arbitrary",),
            vmem_limit_bytes=VMEM_LIMIT,
        ),
    )(patches, wmat, bias_full)


# ----------------------------------------------------------------------------
# Plain-JAX glue: ConvTranspose2d -> im2col GEMM lowering (bf16)
# ----------------------------------------------------------------------------
def conv_transpose_im2col(x_nhwc, K, stride):
    """Zero-insertion upsample + pad(K-1) + im2col (column order: p, q, cin)."""
    N, H, W, C = x_nhwc.shape
    Hu = (H - 1) * stride + 1
    Wu = (W - 1) * stride + 1
    if stride > 1:
        up = jnp.zeros((N, Hu, Wu, C), x_nhwc.dtype)
        up = up.at[:, ::stride, ::stride, :].set(x_nhwc)
    else:
        up = x_nhwc
    Ho = Hu + K - 1
    Wo = Wu + K - 1
    if K > 1:
        pad = K - 1
        xp = jnp.pad(up, ((0, 0), (pad, pad), (pad, pad), (0, 0)))
        slabs = [xp[:, p:p + Ho, q:q + Wo, :] for p in range(K) for q in range(K)]
        patches = jnp.concatenate(slabs, axis=-1)     # (N, Ho, Wo, K*K*C)
    else:
        patches = up
    return patches.reshape(N * Ho * Wo, K * K * C), (N, Ho, Wo)


def convt_weight_to_mat(wt):
    """PyTorch ConvTranspose2d weight (Cin, Cout, K, K) -> GEMM matrix (K*K*Cin, Cout)."""
    w_flip = wt[:, :, ::-1, ::-1]
    return jnp.transpose(w_flip, (2, 3, 0, 1)).reshape(-1, wt.shape[1])


def _pad_rows(a, Mpad):
    M = a.shape[0]
    if Mpad != M:
        a = jnp.pad(a, ((0, Mpad - M), (0, 0)))
    return a


def gen_layer(x_nhwc, wt, K, stride, gamma, beta):
    """ConvTranspose2d(bias=False) + BatchNorm2d(train-mode stats) + LeakyReLU."""
    patches, (N, Ho, Wo) = conv_transpose_im2col(x_nhwc, K, stride)
    M = patches.shape[0]
    Mpad = _round_up(M, TM)
    patches = _pad_rows(patches.astype(jnp.bfloat16), Mpad)
    wmat = convt_weight_to_mat(wt).astype(jnp.bfloat16)
    z = conv_bn_lrelu(patches, wmat, gamma, beta, M)
    return z[:M].reshape(N, Ho, Wo, -1)


def gen_final(x_nhwc, wt, output_bias_chw):
    """Final 1x1 ConvTranspose2d + output_bias + sigmoid (fused epilogue)."""
    patches, (N, Ho, Wo) = conv_transpose_im2col(x_nhwc, 1, 1)
    M = patches.shape[0]
    Mpad = _round_up(M, TM)
    patches = _pad_rows(patches.astype(jnp.bfloat16), Mpad)
    wmat = convt_weight_to_mat(wt).astype(jnp.bfloat16)
    C = wt.shape[1]
    bias_sc = jnp.transpose(output_bias_chw, (1, 2, 0)).reshape(Ho * Wo, C)
    bias_full = _pad_rows(jnp.tile(bias_sc, (N, 1)).astype(jnp.float32), Mpad)
    out = conv_bias_sigmoid(patches, wmat, bias_full)
    return out[:M].reshape(N, Ho, Wo, C)


def generator_forward(x_nchw, params):
    x = jnp.transpose(x_nchw, (0, 2, 3, 1)).astype(jnp.bfloat16)   # NCHW -> NHWC bf16
    for layer in params["layers"]:
        x = gen_layer(x, layer["w"], layer["k"], layer["s"],
                      layer["gamma"], layer["beta"])
    out_nhwc = gen_final(x, params["final_w"], params["output_bias"])
    return jnp.transpose(out_nhwc, (0, 3, 1, 2))                   # NHWC -> NCHW f32


# ----------------------------------------------------------------------------
# Deterministic parameter init (matches module __init__ shapes)
# ----------------------------------------------------------------------------
def init_params(key, representation_size, input_channels, imsize):
    cfgs = [
        (representation_size, 256, 8, 1),
        (256, 128, 4, 2),
        (128, 64, 4, 1),
        (64, 32, 4, 2),
        (32, 32, 5, 1),
        (32, 32, 1, 1),
    ]
    layers = []
    for (cin, cout, k, s) in cfgs:
        key, wk = jax.random.split(key)
        w = 0.05 * jax.random.normal(wk, (cin, cout, k, k), jnp.float32)
        layers.append(dict(
            w=w, k=k, s=s,
            gamma=jnp.ones((cout,), jnp.float32),        # BatchNorm2d default weight
            beta=jnp.zeros((cout,), jnp.float32),        # BatchNorm2d default bias
        ))
    key, wk = jax.random.split(key)
    final_w = 0.05 * jax.random.normal(wk, (32, input_channels, 1, 1), jnp.float32)
    output_bias = jnp.zeros((input_channels, imsize, imsize), jnp.float32)
    return dict(layers=layers, final_w=final_w, output_bias=output_bias)


if __name__ == "__main__":
    representation_size = 16
    input_channels = 3
    imsize = 48                                          # architecture forces 48x48
    batch = 2

    key = jax.random.PRNGKey(0)
    key, xk = jax.random.split(key)
    params = init_params(key, representation_size, input_channels, imsize)
    x = jax.random.normal(xk, (batch, representation_size, 1, 1), jnp.float32)

    out = generator_forward(x, params)
    out = jax.block_until_ready(out)

    assert out.shape == (batch, input_channels, imsize, imsize), out.shape
    assert bool(jnp.all(jnp.isfinite(out)))
    assert bool(jnp.all((out >= 0.0) & (out <= 1.0)))    # sigmoid range
    print("KERNEL_OK")
</pallas_src>

<mosaic_0001>
module attributes {stable_mosaic.version = 11 : i64} {
  func.func @_conv_bn_lrelu_kernel(%arg0: i32, %arg1: memref<512x1024xbf16, #tpu.memory_space<vmem>>, %arg2: memref<1024x256xbf16, #tpu.memory_space<vmem>>, %arg3: memref<1x256xf32, #tpu.memory_space<vmem>>, %arg4: memref<1x256xf32, #tpu.memory_space<vmem>>, %arg5: memref<512x256xbf16, #tpu.memory_space<vmem>>, %arg6: memref<512x256xf32, #tpu.memory_space<vmem>>, %arg7: memref<1x256xf32, #tpu.memory_space<vmem>>, %arg8: memref<1x256xf32, #tpu.memory_space<vmem>>) attributes {dimension_semantics = [#tpu.dimension_semantics<arbitrary>], iteration_bounds = array<i64: 1>, scalar_prefetch = 0 : i64, scratch_operands = 3 : i64, tpu.core_type = #tpu.core_type<tc>, window_params = [{transform_indices = @transform_0, window_bounds = array<i64: 512, 1024>}, {pipeline_mode = #tpu.pipeline_mode<synchronous>, transform_indices = @transform_1, window_bounds = array<i64: 1024, 256>}, {pipeline_mode = #tpu.pipeline_mode<synchronous>, transform_indices = @transform_2, window_bounds = array<i64: 1, 256>}, {pipeline_mode = #tpu.pipeline_mode<synchronous>, transform_indices = @transform_3, window_bounds = array<i64: 1, 256>}, {pipeline_mode = #tpu.pipeline_mode<synchronous>, transform_indices = @transform_4, window_bounds = array<i64: 512, 256>}]} {
    %c0_i32 = arith.constant 0 : i32
    %0 = arith.cmpi eq, %arg0, %c0_i32 : i32
    %1 = arith.extui %0 : i1 to i32
    %c0_i32_0 = arith.constant 0 : i32
    %2 = arith.cmpi ne, %1, %c0_i32_0 : i32
    scf.if %2 {
      %cst_17 = arith.constant 0.000000e+00 : f32
      %24 = vector.broadcast %cst_17 : f32 to vector<1x256xf32>
      %c0_18 = arith.constant 0 : index
      %c0_19 = arith.constant 0 : index
      %25 = vector.load %arg7[%c0_18, %c0_19] : memref<1x256xf32, #tpu.memory_space<vmem>>, vector<1x256xf32>
      tpu.vector_store %arg7[%c0_18, %c0_19], %24 {strides = array<i32>} : memref<1x256xf32, #tpu.memory_space<vmem>>, vector<1x256xf32>,
      %cst_20 = arith.constant 0.000000e+00 : f32
      %26 = vector.broadcast %cst_20 : f32 to vector<1x256xf32>
      %c0_21 = arith.constant 0 : index
      %c0_22 = arith.constant 0 : index
      %27 = vector.load %arg8[%c0_21, %c0_22] : memref<1x256xf32, #tpu.memory_space<vmem>>, vector<1x256xf32>
      tpu.vector_store %arg8[%c0_21, %c0_22], %26 {strides = array<i32>} : memref<1x256xf32, #tpu.memory_space<vmem>>, vector<1x256xf32>,
    } else {
    }
    %c0 = arith.constant 0 : index
    %c0_1 = arith.constant 0 : index
    %3 = vector.load %arg1[%c0, %c0_1] : memref<512x1024xbf16, #tpu.memory_space<vmem>>, vector<512x1024xbf16>
    %c0_2 = arith.constant 0 : index
    %c0_3 = arith.constant 0 : index
    %4 = vector.load %arg2[%c0_2, %c0_3] : memref<1024x256xbf16, #tpu.memory_space<vmem>>, vector<1024x256xbf16>
    %cst = arith.constant dense<0.000000e+00> : vector<512x256xf32>
    %5 = tpu.matmul %3, %4, %cst {dimension_numbers = #tpu.dot_dimension_numbers<[1], [0], [0], [1], [0, 0, 1, 1], [], []>} : vector<512x1024xbf16>, vector<1024x256xbf16>, vector<512x256xf32> -> vector<512x256xf32>
    %c512_i32 = arith.constant 512 : i32
    %6 = arith.muli %arg0, %c512_i32 : i32
    %7 = tpu.assume_multiple %6, 512 : i32
    %8 = arith.index_cast %7 : i32 to index
    %c0_4 = arith.constant 0 : index
    %9 = vector.load %arg6[%8, %c0_4] : memref<512x256xf32, #tpu.memory_space<vmem>>, vector<512x256xf32>
    tpu.vector_store %arg6[%8, %c0_4], %5 {strides = array<i32>} : memref<512x256xf32, #tpu.memory_space<vmem>>, vector<512x256xf32>,
    %c0_5 = arith.constant 0 : index
    %c0_6 = arith.constant 0 : index
    %10 = vector.load %arg7[%c0_5, %c0_6] : memref<1x256xf32, #tpu.memory_space<vmem>>, vector<1x256xf32>
    %cst_7 = arith.constant dense<0.000000e+00> : vector<256xf32>
    %11 = vector.multi_reduction <add>, %5, %cst_7 [0] : vector<512x256xf32> to vector<256xf32>
    %12 = vector.shape_cast %11 : vector<256xf32> to vector<1x256xf32>
    %13 = arith.addf %10, %12 : vector<1x256xf32>
    %c0_8 = arith.constant 0 : index
    %c0_9 = arith.constant 0 : index
    %14 = vector.load %arg7[%c0_8, %c0_9] : memref<1x256xf32, #tpu.memory_space<vmem>>, vector<1x256xf32>
    tpu.vector_store %arg7[%c0_8, %c0_9], %13 {strides = array<i32>} : memref<1x256xf32, #tpu.memory_space<vmem>>, vector<1x256xf32>,
    %c0_10 = arith.constant 0 : index
    %c0_11 = arith.constant 0 : index
    %15 = vector.load %arg8[%c0_10, %c0_11] : memref<1x256xf32, #tpu.memory_space<vmem>>, vector<1x256xf32>
    %16 = arith.mulf %5, %5 : vector<512x256xf32>
    %cst_12 = arith.constant dense<0.000000e+00> : vector<256xf32>
    %17 = vector.multi_reduction <add>, %16, %cst_12 [0] : vector<512x256xf32> to vector<256xf32>
    %18 = vector.shape_cast %17 : vector<256xf32> to vector<1x256xf32>
    %19 = arith.addf %15, %18 : vector<1x256xf32>
    %c0_13 = arith.constant 0 : index
    %c0_14 = arith.constant 0 : index
    %20 = vector.load %arg8[%c0_13, %c0_14] : memref<1x256xf32, #tpu.memory_space<vmem>>, vector<1x256xf32>
    tpu.vector_store %arg8[%c0_13, %c0_14], %19 {strides = array<i32>} : memref<1x256xf32, #tpu.memory_space<vmem>>, vector<1x256xf32>,
    %c0_i32_15 = arith.constant 0 : i32
    %21 = arith.cmpi eq, %arg0, %c0_i32_15 : i32
    %22 = arith.extui %21 : i1 to i32
    %c0_i32_16 = arith.constant 0 : i32
    %23 = arith.cmpi ne, %22, %c0_i32_16 : i32
    scf.if %23 {
      %c0_17 = arith.constant 0 : index
      %c0_18 = arith.constant 0 : index
      %24 = vector.load %arg7[%c0_17, %c0_18] : memref<1x256xf32, #tpu.memory_space<vmem>>, vector<1x256xf32>
      %cst_19 = arith.constant 7.812500e-03 : f32
      %25 = vector.broadcast %cst_19 : f32 to vector<1x256xf32>
      %26 = arith.mulf %24, %25 : vector<1x256xf32>
      %c0_20 = arith.constant 0 : index
      %c0_21 = arith.constant 0 : index
      %27 = vector.load %arg8[%c0_20, %c0_21] : memref<1x256xf32, #tpu.memory_space<vmem>>, vector<1x256xf32>
      %cst_22 = arith.constant 7.812500e-03 : f32
      %28 = vector.broadcast %cst_22 : f32 to vector<1x256xf32>
      %29 = arith.mulf %27, %28 : vector<1x256xf32>
      %30 = arith.mulf %26, %26 : vector<1x256xf32>
      %31 = arith.subf %29, %30 : vector<1x256xf32>
      %cst_23 = arith.constant 0.000000e+00 : f32
      %32 = vector.broadcast %cst_23 : f32 to vector<1x256xf32>
      %33 = arith.maximumf %31, %32 : vector<1x256xf32>
      %c0_24 = arith.constant 0 : index
      %c0_25 = arith.constant 0 : index
      %34 = vector.load %arg3[%c0_24, %c0_25] : memref<1x256xf32, #tpu.memory_space<vmem>>, vector<1x256xf32>
      %cst_26 = arith.constant 9.99999974E-6 : f32
      %35 = vector.broadcast %cst_26 : f32 to vector<1x256xf32>
      %36 = arith.addf %33, %35 : vector<1x256xf32>
      %37 = math.rsqrt %36 : vector<1x256xf32>
      %38 = arith.mulf %34, %37 : vector<1x256xf32>
      %c0_27 = arith.constant 0 : index
      %c0_28 = arith.constant 0 : index
      %39 = vector.load %arg4[%c0_27, %c0_28] : memref<1x256xf32, #tpu.memory_space<vmem>>, vector<1x256xf32>
      %40 = arith.mulf %26, %38 : vector<1x256xf32>
      %41 = arith.subf %39, %40 : vector<1x256xf32>
      %c0_29 = arith.constant 0 : index
      %c0_30 = arith.constant 0 : index
      %42 = vector.load %arg6[%c0_29, %c0_30] : memref<512x256xf32, #tpu.memory_space<vmem>>, vector<512x256xf32>
      %43 = vector.broadcast %38 : vector<1x256xf32> to vector<512x256xf32>
      %44 = arith.mulf %42, %43 : vector<512x256xf32>
      %45 = vector.broadcast %41 : vector<1x256xf32> to vector<512x256xf32>
      %46 = arith.addf %44, %45 : vector<512x256xf32>
      %cst_31 = arith.constant 0.000000e+00 : f32
      %47 = vector.broadcast %cst_31 : f32 to vector<512x256xf32>
      %48 = arith.cmpf oge, %46, %47 : vector<512x256xf32>
      %cst_32 = arith.constant 0.00999999977 : f32
      %49 = vector.broadcast %cst_32 : f32 to vector<512x256xf32>
      %50 = arith.mulf %49, %46 : vector<512x256xf32>
      %51 = arith.select %48, %46, %50 : vector<512x256xi1>, vector<512x256xf32>
      %52 = arith.truncf %51 : vector<512x256xf32> to vector<512x256xbf16>
      %c0_33 = arith.constant 0 : index
      %c0_34 = arith.constant 0 : index
      %53 = vector.load %arg5[%c0_33, %c0_34] : memref<512x256xbf16, #tpu.memory_space<vmem>>, vector<512x256xbf16>
      tpu.vector_store %arg5[%c0_33, %c0_34], %52 {strides = array<i32>} : memref<512x256xbf16, #tpu.memory_space<vmem>>, vector<512x256xbf16>,
    } else {
    }
    return
  }
  func.func @transform_0(%arg0: i32) -> (i32, i32) {
    %c0_i32 = arith.constant 0 : i32
    %c0_i32_0 = arith.constant 0 : i32
    return %arg0, %c0_i32 : i32, i32
  }
  func.func @transform_1(%arg0: i32) -> (i32, i32) {
    %c0_i32 = arith.constant 0 : i32
    %c0_i32_0 = arith.constant 0 : i32
    %c0_i32_1 = arith.constant 0 : i32
    return %c0_i32, %c0_i32_0 : i32, i32
  }
  func.func @transform_2(%arg0: i32) -> (i32, i32) {
    %c0_i32 = arith.constant 0 : i32
    %c0_i32_0 = arith.constant 0 : i32
    %c0_i32_1 = arith.constant 0 : i32
    return %c0_i32, %c0_i32_0 : i32, i32
  }
  func.func @transform_3(%arg0: i32) -> (i32, i32) {
    %c0_i32 = arith.constant 0 : i32
    %c0_i32_0 = arith.constant 0 : i32
    %c0_i32_1 = arith.constant 0 : i32
    return %c0_i32, %c0_i32_0 : i32, i32
  }
  func.func @transform_4(%arg0: i32) -> (i32, i32) {
    %c0_i32 = arith.constant 0 : i32
    %c0_i32_0 = arith.constant 0 : i32
    %c0_i32_1 = arith.constant 0 : i32
    return %c0_i32, %c0_i32_0 : i32, i32
  }
}

</mosaic_0001>

<bundles_post_ra>
// kernel: tpu_custom_call.1
= control target key start
LH: loop header
LB: loop body
LE: loop exit
PB: predicated region body
PF: predicated region fallthrough
CT: control target
= control target key end

     0   :  { %9 = vsyncpa [#allocation6], 0  ;;  %s13222_s0 = inlined_call_operand.hbm [shape: bf16[512,1024], index: 0, kind: input, shape index: {}]   ;;  %s13223_s1 = inlined_call_operand.hbm [shape: bf16[1024,256], index: 1, kind: input, shape index: {}]   ;;  %s13224_s2 = inlined_call_operand.hbm [shape: f32[1,256], index: 2, kind: input, shape index: {}]   ;;  %s13225_s3 = inlined_call_operand.vmem [shape: f32[1,256], index: 3, kind: input, shape index: {}]   ;;  %s13226_s4 = inlined_call_operand.hbm [shape: bf16[512,256], index: 4, kind: output, shape index: {}]  }
   0x1   :  { %10 = vsyncpa [#allocation9], 0  ;;  %s29_s17 = sshll.u32 %s13223_s1, 4  ;;  %s30_s17 = int_to_ptr.hbm [resolvable:$true] %s29_s17 }
   0x2   :  { %11 = vsyncpa [#allocation7], 0  ;;  %s8627_s18 = smov [#allocation8]   ;;  %s16_s22 = sshll.u32 %s13222_s0, 4  ;;  %s17_s22 = int_to_ptr.hbm [resolvable:$true] %s16_s22 }
   0x3   :  { %s31_s19 = sshll.u32 %s8627_s18, 4  ;;  %s8628_s23 = smov 128   ;;  %s32_s19 = int_to_ptr.vmem [resolvable:$true] %s31_s19 }
   0x4   :  { %s8629_s24 = smov 8   ;;  %s8630_s25 = smov [#allocation5]  }
   0x5   :  { %37 = dma.hbm_to_vmem [thread:$0]  %s30_s17, 16384, %s32_s19, [#allocation9], %s8628_s23, %s8628_s23, %s8629_s24  }
   0x6   :  { %s18_s26 = sshll.u32 %s8630_s25, 4  ;;  %s8631_s1 = smov 512   ;;  %s19_s26 = int_to_ptr.vmem [resolvable:$true] %s18_s26 }
   0x7   :  { %s8632_s27 = smov 32   ;;  %s43_s30 = sshll.u32 %s13224_s2, 4  ;;  %s44_s30 = int_to_ptr.hbm [resolvable:$true] %s43_s30 }
   0x8   :  { %24 = dma.hbm_to_vmem [thread:$0]  %s17_s22, 32768, %s19_s26, [#allocation6], %s8631_s1, %s8631_s1, %s8632_s27  }
   0x9   :  { %s8633_s5 = smov [#allocation10]  }
   0xa   :  { %s45_s0 = sshll.u32 %s8633_s5, 4  ;;  %s46_s0 = int_to_ptr.vmem [resolvable:$true] %s45_s0 }
   0xb   :  { %48 = dma.hbm_to_vmem [thread:$0]  %s44_s30, 32, %s46_s0, [#allocation9]  }
   0xc   :  { %8621 = dma.done.wait [#allocation6], 32768  }
   0xd   :  { %8622 = vsyncadd [#allocation6], 4294934528 }
   0xe   :  { %8623 = dma.done.wait [#allocation9], 16416  }
   0xf   :  { %8624 = vsyncadd [#allocation9], 4294950880  ;;  %v7676_v0 = vld [vmem:[#allocation8 + $0x70] sm:$0xf]  ;;  %v8401_v1 = vld [vmem:[#allocation8 + $0x74] sm:$0xf0] }
  0x10   :  { %v7740_v2 = vld [vmem:[#allocation8 + $0xf0] sm:$0xf]  ;;  %v7677_v3 = vor.u32 %v8401_v1, %v7676_v0  ;;  %v8417_v4 = vld [vmem:[#allocation8 + $0xf4] sm:$0xf0]  ;;  %v7668_v11 = vld [vmem:[#allocation8 + $0x60] sm:$0xf] }
  0x11   :  { %v7804_v5 = vld [vmem:[#allocation8 + $0x170] sm:$0xf]  ;;  %v8433_v6 = vld [vmem:[#allocation8 + $0x174] sm:$0xf0]  ;;  %v7741_v7 = vor.u32 %v8417_v4, %v7740_v2  ;;  %v8399_v13 = vld [vmem:[#allocation8 + $0x64] sm:$0xf0] }
  0x12   :  { %v7805_v8 = vor.u32 %v8433_v6, %v7804_v5  ;;  %v7868_v9 = vld [vmem:[#allocation8 + $0x1f0] sm:$0xf]  ;;  %v8449_v10 = vld [vmem:[#allocation8 + $0x1f4] sm:$0xf0]  ;;  %2377 = vmatpush.bf16.msra.mxu0 %v7677_v3  ;;  %v7732_v14 = vld [vmem:[#allocation8 + $0xe0] sm:$0xf]  ;;  %v7669_v16 = vor.u32 %v8399_v13, %v7668_v11 }
  0x13   :  { %v7869_v12 = vor.u32 %v8449_v10, %v7868_v9  ;;  %v8415_v15 = vld [vmem:[#allocation8 + $0xe4] sm:$0xf0]  ;;  %2546 = vmatpush.bf16.msra.mxu1 %v7741_v7  ;;  %v7796_v18 = vld [vmem:[#allocation8 + $0x160] sm:$0xf]  ;;  %v7660_v23 = vld [vmem:[#allocation8 + $0x50] sm:$0xf] }
  0x14   :  { %2715 = vmatpush.bf16.msra.mxu2 %v7805_v8  ;;  %v7733_v17 = vor.u32 %v8415_v15, %v7732_v14  ;;  %v8431_v19 = vld [vmem:[#allocation8 + $0x164] sm:$0xf0]  ;;  %v7860_v20 = vld [vmem:[#allocation8 + $0x1e0] sm:$0xf]  ;;  %v8397_v24 = vld [vmem:[#allocation8 + $0x54] sm:$0xf0] }
  0x15   :  { %2884 = vmatpush.bf16.msra.mxu3 %v7869_v12  ;;  %v7797_v21 = vor.u32 %v8431_v19, %v7796_v18  ;;  %v8447_v22 = vld [vmem:[#allocation8 + $0x1e4] sm:$0xf0]  ;;  %v7724_v26 = vld [vmem:[#allocation8 + $0xd0] sm:$0xf]  ;;  %v8413_v27 = vld [vmem:[#allocation8 + $0xd4] sm:$0xf0]  ;;  %v7661_v29 = vor.u32 %v8397_v24, %v7660_v23 }
  0x16   :  { %v7861_v25 = vor.u32 %v8447_v22, %v7860_v20  ;;  %v7788_v28 = vld [vmem:[#allocation8 + $0x150] sm:$0xf]  ;;  %2378 = vmatpush.bf16.msra.mxu0 %v7669_v16  ;;  %v8429_v30 = vld [vmem:[#allocation8 + $0x154] sm:$0xf0]  ;;  %v7725_v33 = vor.u32 %v8413_v27, %v7724_v26  ;;  %v7652_v35 = vld [vmem:[#allocation8 + $0x40] sm:$0xf] }
  0x17   :  { %v7852_v31 = vld [vmem:[#allocation8 + $0x1d0] sm:$0xf]  ;;  %v8445_v32 = vld [vmem:[#allocation8 + $0x1d4] sm:$0xf0]  ;;  %2547 = vmatpush.bf16.msra.mxu1 %v7733_v17  ;;  %v7789_v34 = vor.u32 %v8429_v30, %v7788_v28  ;;  %v8395_v36 = vld [vmem:[#allocation8 + $0x44] sm:$0xf0] }
  0x18   :  { %2716 = vmatpush.bf16.msra.mxu2 %v7797_v21  ;;  %v7716_v37 = vld [vmem:[#allocation8 + $0xc0] sm:$0xf]  ;;  %v7853_v38 = vor.u32 %v8445_v32, %v7852_v31  ;;  %v8411_v39 = vld [vmem:[#allocation8 + $0xc4] sm:$0xf0]  ;;  %v7653_v44 = vor.u32 %v8395_v36, %v7652_v35  ;;  %v7644_v47 = vld [vmem:[#allocation8 + $0x30] sm:$0xf] }
  0x19   :  { %2885 = vmatpush.bf16.msra.mxu3 %v7861_v25  ;;  %v7780_v40 = vld [vmem:[#allocation8 + $0x140] sm:$0xf]  ;;  %v8427_v41 = vld [vmem:[#allocation8 + $0x144] sm:$0xf0]  ;;  %v7717_v45 = vor.u32 %v8411_v39, %v7716_v37  ;;  %v8393_v48 = vld [vmem:[#allocation8 + $0x34] sm:$0xf0] }
  0x1a   :  { %v7844_v42 = vld [vmem:[#allocation8 + $0x1c0] sm:$0xf]  ;;  %v8443_v43 = vld [vmem:[#allocation8 + $0x1c4] sm:$0xf0]  ;;  %2379 = vmatpush.bf16.msra.mxu0 %v7661_v29  ;;  %v7781_v46 = vor.u32 %v8427_v41, %v7780_v40  ;;  %v7708_v49 = vld [vmem:[#allocation8 + $0xb0] sm:$0xf]  ;;  %v7645_v56 = vor.u32 %v8393_v48, %v7644_v47 }
  0x1b   :  { %2548 = vmatpush.bf16.msra.mxu1 %v7725_v33  ;;  %v7845_v50 = vor.u32 %v8443_v43, %v7844_v42  ;;  %v8409_v51 = vld [vmem:[#allocation8 + $0xb4] sm:$0xf0]  ;;  %v7772_v52 = vld [vmem:[#allocation8 + $0x130] sm:$0xf]  ;;  %v7636_v59 = vld [vmem:[#allocation8 + $0x20] sm:$0xf] }
  0x1c   :  { %2717 = vmatpush.bf16.msra.mxu2 %v7789_v34  ;;  %v8425_v53 = vld [vmem:[#allocation8 + $0x134] sm:$0xf0]  ;;  %v7836_v54 = vld [vmem:[#allocation8 + $0x1b0] sm:$0xf]  ;;  %v7709_v57 = vor.u32 %v8409_v51, %v7708_v49  ;;  %v8391_v60 = vld [vmem:[#allocation8 + $0x24] sm:$0xf0] }
  0x1d   :  { %2886 = vmatpush.bf16.msra.mxu3 %v7853_v38  ;;  %v8441_v55 = vld [vmem:[#allocation8 + $0x1b4] sm:$0xf0]  ;;  %v7773_v58 = vor.u32 %v8425_v53, %v7772_v52  ;;  %v7700_v61 = vld [vmem:[#allocation8 + $0xa0] sm:$0xf]  ;;  %v8407_v63 = vld [vmem:[#allocation8 + $0xa4] sm:$0xf0]  ;;  %v7637_v4 = vor.u32 %v8391_v60, %v7636_v59 }
  0x1e   :  { %2380 = vmatpush.bf16.msra.mxu0 %v7653_v44  ;;  %v7837_v62 = vor.u32 %v8441_v55, %v7836_v54  ;;  %v7764_v0 = vld [vmem:[#allocation8 + $0x120] sm:$0xf]  ;;  %v8423_v1 = vld [vmem:[#allocation8 + $0x124] sm:$0xf0]  ;;  %v7701_v5 = vor.u32 %v8407_v63, %v7700_v61  ;;  %v7628_v7 = vld [vmem:[#allocation8 + $0x10] sm:$0xf] }
  0x1f   :  { %2549 = vmatpush.bf16.msra.mxu1 %v7717_v45  ;;  %v7828_v2 = vld [vmem:[#allocation8 + $0x1a0] sm:$0xf]  ;;  %v8439_v3 = vld [vmem:[#allocation8 + $0x1a4] sm:$0xf0]  ;;  %v7765_v6 = vor.u32 %v8423_v1, %v7764_v0  ;;  %v8389_v8 = vld [vmem:[#allocation8 + $0x14] sm:$0xf0] }
  0x20   :  { %2718 = vmatpush.bf16.msra.mxu2 %v7781_v46  ;;  %v7692_v9 = vld [vmem:[#allocation8 + $0x90] sm:$0xf]  ;;  %v7829_v10 = vor.u32 %v8439_v3, %v7828_v2  ;;  %v8405_v11 = vld [vmem:[#allocation8 + $0x94] sm:$0xf0]  ;;  %v7620_v16 = vld [vmem:[#allocation8] sm:$0xf]  ;;  %v7629_v17 = vor.u32 %v8389_v8, %v7628_v7 }
  0x21   :  { %2887 = vmatpush.bf16.msra.mxu3 %v7845_v50  ;;  %v7756_v12 = vld [vmem:[#allocation8 + $0x110] sm:$0xf]  ;;  %v8421_v13 = vld [vmem:[#allocation8 + $0x114] sm:$0xf0]  ;;  %v8387_v18 = vld [vmem:[#allocation8 + $0x4] sm:$0xf0]  ;;  %v7693_v21 = vor.u32 %v8405_v11, %v7692_v9 }
  0x22   :  { %2381 = vmatpush.bf16.msra.mxu0 %v7645_v56  ;;  %v7820_v14 = vld [vmem:[#allocation8 + $0x190] sm:$0xf]  ;;  %v8437_v15 = vld [vmem:[#allocation8 + $0x194] sm:$0xf0]  ;;  %v7684_v19 = vld [vmem:[#allocation8 + $0x80] sm:$0xf]  ;;  %v7757_v22 = vor.u32 %v8421_v13, %v7756_v12  ;;  %v7621_v33 = vor.u32 %v8387_v18, %v7620_v16 }
  0x23   :  { %2550 = vmatpush.bf16.msra.mxu1 %v7709_v57  ;;  %v8403_v20 = vld [vmem:[#allocation8 + $0x84] sm:$0xf0]  ;;  %v7748_v23 = vld [vmem:[#allocation8 + $0x100] sm:$0xf]  ;;  %v7821_v26 = vor.u32 %v8437_v15, %v7820_v14  ;;  %v8130_v30 = vld [vmem:[#allocation5 + $0x4] sm:$0xf] }
  0x24   :  { %2719 = vmatpush.bf16.msra.mxu2 %v7773_v58  ;;  %v8419_v24 = vld [vmem:[#allocation8 + $0x104] sm:$0xf0]  ;;  %v7812_v25 = vld [vmem:[#allocation8 + $0x180] sm:$0xf]  ;;  %v8060_v31 = vld [vmem:[#allocation8 + $0x370] sm:$0xf]  ;;  %v7685_v37 = vor.u32 %v8403_v20, %v7684_v19 }
  0x25   :  { %2888 = vmatpush.bf16.msra.mxu3 %v7837_v62  ;;  %v8435_v27 = vld [vmem:[#allocation8 + $0x184] sm:$0xf0]  ;;  %v6596_v28 = vld [vmem:[#allocation5] sm:$0xf]  ;;  %v8497_v32 = vld [vmem:[#allocation8 + $0x374] sm:$0xf0]  ;;  %v7749_v38 = vor.u32 %v8419_v24, %v7748_v23 }
  0x26   :  { %2382 = vmatpush.bf16.msra.mxu0 %v7637_v4  ;;  %v8134_v29 = vld [vmem:[#allocation5 + $0x1c] sm:$0xf0]  ;;  %v6598_v34 = vld [vmem:[#allocation5 + $0x20] sm:$0xf0]  ;;  %v8124_v35 = vld [vmem:[#allocation8 + $0x3f0] sm:$0xf]  ;;  %v7813_v42 = vor.u32 %v8435_v27, %v7812_v25  ;;  %v8061_v44 = vor.u32 %v8497_v32, %v8060_v31 }
  0x27   :  { %2551 = vmatpush.bf16.msra.mxu1 %v7701_v5  ;;  %v8513_v36 = vld [vmem:[#allocation8 + $0x3f4] sm:$0xf0]  ;;  %v6604_v39 = vld [vmem:[#allocation5 + $0x8] sm:$0xf]  ;;  %v8131_v41 = vld [vmem:[#allocation5 + $0xc] sm:$0xf]  ;;  %v8673_v47 = vor.u32 %v8134_v29, %v6596_v28  ;;  %v8675_v51 = vor.u32 %v8130_v30, %v6598_v34 }
  0x28   :  { %2720 = vmatpush.bf16.msra.mxu2 %v7765_v6  ;;  %v8135_v40 = vld [vmem:[#allocation5 + $0x24] sm:$0xf0]  ;;  %v6606_v43 = vld [vmem:[#allocation5 + $0x28] sm:$0xf0]  ;;  %v7932_v45 = vld [vmem:[#allocation8 + $0x270] sm:$0xf]  ;;  %v8125_v48 = vor.u32 %v8513_v36, %v8124_v35 }
  0x29   :  { %2889 = vmatpush.bf16.msra.mxu3 %v7829_v10  ;;  %v8465_v46 = vld [vmem:[#allocation8 + $0x274] sm:$0xf0]  ;;  %13737 = vst [vmem:[#allocation15_spill] sm:$0xff] %v8673_v47  ;;  %v7996_v49 = vld [vmem:[#allocation8 + $0x2f0] sm:$0xf]  ;;  %v8677_v52 = vor.u32 %v8135_v40, %v6604_v39  ;;  %v8679_v53 = vor.u32 %v8131_v41, %v6606_v43  ;;  %vm5357_vm1 = vcmask 1040384  }
  0x2a   :  { %2383 = vmatpush.bf16.msra.mxu0 %v7629_v17  ;;  %v8481_v50 = vld [vmem:[#allocation8 + $0x2f4] sm:$0xf0]  ;;  %13738 = vst [vmem:[#allocation16_spill] sm:$0xff] %v8675_v51  ;;  %v7933_v54 = vor.u32 %v8465_v46, %v7932_v45  ;;  %v6628_v56 = vld [vmem:[#allocation5 + $0x40] sm:$0xf]  ;;  %s6578_s10 = sshll.u32 %s13226_s4, 4  ;;  %s6579_s10 = int_to_ptr.hbm [resolvable:$true] %s6578_s10 }
  0x2b   :  { %2552 = vmatpush.bf16.msra.mxu1 %v7693_v21  ;;  %13739 = vst [vmem:[#allocation17_spill] sm:$0xff] %v8677_v52  ;;  %v7997_v55 = vor.u32 %v8481_v50, %v7996_v49  ;;  %v8142_v57 = vld [vmem:[#allocation5 + $0x5c] sm:$0xf0]  ;;  %v8138_v58 = vld [vmem:[#allocation5 + $0x44] sm:$0xf] }
  0x2c   :  { %2721 = vmatpush.bf16.msra.mxu2 %v7757_v22  ;;  %13740 = vst [vmem:[#allocation18_spill] sm:$0xff] %v8679_v53  ;;  %v6630_v59 = vld [vmem:[#allocation5 + $0x60] sm:$0xf0]  ;;  %v6636_v60 = vld [vmem:[#allocation5 + $0x48] sm:$0xf]  ;;  %v8685_v0 = vor.u32 %v8142_v57, %v6628_v56 }
  0x2d   :  { %2890 = vmatpush.bf16.msra.mxu3 %v7821_v26  ;;  %v8143_v61 = vld [vmem:[#allocation5 + $0x64] sm:$0xf0]  ;;  %v8139_v62 = vld [vmem:[#allocation5 + $0x4c] sm:$0xf]  ;;  %v8687_v1 = vor.u32 %v8138_v58, %v6630_v59  ;;  %v6660_v4 = vld [vmem:[#allocation5 + $0x80] sm:$0xf] }
  0x2e   :  { %2384 = vmatpush.bf16.msra.mxu0 %v7621_v33  ;;  %v6638_v63 = vld [vmem:[#allocation5 + $0x68] sm:$0xf0]  ;;  %13741 = vst [vmem:[#allocation19_spill] sm:$0xff] %v8685_v0  ;;  %v8689_v2 = vor.u32 %v8143_v61, %v6636_v60  ;;  %v8150_v5 = vld [vmem:[#allocation5 + $0x9c] sm:$0xf0] }
  0x2f   :  { %2553 = vmatpush.bf16.msra.mxu1 %v7685_v37  ;;  %13742 = vst [vmem:[#allocation20_spill] sm:$0xff] %v8687_v1  ;;  %v8691_v3 = vor.u32 %v8139_v62, %v6638_v63  ;;  %v8146_v6 = vld [vmem:[#allocation5 + $0x84] sm:$0xf]  ;;  %v6668_v8 = vld [vmem:[#allocation5 + $0x88] sm:$0xf]  ;;  %v8697_v12 = vor.u32 %v8150_v5, %v6660_v4 }
  0x30   :  { %2722 = vmatpush.bf16.msra.mxu2 %v7749_v38  ;;  %13743 = vst [vmem:[#allocation21_spill] sm:$0xff] %v8689_v2  ;;  %v6662_v7 = vld [vmem:[#allocation5 + $0xa0] sm:$0xf0]  ;;  %v8151_v9 = vld [vmem:[#allocation5 + $0xa4] sm:$0xf0] }
  0x31   :  { %2891 = vmatpush.bf16.msra.mxu3 %v7813_v42  ;;  %2385 = vmatmul.bf16.vlgmr.msra.gmra.mxu0 %v8673_v47  ;;  %13744 = vst [vmem:[#allocation22_spill] sm:$0xff] %v8691_v3  ;;  %v8147_v10 = vld [vmem:[#allocation5 + $0x8c] sm:$0xf]  ;;  %v8699_v13 = vor.u32 %v8146_v6, %v6662_v7  ;;  %v8701_v14 = vor.u32 %v8151_v9, %v6668_v8  ;;  %v8052_v16 = vld [vmem:[#allocation8 + $0x360] sm:$0xf] }
  0x32   :  { %2554 = vmatmul.bf16.vlgmr.msra.gmra.mxu1 %v8675_v51  ;;  %3053 = vmatpush.bf16.msrb.mxu0 %v7933_v54  ;;  %v6670_v11 = vld [vmem:[#allocation5 + $0xa8] sm:$0xf0]  ;;  %13745 = vst [vmem:[#allocation23_spill] sm:$0xff] %v8697_v12  ;;  %v8495_v17 = vld [vmem:[#allocation8 + $0x364] sm:$0xf0] }
  0x33   :  { %2723 = vmatmul.bf16.vlgmr.msra.gmra.mxu2 %v8677_v52  ;;  %3222 = vmatpush.bf16.msrb.mxu1 %v7997_v55  ;;  %13746 = vst [vmem:[#allocation24_spill] sm:$0xff] %v8699_v13  ;;  %v8703_v15 = vor.u32 %v8147_v10, %v6670_v11  ;;  %v7924_v18 = vld [vmem:[#allocation8 + $0x260] sm:$0xf]  ;;  %v8053_v19 = vor.u32 %v8495_v17, %v8052_v16  ;;  %v8463_v20 = vld [vmem:[#allocation8 + $0x264] sm:$0xf0] }
  0x34   :  { %3391 = vmatpush.bf16.msrb.mxu2 %v8061_v44  ;;  %2892 = vmatmul.bf16.vlgmr.msra.gmra.mxu3 %v8679_v53  ;;  %13747 = vst [vmem:[#allocation25_spill] sm:$0xff] %v8701_v14  ;;  %v8116_v21 = vld [vmem:[#allocation8 + $0x3e0] sm:$0xf]  ;;  %v8511_v22 = vld [vmem:[#allocation8 + $0x3e4] sm:$0xf0]  ;;  %v7925_v23 = vor.u32 %v8463_v20, %v7924_v18 }
  0x35   :  { %3560 = vmatpush.bf16.msrb.mxu3 %v8125_v48  ;;  %13748 = vst [vmem:[#allocation26_spill] sm:$0xff] %v8703_v15  ;;  %v8117_v24 = vor.u32 %v8511_v22, %v8116_v21  ;;  %v7988_v25 = vld [vmem:[#allocation8 + $0x2e0] sm:$0xf]  ;;  %v8479_v26 = vld [vmem:[#allocation8 + $0x2e4] sm:$0xf0] }
  0x36   :  { %v7989_v27 = vor.u32 %v8479_v26, %v7988_v25  ;;  %3054 = vmatpush.bf16.msrb.mxu0 %v7925_v23  ;;  %v6692_v28 = vld [vmem:[#allocation5 + $0xc0] sm:$0xf]  ;;  %v8154_v30 = vld [vmem:[#allocation5 + $0xc4] sm:$0xf]  ;;  %v6700_v32 = vld [vmem:[#allocation5 + $0xc8] sm:$0xf] }
  0x37   :  { %v8158_v29 = vld [vmem:[#allocation5 + $0xdc] sm:$0xf0]  ;;  %v6694_v31 = vld [vmem:[#allocation5 + $0xe0] sm:$0xf0]  ;;  %v8159_v33 = vld [vmem:[#allocation5 + $0xe4] sm:$0xf0] }
  0x38   :  { %3392 = vmatpush.bf16.msrb.mxu2 %v8053_v19  ;;  %3223 = vmatpush.bf16.msrb.mxu1 %v7989_v27  ;;  %v8155_v34 = vld [vmem:[#allocation5 + $0xcc] sm:$0xf]  ;;  %v8709_v36 = vor.u32 %v8158_v29, %v6692_v28  ;;  %v8711_v37 = vor.u32 %v8154_v30, %v6694_v31  ;;  %v8713_v38 = vor.u32 %v8159_v33, %v6700_v32  ;;  %v6724_v40 = vld [vmem:[#allocation5 + $0x100] sm:$0xf]  ;;  %v8162_v42 = vld [vmem:[#allocation5 + $0x104] sm:$0xf] }
  0x39   :  { %3561 = vmatpush.bf16.msrb.mxu3 %v8117_v24  ;;  %v6702_v35 = vld [vmem:[#allocation5 + $0xe8] sm:$0xf0]  ;;  %v8166_v41 = vld [vmem:[#allocation5 + $0x11c] sm:$0xf0]  ;;  %v6726_v43 = vld [vmem:[#allocation5 + $0x120] sm:$0xf0] }
  0x3a   :  { %13749 = vst [vmem:[#allocation27_spill] sm:$0xff] %v8709_v36  ;;  %v8715_v39 = vor.u32 %v8155_v34, %v6702_v35  ;;  %v6732_v44 = vld [vmem:[#allocation5 + $0x108] sm:$0xf]  ;;  %v8163_v46 = vld [vmem:[#allocation5 + $0x10c] sm:$0xf]  ;;  %v8721_v49 = vor.u32 %v8166_v41, %v6724_v40  ;;  %v8723_v50 = vor.u32 %v8162_v42, %v6726_v43 }
  0x3b   :  { %13750 = vst [vmem:[#allocation28_spill] sm:$0xff] %v8711_v37  ;;  %v8167_v45 = vld [vmem:[#allocation5 + $0x124] sm:$0xf0]  ;;  %v6734_v48 = vld [vmem:[#allocation5 + $0x128] sm:$0xf0] }
  0x3c   :  { %13751 = vst [vmem:[#allocation29_spill] sm:$0xff] %v8713_v38  ;;  %v8725_v54 = vor.u32 %v8167_v45, %v6732_v44  ;;  %v8727_v55 = vor.u32 %v8163_v46, %v6734_v48  ;;  %v6756_v56 = vld [vmem:[#allocation5 + $0x140] sm:$0xf]  ;;  %v8170_v58 = vld [vmem:[#allocation5 + $0x144] sm:$0xf] }
  0x3d   :  { %13752 = vst [vmem:[#allocation30_spill] sm:$0xff] %v8715_v39  ;;  %v8174_v57 = vld [vmem:[#allocation5 + $0x15c] sm:$0xf0]  ;;  %v6758_v59 = vld [vmem:[#allocation5 + $0x160] sm:$0xf0] }
  0x3e   :  { %13753 = vst [vmem:[#allocation31_spill] sm:$0xff] %v8721_v49  ;;  %v6764_v60 = vld [vmem:[#allocation5 + $0x148] sm:$0xf]  ;;  %v8171_v62 = vld [vmem:[#allocation5 + $0x14c] sm:$0xf]  ;;  %v8733_v4 = vor.u32 %v8174_v57, %v6756_v56  ;;  %v8735_v5 = vor.u32 %v8170_v58, %v6758_v59 }
  0x3f   :  { %13754 = vst [vmem:[#allocation32_spill] sm:$0xff] %v8723_v50  ;;  %v8175_v61 = vld [vmem:[#allocation5 + $0x164] sm:$0xf0]  ;;  %v6766_v63 = vld [vmem:[#allocation5 + $0x168] sm:$0xf0] }
  0x40   :  { %13755 = vst [vmem:[#allocation33_spill] sm:$0xff] %v8725_v54  ;;  %v8737_v6 = vor.u32 %v8175_v61, %v6764_v60  ;;  %v8739_v7 = vor.u32 %v8171_v62, %v6766_v63  ;;  %v6788_v8 = vld [vmem:[#allocation5 + $0x180] sm:$0xf]  ;;  %v8178_v10 = vld [vmem:[#allocation5 + $0x184] sm:$0xf] }
  0x41   :  { %2390 = vmatmul.bf16.gmra.mxu0 %v8685_v0  ;;  %13756 = vst [vmem:[#allocation34_spill] sm:$0xff] %v8727_v55  ;;  %v8182_v9 = vld [vmem:[#allocation5 + $0x19c] sm:$0xf0]  ;;  %v6790_v11 = vld [vmem:[#allocation5 + $0x1a0] sm:$0xf0] }
  0x42   :  { %2559 = vmatmul.bf16.gmra.mxu1 %v8687_v1  ;;  %13757 = vst [vmem:[#allocation35_spill] sm:$0xff] %v8733_v4  ;;  %v6796_v16 = vld [vmem:[#allocation5 + $0x188] sm:$0xf]  ;;  %v8179_v18 = vld [vmem:[#allocation5 + $0x18c] sm:$0xf]  ;;  %v8745_v20 = vor.u32 %v8182_v9, %v6788_v8  ;;  %v8747_v21 = vor.u32 %v8178_v10, %v6790_v11 }
  0x43   :  { %2728 = vmatmul.bf16.gmra.mxu2 %v8689_v2  ;;  %13758 = vst [vmem:[#allocation36_spill] sm:$0xff] %v8735_v5  ;;  %v8183_v17 = vld [vmem:[#allocation5 + $0x1a4] sm:$0xf0]  ;;  %v6798_v19 = vld [vmem:[#allocation5 + $0x1a8] sm:$0xf0] }
  0x44   :  { %2897 = vmatmul.bf16.gmra.mxu3 %v8691_v3  ;;  %13759 = vst [vmem:[#allocation37_spill] sm:$0xff] %v8737_v6  ;;  %v8749_v22 = vor.u32 %v8183_v17, %v6796_v16  ;;  %v8751_v23 = vor.u32 %v8179_v18, %v6798_v19  ;;  %v8044_v24 = vld [vmem:[#allocation8 + $0x350] sm:$0xf]  ;;  %v8493_v25 = vld [vmem:[#allocation8 + $0x354] sm:$0xf0] }
  0x45   :  { %13760 = vst [vmem:[#allocation38_spill] sm:$0xff] %v8739_v7  ;;  %v7916_v26 = vld [vmem:[#allocation8 + $0x250] sm:$0xf]  ;;  %v8045_v27 = vor.u32 %v8493_v25, %v8044_v24  ;;  %v8461_v28 = vld [vmem:[#allocation8 + $0x254] sm:$0xf0] }
  0x46   :  { %13761 = vst [vmem:[#allocation39_spill] sm:$0xff] %v8745_v20  ;;  %v8108_v29 = vld [vmem:[#allocation8 + $0x3d0] sm:$0xf]  ;;  %v8509_v30 = vld [vmem:[#allocation8 + $0x3d4] sm:$0xf0]  ;;  %v7917_v31 = vor.u32 %v8461_v28, %v7916_v26 }
  0x47   :  { %13762 = vst [vmem:[#allocation40_spill] sm:$0xff] %v8747_v21  ;;  %v8109_v32 = vor.u32 %v8509_v30, %v8108_v29  ;;  %3393 = vmatpush.bf16.msrb.mxu2 %v8045_v27  ;;  %v7980_v33 = vld [vmem:[#allocation8 + $0x2d0] sm:$0xf]  ;;  %v8477_v34 = vld [vmem:[#allocation8 + $0x2d4] sm:$0xf0] }
  0x48   :  { %13763 = vst [vmem:[#allocation41_spill] sm:$0xff] %v8749_v22  ;;  %3055 = vmatpush.bf16.msrb.mxu0 %v7917_v31  ;;  %v7981_v35 = vor.u32 %v8477_v34, %v7980_v33  ;;  %v6820_v40 = vld [vmem:[#allocation5 + $0x1c0] sm:$0xf]  ;;  %v8186_v42 = vld [vmem:[#allocation5 + $0x1c4] sm:$0xf] }
  0x49   :  { %13764 = vst [vmem:[#allocation42_spill] sm:$0xff] %v8751_v23  ;;  %3562 = vmatpush.bf16.msrb.mxu3 %v8109_v32  ;;  %v8190_v41 = vld [vmem:[#allocation5 + $0x1dc] sm:$0xf0]  ;;  %v6822_v43 = vld [vmem:[#allocation5 + $0x1e0] sm:$0xf0] }
  0x4a   :  { %v6828_v44 = vld [vmem:[#allocation5 + $0x1c8] sm:$0xf]  ;;  %3224 = vmatpush.bf16.msrb.mxu1 %v7981_v35  ;;  %v8187_v46 = vld [vmem:[#allocation5 + $0x1cc] sm:$0xf]  ;;  %v8757_v56 = vor.u32 %v8190_v41, %v6820_v40  ;;  %v8759_v57 = vor.u32 %v8186_v42, %v6822_v43  ;;  %v6852_v60 = vld [vmem:[#allocation5 + $0x200] sm:$0xf] }
  0x4b   :  { %v8191_v45 = vld [vmem:[#allocation5 + $0x1e4] sm:$0xf0]  ;;  %v6830_v48 = vld [vmem:[#allocation5 + $0x1e8] sm:$0xf0]  ;;  %v8198_v61 = vld [vmem:[#allocation5 + $0x21c] sm:$0xf0] }
  0x4c   :  { %13765 = vst [vmem:[#allocation43_spill] sm:$0xff] %v8757_v56  ;;  %v8761_v58 = vor.u32 %v8191_v45, %v6828_v44  ;;  %v8763_v59 = vor.u32 %v8187_v46, %v6830_v48  ;;  %v8194_v62 = vld [vmem:[#allocation5 + $0x204] sm:$0xf]  ;;  %v6860_v8 = vld [vmem:[#allocation5 + $0x208] sm:$0xf]  ;;  %v8769_v16 = vor.u32 %v8198_v61, %v6852_v60 }
  0x4d   :  { %13766 = vst [vmem:[#allocation44_spill] sm:$0xff] %v8759_v57  ;;  %v6854_v63 = vld [vmem:[#allocation5 + $0x220] sm:$0xf0]  ;;  %v8199_v9 = vld [vmem:[#allocation5 + $0x224] sm:$0xf0] }
  0x4e   :  { %13767 = vst [vmem:[#allocation45_spill] sm:$0xff] %v8761_v58  ;;  %v8195_v10 = vld [vmem:[#allocation5 + $0x20c] sm:$0xf]  ;;  %v8771_v18 = vor.u32 %v8194_v62, %v6854_v63  ;;  %v8773_v19 = vor.u32 %v8199_v9, %v6860_v8  ;;  %v6884_v34 = vld [vmem:[#allocation5 + $0x240] sm:$0xf] }
  0x4f   :  { %13768 = vst [vmem:[#allocation46_spill] sm:$0xff] %v8763_v59  ;;  %v6862_v11 = vld [vmem:[#allocation5 + $0x228] sm:$0xf0]  ;;  %v8206_v35 = vld [vmem:[#allocation5 + $0x25c] sm:$0xf0] }
  0x50   :  { %13769 = vst [vmem:[#allocation47_spill] sm:$0xff] %v8769_v16  ;;  %v8775_v25 = vor.u32 %v8195_v10, %v6862_v11  ;;  %v8202_v40 = vld [vmem:[#allocation5 + $0x244] sm:$0xf]  ;;  %v6892_v42 = vld [vmem:[#allocation5 + $0x248] sm:$0xf]  ;;  %v8783_v48 = vor.u32 %v8206_v35, %v6884_v34 }
  0x51   :  { %2395 = vmatmul.bf16.gmra.mxu0 %v8697_v12  ;;  %13770 = vst [vmem:[#allocation48_spill] sm:$0xff] %v8771_v18  ;;  %v6886_v41 = vld [vmem:[#allocation5 + $0x260] sm:$0xf0]  ;;  %v8207_v43 = vld [vmem:[#allocation5 + $0x264] sm:$0xf0] }
  0x52   :  { %2564 = vmatmul.bf16.gmra.mxu1 %v8699_v13  ;;  %13771 = vst [vmem:[#allocation49_spill] sm:$0xff] %v8773_v19  ;;  %v8203_v44 = vld [vmem:[#allocation5 + $0x24c] sm:$0xf]  ;;  %v8785_v63 = vor.u32 %v8202_v40, %v6886_v41  ;;  %v8787_v8 = vor.u32 %v8207_v43, %v6892_v42  ;;  %v8214_v34 = vld [vmem:[#allocation5 + $0x29c] sm:$0xf0] }
  0x53   :  { %2733 = vmatmul.bf16.gmra.mxu2 %v8701_v14  ;;  %13772 = vst [vmem:[#allocation50_spill] sm:$0xff] %v8775_v25  ;;  %v6894_v45 = vld [vmem:[#allocation5 + $0x268] sm:$0xf0]  ;;  %v8210_v35 = vld [vmem:[#allocation5 + $0x284] sm:$0xf] }
  0x54   :  { %2902 = vmatmul.bf16.gmra.mxu3 %v8703_v15  ;;  %13773 = vst [vmem:[#allocation51_spill] sm:$0xff] %v8783_v48  ;;  %v8789_v10 = vor.u32 %v8203_v44, %v6894_v45  ;;  %v6918_v40 = vld [vmem:[#allocation5 + $0x2a0] sm:$0xf0]  ;;  %v6924_v41 = vld [vmem:[#allocation5 + $0x288] sm:$0xf] }
  0x55   :  { %13774 = vst [vmem:[#allocation52_spill] sm:$0xff] %v8785_v63  ;;  %v8215_v42 = vld [vmem:[#allocation5 + $0x2a4] sm:$0xf0]  ;;  %v8211_v43 = vld [vmem:[#allocation5 + $0x28c] sm:$0xf] }
  0x56   :  { %13775 = vst [vmem:[#allocation53_spill] sm:$0xff] %v8787_v8  ;;  %v6926_v44 = vld [vmem:[#allocation5 + $0x2a8] sm:$0xf0]  ;;  %v8346_v3 = vld [vmem:[#allocation5 + $0x6c4] sm:$0xf] }
  0x57   :  { %13776 = vst [vmem:[#allocation54_spill] sm:$0xff] %v8789_v10  ;;  %v7462_v2 = vld [vmem:[#allocation5 + $0x6e0] sm:$0xf0]  ;;  %v7468_v1 = vld [vmem:[#allocation5 + $0x6c8] sm:$0xf] }
  0x61   :  { %2400 = vmatmul.bf16.gmra.mxu0 %v8709_v36 }
  0x62   :  { %2569 = vmatmul.bf16.gmra.mxu1 %v8711_v37  ;;  %v7340_v37 = vld [vmem:[#allocation5 + $0x5c8] sm:$0xf] }
  0x63   :  { %2738 = vmatmul.bf16.gmra.mxu2 %v8713_v38  ;;  %v7334_v38 = vld [vmem:[#allocation5 + $0x5e0] sm:$0xf0] }
  0x64   :  { %2907 = vmatmul.bf16.gmra.mxu3 %v8715_v39  ;;  %v8314_v39 = vld [vmem:[#allocation5 + $0x5c4] sm:$0xf] }
  0x71   :  { %2405 = vmatmul.bf16.gmra.mxu0 %v8721_v49 }
  0x72   :  { %2574 = vmatmul.bf16.gmra.mxu1 %v8723_v50 }
  0x73   :  { %2743 = vmatmul.bf16.gmra.mxu2 %v8725_v54 }
  0x74   :  { %2912 = vmatmul.bf16.gmra.mxu3 %v8727_v55 }
  0x81   :  { %2410 = vmatmul.bf16.gmra.mxu0 %v8733_v4 }
  0x82   :  { %2579 = vmatmul.bf16.gmra.mxu1 %v8735_v5  ;;  %v7212_v5 = vld [vmem:[#allocation5 + $0x4c8] sm:$0xf] }
  0x83   :  { %2748 = vmatmul.bf16.gmra.mxu2 %v8737_v6  ;;  %v7206_v6 = vld [vmem:[#allocation5 + $0x4e0] sm:$0xf0] }
  0x84   :  { %2917 = vmatmul.bf16.gmra.mxu3 %v8739_v7  ;;  %v8282_v7 = vld [vmem:[#allocation5 + $0x4c4] sm:$0xf] }
  0x91   :  { %2415 = vmatmul.bf16.gmra.mxu0 %v8745_v20 }
  0x92   :  { %2584 = vmatmul.bf16.gmra.mxu1 %v8747_v21 }
  0x93   :  { %2753 = vmatmul.bf16.gmra.mxu2 %v8749_v22 }
  0x94   :  { %2922 = vmatmul.bf16.gmra.mxu3 %v8751_v23 }
  0xa1   :  { %2420 = vmatmul.bf16.gmra.mxu0 %v8757_v56 }
  0xa2   :  { %2589 = vmatmul.bf16.gmra.mxu1 %v8759_v57  ;;  %v7084_v57 = vld [vmem:[#allocation5 + $0x3c8] sm:$0xf] }
  0xa3   :  { %2758 = vmatmul.bf16.gmra.mxu2 %v8761_v58  ;;  %v7078_v58 = vld [vmem:[#allocation5 + $0x3e0] sm:$0xf0] }
  0xa4   :  { %2927 = vmatmul.bf16.gmra.mxu3 %v8763_v59  ;;  %v8250_v59 = vld [vmem:[#allocation5 + $0x3c4] sm:$0xf] }
  0xae   :  { %v2386_v17 = vpop.f32.mrf.mxu0 }
  0xaf   :  { %v2555_v24 = vpop.f32.mrf.mxu1 }
  0xb0   :  { %v2556_v26 = vadd.f32 %v2555_v24, %v2386_v17 }
  0xb1   :  { %2425 = vmatmul.bf16.gmra.mxu0 %v8769_v16 }
  0xb2   :  { %2594 = vmatmul.bf16.gmra.mxu1 %v8771_v18 }
  0xb3   :  { %2763 = vmatmul.bf16.gmra.mxu2 %v8773_v19 }
  0xb4   :  { %2932 = vmatmul.bf16.gmra.mxu3 %v8775_v25 }
  0xb6   :  { %v2724_v27 = vpop.f32.mrf.mxu2  ;;  %v2388_v30 = vpop.f32.mrf.mxu0 }
  0xb7   :  { %v2725_v28 = vadd.f32 %v2724_v27, %v2556_v26  ;;  %v2893_v29 = vpop.f32.mrf.mxu3  ;;  %v2557_v31 = vpop.f32.mrf.mxu1 }
  0xb8   :  { %v2558_v33 = vadd.f32 %v2557_v31, %v2388_v30 }
  0xb9   :  { %v8781_v32 = vadd.f32 %v2893_v29, %v2725_v28 }
  0xbe   :  { %v2726_v46 = vpop.f32.mrf.mxu2  ;;  %v2391_v62 = vpop.f32.mrf.mxu0 }
  0xbf   :  { %v2727_v60 = vadd.f32 %v2726_v46, %v2558_v33  ;;  %v2895_v61 = vpop.f32.mrf.mxu3  ;;  %v2560_v9 = vpop.f32.mrf.mxu1  ;;  %v6916_v33 = vld [vmem:[#allocation5 + $0x280] sm:$0xf] }
  0xc0   :  { %v2561_v17 = vadd.f32 %v2560_v9, %v2391_v62  ;;  %v8799_v46 = vor.u32 %v8214_v34, %v6916_v33  ;;  %v8801_v9 = vor.u32 %v8210_v35, %v6918_v40  ;;  %v7908_v33 = vld [vmem:[#allocation8 + $0x240] sm:$0xf]  ;;  %v8459_v35 = vld [vmem:[#allocation8 + $0x244] sm:$0xf0] }
  0xc1   :  { %v8791_v11 = vadd.f32 %v2895_v61, %v2727_v60  ;;  %2430 = vmatmul.bf16.gmra.mxu0 %v8783_v48  ;;  %v8100_v40 = vld [vmem:[#allocation8 + $0x3c0] sm:$0xf] }
  0xc2   :  { %2599 = vmatmul.bf16.gmra.mxu1 %v8785_v63  ;;  %13777 = vst [vmem:[#allocation55_spill] sm:$0xff] %v8799_v46  ;;  %v6956_v63 = vld [vmem:[#allocation5 + $0x2c8] sm:$0xf] }
  0xc3   :  { %2768 = vmatmul.bf16.gmra.mxu2 %v8787_v8  ;;  %13778 = vst [vmem:[#allocation56_spill] sm:$0xff] %v8801_v9  ;;  %v6950_v8 = vld [vmem:[#allocation5 + $0x2e0] sm:$0xf0] }
  0xc4   :  { %2937 = vmatmul.bf16.gmra.mxu3 %v8789_v10  ;;  %v8218_v10 = vld [vmem:[#allocation5 + $0x2c4] sm:$0xf] }
  0xc6   :  { %v2729_v24 = vpop.f32.mrf.mxu2  ;;  %v2393_v28 = vpop.f32.mrf.mxu0 }
  0xc7   :  { %v2730_v26 = vadd.f32 %v2729_v24, %v2561_v17  ;;  %v2898_v27 = vpop.f32.mrf.mxu3  ;;  %v2562_v29 = vpop.f32.mrf.mxu1  ;;  %v8803_v17 = vor.u32 %v8215_v42, %v6924_v41  ;;  %v8507_v41 = vld [vmem:[#allocation8 + $0x3c4] sm:$0xf0] }
  0xc8   :  { %v2563_v31 = vadd.f32 %v2562_v29, %v2393_v28  ;;  %v8036_v29 = vld [vmem:[#allocation8 + $0x340] sm:$0xf] }
  0xc9   :  { %v8797_v30 = vadd.f32 %v2898_v27, %v2730_v26  ;;  %13779 = vst [vmem:[#allocation57_spill] sm:$0xff] %v8803_v17  ;;  %v8805_v26 = vor.u32 %v8211_v43, %v6926_v44  ;;  %v7909_v43 = vor.u32 %v8459_v35, %v7908_v33  ;;  %v8101_v44 = vor.u32 %v8507_v41, %v8100_v40  ;;  %v8223_v33 = vld [vmem:[#allocation5 + $0x2e4] sm:$0xf0]  ;;  %v6958_v35 = vld [vmem:[#allocation5 + $0x2e8] sm:$0xf0] }
  0xcb   :  { %13780 = vst [vmem:[#allocation58_spill] sm:$0xff] %v8805_v26  ;;  %3056 = vmatpush.bf16.msrb.mxu0 %v7909_v43  ;;  %3563 = vmatpush.bf16.msrb.mxu3 %v8101_v44  ;;  %v8817_v44 = vor.u32 %v8218_v10, %v6950_v8 }
  0xcd   :  { %13782 = vst [vmem:[#allocation60_spill] sm:$0xff] %v8817_v44 }
  0xce   :  { %v2731_v45 = vpop.f32.mrf.mxu2  ;;  %v2396_v62 = vpop.f32.mrf.mxu0 }
  0xcf   :  { %v2732_v60 = vadd.f32 %v2731_v45, %v2563_v31  ;;  %v2900_v61 = vpop.f32.mrf.mxu3  ;;  %v2565_v24 = vpop.f32.mrf.mxu1  ;;  %v8491_v31 = vld [vmem:[#allocation8 + $0x344] sm:$0xf0] }
  0xd0   :  { %v2566_v28 = vadd.f32 %v2565_v24, %v2396_v62  ;;  %v8037_v34 = vor.u32 %v8491_v31, %v8036_v29  ;;  %v6948_v29 = vld [vmem:[#allocation5 + $0x2c0] sm:$0xf] }
  0xd1   :  { %v8807_v27 = vadd.f32 %v2900_v61, %v2732_v60  ;;  %2435 = vmatmul.bf16.gmra.mxu0 %v8799_v46  ;;  %v8222_v31 = vld [vmem:[#allocation5 + $0x2dc] sm:$0xf0] }
  0xd2   :  { %2604 = vmatmul.bf16.gmra.mxu1 %v8801_v9  ;;  %3394 = vmatpush.bf16.msrb.mxu2 %v8037_v34  ;;  %v8475_v9 = vld [vmem:[#allocation8 + $0x2c4] sm:$0xf0]  ;;  %v8815_v34 = vor.u32 %v8222_v31, %v6948_v29  ;;  %v6980_v31 = vld [vmem:[#allocation5 + $0x300] sm:$0xf] }
  0xd3   :  { %2773 = vmatmul.bf16.gmra.mxu2 %v8803_v17  ;;  %v7972_v17 = vld [vmem:[#allocation8 + $0x2c0] sm:$0xf] }
  0xd4   :  { %2942 = vmatmul.bf16.gmra.mxu3 %v8805_v26  ;;  %v7973_v46 = vor.u32 %v8475_v9, %v7972_v17  ;;  %13781 = vst [vmem:[#allocation59_spill] sm:$0xff] %v8815_v34 }
  0xd6   :  { %v2734_v42 = vpop.f32.mrf.mxu2  ;;  %v2398_v61 = vpop.f32.mrf.mxu0  ;;  %3225 = vmatpush.bf16.msrb.mxu1 %v7973_v46 }
  0xd7   :  { %v2735_v45 = vadd.f32 %v2734_v42, %v2566_v28  ;;  %v2903_v60 = vpop.f32.mrf.mxu3  ;;  %v2567_v62 = vpop.f32.mrf.mxu1  ;;  %v8219_v28 = vld [vmem:[#allocation5 + $0x2cc] sm:$0xf] }
  0xd8   :  { %v2568_v26 = vadd.f32 %v2567_v62, %v2398_v61  ;;  %v8821_v17 = vor.u32 %v8219_v28, %v6958_v35  ;;  %v8226_v28 = vld [vmem:[#allocation5 + $0x304] sm:$0xf] }
  0xd9   :  { %v8813_v24 = vadd.f32 %v2903_v60, %v2735_v45  ;;  %v8819_v45 = vor.u32 %v8223_v33, %v6956_v63  ;;  %v8230_v33 = vld [vmem:[#allocation5 + $0x31c] sm:$0xf0]  ;;  %v6982_v35 = vld [vmem:[#allocation5 + $0x320] sm:$0xf0] }
  0xda   :  { %13784 = vst [vmem:[#allocation62_spill] sm:$0xff] %v8821_v17 }
  0xdb   :  { %13783 = vst [vmem:[#allocation61_spill] sm:$0xff] %v8819_v45 }
  0xde   :  { %v2736_v40 = vpop.f32.mrf.mxu2  ;;  %v2401_v43 = vpop.f32.mrf.mxu0 }
  0xdf   :  { %v2737_v41 = vadd.f32 %v2736_v40, %v2568_v26  ;;  %v2905_v42 = vpop.f32.mrf.mxu3  ;;  %v2570_v9 = vpop.f32.mrf.mxu1  ;;  %v6988_v40 = vld [vmem:[#allocation5 + $0x308] sm:$0xf] }
  0xe0   :  { %v2571_v61 = vadd.f32 %v2570_v9, %v2401_v43  ;;  %v6990_v43 = vld [vmem:[#allocation5 + $0x328] sm:$0xf0] }
  0xe1   :  { %v8823_v60 = vadd.f32 %v2905_v42, %v2737_v41  ;;  %2440 = vmatmul.bf16.gmra.mxu0 %v8815_v34  ;;  %v8231_v41 = vld [vmem:[#allocation5 + $0x324] sm:$0xf0]  ;;  %v8227_v42 = vld [vmem:[#allocation5 + $0x30c] sm:$0xf] }
  0xe2   :  { %2609 = vmatmul.bf16.gmra.mxu1 %v8817_v44  ;;  %v8835_v34 = vor.u32 %v8231_v41, %v6988_v40 }
  0xe3   :  { %2778 = vmatmul.bf16.gmra.mxu2 %v8819_v45  ;;  %v8831_v45 = vor.u32 %v8230_v33, %v6980_v31 }
  0xe4   :  { %2947 = vmatmul.bf16.gmra.mxu3 %v8821_v17  ;;  %13787 = vst [vmem:[#allocation65_spill] sm:$0xff] %v8835_v34 }
  0xe5   :  { %13785 = vst [vmem:[#allocation63_spill] sm:$0xff] %v8831_v45 }
  0xe6   :  { %v2739_v46 = vpop.f32.mrf.mxu2  ;;  %v2403_v10 = vpop.f32.mrf.mxu0 }
  0xe7   :  { %v2740_v26 = vadd.f32 %v2739_v46, %v2571_v61  ;;  %v2908_v8 = vpop.f32.mrf.mxu3  ;;  %v2572_v63 = vpop.f32.mrf.mxu1  ;;  %v8833_v46 = vor.u32 %v8226_v28, %v6982_v35 }
  0xe8   :  { %v2573_v29 = vadd.f32 %v2572_v63, %v2403_v10 }
  0xe9   :  { %v8829_v62 = vadd.f32 %v2908_v8, %v2740_v26  ;;  %13786 = vst [vmem:[#allocation64_spill] sm:$0xff] %v8833_v46  ;;  %v8837_v8 = vor.u32 %v8227_v42, %v6990_v43  ;;  %v7012_v42 = vld [vmem:[#allocation5 + $0x340] sm:$0xf]  ;;  %v7014_v43 = vld [vmem:[#allocation5 + $0x360] sm:$0xf0] }
  0xeb   :  { %13788 = vst [vmem:[#allocation66_spill] sm:$0xff] %v8837_v8 }
  0xee   :  { %v2741_v9 = vpop.f32.mrf.mxu2  ;;  %v2406_v61 = vpop.f32.mrf.mxu0 }
  0xef   :  { %v2742_v17 = vadd.f32 %v2741_v9, %v2573_v29  ;;  %v2910_v44 = vpop.f32.mrf.mxu3  ;;  %v2575_v26 = vpop.f32.mrf.mxu1  ;;  %v7020_v9 = vld [vmem:[#allocation5 + $0x348] sm:$0xf] }
  0xf0   :  { %v2576_v63 = vadd.f32 %v2575_v26, %v2406_v61  ;;  %v8239_v61 = vld [vmem:[#allocation5 + $0x364] sm:$0xf0]  ;;  %v8235_v26 = vld [vmem:[#allocation5 + $0x34c] sm:$0xf] }
  0xf1   :  { %v8839_v10 = vadd.f32 %v2910_v44, %v2742_v17  ;;  %2445 = vmatmul.bf16.gmra.mxu0 %v8831_v45  ;;  %v8238_v44 = vld [vmem:[#allocation5 + $0x35c] sm:$0xf0]  ;;  %v8234_v17 = vld [vmem:[#allocation5 + $0x344] sm:$0xf]  ;;  %v8851_v25 = vor.u32 %v8239_v61, %v7020_v9 }
  0xf2   :  { %2614 = vmatmul.bf16.gmra.mxu1 %v8833_v46  ;;  %v7022_v46 = vld [vmem:[#allocation5 + $0x368] sm:$0xf0]  ;;  %v7044_v9 = vld [vmem:[#allocation5 + $0x380] sm:$0xf]  ;;  %v7046_v61 = vld [vmem:[#allocation5 + $0x3a0] sm:$0xf0] }
  0xf3   :  { %2783 = vmatmul.bf16.gmra.mxu2 %v8835_v34  ;;  %v8847_v34 = vor.u32 %v8238_v44, %v7012_v42  ;;  %13791 = vst [vmem:[#allocation69_spill] sm:$0xff] %v8851_v25 }
  0xf4   :  { %2952 = vmatmul.bf16.gmra.mxu3 %v8837_v8 }
  0xf5   :  { %13789 = vst [vmem:[#allocation67_spill] sm:$0xff] %v8847_v34 }
  0xf6   :  { %v2744_v29 = vpop.f32.mrf.mxu2  ;;  %v2408_v28 = vpop.f32.mrf.mxu0 }
  0xf7   :  { %v2745_v31 = vadd.f32 %v2744_v29, %v2576_v63  ;;  %v2913_v33 = vpop.f32.mrf.mxu3  ;;  %v2577_v35 = vpop.f32.mrf.mxu1  ;;  %v8849_v29 = vor.u32 %v8234_v17, %v7014_v43 }
  0xf8   :  { %v2578_v41 = vadd.f32 %v2577_v35, %v2408_v28 }
  0xf9   :  { %v8845_v40 = vadd.f32 %v2913_v33, %v2745_v31  ;;  %13790 = vst [vmem:[#allocation68_spill] sm:$0xff] %v8849_v29  ;;  %v8853_v33 = vor.u32 %v8235_v26, %v7022_v46  ;;  %v7052_v26 = vld [vmem:[#allocation5 + $0x388] sm:$0xf] }
  0xfb   :  { %13792 = vst [vmem:[#allocation70_spill] sm:$0xff] %v8853_v33 }
  0xfe   :  { %v2746_v45 = vpop.f32.mrf.mxu2  ;;  %v2411_v63 = vpop.f32.mrf.mxu0 }
  0xff   :  { %v2747_v8 = vadd.f32 %v2746_v45, %v2578_v41  ;;  %v2915_v48 = vpop.f32.mrf.mxu3  ;;  %v2580_v31 = vpop.f32.mrf.mxu1 }
 0x100   :  { %v2581_v35 = vadd.f32 %v2580_v31, %v2411_v63  ;;  %v8247_v63 = vld [vmem:[#allocation5 + $0x3a4] sm:$0xf0]  ;;  %v8243_v31 = vld [vmem:[#allocation5 + $0x38c] sm:$0xf] }
 0x101   :  { %v8855_v28 = vadd.f32 %v2915_v48, %v2747_v8  ;;  %2450 = vmatmul.bf16.gmra.mxu0 %v8847_v34  ;;  %v8246_v48 = vld [vmem:[#allocation5 + $0x39c] sm:$0xf0]  ;;  %v8242_v8 = vld [vmem:[#allocation5 + $0x384] sm:$0xf]  ;;  %v8867_v18 = vor.u32 %v8247_v63, %v7052_v26  ;;  %v8505_v26 = vld [vmem:[#allocation8 + $0x3b4] sm:$0xf0] }
 0x102   :  { %2619 = vmatmul.bf16.gmra.mxu1 %v8849_v29  ;;  %v7054_v29 = vld [vmem:[#allocation5 + $0x3a8] sm:$0xf0] }
 0x103   :  { %2788 = vmatmul.bf16.gmra.mxu2 %v8851_v25  ;;  %v8863_v25 = vor.u32 %v8246_v48, %v7044_v9  ;;  %13795 = vst [vmem:[#allocation73_spill] sm:$0xff] %v8867_v18  ;;  %v7900_v9 = vld [vmem:[#allocation8 + $0x230] sm:$0xf] }
 0x104   :  { %2957 = vmatmul.bf16.gmra.mxu3 %v8853_v33 }
 0x105   :  { %13793 = vst [vmem:[#allocation71_spill] sm:$0xff] %v8863_v25 }
 0x106   :  { %v2749_v45 = vpop.f32.mrf.mxu2  ;;  %v2413_v44 = vpop.f32.mrf.mxu0 }
 0x107   :  { %v2750_v41 = vadd.f32 %v2749_v45, %v2581_v35  ;;  %v2918_v42 = vpop.f32.mrf.mxu3  ;;  %v2582_v17 = vpop.f32.mrf.mxu1  ;;  %v8865_v45 = vor.u32 %v8242_v8, %v7046_v61  ;;  %v8457_v8 = vld [vmem:[#allocation8 + $0x234] sm:$0xf0]  ;;  %v8092_v61 = vld [vmem:[#allocation8 + $0x3b0] sm:$0xf] }
 0x108   :  { %v2583_v46 = vadd.f32 %v2582_v17, %v2413_v44  ;;  %v7901_v63 = vor.u32 %v8457_v8, %v7900_v9  ;;  %v8255_v9 = vld [vmem:[#allocation5 + $0x3e4] sm:$0xf0]  ;;  %v7086_v8 = vld [vmem:[#allocation5 + $0x3e8] sm:$0xf0] }
 0x109   :  { %v8861_v43 = vadd.f32 %v2918_v42, %v2750_v41  ;;  %13794 = vst [vmem:[#allocation72_spill] sm:$0xff] %v8865_v45  ;;  %v8869_v42 = vor.u32 %v8243_v31, %v7054_v29 }
 0x10a   :  { %3057 = vmatpush.bf16.msrb.mxu0 %v7901_v63 }
 0x10b   :  { %13796 = vst [vmem:[#allocation74_spill] sm:$0xff] %v8869_v42 }
 0x10e   :  { %v2751_v34 = vpop.f32.mrf.mxu2  ;;  %v2416_v35 = vpop.f32.mrf.mxu0 }
 0x10f   :  { %v2752_v33 = vadd.f32 %v2751_v34, %v2583_v46  ;;  %v2920_v19 = vpop.f32.mrf.mxu3  ;;  %v2585_v41 = vpop.f32.mrf.mxu1  ;;  %v8028_v34 = vld [vmem:[#allocation8 + $0x330] sm:$0xf]  ;;  %v8489_v46 = vld [vmem:[#allocation8 + $0x334] sm:$0xf0] }
 0x110   :  { %v2586_v17 = vadd.f32 %v2585_v41, %v2416_v35  ;;  %v8029_v48 = vor.u32 %v8489_v46, %v8028_v34  ;;  %v7076_v34 = vld [vmem:[#allocation5 + $0x3c0] sm:$0xf] }
 0x111   :  { %v8871_v44 = vadd.f32 %v2920_v19, %v2752_v33  ;;  %2455 = vmatmul.bf16.gmra.mxu0 %v8863_v25  ;;  %v8093_v19 = vor.u32 %v8505_v26, %v8092_v61  ;;  %v8473_v25 = vld [vmem:[#allocation8 + $0x2b4] sm:$0xf0]  ;;  %v8254_v46 = vld [vmem:[#allocation5 + $0x3dc] sm:$0xf0] }
 0x112   :  { %2624 = vmatmul.bf16.gmra.mxu1 %v8865_v45  ;;  %3395 = vmatpush.bf16.msrb.mxu2 %v8029_v48  ;;  %v7964_v45 = vld [vmem:[#allocation8 + $0x2b0] sm:$0xf]  ;;  %v8879_v48 = vor.u32 %v8254_v46, %v7076_v34  ;;  %v7108_v46 = vld [vmem:[#allocation5 + $0x400] sm:$0xf] }
 0x113   :  { %2793 = vmatmul.bf16.gmra.mxu2 %v8867_v18  ;;  %3564 = vmatpush.bf16.msrb.mxu3 %v8093_v19  ;;  %v7965_v16 = vor.u32 %v8473_v25, %v7964_v45  ;;  %v8881_v19 = vor.u32 %v8250_v59, %v7078_v58 }
 0x114   :  { %2962 = vmatmul.bf16.gmra.mxu3 %v8869_v42  ;;  %13797 = vst [vmem:[#allocation75_spill] sm:$0xff] %v8879_v48 }
 0x115   :  { %3226 = vmatpush.bf16.msrb.mxu1 %v7965_v16  ;;  %13798 = vst [vmem:[#allocation76_spill] sm:$0xff] %v8881_v19 }
 0x116   :  { %v2754_v29 = vpop.f32.mrf.mxu2  ;;  %v2418_v35 = vpop.f32.mrf.mxu0 }
 0x117   :  { %v2755_v33 = vadd.f32 %v2754_v29, %v2586_v17  ;;  %v2923_v31 = vpop.f32.mrf.mxu3  ;;  %v2587_v41 = vpop.f32.mrf.mxu1  ;;  %v8251_v17 = vld [vmem:[#allocation5 + $0x3cc] sm:$0xf] }
 0x118   :  { %v2588_v42 = vadd.f32 %v2587_v41, %v2418_v35  ;;  %v8885_v45 = vor.u32 %v8251_v17, %v7086_v8  ;;  %v8258_v17 = vld [vmem:[#allocation5 + $0x404] sm:$0xf] }
 0x119   :  { %v8877_v18 = vadd.f32 %v2923_v31, %v2755_v33  ;;  %v8883_v33 = vor.u32 %v8255_v9, %v7084_v57  ;;  %v8262_v9 = vld [vmem:[#allocation5 + $0x41c] sm:$0xf0]  ;;  %v7110_v8 = vld [vmem:[#allocation5 + $0x420] sm:$0xf0] }
 0x11a   :  { %13800 = vst [vmem:[#allocation78_spill] sm:$0xff] %v8885_v45 }
 0x11b   :  { %13799 = vst [vmem:[#allocation77_spill] sm:$0xff] %v8883_v33 }
 0x11e   :  { %v2756_v61 = vpop.f32.mrf.mxu2  ;;  %v2421_v63 = vpop.f32.mrf.mxu0 }
 0x11f   :  { %v2757_v26 = vadd.f32 %v2756_v61, %v2588_v42  ;;  %v2925_v29 = vpop.f32.mrf.mxu3  ;;  %v2590_v25 = vpop.f32.mrf.mxu1  ;;  %v7116_v61 = vld [vmem:[#allocation5 + $0x408] sm:$0xf] }
 0x120   :  { %v2591_v35 = vadd.f32 %v2590_v25, %v2421_v63  ;;  %v7118_v63 = vld [vmem:[#allocation5 + $0x428] sm:$0xf0] }
 0x121   :  { %v8887_v31 = vadd.f32 %v2925_v29, %v2757_v26  ;;  %2460 = vmatmul.bf16.gmra.mxu0 %v8879_v48  ;;  %v8263_v26 = vld [vmem:[#allocation5 + $0x424] sm:$0xf0]  ;;  %v8259_v29 = vld [vmem:[#allocation5 + $0x40c] sm:$0xf] }
 0x122   :  { %2629 = vmatmul.bf16.gmra.mxu1 %v8881_v19  ;;  %v8899_v48 = vor.u32 %v8263_v26, %v7116_v61 }
 0x123   :  { %2798 = vmatmul.bf16.gmra.mxu2 %v8883_v33  ;;  %v8895_v33 = vor.u32 %v8262_v9, %v7108_v46 }
 0x124   :  { %2967 = vmatmul.bf16.gmra.mxu3 %v8885_v45  ;;  %13803 = vst [vmem:[#allocation81_spill] sm:$0xff] %v8899_v48 }
 0x125   :  { %13801 = vst [vmem:[#allocation79_spill] sm:$0xff] %v8895_v33 }
 0x126   :  { %v2759_v16 = vpop.f32.mrf.mxu2  ;;  %v2423_v59 = vpop.f32.mrf.mxu0 }
 0x127   :  { %v2760_v42 = vadd.f32 %v2759_v16, %v2591_v35  ;;  %v2928_v58 = vpop.f32.mrf.mxu3  ;;  %v2592_v57 = vpop.f32.mrf.mxu1  ;;  %v8897_v16 = vor.u32 %v8258_v17, %v7110_v8 }
 0x128   :  { %v2593_v34 = vadd.f32 %v2592_v57, %v2423_v59 }
 0x129   :  { %v8893_v41 = vadd.f32 %v2928_v58, %v2760_v42  ;;  %13802 = vst [vmem:[#allocation80_spill] sm:$0xff] %v8897_v16  ;;  %v8901_v58 = vor.u32 %v8259_v29, %v7118_v63  ;;  %v7140_v29 = vld [vmem:[#allocation5 + $0x440] sm:$0xf]  ;;  %v7142_v63 = vld [vmem:[#allocation5 + $0x460] sm:$0xf0] }
 0x12b   :  { %13804 = vst [vmem:[#allocation82_spill] sm:$0xff] %v8901_v58 }
 0x12e   :  { %v2761_v25 = vpop.f32.mrf.mxu2  ;;  %v2426_v35 = vpop.f32.mrf.mxu0 }
 0x12f   :  { %v2762_v45 = vadd.f32 %v2761_v25, %v2593_v34  ;;  %v2930_v19 = vpop.f32.mrf.mxu3  ;;  %v2595_v42 = vpop.f32.mrf.mxu1  ;;  %v7148_v25 = vld [vmem:[#allocation5 + $0x448] sm:$0xf] }
 0x130   :  { %v2596_v57 = vadd.f32 %v2595_v42, %v2426_v35  ;;  %v8271_v35 = vld [vmem:[#allocation5 + $0x464] sm:$0xf0]  ;;  %v8267_v42 = vld [vmem:[#allocation5 + $0x44c] sm:$0xf] }
 0x131   :  { %v8903_v59 = vadd.f32 %v2930_v19, %v2762_v45  ;;  %2465 = vmatmul.bf16.gmra.mxu0 %v8895_v33  ;;  %v8270_v19 = vld [vmem:[#allocation5 + $0x45c] sm:$0xf0]  ;;  %v8266_v45 = vld [vmem:[#allocation5 + $0x444] sm:$0xf]  ;;  %v8915_v23 = vor.u32 %v8271_v35, %v7148_v25 }
 0x132   :  { %2634 = vmatmul.bf16.gmra.mxu1 %v8897_v16  ;;  %v7150_v16 = vld [vmem:[#allocation5 + $0x468] sm:$0xf0]  ;;  %v7172_v25 = vld [vmem:[#allocation5 + $0x480] sm:$0xf]  ;;  %v7174_v35 = vld [vmem:[#allocation5 + $0x4a0] sm:$0xf0] }
 0x133   :  { %2803 = vmatmul.bf16.gmra.mxu2 %v8899_v48  ;;  %v8911_v48 = vor.u32 %v8270_v19, %v7140_v29  ;;  %13807 = vst [vmem:[#allocation85_spill] sm:$0xff] %v8915_v23 }
 0x134   :  { %2972 = vmatmul.bf16.gmra.mxu3 %v8901_v58 }
 0x135   :  { %13805 = vst [vmem:[#allocation83_spill] sm:$0xff] %v8911_v48 }
 0x136   :  { %v2764_v34 = vpop.f32.mrf.mxu2  ;;  %v2428_v17 = vpop.f32.mrf.mxu0 }
 0x137   :  { %v2765_v46 = vadd.f32 %v2764_v34, %v2596_v57  ;;  %v2933_v9 = vpop.f32.mrf.mxu3  ;;  %v2597_v8 = vpop.f32.mrf.mxu1  ;;  %v8913_v34 = vor.u32 %v8266_v45, %v7142_v63 }
 0x138   :  { %v2598_v26 = vadd.f32 %v2597_v8, %v2428_v17 }
 0x139   :  { %v8909_v61 = vadd.f32 %v2933_v9, %v2765_v46  ;;  %13806 = vst [vmem:[#allocation84_spill] sm:$0xff] %v8913_v34  ;;  %v8917_v9 = vor.u32 %v8267_v42, %v7150_v16  ;;  %v7180_v42 = vld [vmem:[#allocation5 + $0x488] sm:$0xf] }
 0x13b   :  { %13808 = vst [vmem:[#allocation86_spill] sm:$0xff] %v8917_v9 }
 0x13e   :  { %v2766_v33 = vpop.f32.mrf.mxu2  ;;  %v2431_v57 = vpop.f32.mrf.mxu0 }
 0x13f   :  { %v2767_v58 = vadd.f32 %v2766_v33, %v2598_v26  ;;  %v2935_v56 = vpop.f32.mrf.mxu3  ;;  %v2600_v46 = vpop.f32.mrf.mxu1 }
 0x140   :  { %v2601_v8 = vadd.f32 %v2600_v46, %v2431_v57  ;;  %v8279_v57 = vld [vmem:[#allocation5 + $0x4a4] sm:$0xf0]  ;;  %v8275_v46 = vld [vmem:[#allocation5 + $0x48c] sm:$0xf] }
 0x141   :  { %v8919_v17 = vadd.f32 %v2935_v56, %v2767_v58  ;;  %2470 = vmatmul.bf16.gmra.mxu0 %v8911_v48  ;;  %v8278_v56 = vld [vmem:[#allocation5 + $0x49c] sm:$0xf0]  ;;  %v8274_v58 = vld [vmem:[#allocation5 + $0x484] sm:$0xf]  ;;  %v8931_v21 = vor.u32 %v8279_v57, %v7180_v42  ;;  %v8503_v42 = vld [vmem:[#allocation8 + $0x3a4] sm:$0xf0] }
 0x142   :  { %2639 = vmatmul.bf16.gmra.mxu1 %v8913_v34  ;;  %v7182_v34 = vld [vmem:[#allocation5 + $0x4a8] sm:$0xf0] }
 0x143   :  { %2808 = vmatmul.bf16.gmra.mxu2 %v8915_v23  ;;  %v8927_v23 = vor.u32 %v8278_v56, %v7172_v25  ;;  %13811 = vst [vmem:[#allocation89_spill] sm:$0xff] %v8931_v21  ;;  %v7892_v25 = vld [vmem:[#allocation8 + $0x220] sm:$0xf] }
 0x144   :  { %2977 = vmatmul.bf16.gmra.mxu3 %v8917_v9 }
 0x145   :  { %13809 = vst [vmem:[#allocation87_spill] sm:$0xff] %v8927_v23 }
 0x146   :  { %v2769_v33 = vpop.f32.mrf.mxu2  ;;  %v2433_v19 = vpop.f32.mrf.mxu0 }
 0x147   :  { %v2770_v26 = vadd.f32 %v2769_v33, %v2601_v8  ;;  %v2938_v29 = vpop.f32.mrf.mxu3  ;;  %v2602_v45 = vpop.f32.mrf.mxu1  ;;  %v8929_v33 = vor.u32 %v8274_v58, %v7174_v35  ;;  %v8455_v58 = vld [vmem:[#allocation8 + $0x224] sm:$0xf0]  ;;  %v8084_v35 = vld [vmem:[#allocation8 + $0x3a0] sm:$0xf] }
 0x148   :  { %v2603_v16 = vadd.f32 %v2602_v45, %v2433_v19  ;;  %v7893_v57 = vor.u32 %v8455_v58, %v7892_v25  ;;  %v8287_v25 = vld [vmem:[#allocation5 + $0x4e4] sm:$0xf0]  ;;  %v7214_v58 = vld [vmem:[#allocation5 + $0x4e8] sm:$0xf0] }
 0x149   :  { %v8925_v63 = vadd.f32 %v2938_v29, %v2770_v26  ;;  %13810 = vst [vmem:[#allocation88_spill] sm:$0xff] %v8929_v33  ;;  %v8933_v29 = vor.u32 %v8275_v46, %v7182_v34 }
 0x14a   :  { %3058 = vmatpush.bf16.msrb.mxu0 %v7893_v57 }
 0x14b   :  { %13812 = vst [vmem:[#allocation90_spill] sm:$0xff] %v8933_v29 }
 0x14e   :  { %v2771_v48 = vpop.f32.mrf.mxu2  ;;  %v2436_v8 = vpop.f32.mrf.mxu0 }
 0x14f   :  { %v2772_v9 = vadd.f32 %v2771_v48, %v2603_v16  ;;  %v2940_v22 = vpop.f32.mrf.mxu3  ;;  %v2605_v26 = vpop.f32.mrf.mxu1  ;;  %v8020_v48 = vld [vmem:[#allocation8 + $0x320] sm:$0xf]  ;;  %v8487_v16 = vld [vmem:[#allocation8 + $0x324] sm:$0xf0] }
 0x150   :  { %v2606_v45 = vadd.f32 %v2605_v26, %v2436_v8  ;;  %v8021_v56 = vor.u32 %v8487_v16, %v8020_v48  ;;  %v7204_v48 = vld [vmem:[#allocation5 + $0x4c0] sm:$0xf] }
 0x151   :  { %v8935_v19 = vadd.f32 %v2940_v22, %v2772_v9  ;;  %2475 = vmatmul.bf16.gmra.mxu0 %v8927_v23  ;;  %v8085_v22 = vor.u32 %v8503_v42, %v8084_v35  ;;  %v8471_v23 = vld [vmem:[#allocation8 + $0x2a4] sm:$0xf0]  ;;  %v8286_v16 = vld [vmem:[#allocation5 + $0x4dc] sm:$0xf0] }
 0x152   :  { %2644 = vmatmul.bf16.gmra.mxu1 %v8929_v33  ;;  %3396 = vmatpush.bf16.msrb.mxu2 %v8021_v56  ;;  %v7956_v33 = vld [vmem:[#allocation8 + $0x2a0] sm:$0xf]  ;;  %v8943_v56 = vor.u32 %v8286_v16, %v7204_v48 }
 0x153   :  { %2813 = vmatmul.bf16.gmra.mxu2 %v8931_v21  ;;  %3565 = vmatpush.bf16.msrb.mxu3 %v8085_v22  ;;  %v7957_v20 = vor.u32 %v8471_v23, %v7956_v33  ;;  %v8945_v22 = vor.u32 %v8282_v7, %v7206_v6  ;;  %v7236_v16 = vld [vmem:[#allocation5 + $0x500] sm:$0xf] }
 0x154   :  { %2982 = vmatmul.bf16.gmra.mxu3 %v8933_v29  ;;  %13813 = vst [vmem:[#allocation91_spill] sm:$0xff] %v8943_v56 }
 0x155   :  { %3227 = vmatpush.bf16.msrb.mxu1 %v7957_v20  ;;  %13814 = vst [vmem:[#allocation92_spill] sm:$0xff] %v8945_v22 }
 0x156   :  { %v2774_v34 = vpop.f32.mrf.mxu2  ;;  %v2438_v8 = vpop.f32.mrf.mxu0 }
 0x157   :  { %v2775_v9 = vadd.f32 %v2774_v34, %v2606_v45  ;;  %v2943_v46 = vpop.f32.mrf.mxu3  ;;  %v2607_v26 = vpop.f32.mrf.mxu1  ;;  %v8283_v45 = vld [vmem:[#allocation5 + $0x4cc] sm:$0xf] }
 0x158   :  { %v2608_v29 = vadd.f32 %v2607_v26, %v2438_v8  ;;  %v8949_v33 = vor.u32 %v8283_v45, %v7214_v58  ;;  %v8290_v45 = vld [vmem:[#allocation5 + $0x504] sm:$0xf] }
 0x159   :  { %v8941_v21 = vadd.f32 %v2943_v46, %v2775_v9  ;;  %v8947_v9 = vor.u32 %v8287_v25, %v7212_v5  ;;  %v8294_v25 = vld [vmem:[#allocation5 + $0x51c] sm:$0xf0]  ;;  %v7238_v58 = vld [vmem:[#allocation5 + $0x520] sm:$0xf0] }
 0x15a   :  { %13816 = vst [vmem:[#allocation94_spill] sm:$0xff] %v8949_v33 }
 0x15b   :  { %13815 = vst [vmem:[#allocation93_spill] sm:$0xff] %v8947_v9 }
 0x15e   :  { %v2776_v35 = vpop.f32.mrf.mxu2  ;;  %v2441_v57 = vpop.f32.mrf.mxu0 }
 0x15f   :  { %v2777_v42 = vadd.f32 %v2776_v35, %v2608_v29  ;;  %v2945_v34 = vpop.f32.mrf.mxu3  ;;  %v2610_v23 = vpop.f32.mrf.mxu1  ;;  %v7244_v35 = vld [vmem:[#allocation5 + $0x508] sm:$0xf] }
 0x160   :  { %v2611_v8 = vadd.f32 %v2610_v23, %v2441_v57  ;;  %v7246_v57 = vld [vmem:[#allocation5 + $0x528] sm:$0xf0] }
 0x161   :  { %v8951_v46 = vadd.f32 %v2945_v34, %v2777_v42  ;;  %2480 = vmatmul.bf16.gmra.mxu0 %v8943_v56  ;;  %v8295_v42 = vld [vmem:[#allocation5 + $0x524] sm:$0xf0]  ;;  %v8291_v34 = vld [vmem:[#allocation5 + $0x50c] sm:$0xf] }
 0x162   :  { %2649 = vmatmul.bf16.gmra.mxu1 %v8945_v22  ;;  %v8963_v56 = vor.u32 %v8295_v42, %v7244_v35 }
 0x163   :  { %2818 = vmatmul.bf16.gmra.mxu2 %v8947_v9  ;;  %v8959_v9 = vor.u32 %v8294_v25, %v7236_v16 }
 0x164   :  { %2987 = vmatmul.bf16.gmra.mxu3 %v8949_v33  ;;  %13819 = vst [vmem:[#allocation97_spill] sm:$0xff] %v8963_v56 }
 0x165   :  { %13817 = vst [vmem:[#allocation95_spill] sm:$0xff] %v8959_v9 }
 0x166   :  { %v2779_v20 = vpop.f32.mrf.mxu2  ;;  %v2443_v7 = vpop.f32.mrf.mxu0 }
 0x167   :  { %v2780_v29 = vadd.f32 %v2779_v20, %v2611_v8  ;;  %v2948_v6 = vpop.f32.mrf.mxu3  ;;  %v2612_v5 = vpop.f32.mrf.mxu1  ;;  %v8961_v20 = vor.u32 %v8290_v45, %v7238_v58 }
 0x168   :  { %v2613_v48 = vadd.f32 %v2612_v5, %v2443_v7 }
 0x169   :  { %v8957_v26 = vadd.f32 %v2948_v6, %v2780_v29  ;;  %13818 = vst [vmem:[#allocation96_spill] sm:$0xff] %v8961_v20  ;;  %v8965_v6 = vor.u32 %v8291_v34, %v7246_v57  ;;  %v7268_v34 = vld [vmem:[#allocation5 + $0x540] sm:$0xf]  ;;  %v7270_v57 = vld [vmem:[#allocation5 + $0x560] sm:$0xf0] }
 0x16b   :  { %13820 = vst [vmem:[#allocation98_spill] sm:$0xff] %v8965_v6 }
 0x16e   :  { %v2781_v23 = vpop.f32.mrf.mxu2  ;;  %v2446_v8 = vpop.f32.mrf.mxu0 }
 0x16f   :  { %v2782_v33 = vadd.f32 %v2781_v23, %v2613_v48  ;;  %v2950_v22 = vpop.f32.mrf.mxu3  ;;  %v2615_v29 = vpop.f32.mrf.mxu1  ;;  %v7276_v23 = vld [vmem:[#allocation5 + $0x548] sm:$0xf] }
 0x170   :  { %v2616_v5 = vadd.f32 %v2615_v29, %v2446_v8  ;;  %v8303_v8 = vld [vmem:[#allocation5 + $0x564] sm:$0xf0]  ;;  %v8299_v29 = vld [vmem:[#allocation5 + $0x54c] sm:$0xf] }
 0x171   :  { %v8967_v7 = vadd.f32 %v2950_v22, %v2782_v33  ;;  %2485 = vmatmul.bf16.gmra.mxu0 %v8959_v9  ;;  %v8302_v22 = vld [vmem:[#allocation5 + $0x55c] sm:$0xf0]  ;;  %v8298_v33 = vld [vmem:[#allocation5 + $0x544] sm:$0xf]  ;;  %v8979_v55 = vor.u32 %v8303_v8, %v7276_v23 }
 0x172   :  { %2654 = vmatmul.bf16.gmra.mxu1 %v8961_v20  ;;  %v7278_v20 = vld [vmem:[#allocation5 + $0x568] sm:$0xf0]  ;;  %v7300_v23 = vld [vmem:[#allocation5 + $0x580] sm:$0xf]  ;;  %v7302_v8 = vld [vmem:[#allocation5 + $0x5a0] sm:$0xf0] }
 0x173   :  { %2823 = vmatmul.bf16.gmra.mxu2 %v8963_v56  ;;  %v8975_v56 = vor.u32 %v8302_v22, %v7268_v34  ;;  %13823 = vst [vmem:[#allocation101_spill] sm:$0xff] %v8979_v55 }
 0x174   :  { %2992 = vmatmul.bf16.gmra.mxu3 %v8965_v6 }
 0x175   :  { %13821 = vst [vmem:[#allocation99_spill] sm:$0xff] %v8975_v56 }
 0x176   :  { %v2784_v48 = vpop.f32.mrf.mxu2  ;;  %v2448_v45 = vpop.f32.mrf.mxu0 }
 0x177   :  { %v2785_v16 = vadd.f32 %v2784_v48, %v2616_v5  ;;  %v2953_v25 = vpop.f32.mrf.mxu3  ;;  %v2617_v58 = vpop.f32.mrf.mxu1  ;;  %v8977_v48 = vor.u32 %v8298_v33, %v7270_v57 }
 0x178   :  { %v2618_v42 = vadd.f32 %v2617_v58, %v2448_v45 }
 0x179   :  { %v8973_v35 = vadd.f32 %v2953_v25, %v2785_v16  ;;  %13822 = vst [vmem:[#allocation100_spill] sm:$0xff] %v8977_v48  ;;  %v8981_v25 = vor.u32 %v8299_v29, %v7278_v20  ;;  %v7308_v29 = vld [vmem:[#allocation5 + $0x588] sm:$0xf] }
 0x17b   :  { %13824 = vst [vmem:[#allocation102_spill] sm:$0xff] %v8981_v25 }
 0x17e   :  { %v2786_v9 = vpop.f32.mrf.mxu2  ;;  %v2451_v5 = vpop.f32.mrf.mxu0 }
 0x17f   :  { %v2787_v6 = vadd.f32 %v2786_v9, %v2618_v42  ;;  %v2955_v4 = vpop.f32.mrf.mxu3  ;;  %v2620_v16 = vpop.f32.mrf.mxu1 }
 0x180   :  { %v2621_v58 = vadd.f32 %v2620_v16, %v2451_v5  ;;  %v8311_v5 = vld [vmem:[#allocation5 + $0x5a4] sm:$0xf0]  ;;  %v8307_v16 = vld [vmem:[#allocation5 + $0x58c] sm:$0xf] }
 0x181   :  { %v8983_v45 = vadd.f32 %v2955_v4, %v2787_v6  ;;  %2490 = vmatmul.bf16.gmra.mxu0 %v8975_v56  ;;  %v8310_v4 = vld [vmem:[#allocation5 + $0x59c] sm:$0xf0]  ;;  %v8306_v6 = vld [vmem:[#allocation5 + $0x584] sm:$0xf]  ;;  %v8995_v50 = vor.u32 %v8311_v5, %v7308_v29  ;;  %v8501_v29 = vld [vmem:[#allocation8 + $0x394] sm:$0xf0] }
 0x182   :  { %2659 = vmatmul.bf16.gmra.mxu1 %v8977_v48  ;;  %v7310_v48 = vld [vmem:[#allocation5 + $0x5a8] sm:$0xf0] }
 0x183   :  { %2828 = vmatmul.bf16.gmra.mxu2 %v8979_v55  ;;  %v8991_v55 = vor.u32 %v8310_v4, %v7300_v23  ;;  %13827 = vst [vmem:[#allocation105_spill] sm:$0xff] %v8995_v50  ;;  %v7884_v23 = vld [vmem:[#allocation8 + $0x210] sm:$0xf] }
 0x184   :  { %2997 = vmatmul.bf16.gmra.mxu3 %v8981_v25 }
 0x185   :  { %13825 = vst [vmem:[#allocation103_spill] sm:$0xff] %v8991_v55 }
 0x186   :  { %v2789_v9 = vpop.f32.mrf.mxu2  ;;  %v2453_v22 = vpop.f32.mrf.mxu0 }
 0x187   :  { %v2790_v42 = vadd.f32 %v2789_v9, %v2621_v58  ;;  %v2958_v34 = vpop.f32.mrf.mxu3  ;;  %v2622_v33 = vpop.f32.mrf.mxu1  ;;  %v8993_v9 = vor.u32 %v8306_v6, %v7302_v8  ;;  %v8453_v6 = vld [vmem:[#allocation8 + $0x214] sm:$0xf0]  ;;  %v8076_v8 = vld [vmem:[#allocation8 + $0x390] sm:$0xf] }
 0x188   :  { %v2623_v20 = vadd.f32 %v2622_v33, %v2453_v22  ;;  %v7885_v5 = vor.u32 %v8453_v6, %v7884_v23  ;;  %v8319_v23 = vld [vmem:[#allocation5 + $0x5e4] sm:$0xf0]  ;;  %v7342_v6 = vld [vmem:[#allocation5 + $0x5e8] sm:$0xf0] }
 0x189   :  { %v8989_v57 = vadd.f32 %v2958_v34, %v2790_v42  ;;  %13826 = vst [vmem:[#allocation104_spill] sm:$0xff] %v8993_v9  ;;  %v8997_v34 = vor.u32 %v8307_v16, %v7310_v48 }
 0x18a   :  { %3059 = vmatpush.bf16.msrb.mxu0 %v7885_v5 }
 0x18b   :  { %13828 = vst [vmem:[#allocation106_spill] sm:$0xff] %v8997_v34 }
 0x18e   :  { %v2791_v56 = vpop.f32.mrf.mxu2  ;;  %v2456_v58 = vpop.f32.mrf.mxu0 }
 0x18f   :  { %v2792_v25 = vadd.f32 %v2791_v56, %v2623_v20  ;;  %v2960_v54 = vpop.f32.mrf.mxu3  ;;  %v2625_v42 = vpop.f32.mrf.mxu1  ;;  %v8012_v56 = vld [vmem:[#allocation8 + $0x310] sm:$0xf]  ;;  %v8485_v20 = vld [vmem:[#allocation8 + $0x314] sm:$0xf0] }
 0x190   :  { %v2626_v33 = vadd.f32 %v2625_v42, %v2456_v58  ;;  %v8013_v4 = vor.u32 %v8485_v20, %v8012_v56  ;;  %v7332_v56 = vld [vmem:[#allocation5 + $0x5c0] sm:$0xf] }
 0x191   :  { %v8999_v22 = vadd.f32 %v2960_v54, %v2792_v25  ;;  %2495 = vmatmul.bf16.gmra.mxu0 %v8991_v55  ;;  %v8077_v54 = vor.u32 %v8501_v29, %v8076_v8  ;;  %v8469_v55 = vld [vmem:[#allocation8 + $0x294] sm:$0xf0]  ;;  %v8318_v20 = vld [vmem:[#allocation5 + $0x5dc] sm:$0xf0] }
 0x192   :  { %2664 = vmatmul.bf16.gmra.mxu1 %v8993_v9  ;;  %3397 = vmatpush.bf16.msrb.mxu2 %v8013_v4  ;;  %v7948_v9 = vld [vmem:[#allocation8 + $0x290] sm:$0xf]  ;;  %v9007_v4 = vor.u32 %v8318_v20, %v7332_v56  ;;  %v7364_v20 = vld [vmem:[#allocation5 + $0x600] sm:$0xf] }
 0x193   :  { %2833 = vmatmul.bf16.gmra.mxu2 %v8995_v50  ;;  %3566 = vmatpush.bf16.msrb.mxu3 %v8077_v54  ;;  %v7949_v49 = vor.u32 %v8469_v55, %v7948_v9  ;;  %v9009_v54 = vor.u32 %v8314_v39, %v7334_v38 }
 0x194   :  { %3002 = vmatmul.bf16.gmra.mxu3 %v8997_v34  ;;  %13829 = vst [vmem:[#allocation107_spill] sm:$0xff] %v9007_v4 }
 0x195   :  { %3228 = vmatpush.bf16.msrb.mxu1 %v7949_v49  ;;  %13830 = vst [vmem:[#allocation108_spill] sm:$0xff] %v9009_v54 }
 0x196   :  { %v2794_v48 = vpop.f32.mrf.mxu2  ;;  %v2458_v58 = vpop.f32.mrf.mxu0 }
 0x197   :  { %v2795_v25 = vadd.f32 %v2794_v48, %v2626_v33  ;;  %v2963_v16 = vpop.f32.mrf.mxu3  ;;  %v2627_v42 = vpop.f32.mrf.mxu1  ;;  %v8315_v33 = vld [vmem:[#allocation5 + $0x5cc] sm:$0xf] }
 0x198   :  { %v2628_v34 = vadd.f32 %v2627_v42, %v2458_v58  ;;  %v9013_v9 = vor.u32 %v8315_v33, %v7342_v6  ;;  %v8322_v33 = vld [vmem:[#allocation5 + $0x604] sm:$0xf] }
 0x199   :  { %v9005_v50 = vadd.f32 %v2963_v16, %v2795_v25  ;;  %v9011_v25 = vor.u32 %v8319_v23, %v7340_v37  ;;  %v8326_v23 = vld [vmem:[#allocation5 + $0x61c] sm:$0xf0]  ;;  %v7366_v6 = vld [vmem:[#allocation5 + $0x620] sm:$0xf0] }
 0x19a   :  { %13832 = vst [vmem:[#allocation110_spill] sm:$0xff] %v9013_v9 }
 0x19b   :  { %13831 = vst [vmem:[#allocation109_spill] sm:$0xff] %v9011_v25 }
 0x19e   :  { %v2796_v8 = vpop.f32.mrf.mxu2  ;;  %v2461_v5 = vpop.f32.mrf.mxu0 }
 0x19f   :  { %v2797_v29 = vadd.f32 %v2796_v8, %v2628_v34  ;;  %v2965_v48 = vpop.f32.mrf.mxu3  ;;  %v2630_v55 = vpop.f32.mrf.mxu1  ;;  %v7372_v8 = vld [vmem:[#allocation5 + $0x608] sm:$0xf] }
 0x1a0   :  { %v2631_v58 = vadd.f32 %v2630_v55, %v2461_v5  ;;  %v7374_v5 = vld [vmem:[#allocation5 + $0x628] sm:$0xf0] }
 0x1a1   :  { %v9015_v16 = vadd.f32 %v2965_v48, %v2797_v29  ;;  %2500 = vmatmul.bf16.gmra.mxu0 %v9007_v4  ;;  %v8327_v29 = vld [vmem:[#allocation5 + $0x624] sm:$0xf0]  ;;  %v8323_v48 = vld [vmem:[#allocation5 + $0x60c] sm:$0xf] }
 0x1a2   :  { %2669 = vmatmul.bf16.gmra.mxu1 %v9009_v54  ;;  %v9027_v4 = vor.u32 %v8327_v29, %v7372_v8 }
 0x1a3   :  { %2838 = vmatmul.bf16.gmra.mxu2 %v9011_v25  ;;  %v9023_v25 = vor.u32 %v8326_v23, %v7364_v20 }
 0x1a4   :  { %3007 = vmatmul.bf16.gmra.mxu3 %v9013_v9  ;;  %13835 = vst [vmem:[#allocation113_spill] sm:$0xff] %v9027_v4 }
 0x1a5   :  { %13833 = vst [vmem:[#allocation111_spill] sm:$0xff] %v9023_v25 }
 0x1a6   :  { %v2799_v49 = vpop.f32.mrf.mxu2  ;;  %v2463_v39 = vpop.f32.mrf.mxu0 }
 0x1a7   :  { %v2800_v34 = vadd.f32 %v2799_v49, %v2631_v58  ;;  %v2968_v38 = vpop.f32.mrf.mxu3  ;;  %v2632_v37 = vpop.f32.mrf.mxu1  ;;  %v9025_v49 = vor.u32 %v8322_v33, %v7366_v6 }
 0x1a8   :  { %v2633_v56 = vadd.f32 %v2632_v37, %v2463_v39 }
 0x1a9   :  { %v9021_v42 = vadd.f32 %v2968_v38, %v2800_v34  ;;  %13834 = vst [vmem:[#allocation112_spill] sm:$0xff] %v9025_v49  ;;  %v9029_v38 = vor.u32 %v8323_v48, %v7374_v5  ;;  %v7396_v48 = vld [vmem:[#allocation5 + $0x640] sm:$0xf]  ;;  %v7398_v5 = vld [vmem:[#allocation5 + $0x660] sm:$0xf0] }
 0x1ab   :  { %13836 = vst [vmem:[#allocation114_spill] sm:$0xff] %v9029_v38 }
 0x1ae   :  { %v2801_v55 = vpop.f32.mrf.mxu2  ;;  %v2466_v58 = vpop.f32.mrf.mxu0 }
 0x1af   :  { %v2802_v9 = vadd.f32 %v2801_v55, %v2633_v56  ;;  %v2970_v54 = vpop.f32.mrf.mxu3  ;;  %v2635_v34 = vpop.f32.mrf.mxu1  ;;  %v7404_v55 = vld [vmem:[#allocation5 + $0x648] sm:$0xf] }
 0x1b0   :  { %v2636_v37 = vadd.f32 %v2635_v34, %v2466_v58  ;;  %v8335_v58 = vld [vmem:[#allocation5 + $0x664] sm:$0xf0]  ;;  %v8331_v34 = vld [vmem:[#allocation5 + $0x64c] sm:$0xf] }
 0x1b1   :  { %v9031_v39 = vadd.f32 %v2970_v54, %v2802_v9  ;;  %2505 = vmatmul.bf16.gmra.mxu0 %v9023_v25  ;;  %v8334_v54 = vld [vmem:[#allocation5 + $0x65c] sm:$0xf0]  ;;  %v8330_v9 = vld [vmem:[#allocation5 + $0x644] sm:$0xf]  ;;  %v9043_v15 = vor.u32 %v8335_v58, %v7404_v55 }
 0x1b2   :  { %2674 = vmatmul.bf16.gmra.mxu1 %v9025_v49  ;;  %v7406_v49 = vld [vmem:[#allocation5 + $0x668] sm:$0xf0]  ;;  %v7428_v55 = vld [vmem:[#allocation5 + $0x680] sm:$0xf]  ;;  %v7430_v58 = vld [vmem:[#allocation5 + $0x6a0] sm:$0xf0] }
 0x1b3   :  { %2843 = vmatmul.bf16.gmra.mxu2 %v9027_v4  ;;  %v9039_v4 = vor.u32 %v8334_v54, %v7396_v48  ;;  %13839 = vst [vmem:[#allocation117_spill] sm:$0xff] %v9043_v15 }
 0x1b4   :  { %3012 = vmatmul.bf16.gmra.mxu3 %v9029_v38 }
 0x1b5   :  { %13837 = vst [vmem:[#allocation115_spill] sm:$0xff] %v9039_v4 }
 0x1b6   :  { %v2804_v56 = vpop.f32.mrf.mxu2  ;;  %v2468_v33 = vpop.f32.mrf.mxu0 }
 0x1b7   :  { %v2805_v20 = vadd.f32 %v2804_v56, %v2636_v37  ;;  %v2973_v23 = vpop.f32.mrf.mxu3  ;;  %v2637_v6 = vpop.f32.mrf.mxu1  ;;  %v9041_v56 = vor.u32 %v8330_v9, %v7398_v5 }
 0x1b8   :  { %v2638_v29 = vadd.f32 %v2637_v6, %v2468_v33 }
 0x1b9   :  { %v9037_v8 = vadd.f32 %v2973_v23, %v2805_v20  ;;  %13838 = vst [vmem:[#allocation116_spill] sm:$0xff] %v9041_v56  ;;  %v9045_v23 = vor.u32 %v8331_v34, %v7406_v49  ;;  %v7436_v34 = vld [vmem:[#allocation5 + $0x688] sm:$0xf] }
 0x1bb   :  { %13840 = vst [vmem:[#allocation118_spill] sm:$0xff] %v9045_v23 }
 0x1be   :  { %v2806_v25 = vpop.f32.mrf.mxu2  ;;  %v2471_v37 = vpop.f32.mrf.mxu0 }
 0x1bf   :  { %v2807_v38 = vadd.f32 %v2806_v25, %v2638_v29  ;;  %v2975_v36 = vpop.f32.mrf.mxu3  ;;  %v2640_v20 = vpop.f32.mrf.mxu1 }
 0x1c0   :  { %v2641_v6 = vadd.f32 %v2640_v20, %v2471_v37  ;;  %v8343_v37 = vld [vmem:[#allocation5 + $0x6a4] sm:$0xf0]  ;;  %v8339_v20 = vld [vmem:[#allocation5 + $0x68c] sm:$0xf] }
 0x1c1   :  { %v9047_v33 = vadd.f32 %v2975_v36, %v2807_v38  ;;  %2510 = vmatmul.bf16.gmra.mxu0 %v9039_v4  ;;  %v8342_v36 = vld [vmem:[#allocation5 + $0x69c] sm:$0xf0]  ;;  %v8338_v38 = vld [vmem:[#allocation5 + $0x684] sm:$0xf]  ;;  %v9059_v13 = vor.u32 %v8343_v37, %v7436_v34  ;;  %v8499_v34 = vld [vmem:[#allocation8 + $0x384] sm:$0xf0] }
 0x1c2   :  { %2679 = vmatmul.bf16.gmra.mxu1 %v9041_v56  ;;  %v7438_v56 = vld [vmem:[#allocation5 + $0x6a8] sm:$0xf0] }
 0x1c3   :  { %2848 = vmatmul.bf16.gmra.mxu2 %v9043_v15  ;;  %v9055_v15 = vor.u32 %v8342_v36, %v7428_v55  ;;  %13843 = vst [vmem:[#allocation121_spill] sm:$0xff] %v9059_v13  ;;  %v7876_v55 = vld [vmem:[#allocation8 + $0x200] sm:$0xf] }
 0x1c4   :  { %3017 = vmatmul.bf16.gmra.mxu3 %v9045_v23 }
 0x1c5   :  { %13841 = vst [vmem:[#allocation119_spill] sm:$0xff] %v9055_v15 }
 0x1c6   :  { %v2809_v25 = vpop.f32.mrf.mxu2  ;;  %v2473_v54 = vpop.f32.mrf.mxu0 }
 0x1c7   :  { %v2810_v29 = vadd.f32 %v2809_v25, %v2641_v6  ;;  %v2978_v48 = vpop.f32.mrf.mxu3  ;;  %v2642_v9 = vpop.f32.mrf.mxu1  ;;  %v9057_v25 = vor.u32 %v8338_v38, %v7430_v58  ;;  %v8451_v38 = vld [vmem:[#allocation8 + $0x204] sm:$0xf0]  ;;  %v8068_v58 = vld [vmem:[#allocation8 + $0x380] sm:$0xf] }
 0x1c8   :  { %v2643_v49 = vadd.f32 %v2642_v9, %v2473_v54  ;;  %v7877_v37 = vor.u32 %v8451_v38, %v7876_v55  ;;  %v8351_v55 = vld [vmem:[#allocation5 + $0x6e4] sm:$0xf0]  ;;  %v7470_v38 = vld [vmem:[#allocation5 + $0x6e8] sm:$0xf0] }
 0x1c9   :  { %v9053_v5 = vadd.f32 %v2978_v48, %v2810_v29  ;;  %13842 = vst [vmem:[#allocation120_spill] sm:$0xff] %v9057_v25  ;;  %v9061_v48 = vor.u32 %v8339_v20, %v7438_v56 }
 0x1ca   :  { %3060 = vmatpush.bf16.msrb.mxu0 %v7877_v37 }
 0x1cb   :  { %13844 = vst [vmem:[#allocation122_spill] sm:$0xff] %v9061_v48 }
 0x1ce   :  { %v2811_v4 = vpop.f32.mrf.mxu2  ;;  %v2476_v6 = vpop.f32.mrf.mxu0 }
 0x1cf   :  { %v2812_v23 = vadd.f32 %v2811_v4, %v2643_v49  ;;  %v2980_v14 = vpop.f32.mrf.mxu3  ;;  %v2645_v29 = vpop.f32.mrf.mxu1  ;;  %v8004_v4 = vld [vmem:[#allocation8 + $0x300] sm:$0xf]  ;;  %v8483_v49 = vld [vmem:[#allocation8 + $0x304] sm:$0xf0] }
 0x1d0   :  { %v2646_v9 = vadd.f32 %v2645_v29, %v2476_v6  ;;  %v8005_v36 = vor.u32 %v8483_v49, %v8004_v4  ;;  %v7460_v4 = vld [vmem:[#allocation5 + $0x6c0] sm:$0xf] }
 0x1d1   :  { %v9063_v54 = vadd.f32 %v2980_v14, %v2812_v23  ;;  %2515 = vmatmul.bf16.gmra.mxu0 %v9055_v15  ;;  %v8069_v14 = vor.u32 %v8499_v34, %v8068_v58  ;;  %v8467_v15 = vld [vmem:[#allocation8 + $0x284] sm:$0xf0]  ;;  %v8350_v49 = vld [vmem:[#allocation5 + $0x6dc] sm:$0xf0] }
 0x1d2   :  { %2684 = vmatmul.bf16.gmra.mxu1 %v9057_v25  ;;  %3398 = vmatpush.bf16.msrb.mxu2 %v8005_v36  ;;  %v7940_v25 = vld [vmem:[#allocation8 + $0x280] sm:$0xf]  ;;  %v9071_v36 = vor.u32 %v8350_v49, %v7460_v4 }
 0x1d3   :  { %2853 = vmatmul.bf16.gmra.mxu2 %v9059_v13  ;;  %3567 = vmatpush.bf16.msrb.mxu3 %v8069_v14  ;;  %v7941_v12 = vor.u32 %v8467_v15, %v7940_v25  ;;  %v9073_v14 = vor.u32 %v8346_v3, %v7462_v2  ;;  %v7492_v49 = vld [vmem:[#allocation5 + $0x700] sm:$0xf] }
 0x1d4   :  { %3022 = vmatmul.bf16.gmra.mxu3 %v9061_v48  ;;  %13845 = vst [vmem:[#allocation123_spill] sm:$0xff] %v9071_v36 }
 0x1d5   :  { %3229 = vmatpush.bf16.msrb.mxu1 %v7941_v12  ;;  %13846 = vst [vmem:[#allocation124_spill] sm:$0xff] %v9073_v14 }
 0x1d6   :  { %v2814_v56 = vpop.f32.mrf.mxu2  ;;  %v2478_v6 = vpop.f32.mrf.mxu0 }
 0x1d7   :  { %v2815_v23 = vadd.f32 %v2814_v56, %v2646_v9  ;;  %v2983_v20 = vpop.f32.mrf.mxu3  ;;  %v2647_v29 = vpop.f32.mrf.mxu1  ;;  %v8347_v9 = vld [vmem:[#allocation5 + $0x6cc] sm:$0xf] }
 0x1d8   :  { %v2648_v48 = vadd.f32 %v2647_v29, %v2478_v6  ;;  %v9077_v25 = vor.u32 %v8347_v9, %v7470_v38  ;;  %v8354_v9 = vld [vmem:[#allocation5 + $0x704] sm:$0xf] }
 0x1d9   :  { %v9069_v13 = vadd.f32 %v2983_v20, %v2815_v23  ;;  %v9075_v23 = vor.u32 %v8351_v55, %v7468_v1  ;;  %v8358_v55 = vld [vmem:[#allocation5 + $0x71c] sm:$0xf0]  ;;  %v7494_v38 = vld [vmem:[#allocation5 + $0x720] sm:$0xf0] }
 0x1da   :  { %13848 = vst [vmem:[#allocation126_spill] sm:$0xff] %v9077_v25 }
 0x1db   :  { %13847 = vst [vmem:[#allocation125_spill] sm:$0xff] %v9075_v23 }
 0x1de   :  { %v2816_v58 = vpop.f32.mrf.mxu2  ;;  %v2481_v37 = vpop.f32.mrf.mxu0 }
 0x1df   :  { %v2817_v34 = vadd.f32 %v2816_v58, %v2648_v48  ;;  %v2985_v56 = vpop.f32.mrf.mxu3  ;;  %v2650_v15 = vpop.f32.mrf.mxu1  ;;  %v7500_v58 = vld [vmem:[#allocation5 + $0x708] sm:$0xf] }
 0x1e0   :  { %v2651_v6 = vadd.f32 %v2650_v15, %v2481_v37  ;;  %v7502_v37 = vld [vmem:[#allocation5 + $0x728] sm:$0xf0] }
 0x1e1   :  { %v9079_v20 = vadd.f32 %v2985_v56, %v2817_v34  ;;  %2520 = vmatmul.bf16.gmra.mxu0 %v9071_v36  ;;  %v8359_v34 = vld [vmem:[#allocation5 + $0x724] sm:$0xf0]  ;;  %v8355_v56 = vld [vmem:[#allocation5 + $0x70c] sm:$0xf] }
 0x1e2   :  { %2689 = vmatmul.bf16.gmra.mxu1 %v9073_v14  ;;  %v9091_v36 = vor.u32 %v8359_v34, %v7500_v58 }
 0x1e3   :  { %2858 = vmatmul.bf16.gmra.mxu2 %v9075_v23  ;;  %v9087_v23 = vor.u32 %v8358_v55, %v7492_v49 }
 0x1e4   :  { %3027 = vmatmul.bf16.gmra.mxu3 %v9077_v25  ;;  %13851 = vst [vmem:[#allocation129_spill] sm:$0xff] %v9091_v36 }
 0x1e5   :  { %13849 = vst [vmem:[#allocation127_spill] sm:$0xff] %v9087_v23 }
 0x1e6   :  { %v2819_v12 = vpop.f32.mrf.mxu2  ;;  %v2483_v3 = vpop.f32.mrf.mxu0 }
 0x1e7   :  { %v2820_v48 = vadd.f32 %v2819_v12, %v2651_v6  ;;  %v2988_v2 = vpop.f32.mrf.mxu3  ;;  %v2652_v1 = vpop.f32.mrf.mxu1  ;;  %v9089_v12 = vor.u32 %v8354_v9, %v7494_v38 }
 0x1e8   :  { %v2653_v4 = vadd.f32 %v2652_v1, %v2483_v3 }
 0x1e9   :  { %v9085_v29 = vadd.f32 %v2988_v2, %v2820_v48  ;;  %13850 = vst [vmem:[#allocation128_spill] sm:$0xff] %v9089_v12  ;;  %v9093_v2 = vor.u32 %v8355_v56, %v7502_v37  ;;  %v7524_v56 = vld [vmem:[#allocation5 + $0x740] sm:$0xf]  ;;  %v7526_v37 = vld [vmem:[#allocation5 + $0x760] sm:$0xf0] }
 0x1eb   :  { %13852 = vst [vmem:[#allocation130_spill] sm:$0xff] %v9093_v2 }
 0x1ee   :  { %v2821_v15 = vpop.f32.mrf.mxu2  ;;  %v2486_v6 = vpop.f32.mrf.mxu0 }
 0x1ef   :  { %v2822_v25 = vadd.f32 %v2821_v15, %v2653_v4  ;;  %v2990_v14 = vpop.f32.mrf.mxu3  ;;  %v2655_v48 = vpop.f32.mrf.mxu1  ;;  %v7532_v15 = vld [vmem:[#allocation5 + $0x748] sm:$0xf] }
 0x1f0   :  { %v2656_v1 = vadd.f32 %v2655_v48, %v2486_v6  ;;  %v8367_v6 = vld [vmem:[#allocation5 + $0x764] sm:$0xf0]  ;;  %v8363_v48 = vld [vmem:[#allocation5 + $0x74c] sm:$0xf] }
 0x1f1   :  { %v9095_v3 = vadd.f32 %v2990_v14, %v2822_v25  ;;  %2525 = vmatmul.bf16.gmra.mxu0 %v9087_v23  ;;  %v8366_v14 = vld [vmem:[#allocation5 + $0x75c] sm:$0xf0]  ;;  %v8362_v25 = vld [vmem:[#allocation5 + $0x744] sm:$0xf]  ;;  %v9107_v53 = vor.u32 %v8367_v6, %v7532_v15 }
 0x1f2   :  { %2694 = vmatmul.bf16.gmra.mxu1 %v9089_v12  ;;  %v7534_v12 = vld [vmem:[#allocation5 + $0x768] sm:$0xf0]  ;;  %v7556_v15 = vld [vmem:[#allocation5 + $0x780] sm:$0xf]  ;;  %v7558_v6 = vld [vmem:[#allocation5 + $0x7a0] sm:$0xf0] }
 0x1f3   :  { %2863 = vmatmul.bf16.gmra.mxu2 %v9091_v36  ;;  %v9103_v36 = vor.u32 %v8366_v14, %v7524_v56  ;;  %13855 = vst [vmem:[#allocation133_spill] sm:$0xff] %v9107_v53 }
 0x1f4   :  { %3032 = vmatmul.bf16.gmra.mxu3 %v9093_v2 }
 0x1f5   :  { %13853 = vst [vmem:[#allocation131_spill] sm:$0xff] %v9103_v36 }
 0x1f6   :  { %v2824_v4 = vpop.f32.mrf.mxu2  ;;  %v2488_v9 = vpop.f32.mrf.mxu0 }
 0x1f7   :  { %v2825_v49 = vadd.f32 %v2824_v4, %v2656_v1  ;;  %v2993_v55 = vpop.f32.mrf.mxu3  ;;  %v2657_v38 = vpop.f32.mrf.mxu1  ;;  %v9105_v4 = vor.u32 %v8362_v25, %v7526_v37 }
 0x1f8   :  { %v2658_v34 = vadd.f32 %v2657_v38, %v2488_v9 }
 0x1f9   :  { %v9101_v58 = vadd.f32 %v2993_v55, %v2825_v49  ;;  %13854 = vst [vmem:[#allocation132_spill] sm:$0xff] %v9105_v4  ;;  %v9109_v55 = vor.u32 %v8363_v48, %v7534_v12  ;;  %v7564_v48 = vld [vmem:[#allocation5 + $0x788] sm:$0xf] }
 0x1fb   :  { %13856 = vst [vmem:[#allocation134_spill] sm:$0xff] %v9109_v55 }
 0x1fe   :  { %v2826_v23 = vpop.f32.mrf.mxu2  ;;  %v2491_v1 = vpop.f32.mrf.mxu0 }
 0x1ff   :  { %v2827_v2 = vadd.f32 %v2826_v23, %v2658_v34  ;;  %v2995_v0 = vpop.f32.mrf.mxu3  ;;  %v2660_v49 = vpop.f32.mrf.mxu1 }
 0x200   :  { %v2661_v38 = vadd.f32 %v2660_v49, %v2491_v1  ;;  %v8375_v1 = vld [vmem:[#allocation5 + $0x7a4] sm:$0xf0]  ;;  %v8371_v49 = vld [vmem:[#allocation5 + $0x78c] sm:$0xf] }
 0x201   :  { %v9111_v9 = vadd.f32 %v2995_v0, %v2827_v2  ;;  %2530 = vmatmul.bf16.gmra.mxu0 %v9103_v36  ;;  %v8374_v0 = vld [vmem:[#allocation5 + $0x79c] sm:$0xf0]  ;;  %v8370_v2 = vld [vmem:[#allocation5 + $0x784] sm:$0xf]  ;;  %v9123_v51 = vor.u32 %v8375_v1, %v7564_v48  ;;  %v7870_v48 = vld [vmem:[#allocation8 + $0x1f8] sm:$0xf0] }
 0x202   :  { %2699 = vmatmul.bf16.gmra.mxu1 %v9105_v4  ;;  %v7566_v4 = vld [vmem:[#allocation5 + $0x7a8] sm:$0xf0] }
 0x203   :  { %13857 = vst [vmem:[#allocation135_spill] sm:$0xff] %v9111_v9  ;;  %2868 = vmatmul.bf16.gmra.mxu2 %v9107_v53  ;;  %v9119_v53 = vor.u32 %v8374_v0, %v7556_v15  ;;  %v8400_v15 = vld [vmem:[#allocation8 + $0x74] sm:$0xf]  ;;  %v7596_v9 = vld [vmem:[#allocation5 + $0x7c8] sm:$0xf] }
 0x204   :  { %3037 = vmatmul.bf16.gmra.mxu3 %v9109_v55  ;;  %13861 = vst [vmem:[#allocation139_spill] sm:$0xff] %v9123_v51 }
 0x205   :  { %13859 = vst [vmem:[#allocation137_spill] sm:$0xff] %v9119_v53 }
 0x206   :  { %v2829_v23 = vpop.f32.mrf.mxu2  ;;  %v2493_v14 = vpop.f32.mrf.mxu0 }
 0x207   :  { %v2830_v34 = vadd.f32 %v2829_v23, %v2661_v38  ;;  %v2998_v56 = vpop.f32.mrf.mxu3  ;;  %v2662_v25 = vpop.f32.mrf.mxu1  ;;  %v9121_v23 = vor.u32 %v8370_v2, %v7558_v6  ;;  %v7678_v2 = vld [vmem:[#allocation8 + $0x78] sm:$0xf0]  ;;  %v8448_v6 = vld [vmem:[#allocation8 + $0x1f4] sm:$0xf] }
 0x208   :  { %v2663_v12 = vadd.f32 %v2662_v25, %v2493_v14  ;;  %v7681_v1 = vor.u32 %v8400_v15, %v7678_v2  ;;  %v8383_v15 = vld [vmem:[#allocation5 + $0x7e4] sm:$0xf0]  ;;  %v7598_v2 = vld [vmem:[#allocation5 + $0x7e8] sm:$0xf0] }
 0x209   :  { %v9117_v37 = vadd.f32 %v2998_v56, %v2830_v34  ;;  %13860 = vst [vmem:[#allocation138_spill] sm:$0xff] %v9121_v23  ;;  %v9125_v56 = vor.u32 %v8371_v49, %v7566_v4 }
 0x20a   :  { %3729 = vmatpush.bf16.msra.mxu0 %v7681_v1 }
 0x20b   :  { %13858 = vst [vmem:[#allocation136_spill] sm:$0xff] %v9117_v37  ;;  %v7590_v37 = vld [vmem:[#allocation5 + $0x7e0] sm:$0xf0] }
 0x20c   :  { %13862 = vst [vmem:[#allocation140_spill] sm:$0xff] %v9125_v56 }
 0x20e   :  { %v2831_v36 = vpop.f32.mrf.mxu2  ;;  %v2496_v38 = vpop.f32.mrf.mxu0 }
 0x20f   :  { %v2832_v55 = vadd.f32 %v2831_v36, %v2663_v12  ;;  %v3000_v52 = vpop.f32.mrf.mxu3  ;;  %v2665_v34 = vpop.f32.mrf.mxu1  ;;  %v8432_v36 = vld [vmem:[#allocation8 + $0x174] sm:$0xf]  ;;  %v7806_v12 = vld [vmem:[#allocation8 + $0x178] sm:$0xf0] }
 0x210   :  { %v2666_v25 = vadd.f32 %v2665_v34, %v2496_v38  ;;  %v7809_v0 = vor.u32 %v8432_v36, %v7806_v12  ;;  %v7588_v36 = vld [vmem:[#allocation5 + $0x7c0] sm:$0xf] }
 0x211   :  { %v9127_v14 = vadd.f32 %v3000_v52, %v2832_v55  ;;  %2535 = vmatmul.bf16.gmra.mxu0 %v9119_v53  ;;  %v7873_v52 = vor.u32 %v8448_v6, %v7870_v48  ;;  %v7742_v53 = vld [vmem:[#allocation8 + $0xf8] sm:$0xf0]  ;;  %v8382_v12 = vld [vmem:[#allocation5 + $0x7dc] sm:$0xf0] }
 0x212   :  { %2704 = vmatmul.bf16.gmra.mxu1 %v9121_v23  ;;  %4067 = vmatpush.bf16.msra.mxu2 %v7809_v0  ;;  %v8416_v23 = vld [vmem:[#allocation8 + $0xf4] sm:$0xf]  ;;  %v9135_v0 = vor.u32 %v8382_v12, %v7588_v36  ;;  %v6612_v12 = vld [vmem:[#allocation5 + $0x10] sm:$0xf] }
 0x213   :  { %13863 = vst [vmem:[#allocation141_spill] sm:$0xff] %v9127_v14  ;;  %2873 = vmatmul.bf16.gmra.mxu2 %v9123_v51  ;;  %4236 = vmatpush.bf16.msra.mxu3 %v7873_v52  ;;  %v7745_v47 = vor.u32 %v8416_v23, %v7742_v53  ;;  %v8378_v14 = vld [vmem:[#allocation5 + $0x7c4] sm:$0xf] }
 0x214   :  { %3042 = vmatmul.bf16.gmra.mxu3 %v9125_v56  ;;  %13865 = vst [vmem:[#allocation143_spill] sm:$0xff] %v9135_v0  ;;  %v9137_v52 = vor.u32 %v8378_v14, %v7590_v37 }
 0x215   :  { %3898 = vmatpush.bf16.msra.mxu1 %v7745_v47 }
 0x216   :  { %v2834_v4 = vpop.f32.mrf.mxu2  ;;  %v2498_v38 = vpop.f32.mrf.mxu0  ;;  %13866 = vst [vmem:[#allocation144_spill] sm:$0xff] %v9137_v52 }
 0x217   :  { %v2835_v55 = vadd.f32 %v2834_v4, %v2666_v25  ;;  %v3003_v49 = vpop.f32.mrf.mxu3  ;;  %v2667_v34 = vpop.f32.mrf.mxu1  ;;  %v8379_v25 = vld [vmem:[#allocation5 + $0x7cc] sm:$0xf] }
 0x218   :  { %v2668_v56 = vadd.f32 %v2667_v34, %v2498_v38  ;;  %v9141_v23 = vor.u32 %v8379_v25, %v7598_v2  ;;  %v8132_v25 = vld [vmem:[#allocation5 + $0x14] sm:$0xf] }
 0x219   :  { %v9133_v51 = vadd.f32 %v3003_v49, %v2835_v55  ;;  %v9139_v55 = vor.u32 %v8383_v15, %v7596_v9  ;;  %v8136_v15 = vld [vmem:[#allocation5 + $0x2c] sm:$0xf0]  ;;  %v6614_v2 = vld [vmem:[#allocation5 + $0x30] sm:$0xf0] }
 0x21a   :  { %13868 = vst [vmem:[#allocation146_spill] sm:$0xff] %v9141_v23 }
 0x21b   :  { %13864 = vst [vmem:[#allocation142_spill] sm:$0xff] %v9133_v51  ;;  %v6716_v51 = vld [vmem:[#allocation5 + $0xd8] sm:$0xf] }
 0x21c   :  { %13867 = vst [vmem:[#allocation145_spill] sm:$0xff] %v9139_v55 }
 0x21e   :  { %v2836_v6 = vpop.f32.mrf.mxu2  ;;  %v2501_v1 = vpop.f32.mrf.mxu0 }
 0x21f   :  { %v2837_v48 = vadd.f32 %v2836_v6, %v2668_v56  ;;  %v3005_v4 = vpop.f32.mrf.mxu3  ;;  %v2670_v53 = vpop.f32.mrf.mxu1  ;;  %v6620_v6 = vld [vmem:[#allocation5 + $0x18] sm:$0xf] }
 0x220   :  { %v2671_v38 = vadd.f32 %v2670_v53, %v2501_v1  ;;  %v6622_v1 = vld [vmem:[#allocation5 + $0x38] sm:$0xf0] }
 0x221   :  { %v9143_v49 = vadd.f32 %v3005_v4, %v2837_v48  ;;  %2540 = vmatmul.bf16.gmra.mxu0 %v9135_v0  ;;  %v8137_v48 = vld [vmem:[#allocation5 + $0x34] sm:$0xf0]  ;;  %v8133_v4 = vld [vmem:[#allocation5 + $0x1c] sm:$0xf] }
 0x222   :  { %2709 = vmatmul.bf16.gmra.mxu1 %v9137_v52  ;;  %v9155_v0 = vor.u32 %v8137_v48, %v6620_v6 }
 0x223   :  { %13869 = vst [vmem:[#allocation147_spill] sm:$0xff] %v9143_v49  ;;  %2878 = vmatmul.bf16.gmra.mxu2 %v9139_v55  ;;  %v9151_v55 = vor.u32 %v8136_v15, %v6612_v12  ;;  %v6710_v49 = vld [vmem:[#allocation5 + $0xf0] sm:$0xf0] }
 0x224   :  { %3047 = vmatmul.bf16.gmra.mxu3 %v9141_v23  ;;  %13873 = vst [vmem:[#allocation151_spill] sm:$0xff] %v9155_v0 }
 0x225   :  { %13871 = vst [vmem:[#allocation149_spill] sm:$0xff] %v9151_v55 }
 0x226   :  { %v2839_v47 = vpop.f32.mrf.mxu2  ;;  %v2503_v14 = vpop.f32.mrf.mxu0 }
 0x227   :  { %v2840_v56 = vadd.f32 %v2839_v47, %v2671_v38  ;;  %v3008_v37 = vpop.f32.mrf.mxu3  ;;  %v2672_v9 = vpop.f32.mrf.mxu1  ;;  %v9153_v47 = vor.u32 %v8132_v25, %v6614_v2 }
 0x228   :  { %v2673_v36 = vadd.f32 %v2672_v9, %v2503_v14 }
 0x229   :  { %v9149_v34 = vadd.f32 %v3008_v37, %v2840_v56  ;;  %13872 = vst [vmem:[#allocation150_spill] sm:$0xff] %v9153_v47  ;;  %v9157_v37 = vor.u32 %v8133_v4, %v6622_v1  ;;  %v6644_v4 = vld [vmem:[#allocation5 + $0x50] sm:$0xf]  ;;  %v6646_v1 = vld [vmem:[#allocation5 + $0x70] sm:$0xf0] }
 0x22b   :  { %13870 = vst [vmem:[#allocation148_spill] sm:$0xff] %v9149_v34 }
 0x22c   :  { %13874 = vst [vmem:[#allocation152_spill] sm:$0xff] %v9157_v37 }
 0x22e   :  { %v2841_v53 = vpop.f32.mrf.mxu2  ;;  %v2506_v38 = vpop.f32.mrf.mxu0 }
 0x22f   :  { %v2842_v23 = vadd.f32 %v2841_v53, %v2673_v36  ;;  %v3010_v52 = vpop.f32.mrf.mxu3  ;;  %v2675_v56 = vpop.f32.mrf.mxu1  ;;  %v6652_v53 = vld [vmem:[#allocation5 + $0x58] sm:$0xf] }
 0x230   :  { %v2676_v9 = vadd.f32 %v2675_v56, %v2506_v38  ;;  %v8145_v38 = vld [vmem:[#allocation5 + $0x74] sm:$0xf0]  ;;  %v8141_v56 = vld [vmem:[#allocation5 + $0x5c] sm:$0xf] }
 0x231   :  { %v9159_v14 = vadd.f32 %v3010_v52, %v2842_v23  ;;  %3061 = vmatmul.bf16.vlgmr.msrb.gmra.mxu0 %v9151_v55  ;;  %v8144_v52 = vld [vmem:[#allocation5 + $0x6c] sm:$0xf0]  ;;  %v8140_v23 = vld [vmem:[#allocation5 + $0x54] sm:$0xf]  ;;  %v9171_v34 = vor.u32 %v8145_v38, %v6652_v53 }
 0x232   :  { %3230 = vmatmul.bf16.vlgmr.msrb.gmra.mxu1 %v9153_v47  ;;  %v6654_v47 = vld [vmem:[#allocation5 + $0x78] sm:$0xf0]  ;;  %v6676_v53 = vld [vmem:[#allocation5 + $0x90] sm:$0xf]  ;;  %v6678_v38 = vld [vmem:[#allocation5 + $0xb0] sm:$0xf0] }
 0x233   :  { %13875 = vst [vmem:[#allocation153_spill] sm:$0xff] %v9159_v14  ;;  %3399 = vmatmul.bf16.vlgmr.msrb.gmra.mxu2 %v9155_v0  ;;  %v9167_v0 = vor.u32 %v8144_v52, %v6644_v4 }
 0x234   :  { %3568 = vmatmul.bf16.vlgmr.msrb.gmra.mxu3 %v9157_v37  ;;  %13879 = vst [vmem:[#allocation157_spill] sm:$0xff] %v9171_v34 }
 0x235   :  { %13877 = vst [vmem:[#allocation155_spill] sm:$0xff] %v9167_v0 }
 0x236   :  { %v2844_v36 = vpop.f32.mrf.mxu2  ;;  %v2508_v25 = vpop.f32.mrf.mxu0 }
 0x237   :  { %v2845_v12 = vadd.f32 %v2844_v36, %v2676_v9  ;;  %v3013_v15 = vpop.f32.mrf.mxu3  ;;  %v2677_v2 = vpop.f32.mrf.mxu1  ;;  %v9169_v36 = vor.u32 %v8140_v23, %v6646_v1 }
 0x238   :  { %v2678_v48 = vadd.f32 %v2677_v2, %v2508_v25 }
 0x239   :  { %v9165_v6 = vadd.f32 %v3013_v15, %v2845_v12  ;;  %13878 = vst [vmem:[#allocation156_spill] sm:$0xff] %v9169_v36  ;;  %v9173_v15 = vor.u32 %v8141_v56, %v6654_v47  ;;  %v6684_v56 = vld [vmem:[#allocation5 + $0x98] sm:$0xf] }
 0x23b   :  { %13876 = vst [vmem:[#allocation154_spill] sm:$0xff] %v9165_v6 }
 0x23c   :  { %13880 = vst [vmem:[#allocation158_spill] sm:$0xff] %v9173_v15 }
 0x23e   :  { %v2846_v55 = vpop.f32.mrf.mxu2  ;;  %v2511_v9 = vpop.f32.mrf.mxu0 }
 0x23f   :  { %v2847_v37 = vadd.f32 %v2846_v55, %v2678_v48  ;;  %v3015_v14 = vpop.f32.mrf.mxu3  ;;  %v2680_v12 = vpop.f32.mrf.mxu1 }
 0x240   :  { %v2681_v2 = vadd.f32 %v2680_v12, %v2511_v9  ;;  %v8153_v9 = vld [vmem:[#allocation5 + $0xb4] sm:$0xf0]  ;;  %v8149_v12 = vld [vmem:[#allocation5 + $0x9c] sm:$0xf] }
 0x241   :  { %v9175_v25 = vadd.f32 %v3015_v14, %v2847_v37  ;;  %3066 = vmatmul.bf16.gmra.mxu0 %v9167_v0  ;;  %v8152_v37 = vld [vmem:[#allocation5 + $0xac] sm:$0xf0]  ;;  %v8148_v14 = vld [vmem:[#allocation5 + $0x94] sm:$0xf]  ;;  %v9187_v6 = vor.u32 %v8153_v9, %v6684_v56  ;;  %v7862_v56 = vld [vmem:[#allocation8 + $0x1e8] sm:$0xf0] }
 0x242   :  { %3235 = vmatmul.bf16.gmra.mxu1 %v9169_v36  ;;  %v6686_v36 = vld [vmem:[#allocation5 + $0xb8] sm:$0xf0] }
 0x243   :  { %13881 = vst [vmem:[#allocation159_spill] sm:$0xff] %v9175_v25  ;;  %3404 = vmatmul.bf16.gmra.mxu2 %v9171_v34  ;;  %v9183_v34 = vor.u32 %v8152_v37, %v6676_v53  ;;  %v8398_v53 = vld [vmem:[#allocation8 + $0x64] sm:$0xf] }
 0x244   :  { %3573 = vmatmul.bf16.gmra.mxu3 %v9173_v15  ;;  %13885 = vst [vmem:[#allocation163_spill] sm:$0xff] %v9187_v6 }
 0x245   :  { %13883 = vst [vmem:[#allocation161_spill] sm:$0xff] %v9183_v34 }
 0x246   :  { %v2849_v55 = vpop.f32.mrf.mxu2  ;;  %v2513_v52 = vpop.f32.mrf.mxu0 }
 0x247   :  { %v2850_v48 = vadd.f32 %v2849_v55, %v2681_v2  ;;  %v3018_v4 = vpop.f32.mrf.mxu3  ;;  %v2682_v23 = vpop.f32.mrf.mxu1  ;;  %v9185_v55 = vor.u32 %v8148_v14, %v6678_v38  ;;  %v7670_v14 = vld [vmem:[#allocation8 + $0x68] sm:$0xf0]  ;;  %v8446_v38 = vld [vmem:[#allocation8 + $0x1e4] sm:$0xf] }
 0x248   :  { %v2683_v47 = vadd.f32 %v2682_v23, %v2513_v52  ;;  %v7673_v9 = vor.u32 %v8398_v53, %v7670_v14  ;;  %v8161_v53 = vld [vmem:[#allocation5 + $0xf4] sm:$0xf0]  ;;  %v6718_v14 = vld [vmem:[#allocation5 + $0xf8] sm:$0xf0] }
 0x249   :  { %v9181_v1 = vadd.f32 %v3018_v4, %v2850_v48  ;;  %13884 = vst [vmem:[#allocation162_spill] sm:$0xff] %v9185_v55  ;;  %v9189_v4 = vor.u32 %v8149_v12, %v6686_v36 }
 0x24a   :  { %3730 = vmatpush.bf16.msra.mxu0 %v7673_v9 }
 0x24b   :  { %13882 = vst [vmem:[#allocation160_spill] sm:$0xff] %v9181_v1  ;;  %v8156_v1 = vld [vmem:[#allocation5 + $0xd4] sm:$0xf] }
 0x24c   :  { %13886 = vst [vmem:[#allocation164_spill] sm:$0xff] %v9189_v4 }
 0x24e   :  { %v2851_v0 = vpop.f32.mrf.mxu2  ;;  %v2516_v2 = vpop.f32.mrf.mxu0 }
 0x24f   :  { %v2852_v15 = vadd.f32 %v2851_v0, %v2683_v47  ;;  %v3020_v25 = vpop.f32.mrf.mxu3  ;;  %v2685_v48 = vpop.f32.mrf.mxu1  ;;  %v8430_v0 = vld [vmem:[#allocation8 + $0x164] sm:$0xf]  ;;  %v7798_v47 = vld [vmem:[#allocation8 + $0x168] sm:$0xf0] }
 0x250   :  { %v2686_v23 = vadd.f32 %v2685_v48, %v2516_v2  ;;  %v7801_v37 = vor.u32 %v8430_v0, %v7798_v47  ;;  %v6708_v0 = vld [vmem:[#allocation5 + $0xd0] sm:$0xf] }
 0x251   :  { %v9191_v52 = vadd.f32 %v3020_v25, %v2852_v15  ;;  %3071 = vmatmul.bf16.gmra.mxu0 %v9183_v34  ;;  %v7865_v15 = vor.u32 %v8446_v38, %v7862_v56  ;;  %v7734_v34 = vld [vmem:[#allocation8 + $0xe8] sm:$0xf0]  ;;  %v8160_v47 = vld [vmem:[#allocation5 + $0xec] sm:$0xf0] }
 0x252   :  { %3240 = vmatmul.bf16.gmra.mxu1 %v9185_v55  ;;  %4068 = vmatpush.bf16.msra.mxu2 %v7801_v37  ;;  %v8414_v55 = vld [vmem:[#allocation8 + $0xe4] sm:$0xf]  ;;  %v9199_v37 = vor.u32 %v8160_v47, %v6708_v0  ;;  %v6740_v47 = vld [vmem:[#allocation5 + $0x110] sm:$0xf] }
 0x253   :  { %13887 = vst [vmem:[#allocation165_spill] sm:$0xff] %v9191_v52  ;;  %3409 = vmatmul.bf16.gmra.mxu2 %v9187_v6  ;;  %4237 = vmatpush.bf16.msra.mxu3 %v7865_v15  ;;  %v7737_v52 = vor.u32 %v8414_v55, %v7734_v34  ;;  %v9201_v15 = vor.u32 %v8156_v1, %v6710_v49 }
 0x254   :  { %3578 = vmatmul.bf16.gmra.mxu3 %v9189_v4  ;;  %13889 = vst [vmem:[#allocation167_spill] sm:$0xff] %v9199_v37 }
 0x255   :  { %3899 = vmatpush.bf16.msra.mxu1 %v7737_v52  ;;  %13890 = vst [vmem:[#allocation168_spill] sm:$0xff] %v9201_v15 }
 0x256   :  { %v2854_v36 = vpop.f32.mrf.mxu2  ;;  %v2518_v2 = vpop.f32.mrf.mxu0 }
 0x257   :  { %v2855_v25 = vadd.f32 %v2854_v36, %v2686_v23  ;;  %v3023_v12 = vpop.f32.mrf.mxu3  ;;  %v2687_v48 = vpop.f32.mrf.mxu1  ;;  %v8157_v23 = vld [vmem:[#allocation5 + $0xdc] sm:$0xf] }
 0x258   :  { %v2688_v4 = vadd.f32 %v2687_v48, %v2518_v2  ;;  %v9205_v55 = vor.u32 %v8157_v23, %v6718_v14  ;;  %v8164_v23 = vld [vmem:[#allocation5 + $0x114] sm:$0xf] }
 0x259   :  { %v9197_v6 = vadd.f32 %v3023_v12, %v2855_v25  ;;  %v9203_v25 = vor.u32 %v8161_v53, %v6716_v51  ;;  %v8168_v53 = vld [vmem:[#allocation5 + $0x12c] sm:$0xf0]  ;;  %v6742_v14 = vld [vmem:[#allocation5 + $0x130] sm:$0xf0] }
 0x25a   :  { %13892 = vst [vmem:[#allocation170_spill] sm:$0xff] %v9205_v55 }
 0x25b   :  { %13888 = vst [vmem:[#allocation166_spill] sm:$0xff] %v9197_v6  ;;  %v8193_v6 = vld [vmem:[#allocation5 + $0x1f4] sm:$0xf0] }
 0x25c   :  { %13891 = vst [vmem:[#allocation169_spill] sm:$0xff] %v9203_v25 }
 0x25e   :  { %v2856_v38 = vpop.f32.mrf.mxu2  ;;  %v2521_v9 = vpop.f32.mrf.mxu0 }
 0x25f   :  { %v2857_v56 = vadd.f32 %v2856_v38, %v2688_v4  ;;  %v3025_v36 = vpop.f32.mrf.mxu3  ;;  %v2690_v34 = vpop.f32.mrf.mxu1  ;;  %v6748_v38 = vld [vmem:[#allocation5 + $0x118] sm:$0xf] }
 0x260   :  { %v2691_v2 = vadd.f32 %v2690_v34, %v2521_v9  ;;  %v6750_v9 = vld [vmem:[#allocation5 + $0x138] sm:$0xf0] }
 0x261   :  { %v9207_v12 = vadd.f32 %v3025_v36, %v2857_v56  ;;  %3076 = vmatmul.bf16.gmra.mxu0 %v9199_v37  ;;  %v8169_v56 = vld [vmem:[#allocation5 + $0x134] sm:$0xf0]  ;;  %v8165_v36 = vld [vmem:[#allocation5 + $0x11c] sm:$0xf] }
 0x262   :  { %3245 = vmatmul.bf16.gmra.mxu1 %v9201_v15  ;;  %v9219_v37 = vor.u32 %v8169_v56, %v6748_v38 }
 0x263   :  { %13893 = vst [vmem:[#allocation171_spill] sm:$0xff] %v9207_v12  ;;  %3414 = vmatmul.bf16.gmra.mxu2 %v9203_v25  ;;  %v9215_v25 = vor.u32 %v8168_v53, %v6740_v47  ;;  %v6844_v12 = vld [vmem:[#allocation5 + $0x1d8] sm:$0xf] }
 0x264   :  { %3583 = vmatmul.bf16.gmra.mxu3 %v9205_v55  ;;  %13897 = vst [vmem:[#allocation175_spill] sm:$0xff] %v9219_v37 }
 0x265   :  { %13895 = vst [vmem:[#allocation173_spill] sm:$0xff] %v9215_v25 }
 0x266   :  { %v2859_v4 = vpop.f32.mrf.mxu2  ;;  %v2523_v1 = vpop.f32.mrf.mxu0 }
 0x267   :  { %v2860_v52 = vadd.f32 %v2859_v4, %v2691_v2  ;;  %v3028_v49 = vpop.f32.mrf.mxu3  ;;  %v2692_v51 = vpop.f32.mrf.mxu1  ;;  %v9217_v4 = vor.u32 %v8164_v23, %v6742_v14 }
 0x268   :  { %v2693_v0 = vadd.f32 %v2692_v51, %v2523_v1 }
 0x269   :  { %v9213_v48 = vadd.f32 %v3028_v49, %v2860_v52  ;;  %13896 = vst [vmem:[#allocation174_spill] sm:$0xff] %v9217_v4  ;;  %v9221_v49 = vor.u32 %v8165_v36, %v6750_v9  ;;  %v6772_v36 = vld [vmem:[#allocation5 + $0x150] sm:$0xf]  ;;  %v6774_v9 = vld [vmem:[#allocation5 + $0x170] sm:$0xf0] }
 0x26b   :  { %13894 = vst [vmem:[#allocation172_spill] sm:$0xff] %v9213_v48 }
 0x26c   :  { %13898 = vst [vmem:[#allocation176_spill] sm:$0xff] %v9221_v49 }
 0x26e   :  { %v2861_v34 = vpop.f32.mrf.mxu2  ;;  %v2526_v2 = vpop.f32.mrf.mxu0 }
 0x26f   :  { %v2862_v55 = vadd.f32 %v2861_v34, %v2693_v0  ;;  %v3030_v15 = vpop.f32.mrf.mxu3  ;;  %v2695_v52 = vpop.f32.mrf.mxu1  ;;  %v6780_v34 = vld [vmem:[#allocation5 + $0x158] sm:$0xf] }
 0x270   :  { %v2696_v51 = vadd.f32 %v2695_v52, %v2526_v2  ;;  %v8177_v2 = vld [vmem:[#allocation5 + $0x174] sm:$0xf0]  ;;  %v8173_v52 = vld [vmem:[#allocation5 + $0x15c] sm:$0xf] }
 0x271   :  { %v9223_v1 = vadd.f32 %v3030_v15, %v2862_v55  ;;  %3081 = vmatmul.bf16.gmra.mxu0 %v9215_v25  ;;  %v8176_v15 = vld [vmem:[#allocation5 + $0x16c] sm:$0xf0]  ;;  %v8172_v55 = vld [vmem:[#allocation5 + $0x154] sm:$0xf]  ;;  %v9235_v48 = vor.u32 %v8177_v2, %v6780_v34 }
 0x272   :  { %3250 = vmatmul.bf16.gmra.mxu1 %v9217_v4  ;;  %v6782_v4 = vld [vmem:[#allocation5 + $0x178] sm:$0xf0]  ;;  %v6804_v34 = vld [vmem:[#allocation5 + $0x190] sm:$0xf]  ;;  %v6806_v2 = vld [vmem:[#allocation5 + $0x1b0] sm:$0xf0] }
 0x273   :  { %13899 = vst [vmem:[#allocation177_spill] sm:$0xff] %v9223_v1  ;;  %3419 = vmatmul.bf16.gmra.mxu2 %v9219_v37  ;;  %v9231_v37 = vor.u32 %v8176_v15, %v6772_v36 }
 0x274   :  { %3588 = vmatmul.bf16.gmra.mxu3 %v9221_v49  ;;  %13903 = vst [vmem:[#allocation181_spill] sm:$0xff] %v9235_v48 }
 0x275   :  { %13901 = vst [vmem:[#allocation179_spill] sm:$0xff] %v9231_v37 }
 0x276   :  { %v2864_v0 = vpop.f32.mrf.mxu2  ;;  %v2528_v23 = vpop.f32.mrf.mxu0 }
 0x277   :  { %v2865_v47 = vadd.f32 %v2864_v0, %v2696_v51  ;;  %v3033_v53 = vpop.f32.mrf.mxu3  ;;  %v2697_v14 = vpop.f32.mrf.mxu1  ;;  %v9233_v0 = vor.u32 %v8172_v55, %v6774_v9 }
 0x278   :  { %v2698_v56 = vadd.f32 %v2697_v14, %v2528_v23 }
 0x279   :  { %v9229_v38 = vadd.f32 %v3033_v53, %v2865_v47  ;;  %13902 = vst [vmem:[#allocation180_spill] sm:$0xff] %v9233_v0  ;;  %v9237_v53 = vor.u32 %v8173_v52, %v6782_v4  ;;  %v6812_v52 = vld [vmem:[#allocation5 + $0x198] sm:$0xf] }
 0x27b   :  { %13900 = vst [vmem:[#allocation178_spill] sm:$0xff] %v9229_v38 }
 0x27c   :  { %13904 = vst [vmem:[#allocation182_spill] sm:$0xff] %v9237_v53 }
 0x27e   :  { %v2866_v25 = vpop.f32.mrf.mxu2  ;;  %v2531_v51 = vpop.f32.mrf.mxu0 }
 0x27f   :  { %v2867_v49 = vadd.f32 %v2866_v25, %v2698_v56  ;;  %v3035_v1 = vpop.f32.mrf.mxu3  ;;  %v2700_v47 = vpop.f32.mrf.mxu1 }
 0x280   :  { %v2701_v14 = vadd.f32 %v2700_v47, %v2531_v51  ;;  %v8185_v51 = vld [vmem:[#allocation5 + $0x1b4] sm:$0xf0]  ;;  %v8181_v47 = vld [vmem:[#allocation5 + $0x19c] sm:$0xf] }
 0x281   :  { %v9239_v23 = vadd.f32 %v3035_v1, %v2867_v49  ;;  %3086 = vmatmul.bf16.gmra.mxu0 %v9231_v37  ;;  %v8184_v49 = vld [vmem:[#allocation5 + $0x1ac] sm:$0xf0]  ;;  %v8180_v1 = vld [vmem:[#allocation5 + $0x194] sm:$0xf]  ;;  %v9251_v38 = vor.u32 %v8185_v51, %v6812_v52  ;;  %v7854_v52 = vld [vmem:[#allocation8 + $0x1d8] sm:$0xf0] }
 0x282   :  { %3255 = vmatmul.bf16.gmra.mxu1 %v9233_v0  ;;  %v6814_v0 = vld [vmem:[#allocation5 + $0x1b8] sm:$0xf0] }
 0x283   :  { %13905 = vst [vmem:[#allocation183_spill] sm:$0xff] %v9239_v23  ;;  %3424 = vmatmul.bf16.gmra.mxu2 %v9235_v48  ;;  %v9247_v48 = vor.u32 %v8184_v49, %v6804_v34  ;;  %v8396_v34 = vld [vmem:[#allocation8 + $0x54] sm:$0xf] }
 0x284   :  { %3593 = vmatmul.bf16.gmra.mxu3 %v9237_v53  ;;  %13909 = vst [vmem:[#allocation187_spill] sm:$0xff] %v9251_v38 }
 0x285   :  { %13907 = vst [vmem:[#allocation185_spill] sm:$0xff] %v9247_v48 }
 0x286   :  { %v2869_v25 = vpop.f32.mrf.mxu2  ;;  %v2533_v15 = vpop.f32.mrf.mxu0 }
 0x287   :  { %v2870_v56 = vadd.f32 %v2869_v25, %v2701_v14  ;;  %v3038_v36 = vpop.f32.mrf.mxu3  ;;  %v2702_v55 = vpop.f32.mrf.mxu1  ;;  %v9249_v25 = vor.u32 %v8180_v1, %v6806_v2  ;;  %v7662_v1 = vld [vmem:[#allocation8 + $0x58] sm:$0xf0]  ;;  %v8444_v2 = vld [vmem:[#allocation8 + $0x1d4] sm:$0xf] }
 0x288   :  { %v2703_v4 = vadd.f32 %v2702_v55, %v2533_v15  ;;  %v7665_v51 = vor.u32 %v8396_v34, %v7662_v1  ;;  %v8189_v1 = vld [vmem:[#allocation5 + $0x1dc] sm:$0xf] }
 0x289   :  { %v9245_v9 = vadd.f32 %v3038_v36, %v2870_v56  ;;  %13908 = vst [vmem:[#allocation186_spill] sm:$0xff] %v9249_v25  ;;  %v9253_v36 = vor.u32 %v8181_v47, %v6814_v0 }
 0x28a   :  { %3731 = vmatpush.bf16.msra.mxu0 %v7665_v51 }
 0x28b   :  { %13906 = vst [vmem:[#allocation184_spill] sm:$0xff] %v9245_v9  ;;  %v6838_v9 = vld [vmem:[#allocation5 + $0x1f0] sm:$0xf0] }
 0x28c   :  { %13910 = vst [vmem:[#allocation188_spill] sm:$0xff] %v9253_v36 }
 0x28e   :  { %v2871_v37 = vpop.f32.mrf.mxu2  ;;  %v2536_v14 = vpop.f32.mrf.mxu0 }
 0x28f   :  { %v2872_v53 = vadd.f32 %v2871_v37, %v2703_v4  ;;  %v3040_v23 = vpop.f32.mrf.mxu3  ;;  %v2705_v56 = vpop.f32.mrf.mxu1  ;;  %v8428_v37 = vld [vmem:[#allocation8 + $0x154] sm:$0xf]  ;;  %v7790_v4 = vld [vmem:[#allocation8 + $0x158] sm:$0xf0] }
 0x290   :  { %v2706_v55 = vadd.f32 %v2705_v56, %v2536_v14  ;;  %v7793_v49 = vor.u32 %v8428_v37, %v7790_v4  ;;  %v8412_v37 = vld [vmem:[#allocation8 + $0xd4] sm:$0xf]  ;;  %v7726_v4 = vld [vmem:[#allocation8 + $0xd8] sm:$0xf0] }
 0x291   :  { %v9255_v15 = vadd.f32 %v3040_v23, %v2872_v53  ;;  %3091 = vmatmul.bf16.gmra.mxu0 %v9247_v48  ;;  %v7857_v53 = vor.u32 %v8444_v2, %v7854_v52  ;;  %v8192_v48 = vld [vmem:[#allocation5 + $0x1ec] sm:$0xf0]  ;;  %v7729_v34 = vor.u32 %v8412_v37, %v7726_v4 }
 0x292   :  { %3260 = vmatmul.bf16.gmra.mxu1 %v9249_v25  ;;  %4069 = vmatpush.bf16.msra.mxu2 %v7793_v49  ;;  %v6836_v25 = vld [vmem:[#allocation5 + $0x1d0] sm:$0xf] }
 0x293   :  { %13911 = vst [vmem:[#allocation189_spill] sm:$0xff] %v9255_v15  ;;  %3429 = vmatmul.bf16.gmra.mxu2 %v9251_v38  ;;  %4238 = vmatpush.bf16.msra.mxu3 %v7857_v53  ;;  %v8188_v15 = vld [vmem:[#allocation5 + $0x1d4] sm:$0xf]  ;;  %v9263_v52 = vor.u32 %v8192_v48, %v6836_v25  ;;  %v6868_v37 = vld [vmem:[#allocation5 + $0x210] sm:$0xf] }
 0x294   :  { %3598 = vmatmul.bf16.gmra.mxu3 %v9253_v36  ;;  %3900 = vmatpush.bf16.msra.mxu1 %v7729_v34  ;;  %v9265_v53 = vor.u32 %v8188_v15, %v6838_v9  ;;  %v8200_v4 = vld [vmem:[#allocation5 + $0x22c] sm:$0xf0]  ;;  %v8196_v34 = vld [vmem:[#allocation5 + $0x214] sm:$0xf] }
 0x295   :  { %13913 = vst [vmem:[#allocation191_spill] sm:$0xff] %v9263_v52 }
 0x296   :  { %v2874_v0 = vpop.f32.mrf.mxu2  ;;  %v2538_v14 = vpop.f32.mrf.mxu0  ;;  %13914 = vst [vmem:[#allocation192_spill] sm:$0xff] %v9265_v53 }
 0x297   :  { %v2875_v23 = vadd.f32 %v2874_v0, %v2706_v55  ;;  %v3043_v47 = vpop.f32.mrf.mxu3  ;;  %v2707_v56 = vpop.f32.mrf.mxu1  ;;  %v6846_v55 = vld [vmem:[#allocation5 + $0x1f8] sm:$0xf0] }
 0x298   :  { %v2708_v36 = vadd.f32 %v2707_v56, %v2538_v14  ;;  %v9269_v14 = vor.u32 %v8189_v1, %v6846_v55  ;;  %v6870_v1 = vld [vmem:[#allocation5 + $0x230] sm:$0xf0]  ;;  %v6876_v55 = vld [vmem:[#allocation5 + $0x218] sm:$0xf] }
 0x299   :  { %v9261_v38 = vadd.f32 %v3043_v47, %v2875_v23  ;;  %v9267_v23 = vor.u32 %v8193_v6, %v6844_v12 }
 0x29a   :  { %13916 = vst [vmem:[#allocation194_spill] sm:$0xff] %v9269_v14 }
 0x29b   :  { %13912 = vst [vmem:[#allocation190_spill] sm:$0xff] %v9261_v38 }
 0x29c   :  { %13915 = vst [vmem:[#allocation193_spill] sm:$0xff] %v9267_v23 }
 0x29e   :  { %v2876_v2 = vpop.f32.mrf.mxu2  ;;  %v2541_v51 = vpop.f32.mrf.mxu0 }
 0x29f   :  { %v2877_v49 = vadd.f32 %v2876_v2, %v2708_v36  ;;  %v3045_v0 = vpop.f32.mrf.mxu3  ;;  %v2710_v47 = vpop.f32.mrf.mxu1  ;;  %v8201_v2 = vld [vmem:[#allocation5 + $0x234] sm:$0xf0] }
 0x2a0   :  { %v2711_v38 = vadd.f32 %v2710_v47, %v2541_v51  ;;  %v9279_v47 = vor.u32 %v8200_v4, %v6868_v37 }
 0x2a1   :  { %v9271_v56 = vadd.f32 %v3045_v0, %v2877_v49  ;;  %3096 = vmatmul.bf16.gmra.mxu0 %v9263_v52  ;;  %v8197_v49 = vld [vmem:[#allocation5 + $0x21c] sm:$0xf] }
 0x2a2   :  { %3265 = vmatmul.bf16.gmra.mxu1 %v9265_v53  ;;  %v6878_v0 = vld [vmem:[#allocation5 + $0x238] sm:$0xf0]  ;;  %13917 = vst [vmem:[#allocation195_spill] sm:$0xff] %v9279_v47  ;;  %v9283_v53 = vor.u32 %v8201_v2, %v6876_v55  ;;  %v8208_v2 = vld [vmem:[#allocation5 + $0x26c] sm:$0xf0] }
 0x2a3   :  { %3434 = vmatmul.bf16.gmra.mxu2 %v9267_v23 }
 0x2a4   :  { %3603 = vmatmul.bf16.gmra.mxu3 %v9269_v14  ;;  %13919 = vst [vmem:[#allocation197_spill] sm:$0xff] %v9283_v53 }
 0x2a6   :  { %v2879_v48 = vpop.f32.mrf.mxu2  ;;  %v2543_v36 = vpop.f32.mrf.mxu0 }
 0x2a7   :  { %v2880_v25 = vadd.f32 %v2879_v48, %v2711_v38  ;;  %v3048_v9 = vpop.f32.mrf.mxu3  ;;  %v2712_v6 = vpop.f32.mrf.mxu1  ;;  %v9281_v48 = vor.u32 %v8196_v34, %v6870_v1 }
 0x2a8   :  { %v2713_v15 = vadd.f32 %v2712_v6, %v2543_v36  ;;  %v9286_v36 = vor.u32 %v8197_v49, %v6878_v0  ;;  %v8204_v49 = vld [vmem:[#allocation5 + $0x254] sm:$0xf] }
 0x2a9   :  { %v9277_v12 = vadd.f32 %v3048_v9, %v2880_v25  ;;  %13918 = vst [vmem:[#allocation196_spill] sm:$0xff] %v9281_v48  ;;  %v6902_v0 = vld [vmem:[#allocation5 + $0x270] sm:$0xf0] }
 0x2aa   :  { %13920 = vst [vmem:[#allocation198_spill] sm:$0xff] %v9286_v36 }
 0x2ae   :  { %v2881_v51 = vpop.f32.mrf.mxu2  ;;  %v3062_v38 = vpop.f32.mrf.mxu0 }
 0x2af   :  { %v2882_v14 = vadd.f32 %v2881_v51, %v2713_v15  ;;  %v3050_v23 = vpop.f32.mrf.mxu3  ;;  %v3063_v25 = vadd.f32 %v3062_v38, %v8781_v32  ;;  %v3231_v9 = vpop.f32.mrf.mxu1  ;;  %v6908_v51 = vld [vmem:[#allocation5 + $0x258] sm:$0xf] }
 0x2b0   :  { %v8209_v38 = vld [vmem:[#allocation5 + $0x274] sm:$0xf0] }
 0x2b1   :  { %v9288_v6 = vadd.f32 %v3050_v23, %v2882_v14  ;;  %v3232_v52 = vadd.f32 %v3231_v9, %v3063_v25  ;;  %3101 = vmatmul.bf16.gmra.mxu0 %v9279_v47  ;;  %v6900_v14 = vld [vmem:[#allocation5 + $0x250] sm:$0xf]  ;;  %v8205_v25 = vld [vmem:[#allocation5 + $0x25c] sm:$0xf]  ;;  %v9299_v47 = vor.u32 %v8204_v49, %v6902_v0 }
 0x2b2   :  { %3270 = vmatmul.bf16.gmra.mxu1 %v9281_v48  ;;  %v6910_v9 = vld [vmem:[#allocation5 + $0x278] sm:$0xf0] }
 0x2b3   :  { %3439 = vmatmul.bf16.gmra.mxu2 %v9283_v53 }
 0x2b4   :  { %3608 = vmatmul.bf16.gmra.mxu3 %v9286_v36  ;;  %v9297_v36 = vor.u32 %v8208_v2, %v6900_v14 }
 0x2b6   :  { %v3400_v15 = vpop.f32.mrf.mxu2  ;;  %v3064_v34 = vpop.f32.mrf.mxu0 }
 0x2b7   :  { %v3401_v37 = vadd.f32 %v3400_v15, %v3232_v52  ;;  %v3569_v4 = vpop.f32.mrf.mxu3  ;;  %v3065_v32 = vadd.f32 %v3064_v34, %v8791_v11  ;;  %v3233_v1 = vpop.f32.mrf.mxu1  ;;  %v9301_v11 = vor.u32 %v8209_v38, %v6908_v51  ;;  %v9304_v34 = vor.u32 %v8205_v25, %v6910_v9  ;;  %v6932_v51 = vld [vmem:[#allocation5 + $0x290] sm:$0xf]  ;;  %v8212_v25 = vld [vmem:[#allocation5 + $0x294] sm:$0xf] }
 0x2b8   :  { %v8216_v38 = vld [vmem:[#allocation5 + $0x2ac] sm:$0xf0]  ;;  %v6934_v9 = vld [vmem:[#allocation5 + $0x2b0] sm:$0xf0] }
 0x2b9   :  { %v9295_v55 = vadd.f32 %v3569_v4, %v3401_v37  ;;  %v3234_v23 = vadd.f32 %v3233_v1, %v3065_v32  ;;  %13922 = vst [vmem:[#allocation200_spill] sm:$0xff] %v9301_v11 }
 0x2ba   :  { %13923 = vst [vmem:[#allocation201_spill] sm:$0xff] %v9304_v34 }
 0x2bb   :  { %13921 = vst [vmem:[#allocation199_spill] sm:$0xff] %v9295_v55 }
 0x2be   :  { %v3402_v53 = vpop.f32.mrf.mxu2  ;;  %v3067_v48 = vpop.f32.mrf.mxu0 }
 0x2bf   :  { %v3403_v52 = vadd.f32 %v3402_v53, %v3234_v23  ;;  %v3571_v15 = vpop.f32.mrf.mxu3  ;;  %v3068_v37 = vadd.f32 %v3067_v48, %v8797_v30  ;;  %v3236_v4 = vpop.f32.mrf.mxu1 }
 0x2c1   :  { %v9306_v32 = vadd.f32 %v3571_v15, %v3403_v52  ;;  %v3237_v1 = vadd.f32 %v3236_v4, %v3068_v37  ;;  %3106 = vmatmul.bf16.gmra.mxu0 %v9297_v36  ;;  %v6940_v52 = vld [vmem:[#allocation5 + $0x298] sm:$0xf]  ;;  %v8213_v37 = vld [vmem:[#allocation5 + $0x29c] sm:$0xf] }
 0x2c2   :  { %3275 = vmatmul.bf16.gmra.mxu1 %v9299_v47  ;;  %v8217_v15 = vld [vmem:[#allocation5 + $0x2b4] sm:$0xf0]  ;;  %v6942_v4 = vld [vmem:[#allocation5 + $0x2b8] sm:$0xf0] }
 0x2c3   :  { %13924 = vst [vmem:[#allocation202_spill] sm:$0xff] %v9306_v32  ;;  %3444 = vmatmul.bf16.gmra.mxu2 %v9301_v11  ;;  %v9315_v32 = vor.u32 %v8216_v38, %v6932_v51  ;;  %v9317_v11 = vor.u32 %v8212_v25, %v6934_v9  ;;  %v8394_v51 = vld [vmem:[#allocation8 + $0x44] sm:$0xf]  ;;  %v7846_v9 = vld [vmem:[#allocation8 + $0x1c8] sm:$0xf0] }
 0x2c4   :  { %3613 = vmatmul.bf16.gmra.mxu3 %v9304_v34 }
 0x2c5   :  { %13926 = vst [vmem:[#allocation204_spill] sm:$0xff] %v9315_v32 }
 0x2c6   :  { %v3405_v53 = vpop.f32.mrf.mxu2  ;;  %v3069_v2 = vpop.f32.mrf.mxu0  ;;  %13927 = vst [vmem:[#allocation205_spill] sm:$0xff] %v9317_v11 }
 0x2c7   :  { %v3406_v23 = vadd.f32 %v3405_v53, %v3237_v1  ;;  %v3574_v14 = vpop.f32.mrf.mxu3  ;;  %v3070_v30 = vadd.f32 %v3069_v2, %v8807_v27  ;;  %v3238_v48 = vpop.f32.mrf.mxu1  ;;  %v9319_v27 = vor.u32 %v8217_v15, %v6940_v52  ;;  %v9322_v2 = vor.u32 %v8213_v37, %v6942_v4 }
 0x2c9   :  { %v9313_v49 = vadd.f32 %v3574_v14, %v3406_v23  ;;  %v3239_v0 = vadd.f32 %v3238_v48, %v3070_v30  ;;  %13928 = vst [vmem:[#allocation206_spill] sm:$0xff] %v9319_v27 }
 0x2ca   :  { %13929 = vst [vmem:[#allocation207_spill] sm:$0xff] %v9322_v2 }
 0x2cb   :  { %13925 = vst [vmem:[#allocation203_spill] sm:$0xff] %v9313_v49  ;;  %v6964_v49 = vld [vmem:[#allocation5 + $0x2d0] sm:$0xf] }
 0x2ce   :  { %v3407_v55 = vpop.f32.mrf.mxu2  ;;  %v3072_v34 = vpop.f32.mrf.mxu0 }
 0x2cf   :  { %v3408_v1 = vadd.f32 %v3407_v55, %v3239_v0  ;;  %v3576_v53 = vpop.f32.mrf.mxu3  ;;  %v3073_v23 = vadd.f32 %v3072_v34, %v8813_v24  ;;  %v3241_v14 = vpop.f32.mrf.mxu1  ;;  %v8426_v55 = vld [vmem:[#allocation8 + $0x144] sm:$0xf]  ;;  %v7782_v0 = vld [vmem:[#allocation8 + $0x148] sm:$0xf0] }
 0x2d0   :  { %v7785_v25 = vor.u32 %v8426_v55, %v7782_v0  ;;  %v7654_v24 = vld [vmem:[#allocation8 + $0x48] sm:$0xf0]  ;;  %v8442_v34 = vld [vmem:[#allocation8 + $0x1c4] sm:$0xf]  ;;  %v8220_v55 = vld [vmem:[#allocation5 + $0x2d4] sm:$0xf] }
 0x2d1   :  { %v9324_v30 = vadd.f32 %v3576_v53, %v3408_v1  ;;  %v3242_v48 = vadd.f32 %v3241_v14, %v3073_v23  ;;  %3111 = vmatmul.bf16.gmra.mxu0 %v9315_v32  ;;  %v7657_v4 = vor.u32 %v8394_v51, %v7654_v24  ;;  %v7849_v1 = vor.u32 %v8442_v34, %v7846_v9  ;;  %v6966_v0 = vld [vmem:[#allocation5 + $0x2f0] sm:$0xf0]  ;;  %v8410_v32 = vld [vmem:[#allocation8 + $0xc4] sm:$0xf]  ;;  %v7718_v51 = vld [vmem:[#allocation8 + $0xc8] sm:$0xf0] }
 0x2d2   :  { %3280 = vmatmul.bf16.gmra.mxu1 %v9317_v11  ;;  %4070 = vmatpush.bf16.msra.mxu2 %v7785_v25  ;;  %v8225_v11 = vld [vmem:[#allocation5 + $0x2f4] sm:$0xf0] }
 0x2d3   :  { %13930 = vst [vmem:[#allocation208_spill] sm:$0xff] %v9324_v30  ;;  %3449 = vmatmul.bf16.gmra.mxu2 %v9319_v27  ;;  %3732 = vmatpush.bf16.msra.mxu0 %v7657_v4  ;;  %v6972_v27 = vld [vmem:[#allocation5 + $0x2d8] sm:$0xf] }
 0x2d4   :  { %3618 = vmatmul.bf16.gmra.mxu3 %v9322_v2  ;;  %v8224_v2 = vld [vmem:[#allocation5 + $0x2ec] sm:$0xf0] }
 0x2d5   :  { %4239 = vmatpush.bf16.msra.mxu3 %v7849_v1  ;;  %v9333_v34 = vor.u32 %v8224_v2, %v6964_v49 }
 0x2d6   :  { %v3410_v38 = vpop.f32.mrf.mxu2  ;;  %v3074_v37 = vpop.f32.mrf.mxu0 }
 0x2d7   :  { %v3411_v52 = vadd.f32 %v3410_v38, %v3242_v48  ;;  %v3579_v15 = vpop.f32.mrf.mxu3  ;;  %v3075_v53 = vadd.f32 %v3074_v37, %v8823_v60  ;;  %v3243_v23 = vpop.f32.mrf.mxu1  ;;  %v8221_v48 = vld [vmem:[#allocation5 + $0x2dc] sm:$0xf]  ;;  %v7721_v60 = vor.u32 %v8410_v32, %v7718_v51  ;;  %v9337_v37 = vor.u32 %v8225_v11, %v6972_v27  ;;  %v6998_v51 = vld [vmem:[#allocation5 + $0x330] sm:$0xf0] }
 0x2d8   :  { %v6974_v38 = vld [vmem:[#allocation5 + $0x2f8] sm:$0xf0] }
 0x2d9   :  { %v9331_v14 = vadd.f32 %v3579_v15, %v3411_v52  ;;  %v3244_v30 = vadd.f32 %v3243_v23, %v3075_v53  ;;  %v9335_v15 = vor.u32 %v8220_v55, %v6966_v0  ;;  %v9340_v53 = vor.u32 %v8221_v48, %v6974_v38  ;;  %3901 = vmatpush.bf16.msra.mxu1 %v7721_v60  ;;  %v6996_v0 = vld [vmem:[#allocation5 + $0x310] sm:$0xf]  ;;  %v8228_v38 = vld [vmem:[#allocation5 + $0x314] sm:$0xf]  ;;  %v8233_v60 = vld [vmem:[#allocation5 + $0x334] sm:$0xf0] }
 0x2da   :  { %v8232_v48 = vld [vmem:[#allocation5 + $0x32c] sm:$0xf0] }
 0x2db   :  { %13931 = vst [vmem:[#allocation209_spill] sm:$0xff] %v9331_v14 }
 0x2de   :  { %v3412_v24 = vpop.f32.mrf.mxu2  ;;  %v3077_v52 = vpop.f32.mrf.mxu0 }
 0x2df   :  { %v3413_v25 = vadd.f32 %v3412_v24, %v3244_v30  ;;  %v3581_v9 = vpop.f32.mrf.mxu3  ;;  %v3078_v4 = vadd.f32 %v3077_v52, %v8829_v62  ;;  %v3246_v1 = vpop.f32.mrf.mxu1  ;;  %v7004_v24 = vld [vmem:[#allocation5 + $0x318] sm:$0xf] }
 0x2e1   :  { %v9342_v23 = vadd.f32 %v3581_v9, %v3413_v25  ;;  %v3247_v14 = vadd.f32 %v3246_v1, %v3078_v4  ;;  %3116 = vmatmul.bf16.gmra.mxu0 %v9333_v34  ;;  %v8229_v25 = vld [vmem:[#allocation5 + $0x31c] sm:$0xf]  ;;  %v9351_v4 = vor.u32 %v8232_v48, %v6996_v0 }
 0x2e2   :  { %3285 = vmatmul.bf16.gmra.mxu1 %v9335_v15  ;;  %v7006_v9 = vld [vmem:[#allocation5 + $0x338] sm:$0xf0] }
 0x2e3   :  { %13932 = vst [vmem:[#allocation210_spill] sm:$0xff] %v9342_v23  ;;  %3454 = vmatmul.bf16.gmra.mxu2 %v9337_v37  ;;  %v9353_v23 = vor.u32 %v8228_v38, %v6998_v51 }
 0x2e4   :  { %3623 = vmatmul.bf16.gmra.mxu3 %v9340_v53 }
 0x2e6   :  { %v3415_v32 = vpop.f32.mrf.mxu2  ;;  %v3079_v27 = vpop.f32.mrf.mxu0 }
 0x2e7   :  { %v3416_v11 = vadd.f32 %v3415_v32, %v3247_v14  ;;  %v3584_v49 = vpop.f32.mrf.mxu3  ;;  %v3080_v62 = vadd.f32 %v3079_v27, %v8839_v10  ;;  %v3248_v2 = vpop.f32.mrf.mxu1  ;;  %v9355_v10 = vor.u32 %v8233_v60, %v7004_v24  ;;  %v9358_v27 = vor.u32 %v8229_v25, %v7006_v9  ;;  %v7028_v25 = vld [vmem:[#allocation5 + $0x350] sm:$0xf] }
 0x2e8   :  { %v8240_v9 = vld [vmem:[#allocation5 + $0x36c] sm:$0xf0] }
 0x2e9   :  { %v9349_v30 = vadd.f32 %v3584_v49, %v3416_v11  ;;  %v3249_v55 = vadd.f32 %v3248_v2, %v3080_v62  ;;  %13934 = vst [vmem:[#allocation212_spill] sm:$0xff] %v9355_v10 }
 0x2ea   :  { %13935 = vst [vmem:[#allocation213_spill] sm:$0xff] %v9358_v27 }
 0x2eb   :  { %13933 = vst [vmem:[#allocation211_spill] sm:$0xff] %v9349_v30  ;;  %v9369_v30 = vor.u32 %v8240_v9, %v7028_v25 }
 0x2ee   :  { %v3417_v52 = vpop.f32.mrf.mxu2  ;;  %v3082_v32 = vpop.f32.mrf.mxu0 }
 0x2ef   :  { %v3418_v14 = vadd.f32 %v3417_v52, %v3249_v55  ;;  %v3586_v1 = vpop.f32.mrf.mxu3  ;;  %v3083_v11 = vadd.f32 %v3082_v32, %v8845_v40  ;;  %v3251_v49 = vpop.f32.mrf.mxu1  ;;  %v8236_v52 = vld [vmem:[#allocation5 + $0x354] sm:$0xf]  ;;  %v8241_v32 = vld [vmem:[#allocation5 + $0x374] sm:$0xf0] }
 0x2f1   :  { %v9360_v62 = vadd.f32 %v3586_v1, %v3418_v14  ;;  %v3252_v2 = vadd.f32 %v3251_v49, %v3083_v11  ;;  %3121 = vmatmul.bf16.gmra.mxu0 %v9351_v4  ;;  %v7030_v14 = vld [vmem:[#allocation5 + $0x370] sm:$0xf0]  ;;  %v7036_v1 = vld [vmem:[#allocation5 + $0x358] sm:$0xf]  ;;  %v8237_v11 = vld [vmem:[#allocation5 + $0x35c] sm:$0xf] }
 0x2f2   :  { %3290 = vmatmul.bf16.gmra.mxu1 %v9353_v23  ;;  %v7038_v49 = vld [vmem:[#allocation5 + $0x378] sm:$0xf0] }
 0x2f3   :  { %13936 = vst [vmem:[#allocation214_spill] sm:$0xff] %v9360_v62  ;;  %3459 = vmatmul.bf16.gmra.mxu2 %v9355_v10  ;;  %v9371_v10 = vor.u32 %v8236_v52, %v7030_v14 }
 0x2f4   :  { %3628 = vmatmul.bf16.gmra.mxu3 %v9358_v27 }
 0x2f6   :  { %v3420_v55 = vpop.f32.mrf.mxu2  ;;  %v3084_v38 = vpop.f32.mrf.mxu0 }
 0x2f7   :  { %v3421_v0 = vadd.f32 %v3420_v55, %v3252_v2  ;;  %v3589_v48 = vpop.f32.mrf.mxu3  ;;  %v3085_v40 = vadd.f32 %v3084_v38, %v8855_v28  ;;  %v3253_v51 = vpop.f32.mrf.mxu1  ;;  %v9373_v28 = vor.u32 %v8241_v32, %v7036_v1  ;;  %v9376_v38 = vor.u32 %v8237_v11, %v7038_v49  ;;  %v7060_v1 = vld [vmem:[#allocation5 + $0x390] sm:$0xf]  ;;  %v8244_v11 = vld [vmem:[#allocation5 + $0x394] sm:$0xf] }
 0x2f8   :  { %v8248_v32 = vld [vmem:[#allocation5 + $0x3ac] sm:$0xf0]  ;;  %v7062_v49 = vld [vmem:[#allocation5 + $0x3b0] sm:$0xf0] }
 0x2f9   :  { %v9367_v24 = vadd.f32 %v3589_v48, %v3421_v0  ;;  %v3254_v60 = vadd.f32 %v3253_v51, %v3085_v40  ;;  %13938 = vst [vmem:[#allocation216_spill] sm:$0xff] %v9373_v28 }
 0x2fa   :  { %13939 = vst [vmem:[#allocation217_spill] sm:$0xff] %v9376_v38 }
 0x2fb   :  { %13937 = vst [vmem:[#allocation215_spill] sm:$0xff] %v9367_v24  ;;  %v9387_v24 = vor.u32 %v8248_v32, %v7060_v1  ;;  %v8392_v1 = vld [vmem:[#allocation8 + $0x34] sm:$0xf] }
 0x2fd   :  { %13942 = vst [vmem:[#allocation220_spill] sm:$0xff] %v9387_v24 }
 0x2fe   :  { %v3422_v62 = vpop.f32.mrf.mxu2  ;;  %v3087_v27 = vpop.f32.mrf.mxu0 }
 0x2ff   :  { %v3423_v2 = vadd.f32 %v3422_v62, %v3254_v60  ;;  %v3591_v55 = vpop.f32.mrf.mxu3  ;;  %v3088_v0 = vadd.f32 %v3087_v27, %v8861_v43  ;;  %v3256_v48 = vpop.f32.mrf.mxu1 }
 0x301   :  { %v9378_v40 = vadd.f32 %v3591_v55, %v3423_v2  ;;  %v3257_v51 = vadd.f32 %v3256_v48, %v3088_v0  ;;  %3126 = vmatmul.bf16.gmra.mxu0 %v9369_v30  ;;  %v7068_v2 = vld [vmem:[#allocation5 + $0x398] sm:$0xf]  ;;  %v8245_v0 = vld [vmem:[#allocation5 + $0x39c] sm:$0xf] }
 0x302   :  { %3295 = vmatmul.bf16.gmra.mxu1 %v9371_v10  ;;  %v8249_v55 = vld [vmem:[#allocation5 + $0x3b4] sm:$0xf0]  ;;  %v7070_v48 = vld [vmem:[#allocation5 + $0x3b8] sm:$0xf0] }
 0x303   :  { %13940 = vst [vmem:[#allocation218_spill] sm:$0xff] %v9378_v40  ;;  %3464 = vmatmul.bf16.gmra.mxu2 %v9373_v28  ;;  %v9389_v28 = vor.u32 %v8244_v11, %v7062_v49  ;;  %v7838_v49 = vld [vmem:[#allocation8 + $0x1b8] sm:$0xf0] }
 0x304   :  { %3633 = vmatmul.bf16.gmra.mxu3 %v9376_v38 }
 0x305   :  { %13943 = vst [vmem:[#allocation221_spill] sm:$0xff] %v9389_v28 }
 0x306   :  { %v3425_v62 = vpop.f32.mrf.mxu2  ;;  %v3089_v9 = vpop.f32.mrf.mxu0 }
 0x307   :  { %v3426_v60 = vadd.f32 %v3425_v62, %v3257_v51  ;;  %v3594_v25 = vpop.f32.mrf.mxu3  ;;  %v3090_v43 = vadd.f32 %v3089_v9, %v8871_v44  ;;  %v3258_v27 = vpop.f32.mrf.mxu1  ;;  %v9391_v44 = vor.u32 %v8249_v55, %v7068_v2  ;;  %v9394_v9 = vor.u32 %v8245_v0, %v7070_v48 }
 0x309   :  { %v9385_v52 = vadd.f32 %v3594_v25, %v3426_v60  ;;  %v3259_v14 = vadd.f32 %v3258_v27, %v3090_v43  ;;  %13944 = vst [vmem:[#allocation222_spill] sm:$0xff] %v9391_v44 }
 0x30a   :  { %13945 = vst [vmem:[#allocation223_spill] sm:$0xff] %v9394_v9 }
 0x30b   :  { %13941 = vst [vmem:[#allocation219_spill] sm:$0xff] %v9385_v52  ;;  %v7092_v52 = vld [vmem:[#allocation5 + $0x3d0] sm:$0xf] }
 0x30e   :  { %v3427_v40 = vpop.f32.mrf.mxu2  ;;  %v3092_v38 = vpop.f32.mrf.mxu0 }
 0x30f   :  { %v3428_v51 = vadd.f32 %v3427_v40, %v3259_v14  ;;  %v3596_v62 = vpop.f32.mrf.mxu3  ;;  %v3093_v60 = vadd.f32 %v3092_v38, %v8877_v18  ;;  %v3261_v25 = vpop.f32.mrf.mxu1  ;;  %v8424_v40 = vld [vmem:[#allocation8 + $0x134] sm:$0xf]  ;;  %v7774_v14 = vld [vmem:[#allocation8 + $0x138] sm:$0xf0] }
 0x310   :  { %v7777_v11 = vor.u32 %v8424_v40, %v7774_v14  ;;  %v7646_v18 = vld [vmem:[#allocation8 + $0x38] sm:$0xf0]  ;;  %v8440_v38 = vld [vmem:[#allocation8 + $0x1b4] sm:$0xf] }
 0x311   :  { %v9396_v43 = vadd.f32 %v3596_v62, %v3428_v51  ;;  %v3262_v27 = vadd.f32 %v3261_v25, %v3093_v60  ;;  %3131 = vmatmul.bf16.gmra.mxu0 %v9387_v24  ;;  %v7649_v48 = vor.u32 %v8392_v1, %v7646_v18  ;;  %v7841_v51 = vor.u32 %v8440_v38, %v7838_v49  ;;  %v8252_v40 = vld [vmem:[#allocation5 + $0x3d4] sm:$0xf]  ;;  %v7710_v1 = vld [vmem:[#allocation8 + $0xb8] sm:$0xf0] }
 0x312   :  { %3300 = vmatmul.bf16.gmra.mxu1 %v9389_v28  ;;  %4071 = vmatpush.bf16.msra.mxu2 %v7777_v11  ;;  %v7094_v14 = vld [vmem:[#allocation5 + $0x3f0] sm:$0xf0]  ;;  %v8257_v28 = vld [vmem:[#allocation5 + $0x3f4] sm:$0xf0] }
 0x313   :  { %13946 = vst [vmem:[#allocation224_spill] sm:$0xff] %v9396_v43  ;;  %3469 = vmatmul.bf16.gmra.mxu2 %v9391_v44  ;;  %3733 = vmatpush.bf16.msra.mxu0 %v7649_v48  ;;  %v7100_v44 = vld [vmem:[#allocation5 + $0x3d8] sm:$0xf]  ;;  %v8408_v24 = vld [vmem:[#allocation8 + $0xb4] sm:$0xf] }
 0x314   :  { %3638 = vmatmul.bf16.gmra.mxu3 %v9394_v9  ;;  %v8256_v9 = vld [vmem:[#allocation5 + $0x3ec] sm:$0xf0] }
 0x315   :  { %4240 = vmatpush.bf16.msra.mxu3 %v7841_v51  ;;  %v9405_v38 = vor.u32 %v8256_v9, %v7092_v52 }
 0x316   :  { %v3430_v32 = vpop.f32.mrf.mxu2  ;;  %v3094_v0 = vpop.f32.mrf.mxu0 }
 0x317   :  { %v3431_v2 = vadd.f32 %v3430_v32, %v3262_v27  ;;  %v3599_v55 = vpop.f32.mrf.mxu3  ;;  %v3095_v62 = vadd.f32 %v3094_v0, %v8887_v31  ;;  %v3263_v60 = vpop.f32.mrf.mxu1  ;;  %v8253_v27 = vld [vmem:[#allocation5 + $0x3dc] sm:$0xf]  ;;  %v7713_v31 = vor.u32 %v8408_v24, %v7710_v1  ;;  %v9409_v0 = vor.u32 %v8257_v28, %v7100_v44  ;;  %v7126_v1 = vld [vmem:[#allocation5 + $0x430] sm:$0xf0] }
 0x318   :  { %v7102_v32 = vld [vmem:[#allocation5 + $0x3f8] sm:$0xf0] }
 0x319   :  { %v9403_v25 = vadd.f32 %v3599_v55, %v3431_v2  ;;  %v3264_v43 = vadd.f32 %v3263_v60, %v3095_v62  ;;  %v9407_v55 = vor.u32 %v8252_v40, %v7094_v14  ;;  %v9412_v62 = vor.u32 %v8253_v27, %v7102_v32  ;;  %3902 = vmatpush.bf16.msra.mxu1 %v7713_v31  ;;  %v7124_v14 = vld [vmem:[#allocation5 + $0x410] sm:$0xf]  ;;  %v8260_v32 = vld [vmem:[#allocation5 + $0x414] sm:$0xf]  ;;  %v8265_v31 = vld [vmem:[#allocation5 + $0x434] sm:$0xf0] }
 0x31a   :  { %v8264_v27 = vld [vmem:[#allocation5 + $0x42c] sm:$0xf0] }
 0x31b   :  { %13947 = vst [vmem:[#allocation225_spill] sm:$0xff] %v9403_v25 }
 0x31e   :  { %v3432_v18 = vpop.f32.mrf.mxu2  ;;  %v3097_v2 = vpop.f32.mrf.mxu0 }
 0x31f   :  { %v3433_v11 = vadd.f32 %v3432_v18, %v3264_v43  ;;  %v3601_v49 = vpop.f32.mrf.mxu3  ;;  %v3098_v48 = vadd.f32 %v3097_v2, %v8893_v41  ;;  %v3266_v51 = vpop.f32.mrf.mxu1  ;;  %v7132_v18 = vld [vmem:[#allocation5 + $0x418] sm:$0xf] }
 0x321   :  { %v9414_v60 = vadd.f32 %v3601_v49, %v3433_v11  ;;  %v3267_v25 = vadd.f32 %v3266_v51, %v3098_v48  ;;  %3136 = vmatmul.bf16.gmra.mxu0 %v9405_v38  ;;  %v8261_v11 = vld [vmem:[#allocation5 + $0x41c] sm:$0xf]  ;;  %v9423_v48 = vor.u32 %v8264_v27, %v7124_v14 }
 0x322   :  { %3305 = vmatmul.bf16.gmra.mxu1 %v9407_v55  ;;  %v7134_v49 = vld [vmem:[#allocation5 + $0x438] sm:$0xf0] }
 0x323   :  { %13948 = vst [vmem:[#allocation226_spill] sm:$0xff] %v9414_v60  ;;  %3474 = vmatmul.bf16.gmra.mxu2 %v9409_v0  ;;  %v9425_v60 = vor.u32 %v8260_v32, %v7126_v1 }
 0x324   :  { %3643 = vmatmul.bf16.gmra.mxu3 %v9412_v62 }
 0x326   :  { %v3435_v24 = vpop.f32.mrf.mxu2  ;;  %v3099_v44 = vpop.f32.mrf.mxu0 }
 0x327   :  { %v3436_v28 = vadd.f32 %v3435_v24, %v3267_v25  ;;  %v3604_v52 = vpop.f32.mrf.mxu3  ;;  %v3100_v41 = vadd.f32 %v3099_v44, %v8903_v59  ;;  %v3268_v9 = vpop.f32.mrf.mxu1  ;;  %v9427_v59 = vor.u32 %v8265_v31, %v7132_v18  ;;  %v9430_v44 = vor.u32 %v8261_v11, %v7134_v49  ;;  %v7156_v11 = vld [vmem:[#allocation5 + $0x450] sm:$0xf] }
 0x328   :  { %v8272_v49 = vld [vmem:[#allocation5 + $0x46c] sm:$0xf0] }
 0x329   :  { %v9421_v43 = vadd.f32 %v3604_v52, %v3436_v28  ;;  %v3269_v40 = vadd.f32 %v3268_v9, %v3100_v41  ;;  %13950 = vst [vmem:[#allocation228_spill] sm:$0xff] %v9427_v59 }
 0x32a   :  { %13951 = vst [vmem:[#allocation229_spill] sm:$0xff] %v9430_v44 }
 0x32b   :  { %13949 = vst [vmem:[#allocation227_spill] sm:$0xff] %v9421_v43  ;;  %v9441_v43 = vor.u32 %v8272_v49, %v7156_v11 }
 0x32e   :  { %v3437_v2 = vpop.f32.mrf.mxu2  ;;  %v3102_v24 = vpop.f32.mrf.mxu0 }
 0x32f   :  { %v3438_v25 = vadd.f32 %v3437_v2, %v3269_v40  ;;  %v3606_v51 = vpop.f32.mrf.mxu3  ;;  %v3103_v28 = vadd.f32 %v3102_v24, %v8909_v61  ;;  %v3271_v52 = vpop.f32.mrf.mxu1  ;;  %v8268_v2 = vld [vmem:[#allocation5 + $0x454] sm:$0xf]  ;;  %v8273_v24 = vld [vmem:[#allocation5 + $0x474] sm:$0xf0] }
 0x331   :  { %v9432_v41 = vadd.f32 %v3606_v51, %v3438_v25  ;;  %v3272_v9 = vadd.f32 %v3271_v52, %v3103_v28  ;;  %3141 = vmatmul.bf16.gmra.mxu0 %v9423_v48  ;;  %v7158_v25 = vld [vmem:[#allocation5 + $0x470] sm:$0xf0]  ;;  %v7164_v51 = vld [vmem:[#allocation5 + $0x458] sm:$0xf]  ;;  %v8269_v28 = vld [vmem:[#allocation5 + $0x45c] sm:$0xf] }
 0x332   :  { %3310 = vmatmul.bf16.gmra.mxu1 %v9425_v60  ;;  %v7166_v52 = vld [vmem:[#allocation5 + $0x478] sm:$0xf0] }
 0x333   :  { %13952 = vst [vmem:[#allocation230_spill] sm:$0xff] %v9432_v41  ;;  %3479 = vmatmul.bf16.gmra.mxu2 %v9427_v59  ;;  %v9443_v59 = vor.u32 %v8268_v2, %v7158_v25 }
 0x334   :  { %3648 = vmatmul.bf16.gmra.mxu3 %v9430_v44 }
 0x336   :  { %v3440_v40 = vpop.f32.mrf.mxu2  ;;  %v3104_v32 = vpop.f32.mrf.mxu0 }
 0x337   :  { %v3441_v14 = vadd.f32 %v3440_v40, %v3272_v9  ;;  %v3609_v27 = vpop.f32.mrf.mxu3  ;;  %v3105_v61 = vadd.f32 %v3104_v32, %v8919_v17  ;;  %v3273_v1 = vpop.f32.mrf.mxu1  ;;  %v9445_v17 = vor.u32 %v8273_v24, %v7164_v51  ;;  %v9448_v32 = vor.u32 %v8269_v28, %v7166_v52  ;;  %v7188_v51 = vld [vmem:[#allocation5 + $0x490] sm:$0xf]  ;;  %v8276_v28 = vld [vmem:[#allocation5 + $0x494] sm:$0xf] }
 0x338   :  { %v8280_v24 = vld [vmem:[#allocation5 + $0x4ac] sm:$0xf0]  ;;  %v7190_v52 = vld [vmem:[#allocation5 + $0x4b0] sm:$0xf0] }
 0x339   :  { %v9439_v18 = vadd.f32 %v3609_v27, %v3441_v14  ;;  %v3274_v31 = vadd.f32 %v3273_v1, %v3105_v61  ;;  %13954 = vst [vmem:[#allocation232_spill] sm:$0xff] %v9445_v17 }
 0x33a   :  { %13955 = vst [vmem:[#allocation233_spill] sm:$0xff] %v9448_v32 }
 0x33b   :  { %13953 = vst [vmem:[#allocation231_spill] sm:$0xff] %v9439_v18  ;;  %v9459_v18 = vor.u32 %v8280_v24, %v7188_v51  ;;  %v8390_v51 = vld [vmem:[#allocation8 + $0x24] sm:$0xf] }
 0x33d   :  { %13958 = vst [vmem:[#allocation236_spill] sm:$0xff] %v9459_v18 }
 0x33e   :  { %v3442_v41 = vpop.f32.mrf.mxu2  ;;  %v3107_v44 = vpop.f32.mrf.mxu0 }
 0x33f   :  { %v3443_v9 = vadd.f32 %v3442_v41, %v3274_v31  ;;  %v3611_v40 = vpop.f32.mrf.mxu3  ;;  %v3108_v14 = vadd.f32 %v3107_v44, %v8925_v63  ;;  %v3276_v27 = vpop.f32.mrf.mxu1 }
 0x341   :  { %v9450_v61 = vadd.f32 %v3611_v40, %v3443_v9  ;;  %v3277_v1 = vadd.f32 %v3276_v27, %v3108_v14  ;;  %3146 = vmatmul.bf16.gmra.mxu0 %v9441_v43  ;;  %v7196_v9 = vld [vmem:[#allocation5 + $0x498] sm:$0xf]  ;;  %v8277_v14 = vld [vmem:[#allocation5 + $0x49c] sm:$0xf] }
 0x342   :  { %3315 = vmatmul.bf16.gmra.mxu1 %v9443_v59  ;;  %v8281_v40 = vld [vmem:[#allocation5 + $0x4b4] sm:$0xf0]  ;;  %v7198_v27 = vld [vmem:[#allocation5 + $0x4b8] sm:$0xf0] }
 0x343   :  { %13956 = vst [vmem:[#allocation234_spill] sm:$0xff] %v9450_v61  ;;  %3484 = vmatmul.bf16.gmra.mxu2 %v9445_v17  ;;  %v9461_v17 = vor.u32 %v8276_v28, %v7190_v52  ;;  %v7830_v52 = vld [vmem:[#allocation8 + $0x1a8] sm:$0xf0] }
 0x344   :  { %3653 = vmatmul.bf16.gmra.mxu3 %v9448_v32 }
 0x345   :  { %13959 = vst [vmem:[#allocation237_spill] sm:$0xff] %v9461_v17 }
 0x346   :  { %v3445_v41 = vpop.f32.mrf.mxu2  ;;  %v3109_v49 = vpop.f32.mrf.mxu0 }
 0x347   :  { %v3446_v31 = vadd.f32 %v3445_v41, %v3277_v1  ;;  %v3614_v11 = vpop.f32.mrf.mxu3  ;;  %v3110_v63 = vadd.f32 %v3109_v49, %v8935_v19  ;;  %v3278_v44 = vpop.f32.mrf.mxu1  ;;  %v9463_v19 = vor.u32 %v8281_v40, %v7196_v9  ;;  %v9466_v49 = vor.u32 %v8277_v14, %v7198_v27 }
 0x349   :  { %v9457_v2 = vadd.f32 %v3614_v11, %v3446_v31  ;;  %v3279_v25 = vadd.f32 %v3278_v44, %v3110_v63  ;;  %13960 = vst [vmem:[#allocation238_spill] sm:$0xff] %v9463_v19 }
 0x34a   :  { %13961 = vst [vmem:[#allocation239_spill] sm:$0xff] %v9466_v49 }
 0x34b   :  { %13957 = vst [vmem:[#allocation235_spill] sm:$0xff] %v9457_v2  ;;  %v7220_v2 = vld [vmem:[#allocation5 + $0x4d0] sm:$0xf] }
 0x34e   :  { %v3447_v61 = vpop.f32.mrf.mxu2  ;;  %v3112_v32 = vpop.f32.mrf.mxu0 }
 0x34f   :  { %v3448_v1 = vadd.f32 %v3447_v61, %v3279_v25  ;;  %v3616_v41 = vpop.f32.mrf.mxu3  ;;  %v3113_v31 = vadd.f32 %v3112_v32, %v8941_v21  ;;  %v3281_v11 = vpop.f32.mrf.mxu1  ;;  %v8422_v61 = vld [vmem:[#allocation8 + $0x124] sm:$0xf]  ;;  %v7766_v25 = vld [vmem:[#allocation8 + $0x128] sm:$0xf0] }
 0x350   :  { %v7769_v28 = vor.u32 %v8422_v61, %v7766_v25  ;;  %v7638_v21 = vld [vmem:[#allocation8 + $0x28] sm:$0xf0]  ;;  %v8438_v32 = vld [vmem:[#allocation8 + $0x1a4] sm:$0xf]  ;;  %v8284_v61 = vld [vmem:[#allocation5 + $0x4d4] sm:$0xf] }
 0x351   :  { %v9468_v63 = vadd.f32 %v3616_v41, %v3448_v1  ;;  %v3282_v44 = vadd.f32 %v3281_v11, %v3113_v31  ;;  %3151 = vmatmul.bf16.gmra.mxu0 %v9459_v18  ;;  %v7641_v27 = vor.u32 %v8390_v51, %v7638_v21  ;;  %v7833_v1 = vor.u32 %v8438_v32, %v7830_v52  ;;  %v7222_v25 = vld [vmem:[#allocation5 + $0x4f0] sm:$0xf0]  ;;  %v8406_v18 = vld [vmem:[#allocation8 + $0xa4] sm:$0xf]  ;;  %v7702_v51 = vld [vmem:[#allocation8 + $0xa8] sm:$0xf0] }
 0x352   :  { %3320 = vmatmul.bf16.gmra.mxu1 %v9461_v17  ;;  %4072 = vmatpush.bf16.msra.mxu2 %v7769_v28  ;;  %v8289_v17 = vld [vmem:[#allocation5 + $0x4f4] sm:$0xf0] }
 0x353   :  { %13962 = vst [vmem:[#allocation240_spill] sm:$0xff] %v9468_v63  ;;  %3489 = vmatmul.bf16.gmra.mxu2 %v9463_v19  ;;  %3734 = vmatpush.bf16.msra.mxu0 %v7641_v27  ;;  %v7228_v19 = vld [vmem:[#allocation5 + $0x4d8] sm:$0xf] }
 0x354   :  { %3658 = vmatmul.bf16.gmra.mxu3 %v9466_v49  ;;  %v8288_v49 = vld [vmem:[#allocation5 + $0x4ec] sm:$0xf0] }
 0x355   :  { %4241 = vmatpush.bf16.msra.mxu3 %v7833_v1  ;;  %v9477_v32 = vor.u32 %v8288_v49, %v7220_v2 }
 0x356   :  { %v3450_v24 = vpop.f32.mrf.mxu2  ;;  %v3114_v14 = vpop.f32.mrf.mxu0 }
 0x357   :  { %v3451_v9 = vadd.f32 %v3450_v24, %v3282_v44  ;;  %v3619_v40 = vpop.f32.mrf.mxu3  ;;  %v3115_v41 = vadd.f32 %v3114_v14, %v8951_v46  ;;  %v3283_v31 = vpop.f32.mrf.mxu1  ;;  %v8285_v44 = vld [vmem:[#allocation5 + $0x4dc] sm:$0xf]  ;;  %v7705_v46 = vor.u32 %v8406_v18, %v7702_v51  ;;  %v9481_v14 = vor.u32 %v8289_v17, %v7228_v19  ;;  %v7254_v51 = vld [vmem:[#allocation5 + $0x530] sm:$0xf0] }
 0x358   :  { %v7230_v24 = vld [vmem:[#allocation5 + $0x4f8] sm:$0xf0] }
 0x359   :  { %v9475_v11 = vadd.f32 %v3619_v40, %v3451_v9  ;;  %v3284_v63 = vadd.f32 %v3283_v31, %v3115_v41  ;;  %v9479_v40 = vor.u32 %v8284_v61, %v7222_v25  ;;  %13965 = vst [vmem:[#allocation243_spill] sm:$0xff] %v9481_v14  ;;  %v9484_v41 = vor.u32 %v8285_v44, %v7230_v24  ;;  %v7252_v25 = vld [vmem:[#allocation5 + $0x510] sm:$0xf]  ;;  %v8292_v24 = vld [vmem:[#allocation5 + $0x514] sm:$0xf] }
 0x35a   :  { %3903 = vmatpush.bf16.msra.mxu1 %v7705_v46  ;;  %v8296_v44 = vld [vmem:[#allocation5 + $0x52c] sm:$0xf0]  ;;  %v8297_v46 = vld [vmem:[#allocation5 + $0x534] sm:$0xf0] }
 0x35b   :  { %13963 = vst [vmem:[#allocation241_spill] sm:$0xff] %v9475_v11 }
 0x35c   :  { %13964 = vst [vmem:[#allocation242_spill] sm:$0xff] %v9479_v40 }
 0x35d   :  { %13966 = vst [vmem:[#allocation244_spill] sm:$0xff] %v9484_v41 }
 0x35e   :  { %v3452_v21 = vpop.f32.mrf.mxu2  ;;  %v3117_v9 = vpop.f32.mrf.mxu0 }
 0x35f   :  { %v3453_v28 = vadd.f32 %v3452_v21, %v3284_v63  ;;  %v3621_v52 = vpop.f32.mrf.mxu3  ;;  %v3118_v27 = vadd.f32 %v3117_v9, %v8957_v26  ;;  %v3286_v1 = vpop.f32.mrf.mxu1  ;;  %v7260_v21 = vld [vmem:[#allocation5 + $0x518] sm:$0xf] }
 0x361   :  { %v9486_v31 = vadd.f32 %v3621_v52, %v3453_v28  ;;  %v3287_v11 = vadd.f32 %v3286_v1, %v3118_v27  ;;  %3156 = vmatmul.bf16.gmra.mxu0 %v9477_v32  ;;  %v8293_v28 = vld [vmem:[#allocation5 + $0x51c] sm:$0xf]  ;;  %v9495_v27 = vor.u32 %v8296_v44, %v7252_v25 }
 0x362   :  { %3325 = vmatmul.bf16.gmra.mxu1 %v9479_v40  ;;  %v7262_v52 = vld [vmem:[#allocation5 + $0x538] sm:$0xf0] }
 0x363   :  { %13967 = vst [vmem:[#allocation245_spill] sm:$0xff] %v9486_v31  ;;  %3494 = vmatmul.bf16.gmra.mxu2 %v9481_v14  ;;  %v9497_v31 = vor.u32 %v8292_v24, %v7254_v51 }
 0x364   :  { %3663 = vmatmul.bf16.gmra.mxu3 %v9484_v41  ;;  %13969 = vst [vmem:[#allocation247_spill] sm:$0xff] %v9495_v27 }
 0x365   :  { %13970 = vst [vmem:[#allocation248_spill] sm:$0xff] %v9497_v31 }
 0x366   :  { %v3455_v18 = vpop.f32.mrf.mxu2  ;;  %v3119_v19 = vpop.f32.mrf.mxu0 }
 0x367   :  { %v3456_v17 = vadd.f32 %v3455_v18, %v3287_v11  ;;  %v3624_v2 = vpop.f32.mrf.mxu3  ;;  %v3120_v26 = vadd.f32 %v3119_v19, %v8967_v7  ;;  %v3288_v49 = vpop.f32.mrf.mxu1  ;;  %v9499_v7 = vor.u32 %v8297_v46, %v7260_v21  ;;  %v9502_v19 = vor.u32 %v8293_v28, %v7262_v52  ;;  %v7284_v28 = vld [vmem:[#allocation5 + $0x550] sm:$0xf] }
 0x368   :  { %v8304_v52 = vld [vmem:[#allocation5 + $0x56c] sm:$0xf0] }
 0x369   :  { %v9493_v63 = vadd.f32 %v3624_v2, %v3456_v17  ;;  %v3289_v61 = vadd.f32 %v3288_v49, %v3120_v26  ;;  %13971 = vst [vmem:[#allocation249_spill] sm:$0xff] %v9499_v7 }
 0x36a   :  { %13972 = vst [vmem:[#allocation250_spill] sm:$0xff] %v9502_v19 }
 0x36b   :  { %13968 = vst [vmem:[#allocation246_spill] sm:$0xff] %v9493_v63  ;;  %v9513_v63 = vor.u32 %v8304_v52, %v7284_v28 }
 0x36d   :  { %13975 = vst [vmem:[#allocation253_spill] sm:$0xff] %v9513_v63 }
 0x36e   :  { %v3457_v9 = vpop.f32.mrf.mxu2  ;;  %v3122_v18 = vpop.f32.mrf.mxu0 }
 0x36f   :  { %v3458_v11 = vadd.f32 %v3457_v9, %v3289_v61  ;;  %v3626_v1 = vpop.f32.mrf.mxu3  ;;  %v3123_v17 = vadd.f32 %v3122_v18, %v8973_v35  ;;  %v3291_v2 = vpop.f32.mrf.mxu1  ;;  %v8300_v9 = vld [vmem:[#allocation5 + $0x554] sm:$0xf]  ;;  %v8305_v18 = vld [vmem:[#allocation5 + $0x574] sm:$0xf0] }
 0x371   :  { %v9504_v26 = vadd.f32 %v3626_v1, %v3458_v11  ;;  %v3292_v49 = vadd.f32 %v3291_v2, %v3123_v17  ;;  %3161 = vmatmul.bf16.gmra.mxu0 %v9495_v27  ;;  %v7286_v11 = vld [vmem:[#allocation5 + $0x570] sm:$0xf0]  ;;  %v7292_v1 = vld [vmem:[#allocation5 + $0x558] sm:$0xf]  ;;  %v8301_v17 = vld [vmem:[#allocation5 + $0x55c] sm:$0xf] }
 0x372   :  { %3330 = vmatmul.bf16.gmra.mxu1 %v9497_v31  ;;  %v7294_v2 = vld [vmem:[#allocation5 + $0x578] sm:$0xf0] }
 0x373   :  { %13973 = vst [vmem:[#allocation251_spill] sm:$0xff] %v9504_v26  ;;  %3499 = vmatmul.bf16.gmra.mxu2 %v9499_v7  ;;  %v9515_v7 = vor.u32 %v8300_v9, %v7286_v11 }
 0x374   :  { %3668 = vmatmul.bf16.gmra.mxu3 %v9502_v19 }
 0x375   :  { %13976 = vst [vmem:[#allocation254_spill] sm:$0xff] %v9515_v7 }
 0x376   :  { %v3460_v61 = vpop.f32.mrf.mxu2  ;;  %v3124_v24 = vpop.f32.mrf.mxu0 }
 0x377   :  { %v3461_v25 = vadd.f32 %v3460_v61, %v3292_v49  ;;  %v3629_v44 = vpop.f32.mrf.mxu3  ;;  %v3125_v35 = vadd.f32 %v3124_v24, %v8983_v45  ;;  %v3293_v51 = vpop.f32.mrf.mxu1  ;;  %v9517_v45 = vor.u32 %v8305_v18, %v7292_v1  ;;  %v9520_v24 = vor.u32 %v8301_v17, %v7294_v2  ;;  %v7316_v1 = vld [vmem:[#allocation5 + $0x590] sm:$0xf]  ;;  %v8308_v17 = vld [vmem:[#allocation5 + $0x594] sm:$0xf] }
 0x378   :  { %v8312_v18 = vld [vmem:[#allocation5 + $0x5ac] sm:$0xf0]  ;;  %v7318_v2 = vld [vmem:[#allocation5 + $0x5b0] sm:$0xf0] }
 0x379   :  { %v9511_v21 = vadd.f32 %v3629_v44, %v3461_v25  ;;  %v3294_v46 = vadd.f32 %v3293_v51, %v3125_v35  ;;  %13977 = vst [vmem:[#allocation255_spill] sm:$0xff] %v9517_v45 }
 0x37a   :  { %13978 = vst [vmem:[#allocation256_spill] sm:$0xff] %v9520_v24 }
 0x37b   :  { %13974 = vst [vmem:[#allocation252_spill] sm:$0xff] %v9511_v21  ;;  %v9531_v21 = vor.u32 %v8312_v18, %v7316_v1  ;;  %v8388_v1 = vld [vmem:[#allocation8 + $0x14] sm:$0xf] }
 0x37d   :  { %13981 = vst [vmem:[#allocation259_spill] sm:$0xff] %v9531_v21 }
 0x37e   :  { %v3462_v26 = vpop.f32.mrf.mxu2  ;;  %v3127_v19 = vpop.f32.mrf.mxu0 }
 0x37f   :  { %v3463_v49 = vadd.f32 %v3462_v26, %v3294_v46  ;;  %v3631_v61 = vpop.f32.mrf.mxu3  ;;  %v3128_v25 = vadd.f32 %v3127_v19, %v8989_v57  ;;  %v3296_v44 = vpop.f32.mrf.mxu1 }
 0x381   :  { %v9522_v35 = vadd.f32 %v3631_v61, %v3463_v49  ;;  %v3297_v51 = vadd.f32 %v3296_v44, %v3128_v25  ;;  %3166 = vmatmul.bf16.gmra.mxu0 %v9513_v63  ;;  %v7324_v49 = vld [vmem:[#allocation5 + $0x598] sm:$0xf]  ;;  %v8309_v25 = vld [vmem:[#allocation5 + $0x59c] sm:$0xf] }
 0x382   :  { %3335 = vmatmul.bf16.gmra.mxu1 %v9515_v7  ;;  %v8313_v61 = vld [vmem:[#allocation5 + $0x5b4] sm:$0xf0]  ;;  %v7326_v44 = vld [vmem:[#allocation5 + $0x5b8] sm:$0xf0]  ;;  %v7958_v7 = vld [vmem:[#allocation8 + $0x2a8] sm:$0xf0] }
 0x383   :  { %13979 = vst [vmem:[#allocation257_spill] sm:$0xff] %v9522_v35  ;;  %3504 = vmatmul.bf16.gmra.mxu2 %v9517_v45  ;;  %v9533_v45 = vor.u32 %v8308_v17, %v7318_v2  ;;  %v7822_v2 = vld [vmem:[#allocation8 + $0x198] sm:$0xf0] }
 0x384   :  { %3673 = vmatmul.bf16.gmra.mxu3 %v9520_v24 }
 0x385   :  { %13982 = vst [vmem:[#allocation260_spill] sm:$0xff] %v9533_v45 }
 0x386   :  { %v3465_v26 = vpop.f32.mrf.mxu2  ;;  %v3129_v52 = vpop.f32.mrf.mxu0 }
 0x387   :  { %v3466_v46 = vadd.f32 %v3465_v26, %v3297_v51  ;;  %v3634_v28 = vpop.f32.mrf.mxu3  ;;  %v3130_v57 = vadd.f32 %v3129_v52, %v8999_v22  ;;  %v3298_v19 = vpop.f32.mrf.mxu1  ;;  %v9535_v22 = vor.u32 %v8313_v61, %v7324_v49  ;;  %v9538_v52 = vor.u32 %v8309_v25, %v7326_v44 }
 0x389   :  { %v9529_v9 = vadd.f32 %v3634_v28, %v3466_v46  ;;  %v3299_v11 = vadd.f32 %v3298_v19, %v3130_v57  ;;  %13983 = vst [vmem:[#allocation261_spill] sm:$0xff] %v9535_v22 }
 0x38a   :  { %13984 = vst [vmem:[#allocation262_spill] sm:$0xff] %v9538_v52 }
 0x38b   :  { %13980 = vst [vmem:[#allocation258_spill] sm:$0xff] %v9529_v9  ;;  %v7348_v9 = vld [vmem:[#allocation5 + $0x5d0] sm:$0xf] }
 0x38e   :  { %v3467_v35 = vpop.f32.mrf.mxu2  ;;  %v3132_v24 = vpop.f32.mrf.mxu0 }
 0x38f   :  { %v3468_v51 = vadd.f32 %v3467_v35, %v3299_v11  ;;  %v3636_v26 = vpop.f32.mrf.mxu3  ;;  %v3133_v46 = vadd.f32 %v3132_v24, %v9005_v50  ;;  %v3301_v28 = vpop.f32.mrf.mxu1  ;;  %v8420_v35 = vld [vmem:[#allocation8 + $0x114] sm:$0xf]  ;;  %v7758_v11 = vld [vmem:[#allocation8 + $0x118] sm:$0xf0] }
 0x390   :  { %v7761_v17 = vor.u32 %v8420_v35, %v7758_v11  ;;  %v7630_v50 = vld [vmem:[#allocation8 + $0x18] sm:$0xf0]  ;;  %v8436_v24 = vld [vmem:[#allocation8 + $0x194] sm:$0xf] }
 0x391   :  { %v9540_v57 = vadd.f32 %v3636_v26, %v3468_v51  ;;  %v3302_v19 = vadd.f32 %v3301_v28, %v3133_v46  ;;  %3171 = vmatmul.bf16.gmra.mxu0 %v9531_v21  ;;  %v7633_v44 = vor.u32 %v8388_v1, %v7630_v50  ;;  %v7825_v51 = vor.u32 %v8436_v24, %v7822_v2  ;;  %v8316_v35 = vld [vmem:[#allocation5 + $0x5d4] sm:$0xf]  ;;  %v7694_v1 = vld [vmem:[#allocation8 + $0x98] sm:$0xf0] }
 0x392   :  { %3340 = vmatmul.bf16.gmra.mxu1 %v9533_v45  ;;  %4073 = vmatpush.bf16.msra.mxu2 %v7761_v17  ;;  %v7350_v11 = vld [vmem:[#allocation5 + $0x5f0] sm:$0xf0]  ;;  %v8321_v45 = vld [vmem:[#allocation5 + $0x5f4] sm:$0xf0] }
 0x393   :  { %13985 = vst [vmem:[#allocation263_spill] sm:$0xff] %v9540_v57  ;;  %3509 = vmatmul.bf16.gmra.mxu2 %v9535_v22  ;;  %3735 = vmatpush.bf16.msra.mxu0 %v7633_v44  ;;  %v7356_v22 = vld [vmem:[#allocation5 + $0x5d8] sm:$0xf]  ;;  %v8404_v21 = vld [vmem:[#allocation8 + $0x94] sm:$0xf] }
 0x394   :  { %3678 = vmatmul.bf16.gmra.mxu3 %v9538_v52  ;;  %v8320_v52 = vld [vmem:[#allocation5 + $0x5ec] sm:$0xf0] }
 0x395   :  { %4242 = vmatpush.bf16.msra.mxu3 %v7825_v51  ;;  %v9549_v24 = vor.u32 %v8320_v52, %v7348_v9 }
 0x396   :  { %v3470_v18 = vpop.f32.mrf.mxu2  ;;  %v3134_v25 = vpop.f32.mrf.mxu0 }
 0x397   :  { %v3471_v49 = vadd.f32 %v3470_v18, %v3302_v19  ;;  %v3639_v61 = vpop.f32.mrf.mxu3  ;;  %v3135_v26 = vadd.f32 %v3134_v25, %v9015_v16  ;;  %v3303_v46 = vpop.f32.mrf.mxu1  ;;  %v8317_v19 = vld [vmem:[#allocation5 + $0x5dc] sm:$0xf]  ;;  %13987 = vst [vmem:[#allocation265_spill] sm:$0xff] %v9549_v24  ;;  %v7697_v16 = vor.u32 %v8404_v21, %v7694_v1  ;;  %v9553_v25 = vor.u32 %v8321_v45, %v7356_v22  ;;  %v7382_v1 = vld [vmem:[#allocation5 + $0x630] sm:$0xf0] }
 0x398   :  { %v7358_v18 = vld [vmem:[#allocation5 + $0x5f8] sm:$0xf0] }
 0x399   :  { %v9547_v28 = vadd.f32 %v3639_v61, %v3471_v49  ;;  %v3304_v57 = vadd.f32 %v3303_v46, %v3135_v26  ;;  %v9551_v61 = vor.u32 %v8316_v35, %v7350_v11  ;;  %13989 = vst [vmem:[#allocation267_spill] sm:$0xff] %v9553_v25  ;;  %v9556_v26 = vor.u32 %v8317_v19, %v7358_v18  ;;  %v7380_v11 = vld [vmem:[#allocation5 + $0x610] sm:$0xf]  ;;  %v8324_v18 = vld [vmem:[#allocation5 + $0x614] sm:$0xf] }
 0x39a   :  { %3904 = vmatpush.bf16.msra.mxu1 %v7697_v16  ;;  %v8328_v19 = vld [vmem:[#allocation5 + $0x62c] sm:$0xf0]  ;;  %v8329_v16 = vld [vmem:[#allocation5 + $0x634] sm:$0xf0] }
 0x39b   :  { %13986 = vst [vmem:[#allocation264_spill] sm:$0xff] %v9547_v28 }
 0x39c   :  { %13988 = vst [vmem:[#allocation266_spill] sm:$0xff] %v9551_v61 }
 0x39d   :  { %13990 = vst [vmem:[#allocation268_spill] sm:$0xff] %v9556_v26 }
 0x39e   :  { %v3472_v50 = vpop.f32.mrf.mxu2  ;;  %v3137_v49 = vpop.f32.mrf.mxu0 }
 0x39f   :  { %v3473_v17 = vadd.f32 %v3472_v50, %v3304_v57  ;;  %v3641_v2 = vpop.f32.mrf.mxu3  ;;  %v3138_v44 = vadd.f32 %v3137_v49, %v9021_v42  ;;  %v3306_v51 = vpop.f32.mrf.mxu1  ;;  %v7388_v50 = vld [vmem:[#allocation5 + $0x618] sm:$0xf] }
 0x3a1   :  { %v9558_v46 = vadd.f32 %v3641_v2, %v3473_v17  ;;  %v3307_v28 = vadd.f32 %v3306_v51, %v3138_v44  ;;  %3176 = vmatmul.bf16.gmra.mxu0 %v9549_v24  ;;  %v8325_v17 = vld [vmem:[#allocation5 + $0x61c] sm:$0xf]  ;;  %v9567_v44 = vor.u32 %v8328_v19, %v7380_v11 }
 0x3a2   :  { %3345 = vmatmul.bf16.gmra.mxu1 %v9551_v61  ;;  %v7390_v2 = vld [vmem:[#allocation5 + $0x638] sm:$0xf0] }
 0x3a3   :  { %13991 = vst [vmem:[#allocation269_spill] sm:$0xff] %v9558_v46  ;;  %3514 = vmatmul.bf16.gmra.mxu2 %v9553_v25  ;;  %v9569_v46 = vor.u32 %v8324_v18, %v7382_v1  ;;  %v14150_v25 = vld [vmem:[#allocation87_spill] sm:$0xff] }
 0x3a4   :  { %3683 = vmatmul.bf16.gmra.mxu3 %v9556_v26  ;;  %13993 = vst [vmem:[#allocation271_spill] sm:$0xff] %v9567_v44 }
 0x3a5   :  { %13994 = vst [vmem:[#allocation272_spill] sm:$0xff] %v9569_v46 }
 0x3a6   :  { %v3475_v21 = vpop.f32.mrf.mxu2  ;;  %v3139_v22 = vpop.f32.mrf.mxu0 }
 0x3a7   :  { %v3476_v45 = vadd.f32 %v3475_v21, %v3307_v28  ;;  %v3644_v9 = vpop.f32.mrf.mxu3  ;;  %v3140_v42 = vadd.f32 %v3139_v22, %v9031_v39  ;;  %v3308_v52 = vpop.f32.mrf.mxu1  ;;  %v9571_v39 = vor.u32 %v8329_v16, %v7388_v50  ;;  %v9574_v22 = vor.u32 %v8325_v17, %v7390_v2  ;;  %v7412_v17 = vld [vmem:[#allocation5 + $0x650] sm:$0xf] }
 0x3a8   :  { %v8336_v2 = vld [vmem:[#allocation5 + $0x66c] sm:$0xf0] }
 0x3a9   :  { %v9565_v57 = vadd.f32 %v3644_v9, %v3476_v45  ;;  %v3309_v35 = vadd.f32 %v3308_v52, %v3140_v42  ;;  %13995 = vst [vmem:[#allocation273_spill] sm:$0xff] %v9571_v39 }
 0x3aa   :  { %13996 = vst [vmem:[#allocation274_spill] sm:$0xff] %v9574_v22 }
 0x3ab   :  { %13992 = vst [vmem:[#allocation270_spill] sm:$0xff] %v9565_v57  ;;  %v9585_v57 = vor.u32 %v8336_v2, %v7412_v17 }
 0x3ad   :  { %13999 = vst [vmem:[#allocation277_spill] sm:$0xff] %v9585_v57 }
 0x3ae   :  { %v3477_v49 = vpop.f32.mrf.mxu2  ;;  %v3142_v21 = vpop.f32.mrf.mxu0 }
 0x3af   :  { %v3478_v28 = vadd.f32 %v3477_v49, %v3309_v35  ;;  %v3646_v51 = vpop.f32.mrf.mxu3  ;;  %v3143_v45 = vadd.f32 %v3142_v21, %v9037_v8  ;;  %v3311_v9 = vpop.f32.mrf.mxu1  ;;  %v8332_v49 = vld [vmem:[#allocation5 + $0x654] sm:$0xf]  ;;  %v8337_v21 = vld [vmem:[#allocation5 + $0x674] sm:$0xf0] }
 0x3b1   :  { %v9576_v42 = vadd.f32 %v3646_v51, %v3478_v28  ;;  %v3312_v52 = vadd.f32 %v3311_v9, %v3143_v45  ;;  %3181 = vmatmul.bf16.gmra.mxu0 %v9567_v44  ;;  %v7414_v28 = vld [vmem:[#allocation5 + $0x670] sm:$0xf0]  ;;  %v7420_v51 = vld [vmem:[#allocation5 + $0x658] sm:$0xf]  ;;  %v8333_v45 = vld [vmem:[#allocation5 + $0x65c] sm:$0xf] }
 0x3b2   :  { %3350 = vmatmul.bf16.gmra.mxu1 %v9569_v46  ;;  %v7422_v9 = vld [vmem:[#allocation5 + $0x678] sm:$0xf0] }
 0x3b3   :  { %13997 = vst [vmem:[#allocation275_spill] sm:$0xff] %v9576_v42  ;;  %3519 = vmatmul.bf16.gmra.mxu2 %v9571_v39  ;;  %v9587_v39 = vor.u32 %v8332_v49, %v7414_v28 }
 0x3b4   :  { %3688 = vmatmul.bf16.gmra.mxu3 %v9574_v22 }
 0x3b5   :  { %14000 = vst [vmem:[#allocation278_spill] sm:$0xff] %v9587_v39 }
 0x3b6   :  { %v3480_v35 = vpop.f32.mrf.mxu2  ;;  %v3144_v18 = vpop.f32.mrf.mxu0 }
 0x3b7   :  { %v3481_v11 = vadd.f32 %v3480_v35, %v3312_v52  ;;  %v3649_v19 = vpop.f32.mrf.mxu3  ;;  %v3145_v8 = vadd.f32 %v3144_v18, %v9047_v33  ;;  %v3313_v1 = vpop.f32.mrf.mxu1  ;;  %v9589_v33 = vor.u32 %v8337_v21, %v7420_v51  ;;  %v9592_v18 = vor.u32 %v8333_v45, %v7422_v9  ;;  %v7444_v51 = vld [vmem:[#allocation5 + $0x690] sm:$0xf]  ;;  %v8340_v45 = vld [vmem:[#allocation5 + $0x694] sm:$0xf] }
 0x3b8   :  { %v8344_v21 = vld [vmem:[#allocation5 + $0x6ac] sm:$0xf0]  ;;  %v7446_v9 = vld [vmem:[#allocation5 + $0x6b0] sm:$0xf0] }
 0x3b9   :  { %v9583_v50 = vadd.f32 %v3649_v19, %v3481_v11  ;;  %v3314_v16 = vadd.f32 %v3313_v1, %v3145_v8  ;;  %14001 = vst [vmem:[#allocation279_spill] sm:$0xff] %v9589_v33 }
 0x3ba   :  { %14002 = vst [vmem:[#allocation280_spill] sm:$0xff] %v9592_v18 }
 0x3bb   :  { %13998 = vst [vmem:[#allocation276_spill] sm:$0xff] %v9583_v50  ;;  %v9603_v50 = vor.u32 %v8344_v21, %v7444_v51  ;;  %v8386_v51 = vld [vmem:[#allocation8 + $0x4] sm:$0xf] }
 0x3bd   :  { %14005 = vst [vmem:[#allocation283_spill] sm:$0xff] %v9603_v50 }
 0x3be   :  { %v3482_v42 = vpop.f32.mrf.mxu2  ;;  %v3147_v22 = vpop.f32.mrf.mxu0 }
 0x3bf   :  { %v3483_v52 = vadd.f32 %v3482_v42, %v3314_v16  ;;  %v3651_v35 = vpop.f32.mrf.mxu3  ;;  %v3148_v11 = vadd.f32 %v3147_v22, %v9053_v5  ;;  %v3316_v19 = vpop.f32.mrf.mxu1 }
 0x3c1   :  { %v9594_v8 = vadd.f32 %v3651_v35, %v3483_v52  ;;  %v3317_v1 = vadd.f32 %v3316_v19, %v3148_v11  ;;  %3186 = vmatmul.bf16.gmra.mxu0 %v9585_v57  ;;  %v7452_v52 = vld [vmem:[#allocation5 + $0x698] sm:$0xf]  ;;  %v8341_v11 = vld [vmem:[#allocation5 + $0x69c] sm:$0xf] }
 0x3c2   :  { %3355 = vmatmul.bf16.gmra.mxu1 %v9587_v39  ;;  %v8345_v35 = vld [vmem:[#allocation5 + $0x6b4] sm:$0xf0]  ;;  %v7454_v19 = vld [vmem:[#allocation5 + $0x6b8] sm:$0xf0] }
 0x3c3   :  { %14003 = vst [vmem:[#allocation281_spill] sm:$0xff] %v9594_v8  ;;  %3524 = vmatmul.bf16.gmra.mxu2 %v9589_v33  ;;  %v9605_v33 = vor.u32 %v8340_v45, %v7446_v9  ;;  %v7814_v9 = vld [vmem:[#allocation8 + $0x188] sm:$0xf0]  ;;  %v7966_v39 = vld [vmem:[#allocation8 + $0x2b8] sm:$0xf0] }
 0x3c4   :  { %3693 = vmatmul.bf16.gmra.mxu3 %v9592_v18 }
 0x3c5   :  { %14006 = vst [vmem:[#allocation284_spill] sm:$0xff] %v9605_v33 }
 0x3c6   :  { %v3485_v42 = vpop.f32.mrf.mxu2  ;;  %v3149_v2 = vpop.f32.mrf.mxu0 }
 0x3c7   :  { %v3486_v16 = vadd.f32 %v3485_v42, %v3317_v1  ;;  %v3654_v17 = vpop.f32.mrf.mxu3  ;;  %v3150_v5 = vadd.f32 %v3149_v2, %v9063_v54  ;;  %v3318_v22 = vpop.f32.mrf.mxu1  ;;  %v9607_v54 = vor.u32 %v8345_v35, %v7452_v52  ;;  %v9610_v2 = vor.u32 %v8341_v11, %v7454_v19 }
 0x3c9   :  { %v9601_v49 = vadd.f32 %v3654_v17, %v3486_v16  ;;  %v3319_v28 = vadd.f32 %v3318_v22, %v3150_v5  ;;  %14007 = vst [vmem:[#allocation285_spill] sm:$0xff] %v9607_v54 }
 0x3ca   :  { %14008 = vst [vmem:[#allocation286_spill] sm:$0xff] %v9610_v2 }
 0x3cb   :  { %14004 = vst [vmem:[#allocation282_spill] sm:$0xff] %v9601_v49  ;;  %v7476_v49 = vld [vmem:[#allocation5 + $0x6d0] sm:$0xf] }
 0x3ce   :  { %v3487_v8 = vpop.f32.mrf.mxu2  ;;  %v3152_v18 = vpop.f32.mrf.mxu0 }
 0x3cf   :  { %v3488_v1 = vadd.f32 %v3487_v8, %v3319_v28  ;;  %v3656_v42 = vpop.f32.mrf.mxu3  ;;  %v3153_v16 = vadd.f32 %v3152_v18, %v9069_v13  ;;  %v3321_v17 = vpop.f32.mrf.mxu1  ;;  %v8418_v8 = vld [vmem:[#allocation8 + $0x104] sm:$0xf]  ;;  %v7750_v28 = vld [vmem:[#allocation8 + $0x108] sm:$0xf0] }
 0x3d0   :  { %v7753_v45 = vor.u32 %v8418_v8, %v7750_v28  ;;  %v7622_v13 = vld [vmem:[#allocation8 + $0x8] sm:$0xf0]  ;;  %v8434_v18 = vld [vmem:[#allocation8 + $0x184] sm:$0xf]  ;;  %v8348_v8 = vld [vmem:[#allocation5 + $0x6d4] sm:$0xf] }
 0x3d1   :  { %v9612_v5 = vadd.f32 %v3656_v42, %v3488_v1  ;;  %v3322_v22 = vadd.f32 %v3321_v17, %v3153_v16  ;;  %3191 = vmatmul.bf16.gmra.mxu0 %v9603_v50  ;;  %v7625_v19 = vor.u32 %v8386_v51, %v7622_v13  ;;  %v7817_v1 = vor.u32 %v8434_v18, %v7814_v9  ;;  %v7478_v28 = vld [vmem:[#allocation5 + $0x6f0] sm:$0xf0]  ;;  %v8402_v50 = vld [vmem:[#allocation8 + $0x84] sm:$0xf]  ;;  %v7686_v51 = vld [vmem:[#allocation8 + $0x88] sm:$0xf0] }
 0x3d2   :  { %3360 = vmatmul.bf16.gmra.mxu1 %v9605_v33  ;;  %4074 = vmatpush.bf16.msra.mxu2 %v7753_v45  ;;  %v8353_v33 = vld [vmem:[#allocation5 + $0x6f4] sm:$0xf0] }
 0x3d3   :  { %14009 = vst [vmem:[#allocation287_spill] sm:$0xff] %v9612_v5  ;;  %3529 = vmatmul.bf16.gmra.mxu2 %v9607_v54  ;;  %3736 = vmatpush.bf16.msra.mxu0 %v7625_v19  ;;  %v7484_v54 = vld [vmem:[#allocation5 + $0x6d8] sm:$0xf] }
 0x3d4   :  { %3698 = vmatmul.bf16.gmra.mxu3 %v9610_v2  ;;  %v8352_v2 = vld [vmem:[#allocation5 + $0x6ec] sm:$0xf0] }
 0x3d5   :  { %4243 = vmatpush.bf16.msra.mxu3 %v7817_v1  ;;  %v9621_v18 = vor.u32 %v8352_v2, %v7476_v49 }
 0x3d6   :  { %v3490_v21 = vpop.f32.mrf.mxu2  ;;  %v3154_v11 = vpop.f32.mrf.mxu0 }
 0x3d7   :  { %v3491_v52 = vadd.f32 %v3490_v21, %v3322_v22  ;;  %v3659_v35 = vpop.f32.mrf.mxu3  ;;  %v3155_v42 = vadd.f32 %v3154_v11, %v9079_v20  ;;  %v3323_v16 = vpop.f32.mrf.mxu1  ;;  %v8349_v22 = vld [vmem:[#allocation5 + $0x6dc] sm:$0xf]  ;;  %14011 = vst [vmem:[#allocation289_spill] sm:$0xff] %v9621_v18  ;;  %v7689_v20 = vor.u32 %v8402_v50, %v7686_v51  ;;  %v9625_v11 = vor.u32 %v8353_v33, %v7484_v54  ;;  %v7510_v51 = vld [vmem:[#allocation5 + $0x730] sm:$0xf0] }
 0x3d8   :  { %v7486_v21 = vld [vmem:[#allocation5 + $0x6f8] sm:$0xf0] }
 0x3d9   :  { %v9619_v17 = vadd.f32 %v3659_v35, %v3491_v52  ;;  %v3324_v5 = vadd.f32 %v3323_v16, %v3155_v42  ;;  %v9623_v35 = vor.u32 %v8348_v8, %v7478_v28  ;;  %14013 = vst [vmem:[#allocation291_spill] sm:$0xff] %v9625_v11  ;;  %v9628_v42 = vor.u32 %v8349_v22, %v7486_v21  ;;  %v7508_v28 = vld [vmem:[#allocation5 + $0x710] sm:$0xf]  ;;  %v8356_v21 = vld [vmem:[#allocation5 + $0x714] sm:$0xf] }
 0x3da   :  { %3905 = vmatpush.bf16.msra.mxu1 %v7689_v20  ;;  %v8360_v22 = vld [vmem:[#allocation5 + $0x72c] sm:$0xf0]  ;;  %v8361_v20 = vld [vmem:[#allocation5 + $0x734] sm:$0xf0] }
 0x3db   :  { %14010 = vst [vmem:[#allocation288_spill] sm:$0xff] %v9619_v17 }
 0x3dc   :  { %14012 = vst [vmem:[#allocation290_spill] sm:$0xff] %v9623_v35 }
 0x3dd   :  { %14014 = vst [vmem:[#allocation292_spill] sm:$0xff] %v9628_v42 }
 0x3de   :  { %v3492_v13 = vpop.f32.mrf.mxu2  ;;  %v3157_v52 = vpop.f32.mrf.mxu0 }
 0x3df   :  { %v3493_v45 = vadd.f32 %v3492_v13, %v3324_v5  ;;  %v3661_v9 = vpop.f32.mrf.mxu3  ;;  %v3158_v19 = vadd.f32 %v3157_v52, %v9085_v29  ;;  %v3326_v1 = vpop.f32.mrf.mxu1  ;;  %v7516_v13 = vld [vmem:[#allocation5 + $0x718] sm:$0xf] }
 0x3e1   :  { %v9630_v16 = vadd.f32 %v3661_v9, %v3493_v45  ;;  %v3327_v17 = vadd.f32 %v3326_v1, %v3158_v19  ;;  %3196 = vmatmul.bf16.gmra.mxu0 %v9621_v18  ;;  %v8357_v45 = vld [vmem:[#allocation5 + $0x71c] sm:$0xf]  ;;  %v9639_v19 = vor.u32 %v8360_v22, %v7508_v28 }
 0x3e2   :  { %3365 = vmatmul.bf16.gmra.mxu1 %v9623_v35  ;;  %v7518_v9 = vld [vmem:[#allocation5 + $0x738] sm:$0xf0] }
 0x3e3   :  { %14015 = vst [vmem:[#allocation293_spill] sm:$0xff] %v9630_v16  ;;  %3534 = vmatmul.bf16.gmra.mxu2 %v9625_v11  ;;  %v9641_v16 = vor.u32 %v8356_v21, %v7510_v51  ;;  %v14022_v51 = vld [vmem:[#allocation135_spill] sm:$0xff] }
 0x3e4   :  { %3703 = vmatmul.bf16.gmra.mxu3 %v9628_v42  ;;  %14017 = vst [vmem:[#allocation295_spill] sm:$0xff] %v9639_v19  ;;  %v8480_v42 = vld [vmem:[#allocation8 + $0x2f4] sm:$0xf] }
 0x3e5   :  { %14018 = vst [vmem:[#allocation296_spill] sm:$0xff] %v9641_v16 }
 0x3e6   :  { %v3495_v50 = vpop.f32.mrf.mxu2  ;;  %v3159_v54 = vpop.f32.mrf.mxu0 }
 0x3e7   :  { %v3496_v33 = vadd.f32 %v3495_v50, %v3327_v17  ;;  %v3664_v49 = vpop.f32.mrf.mxu3  ;;  %v3160_v29 = vadd.f32 %v3159_v54, %v9095_v3  ;;  %v3328_v2 = vpop.f32.mrf.mxu1  ;;  %v9643_v3 = vor.u32 %v8361_v20, %v7516_v13  ;;  %v9646_v54 = vor.u32 %v8357_v45, %v7518_v9  ;;  %v7540_v9 = vld [vmem:[#allocation5 + $0x750] sm:$0xf] }
 0x3e9   :  { %v9637_v5 = vadd.f32 %v3664_v49, %v3496_v33  ;;  %v3329_v8 = vadd.f32 %v3328_v2, %v3160_v29  ;;  %14019 = vst [vmem:[#allocation297_spill] sm:$0xff] %v9643_v3 }
 0x3ea   :  { %14020 = vst [vmem:[#allocation298_spill] sm:$0xff] %v9646_v54 }
 0x3eb   :  { %14016 = vst [vmem:[#allocation294_spill] sm:$0xff] %v9637_v5 }
 0x3ee   :  { %v3497_v52 = vpop.f32.mrf.mxu2  ;;  %v3162_v50 = vpop.f32.mrf.mxu0 }
 0x3ef   :  { %v3498_v17 = vadd.f32 %v3497_v52, %v3329_v8  ;;  %v3666_v1 = vpop.f32.mrf.mxu3  ;;  %v3163_v33 = vadd.f32 %v3162_v50, %v9101_v58  ;;  %v3331_v49 = vpop.f32.mrf.mxu1  ;;  %v8368_v52 = vld [vmem:[#allocation5 + $0x76c] sm:$0xf0]  ;;  %v7548_v50 = vld [vmem:[#allocation5 + $0x758] sm:$0xf] }
 0x3f1   :  { %v9648_v29 = vadd.f32 %v3666_v1, %v3498_v17  ;;  %v3332_v2 = vadd.f32 %v3331_v49, %v3163_v33  ;;  %3201 = vmatmul.bf16.gmra.mxu0 %v9639_v19  ;;  %v8364_v17 = vld [vmem:[#allocation5 + $0x754] sm:$0xf]  ;;  %v8369_v33 = vld [vmem:[#allocation5 + $0x774] sm:$0xf0]  ;;  %v8365_v49 = vld [vmem:[#allocation5 + $0x75c] sm:$0xf] }
 0x3f2   :  { %3370 = vmatmul.bf16.gmra.mxu1 %v9641_v16  ;;  %v7542_v1 = vld [vmem:[#allocation5 + $0x770] sm:$0xf0]  ;;  %v8385_v19 = vld [vmem:[#allocation5 + $0x7f4] sm:$0xf0] }
 0x3f3   :  { %14021 = vst [vmem:[#allocation299_spill] sm:$0xff] %v9648_v29  ;;  %3539 = vmatmul.bf16.gmra.mxu2 %v9643_v3  ;;  %v7550_v29 = vld [vmem:[#allocation5 + $0x778] sm:$0xf0]  ;;  %v9659_v16 = vor.u32 %v8364_v17, %v7542_v1  ;;  %v14030_v17 = vld [vmem:[#allocation141_spill] sm:$0xff] }
 0x3f4   :  { %3708 = vmatmul.bf16.gmra.mxu3 %v9646_v54  ;;  %v9657_v54 = vor.u32 %v8368_v52, %v7540_v9 }
 0x3f5   :  { %14025 = vst [vmem:[#allocation301_spill] sm:$0xff] %v9659_v16 }
 0x3f6   :  { %v3500_v8 = vpop.f32.mrf.mxu2  ;;  %v3164_v21 = vpop.f32.mrf.mxu0  ;;  %14024 = vst [vmem:[#allocation300_spill] sm:$0xff] %v9657_v54 }
 0x3f7   :  { %v3501_v28 = vadd.f32 %v3500_v8, %v3332_v2  ;;  %v3669_v22 = vpop.f32.mrf.mxu3  ;;  %v3165_v58 = vadd.f32 %v3164_v21, %v14022_v51  ;;  %v3333_v13 = vpop.f32.mrf.mxu1  ;;  %v9661_v21 = vor.u32 %v8369_v33, %v7548_v50  ;;  %v7572_v33 = vld [vmem:[#allocation5 + $0x790] sm:$0xf] }
 0x3f9   :  { %v9655_v20 = vadd.f32 %v3669_v22, %v3501_v28  ;;  %v3334_v45 = vadd.f32 %v3333_v13, %v3165_v58  ;;  %14026 = vst [vmem:[#allocation302_spill] sm:$0xff] %v9661_v21  ;;  %v14027_v28 = vld [vmem:[#allocation136_spill] sm:$0xff]  ;;  %v9664_v58 = vor.u32 %v8365_v49, %v7550_v29 }
 0x3fa   :  { %v8376_v49 = vld [vmem:[#allocation5 + $0x7ac] sm:$0xf0] }
 0x3fb   :  { %14023 = vst [vmem:[#allocation135_spill] sm:$0xff] %v9655_v20 }
 0x3fc   :  { %14028 = vst [vmem:[#allocation136_spill] sm:$0xff] %v9664_v58 }
 0x3fe   :  { %v3502_v5 = vpop.f32.mrf.mxu2  ;;  %v3167_v3 = vpop.f32.mrf.mxu0 }
 0x3ff   :  { %v3503_v2 = vadd.f32 %v3502_v5, %v3334_v45  ;;  %v3671_v8 = vpop.f32.mrf.mxu3  ;;  %v3168_v22 = vadd.f32 %v3167_v3, %v14027_v28  ;;  %v3336_v51 = vpop.f32.mrf.mxu1  ;;  %v7580_v28 = vld [vmem:[#allocation5 + $0x798] sm:$0xf] }
 0x401   :  { %v9666_v13 = vadd.f32 %v3671_v8, %v3503_v2  ;;  %v3337_v20 = vadd.f32 %v3336_v51, %v3168_v22  ;;  %3206 = vmatmul.bf16.gmra.mxu0 %v9657_v54  ;;  %v8372_v2 = vld [vmem:[#allocation5 + $0x794] sm:$0xf]  ;;  %v8377_v22 = vld [vmem:[#allocation5 + $0x7b4] sm:$0xf0]  ;;  %v8373_v51 = vld [vmem:[#allocation5 + $0x79c] sm:$0xf] }
 0x402   :  { %3375 = vmatmul.bf16.gmra.mxu1 %v9659_v16  ;;  %v7574_v8 = vld [vmem:[#allocation5 + $0x7b0] sm:$0xf0] }
 0x403   :  { %14029 = vst [vmem:[#allocation303_spill] sm:$0xff] %v9666_v13  ;;  %3544 = vmatmul.bf16.gmra.mxu2 %v9661_v21  ;;  %v7582_v13 = vld [vmem:[#allocation5 + $0x7b8] sm:$0xf0]  ;;  %v9677_v54 = vor.u32 %v8372_v2, %v7574_v8  ;;  %v8512_v8 = vld [vmem:[#allocation8 + $0x3f4] sm:$0xf] }
 0x404   :  { %3713 = vmatmul.bf16.gmra.mxu3 %v9664_v58  ;;  %v9675_v58 = vor.u32 %v8376_v49, %v7572_v33  ;;  %v8464_v33 = vld [vmem:[#allocation8 + $0x274] sm:$0xf] }
 0x405   :  { %14033 = vst [vmem:[#allocation305_spill] sm:$0xff] %v9677_v54 }
 0x406   :  { %v3505_v5 = vpop.f32.mrf.mxu2  ;;  %v3169_v52 = vpop.f32.mrf.mxu0  ;;  %14032 = vst [vmem:[#allocation304_spill] sm:$0xff] %v9675_v58 }
 0x407   :  { %v3506_v45 = vadd.f32 %v3505_v5, %v3337_v20  ;;  %v3674_v9 = vpop.f32.mrf.mxu3  ;;  %v3170_v3 = vadd.f32 %v3169_v52, %v14030_v17  ;;  %v3338_v1 = vpop.f32.mrf.mxu1  ;;  %v9679_v52 = vor.u32 %v8377_v22, %v7580_v28 }
 0x409   :  { %v9673_v29 = vadd.f32 %v3674_v9, %v3506_v45  ;;  %v3339_v50 = vadd.f32 %v3338_v1, %v3170_v3  ;;  %14034 = vst [vmem:[#allocation306_spill] sm:$0xff] %v9679_v52  ;;  %v14035_v45 = vld [vmem:[#allocation142_spill] sm:$0xff]  ;;  %v9682_v3 = vor.u32 %v8373_v51, %v7582_v13 }
 0x40a   :  { %v8126_v13 = vld [vmem:[#allocation8 + $0x3f8] sm:$0xf0] }
 0x40b   :  { %14031 = vst [vmem:[#allocation141_spill] sm:$0xff] %v9673_v29 }
 0x40c   :  { %14036 = vst [vmem:[#allocation142_spill] sm:$0xff] %v9682_v3 }
 0x40e   :  { %v3507_v21 = vpop.f32.mrf.mxu2  ;;  %v3172_v16 = vpop.f32.mrf.mxu0 }
 0x40f   :  { %v3508_v20 = vadd.f32 %v3507_v21, %v3339_v50  ;;  %v3676_v5 = vpop.f32.mrf.mxu3  ;;  %v3173_v9 = vadd.f32 %v3172_v16, %v14035_v45  ;;  %v3341_v17 = vpop.f32.mrf.mxu1  ;;  %v8496_v21 = vld [vmem:[#allocation8 + $0x374] sm:$0xf]  ;;  %v8062_v50 = vld [vmem:[#allocation8 + $0x378] sm:$0xf0]  ;;  %v14038_v45 = vld [vmem:[#allocation147_spill] sm:$0xff] }
 0x410   :  { %v8065_v2 = vor.u32 %v8496_v21, %v8062_v50  ;;  %v7934_v16 = vld [vmem:[#allocation8 + $0x278] sm:$0xf0]  ;;  %v8380_v21 = vld [vmem:[#allocation5 + $0x7d4] sm:$0xf] }
 0x411   :  { %v9684_v1 = vadd.f32 %v3676_v5, %v3508_v20  ;;  %v3342_v29 = vadd.f32 %v3341_v17, %v3173_v9  ;;  %3211 = vmatmul.bf16.gmra.mxu0 %v9675_v58  ;;  %v7937_v20 = vor.u32 %v8464_v33, %v7934_v16  ;;  %v8129_v5 = vor.u32 %v8512_v8, %v8126_v13  ;;  %v7606_v50 = vld [vmem:[#allocation5 + $0x7f0] sm:$0xf0]  ;;  %v7612_v58 = vld [vmem:[#allocation5 + $0x7d8] sm:$0xf]  ;;  %v7998_v33 = vld [vmem:[#allocation8 + $0x2f8] sm:$0xf0] }
 0x412   :  { %3380 = vmatmul.bf16.gmra.mxu1 %v9677_v54  ;;  %4743 = vmatpush.bf16.msrb.mxu2 %v8065_v2  ;;  %v8384_v54 = vld [vmem:[#allocation5 + $0x7ec] sm:$0xf0]  ;;  %v8001_v13 = vor.u32 %v8480_v42, %v7998_v33 }
 0x413   :  { %14037 = vst [vmem:[#allocation307_spill] sm:$0xff] %v9684_v1  ;;  %3549 = vmatmul.bf16.gmra.mxu2 %v9679_v52  ;;  %4405 = vmatpush.bf16.msrb.mxu0 %v7937_v20  ;;  %v7604_v52 = vld [vmem:[#allocation5 + $0x7d0] sm:$0xf]  ;;  %v9697_v20 = vor.u32 %v8385_v19, %v7612_v58 }
 0x414   :  { %3718 = vmatmul.bf16.gmra.mxu3 %v9682_v3  ;;  %v9693_v8 = vor.u32 %v8384_v54, %v7604_v52  ;;  %4574 = vmatpush.bf16.msrb.mxu1 %v8001_v13  ;;  %v14046_v52 = vld [vmem:[#allocation153_spill] sm:$0xff] }
 0x415   :  { %4912 = vmatpush.bf16.msrb.mxu3 %v8129_v5  ;;  %14042 = vst [vmem:[#allocation310_spill] sm:$0xff] %v9697_v20  ;;  %v14043_v5 = vld [vmem:[#allocation148_spill] sm:$0xff] }
 0x416   :  { %v3510_v49 = vpop.f32.mrf.mxu2  ;;  %v3174_v51 = vpop.f32.mrf.mxu0  ;;  %14040 = vst [vmem:[#allocation308_spill] sm:$0xff] %v9693_v8 }
 0x417   :  { %v3511_v28 = vadd.f32 %v3510_v49, %v3342_v29  ;;  %v3679_v22 = vpop.f32.mrf.mxu3  ;;  %v3175_v9 = vadd.f32 %v3174_v51, %v14038_v45  ;;  %v3343_v17 = vpop.f32.mrf.mxu1  ;;  %v8381_v29 = vld [vmem:[#allocation5 + $0x7dc] sm:$0xf]  ;;  %v9695_v51 = vor.u32 %v8380_v21, %v7606_v50 }
 0x418   :  { %v7614_v49 = vld [vmem:[#allocation5 + $0x7f8] sm:$0xf0] }
 0x419   :  { %v9691_v1 = vadd.f32 %v3679_v22, %v3511_v28  ;;  %v3344_v3 = vadd.f32 %v3343_v17, %v3175_v9  ;;  %14041 = vst [vmem:[#allocation309_spill] sm:$0xff] %v9695_v51  ;;  %v9700_v17 = vor.u32 %v8381_v29, %v7614_v49 }
 0x41b   :  { %14039 = vst [vmem:[#allocation147_spill] sm:$0xff] %v9691_v1 }
 0x41c   :  { %14044 = vst [vmem:[#allocation148_spill] sm:$0xff] %v9700_v17 }
 0x41e   :  { %v3512_v16 = vpop.f32.mrf.mxu2  ;;  %v3177_v22 = vpop.f32.mrf.mxu0 }
 0x41f   :  { %v3513_v2 = vadd.f32 %v3512_v16, %v3344_v3  ;;  %v3681_v28 = vpop.f32.mrf.mxu3  ;;  %v3178_v45 = vadd.f32 %v3177_v22, %v14043_v5  ;;  %v3346_v9 = vpop.f32.mrf.mxu1 }
 0x421   :  { %v9702_v1 = vadd.f32 %v3681_v28, %v3513_v2  ;;  %v3347_v11 = vadd.f32 %v3346_v9, %v3178_v45  ;;  %3216 = vmatmul.bf16.gmra.mxu0 %v9693_v8  ;;  %v14048_v2 = vld [vmem:[#allocation154_spill] sm:$0xff]  ;;  %v14050_v9 = vld [vmem:[#allocation15_spill] sm:$0xff] }
 0x422   :  { %3385 = vmatmul.bf16.gmra.mxu1 %v9695_v51  ;;  %v14134_v8 = vld [vmem:[#allocation71_spill] sm:$0xff] }
 0x423   :  { %14045 = vst [vmem:[#allocation311_spill] sm:$0xff] %v9702_v1  ;;  %3554 = vmatmul.bf16.gmra.mxu2 %v9697_v20  ;;  %v7990_v1 = vld [vmem:[#allocation8 + $0x2e8] sm:$0xf0] }
 0x424   :  { %3723 = vmatmul.bf16.gmra.mxu3 %v9700_v17 }
 0x426   :  { %v3515_v42 = vpop.f32.mrf.mxu2  ;;  %v3179_v58 = vpop.f32.mrf.mxu0 }
 0x427   :  { %v3516_v19 = vadd.f32 %v3515_v42, %v3347_v11  ;;  %v3684_v54 = vpop.f32.mrf.mxu3  ;;  %v3180_v3 = vadd.f32 %v3179_v58, %v14046_v52  ;;  %v3348_v21 = vpop.f32.mrf.mxu1  ;;  %v14051_v11 = vld [vmem:[#allocation16_spill] sm:$0xff]  ;;  %v14052_v42 = vld [vmem:[#allocation17_spill] sm:$0xff]  ;;  %v14053_v58 = vld [vmem:[#allocation18_spill] sm:$0xff] }
 0x429   :  { %v9709_v50 = vadd.f32 %v3684_v54, %v3516_v19  ;;  %v3349_v29 = vadd.f32 %v3348_v21, %v3180_v3  ;;  %v14054_v21 = vld [vmem:[#allocation159_spill] sm:$0xff] }
 0x42b   :  { %14047 = vst [vmem:[#allocation153_spill] sm:$0xff] %v9709_v50  ;;  %v14058_v50 = vld [vmem:[#allocation19_spill] sm:$0xff] }
 0x42e   :  { %v3517_v49 = vpop.f32.mrf.mxu2  ;;  %v3182_v13 = vpop.f32.mrf.mxu0 }
 0x42f   :  { %v3518_v33 = vadd.f32 %v3517_v49, %v3349_v29  ;;  %v3686_v16 = vpop.f32.mrf.mxu3  ;;  %v3183_v28 = vadd.f32 %v3182_v13, %v14048_v2  ;;  %v3351_v22 = vpop.f32.mrf.mxu1 }
 0x431   :  { %v9712_v5 = vadd.f32 %v3686_v16, %v3518_v33  ;;  %v3352_v45 = vadd.f32 %v3351_v22, %v3183_v28  ;;  %3737 = vmatmul.bf16.vlgmr.msra.gmra.mxu0 %v14050_v9  ;;  %v14056_v9 = vld [vmem:[#allocation160_spill] sm:$0xff] }
 0x432   :  { %3906 = vmatmul.bf16.vlgmr.msra.gmra.mxu1 %v14051_v11 }
 0x433   :  { %14049 = vst [vmem:[#allocation154_spill] sm:$0xff] %v9712_v5  ;;  %4075 = vmatmul.bf16.vlgmr.msra.gmra.mxu2 %v14052_v42 }
 0x434   :  { %4244 = vmatmul.bf16.vlgmr.msra.gmra.mxu3 %v14053_v58 }
 0x436   :  { %v3520_v19 = vpop.f32.mrf.mxu2  ;;  %v3184_v3 = vpop.f32.mrf.mxu0 }
 0x437   :  { %v3521_v54 = vadd.f32 %v3520_v19, %v3352_v45  ;;  %v3689_v52 = vpop.f32.mrf.mxu3  ;;  %v3185_v29 = vadd.f32 %v3184_v3, %v14054_v21  ;;  %v3353_v49 = vpop.f32.mrf.mxu1  ;;  %v14059_v45 = vld [vmem:[#allocation20_spill] sm:$0xff]  ;;  %v14060_v19 = vld [vmem:[#allocation21_spill] sm:$0xff]  ;;  %v14061_v3 = vld [vmem:[#allocation22_spill] sm:$0xff] }
 0x439   :  { %v9719_v13 = vadd.f32 %v3689_v52, %v3521_v54  ;;  %v3354_v33 = vadd.f32 %v3353_v49, %v3185_v29  ;;  %v14062_v49 = vld [vmem:[#allocation165_spill] sm:$0xff] }
 0x43b   :  { %14055 = vst [vmem:[#allocation15_spill] sm:$0xff] %v9719_v13  ;;  %v14066_v13 = vld [vmem:[#allocation23_spill] sm:$0xff] }
 0x43e   :  { %v3522_v16 = vpop.f32.mrf.mxu2  ;;  %v3187_v22 = vpop.f32.mrf.mxu0 }
 0x43f   :  { %v3523_v2 = vadd.f32 %v3522_v16, %v3354_v33  ;;  %v3691_v28 = vpop.f32.mrf.mxu3  ;;  %v3188_v11 = vadd.f32 %v3187_v22, %v14056_v9  ;;  %v3356_v5 = vpop.f32.mrf.mxu1 }
 0x441   :  { %v9722_v42 = vadd.f32 %v3691_v28, %v3523_v2  ;;  %v3357_v58 = vadd.f32 %v3356_v5, %v3188_v11  ;;  %3742 = vmatmul.bf16.gmra.mxu0 %v14058_v50  ;;  %v14064_v11 = vld [vmem:[#allocation166_spill] sm:$0xff] }
 0x442   :  { %3911 = vmatmul.bf16.gmra.mxu1 %v14059_v45 }
 0x443   :  { %14057 = vst [vmem:[#allocation16_spill] sm:$0xff] %v9722_v42  ;;  %4080 = vmatmul.bf16.gmra.mxu2 %v14060_v19 }
 0x444   :  { %4249 = vmatmul.bf16.gmra.mxu3 %v14061_v3 }
 0x446   :  { %v3525_v54 = vpop.f32.mrf.mxu2  ;;  %v3189_v29 = vpop.f32.mrf.mxu0 }
 0x447   :  { %v3526_v52 = vadd.f32 %v3525_v54, %v3357_v58  ;;  %v3694_v21 = vpop.f32.mrf.mxu3  ;;  %v3190_v33 = vadd.f32 %v3189_v29, %v14062_v49  ;;  %v3358_v16 = vpop.f32.mrf.mxu1  ;;  %v14067_v58 = vld [vmem:[#allocation24_spill] sm:$0xff]  ;;  %v14068_v54 = vld [vmem:[#allocation25_spill] sm:$0xff]  ;;  %v14069_v29 = vld [vmem:[#allocation26_spill] sm:$0xff] }
 0x448   :  { %v8462_v49 = vld [vmem:[#allocation8 + $0x264] sm:$0xf] }
 0x449   :  { %v9729_v22 = vadd.f32 %v3694_v21, %v3526_v52  ;;  %v3359_v2 = vadd.f32 %v3358_v16, %v3190_v33  ;;  %v8494_v52 = vld [vmem:[#allocation8 + $0x364] sm:$0xf]  ;;  %v8054_v21 = vld [vmem:[#allocation8 + $0x368] sm:$0xf0] }
 0x44a   :  { %v8057_v16 = vor.u32 %v8494_v52, %v8054_v21 }
 0x44b   :  { %14063 = vst [vmem:[#allocation17_spill] sm:$0xff] %v9729_v22  ;;  %v8478_v22 = vld [vmem:[#allocation8 + $0x2e4] sm:$0xf] }
 0x44c   :  { %4744 = vmatpush.bf16.msrb.mxu2 %v8057_v16  ;;  %v7993_v21 = vor.u32 %v8478_v22, %v7990_v1  ;;  %v14074_v16 = vld [vmem:[#allocation27_spill] sm:$0xff] }
 0x44e   :  { %v3527_v28 = vpop.f32.mrf.mxu2  ;;  %v3192_v50 = vpop.f32.mrf.mxu0  ;;  %4575 = vmatpush.bf16.msrb.mxu1 %v7993_v21  ;;  %v14080_v21 = vld [vmem:[#allocation178_spill] sm:$0xff] }
 0x44f   :  { %v3528_v5 = vadd.f32 %v3527_v28, %v3359_v2  ;;  %v3696_v9 = vpop.f32.mrf.mxu3  ;;  %v3193_v45 = vadd.f32 %v3192_v50, %v14064_v11  ;;  %v3361_v42 = vpop.f32.mrf.mxu1  ;;  %v7926_v2 = vld [vmem:[#allocation8 + $0x268] sm:$0xf0]  ;;  %v8510_v28 = vld [vmem:[#allocation8 + $0x3e4] sm:$0xf] }
 0x450   :  { %v8118_v50 = vld [vmem:[#allocation8 + $0x3e8] sm:$0xf0] }
 0x451   :  { %v9732_v19 = vadd.f32 %v3696_v9, %v3528_v5  ;;  %v3362_v3 = vadd.f32 %v3361_v42, %v3193_v45  ;;  %3747 = vmatmul.bf16.gmra.mxu0 %v14066_v13  ;;  %v7929_v42 = vor.u32 %v8462_v49, %v7926_v2  ;;  %v8121_v45 = vor.u32 %v8510_v28, %v8118_v50  ;;  %v14070_v13 = vld [vmem:[#allocation171_spill] sm:$0xff]  ;;  %v14075_v50 = vld [vmem:[#allocation28_spill] sm:$0xff] }
 0x452   :  { %3916 = vmatmul.bf16.gmra.mxu1 %v14067_v58 }
 0x453   :  { %14065 = vst [vmem:[#allocation18_spill] sm:$0xff] %v9732_v19  ;;  %4085 = vmatmul.bf16.gmra.mxu2 %v14068_v54  ;;  %4406 = vmatpush.bf16.msrb.mxu0 %v7929_v42  ;;  %v14078_v42 = vld [vmem:[#allocation177_spill] sm:$0xff] }
 0x454   :  { %4254 = vmatmul.bf16.gmra.mxu3 %v14069_v29 }
 0x455   :  { %4913 = vmatpush.bf16.msrb.mxu3 %v8121_v45 }
 0x456   :  { %v3530_v33 = vpop.f32.mrf.mxu2  ;;  %v3194_v9 = vpop.f32.mrf.mxu0 }
 0x457   :  { %v3531_v11 = vadd.f32 %v3530_v33, %v3362_v3  ;;  %v3699_v5 = vpop.f32.mrf.mxu3  ;;  %v3195_v19 = vadd.f32 %v3194_v9, %v14070_v13  ;;  %v3363_v58 = vpop.f32.mrf.mxu1  ;;  %v14072_v33 = vld [vmem:[#allocation172_spill] sm:$0xff] }
 0x459   :  { %v9739_v54 = vadd.f32 %v3699_v5, %v3531_v11  ;;  %v3364_v29 = vadd.f32 %v3363_v58, %v3195_v19  ;;  %v14076_v11 = vld [vmem:[#allocation29_spill] sm:$0xff]  ;;  %v14077_v19 = vld [vmem:[#allocation30_spill] sm:$0xff] }
 0x45b   :  { %14071 = vst [vmem:[#allocation159_spill] sm:$0xff] %v9739_v54 }
 0x45e   :  { %v3532_v52 = vpop.f32.mrf.mxu2  ;;  %v3197_v3 = vpop.f32.mrf.mxu0 }
 0x45f   :  { %v3533_v17 = vadd.f32 %v3532_v52, %v3364_v29  ;;  %v3701_v20 = vpop.f32.mrf.mxu3  ;;  %v3198_v51 = vadd.f32 %v3197_v3, %v14072_v33  ;;  %v3366_v49 = vpop.f32.mrf.mxu1 }
 0x461   :  { %v9742_v2 = vadd.f32 %v3701_v20, %v3533_v17  ;;  %v3367_v28 = vadd.f32 %v3366_v49, %v3198_v51  ;;  %3752 = vmatmul.bf16.gmra.mxu0 %v14074_v16 }
 0x462   :  { %3921 = vmatmul.bf16.gmra.mxu1 %v14075_v50  ;;  %v14082_v50 = vld [vmem:[#allocation31_spill] sm:$0xff] }
 0x463   :  { %14073 = vst [vmem:[#allocation160_spill] sm:$0xff] %v9742_v2  ;;  %4090 = vmatmul.bf16.gmra.mxu2 %v14076_v11  ;;  %v14084_v11 = vld [vmem:[#allocation33_spill] sm:$0xff] }
 0x464   :  { %4259 = vmatmul.bf16.gmra.mxu3 %v14077_v19  ;;  %v14085_v19 = vld [vmem:[#allocation34_spill] sm:$0xff] }
 0x466   :  { %v3535_v5 = vpop.f32.mrf.mxu2  ;;  %v3199_v9 = vpop.f32.mrf.mxu0 }
 0x467   :  { %v3536_v1 = vadd.f32 %v3535_v5, %v3367_v28  ;;  %v3704_v22 = vpop.f32.mrf.mxu3  ;;  %v3200_v45 = vadd.f32 %v3199_v9, %v14078_v42  ;;  %v3368_v13 = vpop.f32.mrf.mxu1  ;;  %v14083_v28 = vld [vmem:[#allocation32_spill] sm:$0xff]  ;;  %v14086_v42 = vld [vmem:[#allocation183_spill] sm:$0xff] }
 0x469   :  { %v9749_v58 = vadd.f32 %v3704_v22, %v3536_v1  ;;  %v3369_v20 = vadd.f32 %v3368_v13, %v3200_v45 }
 0x46b   :  { %14079 = vst [vmem:[#allocation19_spill] sm:$0xff] %v9749_v58 }
 0x46e   :  { %v3537_v17 = vpop.f32.mrf.mxu2  ;;  %v3202_v52 = vpop.f32.mrf.mxu0 }
 0x46f   :  { %v3538_v51 = vadd.f32 %v3537_v17, %v3369_v20  ;;  %v3706_v29 = vpop.f32.mrf.mxu3  ;;  %v3203_v3 = vadd.f32 %v3202_v52, %v14080_v21  ;;  %v3371_v33 = vpop.f32.mrf.mxu1 }
 0x471   :  { %v9752_v49 = vadd.f32 %v3706_v29, %v3538_v51  ;;  %v3372_v16 = vadd.f32 %v3371_v33, %v3203_v3  ;;  %3757 = vmatmul.bf16.gmra.mxu0 %v14082_v50  ;;  %v14088_v3 = vld [vmem:[#allocation184_spill] sm:$0xff] }
 0x472   :  { %3926 = vmatmul.bf16.gmra.mxu1 %v14083_v28 }
 0x473   :  { %14081 = vst [vmem:[#allocation20_spill] sm:$0xff] %v9752_v49  ;;  %4095 = vmatmul.bf16.gmra.mxu2 %v14084_v11 }
 0x474   :  { %4264 = vmatmul.bf16.gmra.mxu3 %v14085_v19  ;;  %v14090_v19 = vld [vmem:[#allocation35_spill] sm:$0xff] }
 0x476   :  { %v3540_v5 = vpop.f32.mrf.mxu2  ;;  %v3204_v9 = vpop.f32.mrf.mxu0 }
 0x477   :  { %v3541_v1 = vadd.f32 %v3540_v5, %v3372_v16  ;;  %v3709_v22 = vpop.f32.mrf.mxu3  ;;  %v3205_v45 = vadd.f32 %v3204_v9, %v14086_v42  ;;  %v3373_v13 = vpop.f32.mrf.mxu1  ;;  %v14091_v16 = vld [vmem:[#allocation36_spill] sm:$0xff]  ;;  %v14092_v5 = vld [vmem:[#allocation37_spill] sm:$0xff]  ;;  %v14093_v9 = vld [vmem:[#allocation38_spill] sm:$0xff] }
 0x479   :  { %v9759_v20 = vadd.f32 %v3709_v22, %v3541_v1  ;;  %v3374_v17 = vadd.f32 %v3373_v13, %v3205_v45  ;;  %v14094_v13 = vld [vmem:[#allocation189_spill] sm:$0xff] }
 0x47b   :  { %14087 = vst [vmem:[#allocation21_spill] sm:$0xff] %v9759_v20  ;;  %v14098_v20 = vld [vmem:[#allocation39_spill] sm:$0xff] }
 0x47e   :  { %v3542_v51 = vpop.f32.mrf.mxu2  ;;  %v3207_v21 = vpop.f32.mrf.mxu0 }
 0x47f   :  { %v3543_v29 = vadd.f32 %v3542_v51, %v3374_v17  ;;  %v3711_v52 = vpop.f32.mrf.mxu3  ;;  %v3208_v33 = vadd.f32 %v3207_v21, %v14088_v3  ;;  %v3376_v50 = vpop.f32.mrf.mxu1 }
 0x481   :  { %v9762_v28 = vadd.f32 %v3711_v52, %v3543_v29  ;;  %v3377_v11 = vadd.f32 %v3376_v50, %v3208_v33  ;;  %3762 = vmatmul.bf16.gmra.mxu0 %v14090_v19  ;;  %v14096_v19 = vld [vmem:[#allocation190_spill] sm:$0xff] }
 0x482   :  { %3931 = vmatmul.bf16.gmra.mxu1 %v14091_v16 }
 0x483   :  { %14089 = vst [vmem:[#allocation22_spill] sm:$0xff] %v9762_v28  ;;  %4100 = vmatmul.bf16.gmra.mxu2 %v14092_v5 }
 0x484   :  { %4269 = vmatmul.bf16.gmra.mxu3 %v14093_v9 }
 0x486   :  { %v3545_v1 = vpop.f32.mrf.mxu2  ;;  %v3209_v45 = vpop.f32.mrf.mxu0 }
 0x487   :  { %v3546_v22 = vadd.f32 %v3545_v1, %v3377_v11  ;;  %v3714_v42 = vpop.f32.mrf.mxu3  ;;  %v3210_v17 = vadd.f32 %v3209_v45, %v14094_v13  ;;  %v3378_v51 = vpop.f32.mrf.mxu1  ;;  %v14099_v11 = vld [vmem:[#allocation40_spill] sm:$0xff]  ;;  %v14100_v1 = vld [vmem:[#allocation41_spill] sm:$0xff]  ;;  %v14101_v45 = vld [vmem:[#allocation42_spill] sm:$0xff] }
 0x489   :  { %v9769_v21 = vadd.f32 %v3714_v42, %v3546_v22  ;;  %v3379_v29 = vadd.f32 %v3378_v51, %v3210_v17 }
 0x48b   :  { %14095 = vst [vmem:[#allocation165_spill] sm:$0xff] %v9769_v21  ;;  %v7974_v21 = vld [vmem:[#allocation8 + $0x2c8] sm:$0xf0] }
 0x48e   :  { %v3547_v52 = vpop.f32.mrf.mxu2  ;;  %v3212_v50 = vpop.f32.mrf.mxu0 }
 0x48f   :  { %v3548_v3 = vadd.f32 %v3547_v52, %v3379_v29  ;;  %v3716_v33 = vpop.f32.mrf.mxu3  ;;  %v3213_v16 = vadd.f32 %v3212_v50, %v14096_v19  ;;  %v3381_v28 = vpop.f32.mrf.mxu1 }
 0x491   :  { %v9772_v5 = vadd.f32 %v3716_v33, %v3548_v3  ;;  %v3382_v9 = vadd.f32 %v3381_v28, %v3213_v16  ;;  %3767 = vmatmul.bf16.gmra.mxu0 %v14098_v20 }
 0x492   :  { %3936 = vmatmul.bf16.gmra.mxu1 %v14099_v11 }
 0x493   :  { %14097 = vst [vmem:[#allocation166_spill] sm:$0xff] %v9772_v5  ;;  %4105 = vmatmul.bf16.gmra.mxu2 %v14100_v1  ;;  %v8492_v1 = vld [vmem:[#allocation8 + $0x354] sm:$0xf]  ;;  %v14104_v5 = vld [vmem:[#allocation43_spill] sm:$0xff] }
 0x494   :  { %4274 = vmatmul.bf16.gmra.mxu3 %v14101_v45  ;;  %v8046_v45 = vld [vmem:[#allocation8 + $0x358] sm:$0xf0] }
 0x496   :  { %v3550_v22 = vpop.f32.mrf.mxu2  ;;  %v3214_v17 = vpop.f32.mrf.mxu0 }
 0x497   :  { %v3551_v42 = vadd.f32 %v3550_v22, %v3382_v9  ;;  %v3719_v13 = vpop.f32.mrf.mxu3  ;;  %v3215_v51 = vadd.f32 %v3214_v17, %v9271_v56  ;;  %v3383_v29 = vpop.f32.mrf.mxu1  ;;  %v8460_v9 = vld [vmem:[#allocation8 + $0x254] sm:$0xf]  ;;  %v8049_v56 = vor.u32 %v8492_v1, %v8046_v45  ;;  %v7918_v17 = vld [vmem:[#allocation8 + $0x258] sm:$0xf0] }
 0x499   :  { %v9779_v52 = vadd.f32 %v3719_v13, %v3551_v42  ;;  %v3384_v3 = vadd.f32 %v3383_v29, %v3215_v51  ;;  %v8508_v42 = vld [vmem:[#allocation8 + $0x3d4] sm:$0xf]  ;;  %v8110_v13 = vld [vmem:[#allocation8 + $0x3d8] sm:$0xf0]  ;;  %v14105_v51 = vld [vmem:[#allocation44_spill] sm:$0xff]  ;;  %4745 = vmatpush.bf16.msrb.mxu2 %v8049_v56 }
 0x49a   :  { %v14106_v29 = vld [vmem:[#allocation45_spill] sm:$0xff] }
 0x49b   :  { %14102 = vst [vmem:[#allocation23_spill] sm:$0xff] %v9779_v52 }
 0x49e   :  { %v3552_v33 = vpop.f32.mrf.mxu2  ;;  %v3217_v20 = vpop.f32.mrf.mxu0 }
 0x49f   :  { %v3553_v28 = vadd.f32 %v3552_v33, %v3384_v3  ;;  %v3721_v50 = vpop.f32.mrf.mxu3  ;;  %v3218_v19 = vadd.f32 %v3217_v20, %v9277_v12  ;;  %v3386_v16 = vpop.f32.mrf.mxu1  ;;  %v7921_v3 = vor.u32 %v8460_v9, %v7918_v17  ;;  %v8476_v33 = vld [vmem:[#allocation8 + $0x2d4] sm:$0xf]  ;;  %v7982_v12 = vld [vmem:[#allocation8 + $0x2d8] sm:$0xf0] }
 0x4a0   :  { %v14107_v20 = vld [vmem:[#allocation46_spill] sm:$0xff] }
 0x4a1   :  { %v9782_v11 = vadd.f32 %v3721_v50, %v3553_v28  ;;  %v3387_v22 = vadd.f32 %v3386_v16, %v3218_v19  ;;  %3772 = vmatmul.bf16.gmra.mxu0 %v14104_v5  ;;  %v8113_v28 = vor.u32 %v8508_v42, %v8110_v13  ;;  %v7985_v50 = vor.u32 %v8476_v33, %v7982_v12  ;;  %v14111_v33 = vld [vmem:[#allocation48_spill] sm:$0xff]  ;;  %v14113_v12 = vld [vmem:[#allocation50_spill] sm:$0xff] }
 0x4a2   :  { %3941 = vmatmul.bf16.gmra.mxu1 %v14105_v51  ;;  %4407 = vmatpush.bf16.msrb.mxu0 %v7921_v3  ;;  %v14110_v3 = vld [vmem:[#allocation47_spill] sm:$0xff] }
 0x4a3   :  { %14103 = vst [vmem:[#allocation24_spill] sm:$0xff] %v9782_v11  ;;  %4110 = vmatmul.bf16.gmra.mxu2 %v14106_v29  ;;  %4914 = vmatpush.bf16.msrb.mxu3 %v8113_v28 }
 0x4a4   :  { %4279 = vmatmul.bf16.gmra.mxu3 %v14107_v20  ;;  %4576 = vmatpush.bf16.msrb.mxu1 %v7985_v50 }
 0x4a6   :  { %v3555_v19 = vpop.f32.mrf.mxu2  ;;  %v3219_v1 = vpop.f32.mrf.mxu0 }
 0x4a7   :  { %v3556_v5 = vadd.f32 %v3555_v19, %v3387_v22  ;;  %v3724_v16 = vpop.f32.mrf.mxu3  ;;  %v3220_v45 = vadd.f32 %v3219_v1, %v9288_v6  ;;  %v3388_v51 = vpop.f32.mrf.mxu1  ;;  %v14112_v22 = vld [vmem:[#allocation49_spill] sm:$0xff] }
 0x4a9   :  { %v9789_v11 = vadd.f32 %v3724_v16, %v3556_v5  ;;  %v3389_v9 = vadd.f32 %v3388_v51, %v3220_v45 }
 0x4ab   :  { %14108 = vst [vmem:[#allocation25_spill] sm:$0xff] %v9789_v11 }
 0x4ae   :  { %v3557_v17 = vpop.f32.mrf.mxu2  ;;  %v3738_v20 = vpop.f32.mrf.mxu0 }
 0x4af   :  { %v3558_v29 = vadd.f32 %v3557_v17, %v3389_v9  ;;  %v3726_v52 = vpop.f32.mrf.mxu3  ;;  %v3907_v56 = vpop.f32.mrf.mxu1 }
 0x4b0   :  { %v3908_v13 = vadd.f32 %v3907_v56, %v3738_v20  ;;  %v14114_v56 = vld [vmem:[#allocation51_spill] sm:$0xff] }
 0x4b1   :  { %v9791_v42 = vadd.f32 %v3726_v52, %v3558_v29  ;;  %3777 = vmatmul.bf16.gmra.mxu0 %v14110_v3  ;;  %v14115_v3 = vld [vmem:[#allocation52_spill] sm:$0xff] }
 0x4b2   :  { %3946 = vmatmul.bf16.gmra.mxu1 %v14111_v33  ;;  %v14116_v33 = vld [vmem:[#allocation53_spill] sm:$0xff] }
 0x4b3   :  { %14109 = vst [vmem:[#allocation26_spill] sm:$0xff] %v9791_v42  ;;  %4115 = vmatmul.bf16.gmra.mxu2 %v14112_v22 }
 0x4b4   :  { %4284 = vmatmul.bf16.gmra.mxu3 %v14113_v12 }
 0x4b6   :  { %v4076_v6 = vpop.f32.mrf.mxu2  ;;  %v3740_v19 = vpop.f32.mrf.mxu0 }
 0x4b7   :  { %v4077_v28 = vadd.f32 %v4076_v6, %v3908_v13  ;;  %v4245_v50 = vpop.f32.mrf.mxu3  ;;  %v3909_v5 = vpop.f32.mrf.mxu1  ;;  %v14117_v13 = vld [vmem:[#allocation54_spill] sm:$0xff] }
 0x4b8   :  { %v3910_v1 = vadd.f32 %v3909_v5, %v3740_v19 }
 0x4b9   :  { %v9797_v16 = vadd.f32 %v4245_v50, %v4077_v28 }
 0x4be   :  { %v4078_v45 = vpop.f32.mrf.mxu2  ;;  %v3743_v9 = vpop.f32.mrf.mxu0 }
 0x4bf   :  { %v4079_v52 = vadd.f32 %v4078_v45, %v3910_v1  ;;  %v4247_v51 = vpop.f32.mrf.mxu3  ;;  %v3912_v17 = vpop.f32.mrf.mxu1 }
 0x4c0   :  { %v3913_v20 = vadd.f32 %v3912_v17, %v3743_v9 }
 0x4c1   :  { %v9799_v29 = vadd.f32 %v4247_v51, %v4079_v52  ;;  %3782 = vmatmul.bf16.gmra.mxu0 %v14114_v56 }
 0x4c2   :  { %3951 = vmatmul.bf16.gmra.mxu1 %v14115_v3  ;;  %v14118_v3 = vld [vmem:[#allocation55_spill] sm:$0xff] }
 0x4c3   :  { %4120 = vmatmul.bf16.gmra.mxu2 %v14116_v33  ;;  %v14119_v33 = vld [vmem:[#allocation56_spill] sm:$0xff] }
 0x4c4   :  { %4289 = vmatmul.bf16.gmra.mxu3 %v14117_v13  ;;  %v14120_v13 = vld [vmem:[#allocation57_spill] sm:$0xff] }
 0x4c6   :  { %v4081_v22 = vpop.f32.mrf.mxu2  ;;  %v3745_v28 = vpop.f32.mrf.mxu0 }
 0x4c7   :  { %v4082_v12 = vadd.f32 %v4081_v22, %v3913_v20  ;;  %v4250_v6 = vpop.f32.mrf.mxu3  ;;  %v3914_v50 = vpop.f32.mrf.mxu1  ;;  %v14121_v20 = vld [vmem:[#allocation58_spill] sm:$0xff]  ;;  %v8490_v22 = vld [vmem:[#allocation8 + $0x344] sm:$0xf] }
 0x4c8   :  { %v3915_v5 = vadd.f32 %v3914_v50, %v3745_v28  ;;  %v7910_v50 = vld [vmem:[#allocation8 + $0x248] sm:$0xf0] }
 0x4c9   :  { %v9805_v19 = vadd.f32 %v4250_v6, %v4082_v12  ;;  %v8038_v12 = vld [vmem:[#allocation8 + $0x348] sm:$0xf0]  ;;  %v8458_v6 = vld [vmem:[#allocation8 + $0x244] sm:$0xf] }
 0x4ca   :  { %v8041_v28 = vor.u32 %v8490_v22, %v8038_v12  ;;  %v7913_v11 = vor.u32 %v8458_v6, %v7910_v50 }
 0x4cc   :  { %4746 = vmatpush.bf16.msrb.mxu2 %v8041_v28  ;;  %4408 = vmatpush.bf16.msrb.mxu0 %v7913_v11  ;;  %v14123_v28 = vld [vmem:[#allocation60_spill] sm:$0xff]  ;;  %v14124_v11 = vld [vmem:[#allocation61_spill] sm:$0xff] }
 0x4ce   :  { %v4083_v1 = vpop.f32.mrf.mxu2  ;;  %v3748_v51 = vpop.f32.mrf.mxu0 }
 0x4cf   :  { %v4084_v45 = vadd.f32 %v4083_v1, %v3915_v5  ;;  %v4252_v52 = vpop.f32.mrf.mxu3  ;;  %v3917_v9 = vpop.f32.mrf.mxu1  ;;  %v8506_v5 = vld [vmem:[#allocation8 + $0x3c4] sm:$0xf]  ;;  %v8102_v1 = vld [vmem:[#allocation8 + $0x3c8] sm:$0xf0] }
 0x4d0   :  { %v3918_v56 = vadd.f32 %v3917_v9, %v3748_v51 }
 0x4d1   :  { %v9807_v17 = vadd.f32 %v4252_v52, %v4084_v45  ;;  %3787 = vmatmul.bf16.gmra.mxu0 %v14118_v3  ;;  %v8105_v45 = vor.u32 %v8506_v5, %v8102_v1  ;;  %v14125_v5 = vld [vmem:[#allocation62_spill] sm:$0xff] }
 0x4d2   :  { %3956 = vmatmul.bf16.gmra.mxu1 %v14119_v33 }
 0x4d3   :  { %4125 = vmatmul.bf16.gmra.mxu2 %v14120_v13  ;;  %4915 = vmatpush.bf16.msrb.mxu3 %v8105_v45 }
 0x4d4   :  { %4294 = vmatmul.bf16.gmra.mxu3 %v14121_v20  ;;  %v8474_v20 = vld [vmem:[#allocation8 + $0x2c4] sm:$0xf] }
 0x4d5   :  { %v7977_v49 = vor.u32 %v8474_v20, %v7974_v21 }
 0x4d6   :  { %v4086_v42 = vpop.f32.mrf.mxu2  ;;  %v3750_v9 = vpop.f32.mrf.mxu0 }
 0x4d7   :  { %v4087_v52 = vadd.f32 %v4086_v42, %v3918_v56  ;;  %v4255_v51 = vpop.f32.mrf.mxu3  ;;  %v3919_v3 = vpop.f32.mrf.mxu1  ;;  %4577 = vmatpush.bf16.msrb.mxu1 %v7977_v49  ;;  %v14122_v56 = vld [vmem:[#allocation59_spill] sm:$0xff] }
 0x4d8   :  { %v3920_v13 = vadd.f32 %v3919_v3, %v3750_v9 }
 0x4d9   :  { %v9813_v33 = vadd.f32 %v4255_v51, %v4087_v52 }
 0x4de   :  { %v4088_v22 = vpop.f32.mrf.mxu2  ;;  %v3753_v2 = vpop.f32.mrf.mxu0 }
 0x4df   :  { %v4089_v12 = vadd.f32 %v4088_v22, %v3920_v13  ;;  %v4257_v58 = vpop.f32.mrf.mxu3  ;;  %v3922_v6 = vpop.f32.mrf.mxu1 }
 0x4e0   :  { %v3923_v42 = vadd.f32 %v3922_v6, %v3753_v2  ;;  %v14126_v6 = vld [vmem:[#allocation63_spill] sm:$0xff] }
 0x4e1   :  { %v9815_v50 = vadd.f32 %v4257_v58, %v4089_v12  ;;  %3792 = vmatmul.bf16.gmra.mxu0 %v14122_v56  ;;  %v14127_v56 = vld [vmem:[#allocation64_spill] sm:$0xff] }
 0x4e2   :  { %3961 = vmatmul.bf16.gmra.mxu1 %v14123_v28  ;;  %v14128_v28 = vld [vmem:[#allocation65_spill] sm:$0xff] }
 0x4e3   :  { %4130 = vmatmul.bf16.gmra.mxu2 %v14124_v11 }
 0x4e4   :  { %4299 = vmatmul.bf16.gmra.mxu3 %v14125_v5 }
 0x4e6   :  { %v4091_v1 = vpop.f32.mrf.mxu2  ;;  %v3755_v49 = vpop.f32.mrf.mxu0 }
 0x4e7   :  { %v4092_v45 = vadd.f32 %v4091_v1, %v3923_v42  ;;  %v4260_v21 = vpop.f32.mrf.mxu3  ;;  %v3924_v52 = vpop.f32.mrf.mxu1  ;;  %v14129_v42 = vld [vmem:[#allocation66_spill] sm:$0xff] }
 0x4e8   :  { %v3925_v9 = vadd.f32 %v3924_v52, %v3755_v49 }
 0x4e9   :  { %v9821_v51 = vadd.f32 %v4260_v21, %v4092_v45 }
 0x4ee   :  { %v4093_v3 = vpop.f32.mrf.mxu2  ;;  %v3758_v2 = vpop.f32.mrf.mxu0 }
 0x4ef   :  { %v4094_v58 = vadd.f32 %v4093_v3, %v3925_v9  ;;  %v4262_v13 = vpop.f32.mrf.mxu3  ;;  %v3927_v20 = vpop.f32.mrf.mxu1 }
 0x4f0   :  { %v3928_v12 = vadd.f32 %v3927_v20, %v3758_v2 }
 0x4f1   :  { %v9823_v22 = vadd.f32 %v4262_v13, %v4094_v58  ;;  %3797 = vmatmul.bf16.gmra.mxu0 %v14126_v6 }
 0x4f2   :  { %3966 = vmatmul.bf16.gmra.mxu1 %v14127_v56  ;;  %v14130_v56 = vld [vmem:[#allocation67_spill] sm:$0xff] }
 0x4f3   :  { %4135 = vmatmul.bf16.gmra.mxu2 %v14128_v28  ;;  %v14131_v28 = vld [vmem:[#allocation68_spill] sm:$0xff] }
 0x4f4   :  { %4304 = vmatmul.bf16.gmra.mxu3 %v14129_v42  ;;  %v14132_v42 = vld [vmem:[#allocation69_spill] sm:$0xff] }
 0x4f6   :  { %v4096_v11 = vpop.f32.mrf.mxu2  ;;  %v3760_v45 = vpop.f32.mrf.mxu0 }
 0x4f7   :  { %v4097_v5 = vadd.f32 %v4096_v11, %v3928_v12  ;;  %v4265_v1 = vpop.f32.mrf.mxu3  ;;  %v3929_v21 = vpop.f32.mrf.mxu1  ;;  %v14133_v12 = vld [vmem:[#allocation70_spill] sm:$0xff] }
 0x4f8   :  { %v3930_v52 = vadd.f32 %v3929_v21, %v3760_v45 }
 0x4f9   :  { %v9829_v49 = vadd.f32 %v4265_v1, %v4097_v5 }
 0x4fe   :  { %v4098_v9 = vpop.f32.mrf.mxu2  ;;  %v3763_v13 = vpop.f32.mrf.mxu0 }
 0x4ff   :  { %v4099_v3 = vadd.f32 %v4098_v9, %v3930_v52  ;;  %v4267_v58 = vpop.f32.mrf.mxu3  ;;  %v3932_v2 = vpop.f32.mrf.mxu1 }
 0x500   :  { %v3933_v6 = vadd.f32 %v3932_v2, %v3763_v13 }
 0x501   :  { %v9831_v20 = vadd.f32 %v4267_v58, %v4099_v3  ;;  %3802 = vmatmul.bf16.gmra.mxu0 %v14130_v56 }
 0x502   :  { %3971 = vmatmul.bf16.gmra.mxu1 %v14131_v28 }
 0x503   :  { %4140 = vmatmul.bf16.gmra.mxu2 %v14132_v42  ;;  %v14135_v42 = vld [vmem:[#allocation72_spill] sm:$0xff] }
 0x504   :  { %4309 = vmatmul.bf16.gmra.mxu3 %v14133_v12  ;;  %v14136_v12 = vld [vmem:[#allocation73_spill] sm:$0xff] }
 0x506   :  { %v4101_v11 = vpop.f32.mrf.mxu2  ;;  %v3765_v45 = vpop.f32.mrf.mxu0 }
 0x507   :  { %v4102_v5 = vadd.f32 %v4101_v11, %v3933_v6  ;;  %v4270_v1 = vpop.f32.mrf.mxu3  ;;  %v3934_v21 = vpop.f32.mrf.mxu1  ;;  %v14137_v6 = vld [vmem:[#allocation74_spill] sm:$0xff]  ;;  %v8488_v11 = vld [vmem:[#allocation8 + $0x334] sm:$0xf] }
 0x508   :  { %v3935_v9 = vadd.f32 %v3934_v21, %v3765_v45  ;;  %v7902_v21 = vld [vmem:[#allocation8 + $0x238] sm:$0xf0] }
 0x509   :  { %v9837_v52 = vadd.f32 %v4270_v1, %v4102_v5  ;;  %v8030_v5 = vld [vmem:[#allocation8 + $0x338] sm:$0xf0]  ;;  %v8456_v1 = vld [vmem:[#allocation8 + $0x234] sm:$0xf] }
 0x50a   :  { %v8033_v45 = vor.u32 %v8488_v11, %v8030_v5  ;;  %v7905_v18 = vor.u32 %v8456_v1, %v7902_v21 }
 0x50c   :  { %4747 = vmatpush.bf16.msrb.mxu2 %v8033_v45  ;;  %4409 = vmatpush.bf16.msrb.mxu0 %v7905_v18  ;;  %v14139_v45 = vld [vmem:[#allocation76_spill] sm:$0xff]  ;;  %v14140_v18 = vld [vmem:[#allocation77_spill] sm:$0xff] }
 0x50e   :  { %v4103_v54 = vpop.f32.mrf.mxu2  ;;  %v3768_v13 = vpop.f32.mrf.mxu0 }
 0x50f   :  { %v4104_v3 = vadd.f32 %v4103_v54, %v3935_v9  ;;  %v4272_v58 = vpop.f32.mrf.mxu3  ;;  %v3937_v2 = vpop.f32.mrf.mxu1  ;;  %v8504_v54 = vld [vmem:[#allocation8 + $0x3b4] sm:$0xf]  ;;  %v8094_v9 = vld [vmem:[#allocation8 + $0x3b8] sm:$0xf0] }
 0x510   :  { %v3938_v28 = vadd.f32 %v3937_v2, %v3768_v13 }
 0x511   :  { %v9839_v56 = vadd.f32 %v4272_v58, %v4104_v3  ;;  %3807 = vmatmul.bf16.gmra.mxu0 %v14134_v8  ;;  %v8097_v3 = vor.u32 %v8504_v54, %v8094_v9  ;;  %v14141_v54 = vld [vmem:[#allocation78_spill] sm:$0xff] }
 0x512   :  { %3976 = vmatmul.bf16.gmra.mxu1 %v14135_v42 }
 0x513   :  { %4145 = vmatmul.bf16.gmra.mxu2 %v14136_v12  ;;  %4916 = vmatpush.bf16.msrb.mxu3 %v8097_v3 }
 0x514   :  { %4314 = vmatmul.bf16.gmra.mxu3 %v14137_v6  ;;  %v8472_v6 = vld [vmem:[#allocation8 + $0x2b4] sm:$0xf] }
 0x515   :  { %v7969_v57 = vor.u32 %v8472_v6, %v7966_v39 }
 0x516   :  { %v4106_v35 = vpop.f32.mrf.mxu2  ;;  %v3770_v2 = vpop.f32.mrf.mxu0 }
 0x517   :  { %v4107_v58 = vadd.f32 %v4106_v35, %v3938_v28  ;;  %v4275_v13 = vpop.f32.mrf.mxu3  ;;  %v3939_v8 = vpop.f32.mrf.mxu1  ;;  %4578 = vmatpush.bf16.msrb.mxu1 %v7969_v57  ;;  %v14138_v28 = vld [vmem:[#allocation75_spill] sm:$0xff] }
 0x518   :  { %v3940_v12 = vadd.f32 %v3939_v8, %v3770_v2 }
 0x519   :  { %v9845_v42 = vadd.f32 %v4275_v13, %v4107_v58 }
 0x51e   :  { %v4108_v11 = vpop.f32.mrf.mxu2  ;;  %v3773_v44 = vpop.f32.mrf.mxu0 }
 0x51f   :  { %v4109_v5 = vadd.f32 %v4108_v11, %v3940_v12  ;;  %v4277_v46 = vpop.f32.mrf.mxu3  ;;  %v3942_v1 = vpop.f32.mrf.mxu1 }
 0x520   :  { %v3943_v35 = vadd.f32 %v3942_v1, %v3773_v44  ;;  %v14142_v1 = vld [vmem:[#allocation79_spill] sm:$0xff] }
 0x521   :  { %v9847_v21 = vadd.f32 %v4277_v46, %v4109_v5  ;;  %3812 = vmatmul.bf16.gmra.mxu0 %v14138_v28  ;;  %v14143_v28 = vld [vmem:[#allocation80_spill] sm:$0xff] }
 0x522   :  { %3981 = vmatmul.bf16.gmra.mxu1 %v14139_v45  ;;  %v14144_v45 = vld [vmem:[#allocation81_spill] sm:$0xff] }
 0x523   :  { %4150 = vmatmul.bf16.gmra.mxu2 %v14140_v18 }
 0x524   :  { %4319 = vmatmul.bf16.gmra.mxu3 %v14141_v54 }
 0x526   :  { %v4111_v9 = vpop.f32.mrf.mxu2  ;;  %v3775_v57 = vpop.f32.mrf.mxu0 }
 0x527   :  { %v4112_v3 = vadd.f32 %v4111_v9, %v3943_v35  ;;  %v4280_v39 = vpop.f32.mrf.mxu3  ;;  %v3944_v58 = vpop.f32.mrf.mxu1  ;;  %v14145_v35 = vld [vmem:[#allocation82_spill] sm:$0xff] }
 0x528   :  { %v3945_v2 = vadd.f32 %v3944_v58, %v3775_v57 }
 0x529   :  { %v9853_v13 = vadd.f32 %v4280_v39, %v4112_v3 }
 0x52e   :  { %v4113_v8 = vpop.f32.mrf.mxu2  ;;  %v3778_v44 = vpop.f32.mrf.mxu0 }
 0x52f   :  { %v4114_v46 = vadd.f32 %v4113_v8, %v3945_v2  ;;  %v4282_v12 = vpop.f32.mrf.mxu3  ;;  %v3947_v6 = vpop.f32.mrf.mxu1 }
 0x530   :  { %v3948_v5 = vadd.f32 %v3947_v6, %v3778_v44 }
 0x531   :  { %v9855_v11 = vadd.f32 %v4282_v12, %v4114_v46  ;;  %3817 = vmatmul.bf16.gmra.mxu0 %v14142_v1 }
 0x532   :  { %3986 = vmatmul.bf16.gmra.mxu1 %v14143_v28  ;;  %v14146_v28 = vld [vmem:[#allocation83_spill] sm:$0xff] }
 0x533   :  { %4155 = vmatmul.bf16.gmra.mxu2 %v14144_v45  ;;  %v14147_v45 = vld [vmem:[#allocation84_spill] sm:$0xff] }
 0x534   :  { %4324 = vmatmul.bf16.gmra.mxu3 %v14145_v35  ;;  %v14148_v35 = vld [vmem:[#allocation85_spill] sm:$0xff] }
 0x536   :  { %v4116_v18 = vpop.f32.mrf.mxu2  ;;  %v3780_v3 = vpop.f32.mrf.mxu0 }
 0x537   :  { %v4117_v54 = vadd.f32 %v4116_v18, %v3948_v5  ;;  %v4285_v9 = vpop.f32.mrf.mxu3  ;;  %v3949_v39 = vpop.f32.mrf.mxu1  ;;  %v14149_v5 = vld [vmem:[#allocation86_spill] sm:$0xff] }
 0x538   :  { %v3950_v58 = vadd.f32 %v3949_v39, %v3780_v3 }
 0x539   :  { %v9861_v57 = vadd.f32 %v4285_v9, %v4117_v54 }
 0x53e   :  { %v4118_v2 = vpop.f32.mrf.mxu2  ;;  %v3783_v12 = vpop.f32.mrf.mxu0 }
 0x53f   :  { %v4119_v8 = vadd.f32 %v4118_v2, %v3950_v58  ;;  %v4287_v46 = vpop.f32.mrf.mxu3  ;;  %v3952_v44 = vpop.f32.mrf.mxu1 }
 0x540   :  { %v3953_v1 = vadd.f32 %v3952_v44, %v3783_v12 }
 0x541   :  { %v9863_v6 = vadd.f32 %v4287_v46, %v4119_v8  ;;  %3822 = vmatmul.bf16.gmra.mxu0 %v14146_v28 }
 0x542   :  { %3991 = vmatmul.bf16.gmra.mxu1 %v14147_v45 }
 0x543   :  { %4160 = vmatmul.bf16.gmra.mxu2 %v14148_v35  ;;  %v14151_v35 = vld [vmem:[#allocation88_spill] sm:$0xff] }
 0x544   :  { %4329 = vmatmul.bf16.gmra.mxu3 %v14149_v5  ;;  %v14152_v5 = vld [vmem:[#allocation89_spill] sm:$0xff] }
 0x546   :  { %v4121_v18 = vpop.f32.mrf.mxu2  ;;  %v3785_v3 = vpop.f32.mrf.mxu0 }
 0x547   :  { %v4122_v54 = vadd.f32 %v4121_v18, %v3953_v1  ;;  %v4290_v9 = vpop.f32.mrf.mxu3  ;;  %v3954_v39 = vpop.f32.mrf.mxu1  ;;  %v14153_v1 = vld [vmem:[#allocation90_spill] sm:$0xff]  ;;  %v8486_v18 = vld [vmem:[#allocation8 + $0x324] sm:$0xf] }
 0x548   :  { %v3955_v2 = vadd.f32 %v3954_v39, %v3785_v3  ;;  %v7894_v39 = vld [vmem:[#allocation8 + $0x228] sm:$0xf0] }
 0x549   :  { %v9869_v58 = vadd.f32 %v4290_v9, %v4122_v54  ;;  %v8022_v54 = vld [vmem:[#allocation8 + $0x328] sm:$0xf0]  ;;  %v8454_v9 = vld [vmem:[#allocation8 + $0x224] sm:$0xf] }
 0x54a   :  { %v8025_v3 = vor.u32 %v8486_v18, %v8022_v54  ;;  %v7897_v24 = vor.u32 %v8454_v9, %v7894_v39 }
 0x54c   :  { %4748 = vmatpush.bf16.msrb.mxu2 %v8025_v3  ;;  %4410 = vmatpush.bf16.msrb.mxu0 %v7897_v24  ;;  %v14155_v3 = vld [vmem:[#allocation92_spill] sm:$0xff]  ;;  %v14156_v24 = vld [vmem:[#allocation93_spill] sm:$0xff] }
 0x54e   :  { %v4123_v26 = vpop.f32.mrf.mxu2  ;;  %v3788_v12 = vpop.f32.mrf.mxu0 }
 0x54f   :  { %v4124_v8 = vadd.f32 %v4123_v26, %v3955_v2  ;;  %v4292_v46 = vpop.f32.mrf.mxu3  ;;  %v3957_v44 = vpop.f32.mrf.mxu1  ;;  %v8502_v26 = vld [vmem:[#allocation8 + $0x3a4] sm:$0xf]  ;;  %v8086_v2 = vld [vmem:[#allocation8 + $0x3a8] sm:$0xf0] }
 0x550   :  { %v3958_v45 = vadd.f32 %v3957_v44, %v3788_v12 }
 0x551   :  { %v9871_v28 = vadd.f32 %v4292_v46, %v4124_v8  ;;  %3827 = vmatmul.bf16.gmra.mxu0 %v14150_v25  ;;  %v8089_v8 = vor.u32 %v8502_v26, %v8086_v2  ;;  %v14157_v26 = vld [vmem:[#allocation94_spill] sm:$0xff] }
 0x552   :  { %3996 = vmatmul.bf16.gmra.mxu1 %v14151_v35 }
 0x553   :  { %4165 = vmatmul.bf16.gmra.mxu2 %v14152_v5  ;;  %4917 = vmatpush.bf16.msrb.mxu3 %v8089_v8 }
 0x554   :  { %4334 = vmatmul.bf16.gmra.mxu3 %v14153_v1  ;;  %v8470_v1 = vld [vmem:[#allocation8 + $0x2a4] sm:$0xf] }
 0x555   :  { %v7961_v63 = vor.u32 %v8470_v1, %v7958_v7 }
 0x556   :  { %v4126_v61 = vpop.f32.mrf.mxu2  ;;  %v3790_v44 = vpop.f32.mrf.mxu0 }
 0x557   :  { %v4127_v46 = vadd.f32 %v4126_v61, %v3958_v45  ;;  %v4295_v12 = vpop.f32.mrf.mxu3  ;;  %v3959_v25 = vpop.f32.mrf.mxu1  ;;  %4579 = vmatpush.bf16.msrb.mxu1 %v7961_v63  ;;  %v14154_v45 = vld [vmem:[#allocation91_spill] sm:$0xff] }
 0x558   :  { %v3960_v5 = vadd.f32 %v3959_v25, %v3790_v44 }
 0x559   :  { %v9877_v35 = vadd.f32 %v4295_v12, %v4127_v46 }
 0x55e   :  { %v4128_v18 = vpop.f32.mrf.mxu2  ;;  %v3793_v27 = vpop.f32.mrf.mxu0 }
 0x55f   :  { %v4129_v54 = vadd.f32 %v4128_v18, %v3960_v5  ;;  %v4297_v31 = vpop.f32.mrf.mxu3  ;;  %v3962_v9 = vpop.f32.mrf.mxu1 }
 0x560   :  { %v3963_v61 = vadd.f32 %v3962_v9, %v3793_v27  ;;  %v14159_v9 = vld [vmem:[#allocation95_spill] sm:$0xff] }
 0x561   :  { %v9879_v39 = vadd.f32 %v4297_v31, %v4129_v54  ;;  %3832 = vmatmul.bf16.gmra.mxu0 %v14154_v45  ;;  %v14160_v45 = vld [vmem:[#allocation96_spill] sm:$0xff] }
 0x562   :  { %4001 = vmatmul.bf16.gmra.mxu1 %v14155_v3  ;;  %v14161_v3 = vld [vmem:[#allocation97_spill] sm:$0xff] }
 0x563   :  { %4170 = vmatmul.bf16.gmra.mxu2 %v14156_v24 }
 0x564   :  { %4339 = vmatmul.bf16.gmra.mxu3 %v14157_v26 }
 0x566   :  { %v4131_v2 = vpop.f32.mrf.mxu2  ;;  %v3795_v63 = vpop.f32.mrf.mxu0 }
 0x567   :  { %v4132_v8 = vadd.f32 %v4131_v2, %v3963_v61  ;;  %v4300_v7 = vpop.f32.mrf.mxu3  ;;  %v3964_v46 = vpop.f32.mrf.mxu1  ;;  %v14162_v61 = vld [vmem:[#allocation98_spill] sm:$0xff] }
 0x568   :  { %v3965_v44 = vadd.f32 %v3964_v46, %v3795_v63 }
 0x569   :  { %v9885_v12 = vadd.f32 %v4300_v7, %v4132_v8 }
 0x56e   :  { %v4133_v25 = vpop.f32.mrf.mxu2  ;;  %v3798_v27 = vpop.f32.mrf.mxu0 }
 0x56f   :  { %v4134_v31 = vadd.f32 %v4133_v25, %v3965_v44  ;;  %v4302_v5 = vpop.f32.mrf.mxu3  ;;  %v3967_v1 = vpop.f32.mrf.mxu1 }
 0x570   :  { %v3968_v54 = vadd.f32 %v3967_v1, %v3798_v27 }
 0x571   :  { %v9887_v18 = vadd.f32 %v4302_v5, %v4134_v31  ;;  %3837 = vmatmul.bf16.gmra.mxu0 %v14159_v9 }
 0x572   :  { %4006 = vmatmul.bf16.gmra.mxu1 %v14160_v45  ;;  %v14165_v45 = vld [vmem:[#allocation99_spill] sm:$0xff] }
 0x573   :  { %14158 = vst [vmem:[#allocation171_spill] sm:$0xff] %v9887_v18  ;;  %4175 = vmatmul.bf16.gmra.mxu2 %v14161_v3  ;;  %v14166_v3 = vld [vmem:[#allocation100_spill] sm:$0xff] }
 0x574   :  { %4344 = vmatmul.bf16.gmra.mxu3 %v14162_v61  ;;  %v14167_v61 = vld [vmem:[#allocation101_spill] sm:$0xff] }
 0x576   :  { %v4136_v24 = vpop.f32.mrf.mxu2  ;;  %v3800_v8 = vpop.f32.mrf.mxu0 }
 0x577   :  { %v4137_v26 = vadd.f32 %v4136_v24, %v3968_v54  ;;  %v4305_v2 = vpop.f32.mrf.mxu3  ;;  %v3969_v7 = vpop.f32.mrf.mxu1  ;;  %v14168_v54 = vld [vmem:[#allocation102_spill] sm:$0xff] }
 0x578   :  { %v3970_v46 = vadd.f32 %v3969_v7, %v3800_v8 }
 0x579   :  { %v9893_v63 = vadd.f32 %v4305_v2, %v4137_v26 }
 0x57b   :  { %14163 = vst [vmem:[#allocation172_spill] sm:$0xff] %v9893_v63 }
 0x57e   :  { %v4138_v44 = vpop.f32.mrf.mxu2  ;;  %v3803_v5 = vpop.f32.mrf.mxu0 }
 0x57f   :  { %v4139_v25 = vadd.f32 %v4138_v44, %v3970_v46  ;;  %v4307_v31 = vpop.f32.mrf.mxu3  ;;  %v3972_v27 = vpop.f32.mrf.mxu1 }
 0x580   :  { %v3973_v9 = vadd.f32 %v3972_v27, %v3803_v5 }
 0x581   :  { %v9895_v1 = vadd.f32 %v4307_v31, %v4139_v25  ;;  %3842 = vmatmul.bf16.gmra.mxu0 %v14165_v45 }
 0x582   :  { %4011 = vmatmul.bf16.gmra.mxu1 %v14166_v3 }
 0x583   :  { %14164 = vst [vmem:[#allocation27_spill] sm:$0xff] %v9895_v1  ;;  %4180 = vmatmul.bf16.gmra.mxu2 %v14167_v61  ;;  %v14171_v1 = vld [vmem:[#allocation103_spill] sm:$0xff]  ;;  %v14172_v61 = vld [vmem:[#allocation104_spill] sm:$0xff] }
 0x584   :  { %4349 = vmatmul.bf16.gmra.mxu3 %v14168_v54  ;;  %v14173_v54 = vld [vmem:[#allocation105_spill] sm:$0xff] }
 0x586   :  { %v4141_v24 = vpop.f32.mrf.mxu2  ;;  %v3805_v8 = vpop.f32.mrf.mxu0 }
 0x587   :  { %v4142_v26 = vadd.f32 %v4141_v24, %v3973_v9  ;;  %v4310_v2 = vpop.f32.mrf.mxu3  ;;  %v3974_v7 = vpop.f32.mrf.mxu1  ;;  %v14174_v9 = vld [vmem:[#allocation106_spill] sm:$0xff]  ;;  %v8484_v24 = vld [vmem:[#allocation8 + $0x314] sm:$0xf] }
 0x588   :  { %v3975_v44 = vadd.f32 %v3974_v7, %v3805_v8  ;;  %v7886_v7 = vld [vmem:[#allocation8 + $0x218] sm:$0xf0] }
 0x589   :  { %v9901_v46 = vadd.f32 %v4310_v2, %v4142_v26  ;;  %v8014_v26 = vld [vmem:[#allocation8 + $0x318] sm:$0xf0]  ;;  %v8452_v2 = vld [vmem:[#allocation8 + $0x214] sm:$0xf] }
 0x58a   :  { %v8017_v8 = vor.u32 %v8484_v24, %v8014_v26  ;;  %v7889_v18 = vor.u32 %v8452_v2, %v7886_v7 }
 0x58b   :  { %14169 = vst [vmem:[#allocation28_spill] sm:$0xff] %v9901_v46 }
 0x58c   :  { %4749 = vmatpush.bf16.msrb.mxu2 %v8017_v8  ;;  %4411 = vmatpush.bf16.msrb.mxu0 %v7889_v18  ;;  %v14178_v8 = vld [vmem:[#allocation108_spill] sm:$0xff]  ;;  %v14179_v18 = vld [vmem:[#allocation109_spill] sm:$0xff] }
 0x58e   :  { %v4143_v63 = vpop.f32.mrf.mxu2  ;;  %v3808_v5 = vpop.f32.mrf.mxu0 }
 0x58f   :  { %v4144_v25 = vadd.f32 %v4143_v63, %v3975_v44  ;;  %v4312_v31 = vpop.f32.mrf.mxu3  ;;  %v3977_v27 = vpop.f32.mrf.mxu1  ;;  %v8500_v63 = vld [vmem:[#allocation8 + $0x394] sm:$0xf]  ;;  %v8078_v44 = vld [vmem:[#allocation8 + $0x398] sm:$0xf0] }
 0x590   :  { %v3978_v3 = vadd.f32 %v3977_v27, %v3808_v5 }
 0x591   :  { %v9903_v45 = vadd.f32 %v4312_v31, %v4144_v25  ;;  %3847 = vmatmul.bf16.gmra.mxu0 %v14171_v1  ;;  %v8081_v25 = vor.u32 %v8500_v63, %v8078_v44  ;;  %v14180_v63 = vld [vmem:[#allocation110_spill] sm:$0xff] }
 0x592   :  { %4016 = vmatmul.bf16.gmra.mxu1 %v14172_v61 }
 0x593   :  { %14170 = vst [vmem:[#allocation29_spill] sm:$0xff] %v9903_v45  ;;  %4185 = vmatmul.bf16.gmra.mxu2 %v14173_v54  ;;  %4918 = vmatpush.bf16.msrb.mxu3 %v8081_v25  ;;  %v7950_v45 = vld [vmem:[#allocation8 + $0x298] sm:$0xf0] }
 0x594   :  { %4354 = vmatmul.bf16.gmra.mxu3 %v14174_v9  ;;  %v8468_v9 = vld [vmem:[#allocation8 + $0x294] sm:$0xf] }
 0x595   :  { %v7953_v41 = vor.u32 %v8468_v9, %v7950_v45 }
 0x596   :  { %v4146_v46 = vpop.f32.mrf.mxu2  ;;  %v3810_v27 = vpop.f32.mrf.mxu0 }
 0x597   :  { %v4147_v31 = vadd.f32 %v4146_v46, %v3978_v3  ;;  %v4315_v5 = vpop.f32.mrf.mxu3  ;;  %v3979_v1 = vpop.f32.mrf.mxu1  ;;  %4580 = vmatpush.bf16.msrb.mxu1 %v7953_v41  ;;  %v14177_v3 = vld [vmem:[#allocation107_spill] sm:$0xff] }
 0x598   :  { %v3980_v54 = vadd.f32 %v3979_v1, %v3810_v27 }
 0x599   :  { %v9909_v61 = vadd.f32 %v4315_v5, %v4147_v31 }
 0x59b   :  { %14175 = vst [vmem:[#allocation30_spill] sm:$0xff] %v9909_v61 }
 0x59e   :  { %v4148_v24 = vpop.f32.mrf.mxu2  ;;  %v3813_v40 = vpop.f32.mrf.mxu0 }
 0x59f   :  { %v4149_v26 = vadd.f32 %v4148_v24, %v3980_v54  ;;  %v4317_v14 = vpop.f32.mrf.mxu3  ;;  %v3982_v2 = vpop.f32.mrf.mxu1 }
 0x5a0   :  { %v3983_v46 = vadd.f32 %v3982_v2, %v3813_v40  ;;  %v14183_v2 = vld [vmem:[#allocation111_spill] sm:$0xff] }
 0x5a1   :  { %v9911_v7 = vadd.f32 %v4317_v14, %v4149_v26  ;;  %3852 = vmatmul.bf16.gmra.mxu0 %v14177_v3  ;;  %v14184_v3 = vld [vmem:[#allocation112_spill] sm:$0xff] }
 0x5a2   :  { %4021 = vmatmul.bf16.gmra.mxu1 %v14178_v8  ;;  %v14185_v8 = vld [vmem:[#allocation113_spill] sm:$0xff] }
 0x5a3   :  { %14176 = vst [vmem:[#allocation177_spill] sm:$0xff] %v9911_v7  ;;  %4190 = vmatmul.bf16.gmra.mxu2 %v14179_v18 }
 0x5a4   :  { %4359 = vmatmul.bf16.gmra.mxu3 %v14180_v63 }
 0x5a6   :  { %v4151_v44 = vpop.f32.mrf.mxu2  ;;  %v3815_v41 = vpop.f32.mrf.mxu0 }
 0x5a7   :  { %v4152_v25 = vadd.f32 %v4151_v44, %v3983_v46  ;;  %v4320_v45 = vpop.f32.mrf.mxu3  ;;  %v3984_v31 = vpop.f32.mrf.mxu1  ;;  %v14186_v46 = vld [vmem:[#allocation114_spill] sm:$0xff] }
 0x5a8   :  { %v3985_v27 = vadd.f32 %v3984_v31, %v3815_v41 }
 0x5a9   :  { %v9917_v5 = vadd.f32 %v4320_v45, %v4152_v25 }
 0x5ab   :  { %14181 = vst [vmem:[#allocation178_spill] sm:$0xff] %v9917_v5 }
 0x5ae   :  { %v4153_v1 = vpop.f32.mrf.mxu2  ;;  %v3818_v40 = vpop.f32.mrf.mxu0 }
 0x5af   :  { %v4154_v14 = vadd.f32 %v4153_v1, %v3985_v27  ;;  %v4322_v54 = vpop.f32.mrf.mxu3  ;;  %v3987_v9 = vpop.f32.mrf.mxu1 }
 0x5b0   :  { %v3988_v26 = vadd.f32 %v3987_v9, %v3818_v40 }
 0x5b1   :  { %v9919_v24 = vadd.f32 %v4322_v54, %v4154_v14  ;;  %3857 = vmatmul.bf16.gmra.mxu0 %v14183_v2 }
 0x5b2   :  { %4026 = vmatmul.bf16.gmra.mxu1 %v14184_v3  ;;  %v14189_v3 = vld [vmem:[#allocation115_spill] sm:$0xff] }
 0x5b3   :  { %14182 = vst [vmem:[#allocation31_spill] sm:$0xff] %v9919_v24  ;;  %4195 = vmatmul.bf16.gmra.mxu2 %v14185_v8  ;;  %v14190_v8 = vld [vmem:[#allocation116_spill] sm:$0xff] }
 0x5b4   :  { %4364 = vmatmul.bf16.gmra.mxu3 %v14186_v46  ;;  %v14191_v46 = vld [vmem:[#allocation117_spill] sm:$0xff] }
 0x5b6   :  { %v4156_v18 = vpop.f32.mrf.mxu2  ;;  %v3820_v25 = vpop.f32.mrf.mxu0 }
 0x5b7   :  { %v4157_v63 = vadd.f32 %v4156_v18, %v3988_v26  ;;  %v4325_v44 = vpop.f32.mrf.mxu3  ;;  %v3989_v45 = vpop.f32.mrf.mxu1  ;;  %v14192_v26 = vld [vmem:[#allocation118_spill] sm:$0xff] }
 0x5b8   :  { %v3990_v31 = vadd.f32 %v3989_v45, %v3820_v25 }
 0x5b9   :  { %v9925_v41 = vadd.f32 %v4325_v44, %v4157_v63 }
 0x5bb   :  { %14187 = vst [vmem:[#allocation32_spill] sm:$0xff] %v9925_v41 }
 0x5be   :  { %v4158_v27 = vpop.f32.mrf.mxu2  ;;  %v3823_v54 = vpop.f32.mrf.mxu0 }
 0x5bf   :  { %v4159_v1 = vadd.f32 %v4158_v27, %v3990_v31  ;;  %v4327_v14 = vpop.f32.mrf.mxu3  ;;  %v3992_v40 = vpop.f32.mrf.mxu1 }
 0x5c0   :  { %v3993_v2 = vadd.f32 %v3992_v40, %v3823_v54 }
 0x5c1   :  { %v9927_v9 = vadd.f32 %v4327_v14, %v4159_v1  ;;  %3862 = vmatmul.bf16.gmra.mxu0 %v14189_v3 }
 0x5c2   :  { %4031 = vmatmul.bf16.gmra.mxu1 %v14190_v8 }
 0x5c3   :  { %14188 = vst [vmem:[#allocation33_spill] sm:$0xff] %v9927_v9  ;;  %4200 = vmatmul.bf16.gmra.mxu2 %v14191_v46  ;;  %v14195_v9 = vld [vmem:[#allocation119_spill] sm:$0xff]  ;;  %v14196_v46 = vld [vmem:[#allocation120_spill] sm:$0xff] }
 0x5c4   :  { %4369 = vmatmul.bf16.gmra.mxu3 %v14192_v26  ;;  %v14197_v26 = vld [vmem:[#allocation121_spill] sm:$0xff] }
 0x5c6   :  { %v4161_v18 = vpop.f32.mrf.mxu2  ;;  %v3825_v25 = vpop.f32.mrf.mxu0 }
 0x5c7   :  { %v4162_v63 = vadd.f32 %v4161_v18, %v3993_v2  ;;  %v4330_v44 = vpop.f32.mrf.mxu3  ;;  %v3994_v45 = vpop.f32.mrf.mxu1  ;;  %v14198_v2 = vld [vmem:[#allocation122_spill] sm:$0xff]  ;;  %v8482_v18 = vld [vmem:[#allocation8 + $0x304] sm:$0xf] }
 0x5c8   :  { %v3995_v27 = vadd.f32 %v3994_v45, %v3825_v25  ;;  %v7878_v45 = vld [vmem:[#allocation8 + $0x208] sm:$0xf0] }
 0x5c9   :  { %v9933_v31 = vadd.f32 %v4330_v44, %v4162_v63  ;;  %v8006_v63 = vld [vmem:[#allocation8 + $0x308] sm:$0xf0]  ;;  %v8450_v44 = vld [vmem:[#allocation8 + $0x204] sm:$0xf] }
 0x5ca   :  { %v8009_v25 = vor.u32 %v8482_v18, %v8006_v63  ;;  %v7881_v24 = vor.u32 %v8450_v44, %v7878_v45 }
 0x5cb   :  { %14193 = vst [vmem:[#allocation34_spill] sm:$0xff] %v9933_v31 }
 0x5cc   :  { %4750 = vmatpush.bf16.msrb.mxu2 %v8009_v25  ;;  %4412 = vmatpush.bf16.msrb.mxu0 %v7881_v24  ;;  %v14200_v25 = vld [vmem:[#allocation124_spill] sm:$0xff]  ;;  %v14201_v24 = vld [vmem:[#allocation125_spill] sm:$0xff] }
 0x5ce   :  { %v4163_v41 = vpop.f32.mrf.mxu2  ;;  %v3828_v54 = vpop.f32.mrf.mxu0 }
 0x5cf   :  { %v4164_v1 = vadd.f32 %v4163_v41, %v3995_v27  ;;  %v4332_v14 = vpop.f32.mrf.mxu3  ;;  %v3997_v40 = vpop.f32.mrf.mxu1  ;;  %v8498_v41 = vld [vmem:[#allocation8 + $0x384] sm:$0xf]  ;;  %v8070_v27 = vld [vmem:[#allocation8 + $0x388] sm:$0xf0] }
 0x5d0   :  { %v3998_v8 = vadd.f32 %v3997_v40, %v3828_v54 }
 0x5d1   :  { %v9935_v3 = vadd.f32 %v4332_v14, %v4164_v1  ;;  %3867 = vmatmul.bf16.gmra.mxu0 %v14195_v9  ;;  %v8073_v1 = vor.u32 %v8498_v41, %v8070_v27  ;;  %v14202_v41 = vld [vmem:[#allocation126_spill] sm:$0xff] }
 0x5d2   :  { %4036 = vmatmul.bf16.gmra.mxu1 %v14196_v46 }
 0x5d3   :  { %14194 = vst [vmem:[#allocation183_spill] sm:$0xff] %v9935_v3  ;;  %4205 = vmatmul.bf16.gmra.mxu2 %v14197_v26  ;;  %4919 = vmatpush.bf16.msrb.mxu3 %v8073_v1  ;;  %v7942_v3 = vld [vmem:[#allocation8 + $0x288] sm:$0xf0] }
 0x5d4   :  { %4374 = vmatmul.bf16.gmra.mxu3 %v14198_v2  ;;  %v8466_v2 = vld [vmem:[#allocation8 + $0x284] sm:$0xf] }
 0x5d5   :  { %v7945_v5 = vor.u32 %v8466_v2, %v7942_v3 }
 0x5d6   :  { %v4166_v31 = vpop.f32.mrf.mxu2  ;;  %v3830_v40 = vpop.f32.mrf.mxu0 }
 0x5d7   :  { %v4167_v14 = vadd.f32 %v4166_v31, %v3998_v8  ;;  %v4335_v54 = vpop.f32.mrf.mxu3  ;;  %v3999_v9 = vpop.f32.mrf.mxu1  ;;  %4581 = vmatpush.bf16.msrb.mxu1 %v7945_v5  ;;  %v14199_v8 = vld [vmem:[#allocation123_spill] sm:$0xff] }
 0x5d8   :  { %v4000_v26 = vadd.f32 %v3999_v9, %v3830_v40 }
 0x5d9   :  { %v9941_v46 = vadd.f32 %v4335_v54, %v4167_v14 }
 0x5de   :  { %v4168_v18 = vpop.f32.mrf.mxu2  ;;  %v3833_v61 = vpop.f32.mrf.mxu0 }
 0x5df   :  { %v4169_v63 = vadd.f32 %v4168_v18, %v4000_v26  ;;  %v4337_v7 = vpop.f32.mrf.mxu3  ;;  %v4002_v44 = vpop.f32.mrf.mxu1 }
 0x5e0   :  { %v4003_v31 = vadd.f32 %v4002_v44, %v3833_v61  ;;  %v14203_v44 = vld [vmem:[#allocation127_spill] sm:$0xff] }
 0x5e1   :  { %v9943_v45 = vadd.f32 %v4337_v7, %v4169_v63  ;;  %3872 = vmatmul.bf16.gmra.mxu0 %v14199_v8  ;;  %v14204_v8 = vld [vmem:[#allocation128_spill] sm:$0xff] }
 0x5e2   :  { %4041 = vmatmul.bf16.gmra.mxu1 %v14200_v25  ;;  %v14205_v25 = vld [vmem:[#allocation129_spill] sm:$0xff] }
 0x5e3   :  { %4210 = vmatmul.bf16.gmra.mxu2 %v14201_v24 }
 0x5e4   :  { %4379 = vmatmul.bf16.gmra.mxu3 %v14202_v41 }
 0x5e6   :  { %v4171_v27 = vpop.f32.mrf.mxu2  ;;  %v3835_v5 = vpop.f32.mrf.mxu0 }
 0x5e7   :  { %v4172_v1 = vadd.f32 %v4171_v27, %v4003_v31  ;;  %v4340_v3 = vpop.f32.mrf.mxu3  ;;  %v4004_v14 = vpop.f32.mrf.mxu1  ;;  %v14206_v31 = vld [vmem:[#allocation130_spill] sm:$0xff] }
 0x5e8   :  { %v4005_v40 = vadd.f32 %v4004_v14, %v3835_v5 }
 0x5e9   :  { %v9949_v54 = vadd.f32 %v4340_v3, %v4172_v1 }
 0x5ee   :  { %v4173_v9 = vpop.f32.mrf.mxu2  ;;  %v3838_v61 = vpop.f32.mrf.mxu0 }
 0x5ef   :  { %v4174_v7 = vadd.f32 %v4173_v9, %v4005_v40  ;;  %v4342_v26 = vpop.f32.mrf.mxu3  ;;  %v4007_v2 = vpop.f32.mrf.mxu1 }
 0x5f0   :  { %v4008_v63 = vadd.f32 %v4007_v2, %v3838_v61 }
 0x5f1   :  { %v9951_v18 = vadd.f32 %v4342_v26, %v4174_v7  ;;  %3877 = vmatmul.bf16.gmra.mxu0 %v14203_v44 }
 0x5f2   :  { %4046 = vmatmul.bf16.gmra.mxu1 %v14204_v8  ;;  %v14209_v8 = vld [vmem:[#allocation131_spill] sm:$0xff] }
 0x5f3   :  { %4215 = vmatmul.bf16.gmra.mxu2 %v14205_v25  ;;  %v14210_v25 = vld [vmem:[#allocation132_spill] sm:$0xff] }
 0x5f4   :  { %4384 = vmatmul.bf16.gmra.mxu3 %v14206_v31  ;;  %v14211_v31 = vld [vmem:[#allocation133_spill] sm:$0xff] }
 0x5f6   :  { %v4176_v24 = vpop.f32.mrf.mxu2  ;;  %v3840_v1 = vpop.f32.mrf.mxu0 }
 0x5f7   :  { %v4177_v41 = vadd.f32 %v4176_v24, %v4008_v63  ;;  %v4345_v27 = vpop.f32.mrf.mxu3  ;;  %v4009_v3 = vpop.f32.mrf.mxu1  ;;  %v14212_v63 = vld [vmem:[#allocation134_spill] sm:$0xff] }
 0x5f8   :  { %v4010_v14 = vadd.f32 %v4009_v3, %v3840_v1 }
 0x5f9   :  { %v9957_v5 = vadd.f32 %v4345_v27, %v4177_v41 }
 0x5fb   :  { %14207 = vst [vmem:[#allocation184_spill] sm:$0xff] %v9957_v5 }
 0x5fe   :  { %v4178_v40 = vpop.f32.mrf.mxu2  ;;  %v3843_v26 = vpop.f32.mrf.mxu0 }
 0x5ff   :  { %v4179_v9 = vadd.f32 %v4178_v40, %v4010_v14  ;;  %v4347_v7 = vpop.f32.mrf.mxu3  ;;  %v4012_v61 = vpop.f32.mrf.mxu1 }
 0x600   :  { %v4013_v44 = vadd.f32 %v4012_v61, %v3843_v26 }
 0x601   :  { %v9959_v2 = vadd.f32 %v4347_v7, %v4179_v9  ;;  %3882 = vmatmul.bf16.gmra.mxu0 %v14209_v8 }
 0x602   :  { %4051 = vmatmul.bf16.gmra.mxu1 %v14210_v25 }
 0x603   :  { %14208 = vst [vmem:[#allocation35_spill] sm:$0xff] %v9959_v2  ;;  %4220 = vmatmul.bf16.gmra.mxu2 %v14211_v31  ;;  %v14215_v2 = vld [vmem:[#allocation137_spill] sm:$0xff]  ;;  %v14216_v31 = vld [vmem:[#allocation138_spill] sm:$0xff] }
 0x604   :  { %4389 = vmatmul.bf16.gmra.mxu3 %v14212_v63  ;;  %v14217_v63 = vld [vmem:[#allocation139_spill] sm:$0xff] }
 0x606   :  { %v4181_v24 = vpop.f32.mrf.mxu2  ;;  %v3845_v1 = vpop.f32.mrf.mxu0 }
 0x607   :  { %v4182_v41 = vadd.f32 %v4181_v24, %v4013_v44  ;;  %v4350_v27 = vpop.f32.mrf.mxu3  ;;  %v4014_v3 = vpop.f32.mrf.mxu1  ;;  %v14218_v44 = vld [vmem:[#allocation140_spill] sm:$0xff] }
 0x608   :  { %v4015_v40 = vadd.f32 %v4014_v3, %v3845_v1 }
 0x609   :  { %v9965_v14 = vadd.f32 %v4350_v27, %v4182_v41 }
 0x60b   :  { %14213 = vst [vmem:[#allocation36_spill] sm:$0xff] %v9965_v14 }
 0x60e   :  { %v4183_v5 = vpop.f32.mrf.mxu2  ;;  %v3848_v26 = vpop.f32.mrf.mxu0 }
 0x60f   :  { %v4184_v9 = vadd.f32 %v4183_v5, %v4015_v40  ;;  %v4352_v7 = vpop.f32.mrf.mxu3  ;;  %v4017_v61 = vpop.f32.mrf.mxu1 }
 0x610   :  { %v4018_v25 = vadd.f32 %v4017_v61, %v3848_v26 }
 0x611   :  { %v9967_v8 = vadd.f32 %v4352_v7, %v4184_v9  ;;  %3887 = vmatmul.bf16.gmra.mxu0 %v14215_v2 }
 0x612   :  { %4056 = vmatmul.bf16.gmra.mxu1 %v14216_v31 }
 0x613   :  { %14214 = vst [vmem:[#allocation37_spill] sm:$0xff] %v9967_v8  ;;  %4225 = vmatmul.bf16.gmra.mxu2 %v14217_v63  ;;  %v14221_v8 = vld [vmem:[#allocation143_spill] sm:$0xff]  ;;  %v14222_v63 = vld [vmem:[#allocation144_spill] sm:$0xff] }
 0x614   :  { %4394 = vmatmul.bf16.gmra.mxu3 %v14218_v44  ;;  %v14223_v44 = vld [vmem:[#allocation145_spill] sm:$0xff] }
 0x616   :  { %v4186_v24 = vpop.f32.mrf.mxu2  ;;  %v3850_v1 = vpop.f32.mrf.mxu0 }
 0x617   :  { %v4187_v41 = vadd.f32 %v4186_v24, %v4018_v25  ;;  %v4355_v27 = vpop.f32.mrf.mxu3  ;;  %v4019_v3 = vpop.f32.mrf.mxu1  ;;  %v14224_v25 = vld [vmem:[#allocation146_spill] sm:$0xff] }
 0x618   :  { %v4020_v40 = vadd.f32 %v4019_v3, %v3850_v1 }
 0x619   :  { %v9973_v5 = vadd.f32 %v4355_v27, %v4187_v41 }
 0x61b   :  { %14219 = vst [vmem:[#allocation38_spill] sm:$0xff] %v9973_v5 }
 0x61e   :  { %v4188_v14 = vpop.f32.mrf.mxu2  ;;  %v3853_v26 = vpop.f32.mrf.mxu0 }
 0x61f   :  { %v4189_v9 = vadd.f32 %v4188_v14, %v4020_v40  ;;  %v4357_v7 = vpop.f32.mrf.mxu3  ;;  %v4022_v61 = vpop.f32.mrf.mxu1 }
 0x620   :  { %v4023_v31 = vadd.f32 %v4022_v61, %v3853_v26 }
 0x621   :  { %v9975_v2 = vadd.f32 %v4357_v7, %v4189_v9  ;;  %3892 = vmatmul.bf16.gmra.mxu0 %v14221_v8 }
 0x622   :  { %4061 = vmatmul.bf16.gmra.mxu1 %v14222_v63 }
 0x623   :  { %14220 = vst [vmem:[#allocation189_spill] sm:$0xff] %v9975_v2  ;;  %4230 = vmatmul.bf16.gmra.mxu2 %v14223_v44  ;;  %v14227_v2 = vld [vmem:[#allocation149_spill] sm:$0xff]  ;;  %v14228_v44 = vld [vmem:[#allocation150_spill] sm:$0xff] }
 0x624   :  { %4399 = vmatmul.bf16.gmra.mxu3 %v14224_v25  ;;  %v14229_v25 = vld [vmem:[#allocation151_spill] sm:$0xff] }
 0x626   :  { %v4191_v24 = vpop.f32.mrf.mxu2  ;;  %v3855_v1 = vpop.f32.mrf.mxu0 }
 0x627   :  { %v4192_v41 = vadd.f32 %v4191_v24, %v4023_v31  ;;  %v4360_v27 = vpop.f32.mrf.mxu3  ;;  %v4024_v3 = vpop.f32.mrf.mxu1  ;;  %v14230_v31 = vld [vmem:[#allocation152_spill] sm:$0xff] }
 0x628   :  { %v4025_v40 = vadd.f32 %v4024_v3, %v3855_v1 }
 0x629   :  { %v9981_v14 = vadd.f32 %v4360_v27, %v4192_v41 }
 0x62b   :  { %14225 = vst [vmem:[#allocation190_spill] sm:$0xff] %v9981_v14 }
 0x62e   :  { %v4193_v5 = vpop.f32.mrf.mxu2  ;;  %v3858_v26 = vpop.f32.mrf.mxu0 }
 0x62f   :  { %v4194_v9 = vadd.f32 %v4193_v5, %v4025_v40  ;;  %v4362_v7 = vpop.f32.mrf.mxu3  ;;  %v4027_v61 = vpop.f32.mrf.mxu1 }
 0x630   :  { %v4028_v63 = vadd.f32 %v4027_v61, %v3858_v26 }
 0x631   :  { %v9983_v8 = vadd.f32 %v4362_v7, %v4194_v9  ;;  %4413 = vmatmul.bf16.vlgmr.msrb.gmra.mxu0 %v14227_v2 }
 0x632   :  { %4582 = vmatmul.bf16.vlgmr.msrb.gmra.mxu1 %v14228_v44 }
 0x633   :  { %14226 = vst [vmem:[#allocation39_spill] sm:$0xff] %v9983_v8  ;;  %4751 = vmatmul.bf16.vlgmr.msrb.gmra.mxu2 %v14229_v25  ;;  %v14233_v8 = vld [vmem:[#allocation155_spill] sm:$0xff]  ;;  %v14234_v25 = vld [vmem:[#allocation156_spill] sm:$0xff] }
 0x634   :  { %4920 = vmatmul.bf16.vlgmr.msrb.gmra.mxu3 %v14230_v31  ;;  %v14235_v31 = vld [vmem:[#allocation157_spill] sm:$0xff] }
 0x636   :  { %v4196_v24 = vpop.f32.mrf.mxu2  ;;  %v3860_v1 = vpop.f32.mrf.mxu0 }
 0x637   :  { %v4197_v41 = vadd.f32 %v4196_v24, %v4028_v63  ;;  %v4365_v27 = vpop.f32.mrf.mxu3  ;;  %v4029_v3 = vpop.f32.mrf.mxu1  ;;  %v14236_v63 = vld [vmem:[#allocation158_spill] sm:$0xff] }
 0x638   :  { %v4030_v40 = vadd.f32 %v4029_v3, %v3860_v1 }
 0x639   :  { %v9989_v5 = vadd.f32 %v4365_v27, %v4197_v41 }
 0x63b   :  { %14231 = vst [vmem:[#allocation40_spill] sm:$0xff] %v9989_v5 }
 0x63e   :  { %v4198_v14 = vpop.f32.mrf.mxu2  ;;  %v3863_v26 = vpop.f32.mrf.mxu0 }
 0x63f   :  { %v4199_v9 = vadd.f32 %v4198_v14, %v4030_v40  ;;  %v4367_v7 = vpop.f32.mrf.mxu3  ;;  %v4032_v61 = vpop.f32.mrf.mxu1 }
 0x640   :  { %v4033_v44 = vadd.f32 %v4032_v61, %v3863_v26 }
 0x641   :  { %v9991_v2 = vadd.f32 %v4367_v7, %v4199_v9  ;;  %4418 = vmatmul.bf16.gmra.mxu0 %v14233_v8 }
 0x642   :  { %4587 = vmatmul.bf16.gmra.mxu1 %v14234_v25 }
 0x643   :  { %14232 = vst [vmem:[#allocation41_spill] sm:$0xff] %v9991_v2  ;;  %4756 = vmatmul.bf16.gmra.mxu2 %v14235_v31  ;;  %v14239_v2 = vld [vmem:[#allocation161_spill] sm:$0xff]  ;;  %v14240_v31 = vld [vmem:[#allocation162_spill] sm:$0xff] }
 0x644   :  { %4925 = vmatmul.bf16.gmra.mxu3 %v14236_v63  ;;  %v14241_v63 = vld [vmem:[#allocation163_spill] sm:$0xff] }
 0x646   :  { %v4201_v24 = vpop.f32.mrf.mxu2  ;;  %v3865_v1 = vpop.f32.mrf.mxu0 }
 0x647   :  { %v4202_v41 = vadd.f32 %v4201_v24, %v4033_v44  ;;  %v4370_v27 = vpop.f32.mrf.mxu3  ;;  %v4034_v3 = vpop.f32.mrf.mxu1  ;;  %v14242_v44 = vld [vmem:[#allocation164_spill] sm:$0xff] }
 0x648   :  { %v4035_v40 = vadd.f32 %v4034_v3, %v3865_v1 }
 0x649   :  { %v9997_v14 = vadd.f32 %v4370_v27, %v4202_v41 }
 0x64b   :  { %14237 = vst [vmem:[#allocation42_spill] sm:$0xff] %v9997_v14 }
 0x64e   :  { %v4203_v5 = vpop.f32.mrf.mxu2  ;;  %v3868_v26 = vpop.f32.mrf.mxu0 }
 0x64f   :  { %v4204_v9 = vadd.f32 %v4203_v5, %v4035_v40  ;;  %v4372_v7 = vpop.f32.mrf.mxu3  ;;  %v4037_v61 = vpop.f32.mrf.mxu1 }
 0x650   :  { %v4038_v25 = vadd.f32 %v4037_v61, %v3868_v26 }
 0x651   :  { %v9999_v8 = vadd.f32 %v4372_v7, %v4204_v9  ;;  %4423 = vmatmul.bf16.gmra.mxu0 %v14239_v2 }
 0x652   :  { %4592 = vmatmul.bf16.gmra.mxu1 %v14240_v31 }
 0x653   :  { %14238 = vst [vmem:[#allocation43_spill] sm:$0xff] %v9999_v8  ;;  %4761 = vmatmul.bf16.gmra.mxu2 %v14241_v63  ;;  %v14245_v8 = vld [vmem:[#allocation167_spill] sm:$0xff]  ;;  %v14246_v63 = vld [vmem:[#allocation168_spill] sm:$0xff] }
 0x654   :  { %4930 = vmatmul.bf16.gmra.mxu3 %v14242_v44  ;;  %v14247_v44 = vld [vmem:[#allocation169_spill] sm:$0xff] }
 0x656   :  { %v4206_v24 = vpop.f32.mrf.mxu2  ;;  %v3870_v1 = vpop.f32.mrf.mxu0 }
 0x657   :  { %v4207_v41 = vadd.f32 %v4206_v24, %v4038_v25  ;;  %v4375_v27 = vpop.f32.mrf.mxu3  ;;  %v4039_v3 = vpop.f32.mrf.mxu1  ;;  %v14248_v25 = vld [vmem:[#allocation170_spill] sm:$0xff] }
 0x658   :  { %v4040_v40 = vadd.f32 %v4039_v3, %v3870_v1 }
 0x659   :  { %v10005_v5 = vadd.f32 %v4375_v27, %v4207_v41 }
 0x65b   :  { %14243 = vst [vmem:[#allocation44_spill] sm:$0xff] %v10005_v5 }
 0x65e   :  { %v4208_v14 = vpop.f32.mrf.mxu2  ;;  %v3873_v26 = vpop.f32.mrf.mxu0 }
 0x65f   :  { %v4209_v9 = vadd.f32 %v4208_v14, %v4040_v40  ;;  %v4377_v7 = vpop.f32.mrf.mxu3  ;;  %v4042_v61 = vpop.f32.mrf.mxu1 }
 0x660   :  { %v4043_v31 = vadd.f32 %v4042_v61, %v3873_v26 }
 0x661   :  { %v10007_v2 = vadd.f32 %v4377_v7, %v4209_v9  ;;  %4428 = vmatmul.bf16.gmra.mxu0 %v14245_v8 }
 0x662   :  { %4597 = vmatmul.bf16.gmra.mxu1 %v14246_v63 }
 0x663   :  { %14244 = vst [vmem:[#allocation45_spill] sm:$0xff] %v10007_v2  ;;  %4766 = vmatmul.bf16.gmra.mxu2 %v14247_v44  ;;  %v14251_v2 = vld [vmem:[#allocation173_spill] sm:$0xff]  ;;  %v14252_v44 = vld [vmem:[#allocation174_spill] sm:$0xff] }
 0x664   :  { %4935 = vmatmul.bf16.gmra.mxu3 %v14248_v25  ;;  %v14253_v25 = vld [vmem:[#allocation175_spill] sm:$0xff] }
 0x666   :  { %v4211_v24 = vpop.f32.mrf.mxu2  ;;  %v3875_v1 = vpop.f32.mrf.mxu0 }
 0x667   :  { %v4212_v41 = vadd.f32 %v4211_v24, %v4043_v31  ;;  %v4380_v27 = vpop.f32.mrf.mxu3  ;;  %v4044_v3 = vpop.f32.mrf.mxu1  ;;  %v14254_v31 = vld [vmem:[#allocation176_spill] sm:$0xff] }
 0x668   :  { %v4045_v40 = vadd.f32 %v4044_v3, %v3875_v1 }
 0x669   :  { %v10013_v14 = vadd.f32 %v4380_v27, %v4212_v41 }
 0x66b   :  { %14249 = vst [vmem:[#allocation46_spill] sm:$0xff] %v10013_v14 }
 0x66e   :  { %v4213_v5 = vpop.f32.mrf.mxu2  ;;  %v3878_v26 = vpop.f32.mrf.mxu0 }
 0x66f   :  { %v4214_v9 = vadd.f32 %v4213_v5, %v4045_v40  ;;  %v4382_v7 = vpop.f32.mrf.mxu3  ;;  %v4047_v61 = vpop.f32.mrf.mxu1 }
 0x670   :  { %v4048_v63 = vadd.f32 %v4047_v61, %v3878_v26 }
 0x671   :  { %v10015_v8 = vadd.f32 %v4382_v7, %v4214_v9  ;;  %4433 = vmatmul.bf16.gmra.mxu0 %v14251_v2 }
 0x672   :  { %4602 = vmatmul.bf16.gmra.mxu1 %v14252_v44 }
 0x673   :  { %14250 = vst [vmem:[#allocation47_spill] sm:$0xff] %v10015_v8  ;;  %4771 = vmatmul.bf16.gmra.mxu2 %v14253_v25  ;;  %v14257_v8 = vld [vmem:[#allocation179_spill] sm:$0xff]  ;;  %v14258_v25 = vld [vmem:[#allocation180_spill] sm:$0xff] }
 0x674   :  { %4940 = vmatmul.bf16.gmra.mxu3 %v14254_v31  ;;  %v14259_v31 = vld [vmem:[#allocation181_spill] sm:$0xff] }
 0x676   :  { %v4216_v24 = vpop.f32.mrf.mxu2  ;;  %v3880_v1 = vpop.f32.mrf.mxu0 }
 0x677   :  { %v4217_v41 = vadd.f32 %v4216_v24, %v4048_v63  ;;  %v4385_v27 = vpop.f32.mrf.mxu3  ;;  %v4049_v3 = vpop.f32.mrf.mxu1  ;;  %v14260_v63 = vld [vmem:[#allocation182_spill] sm:$0xff] }
 0x678   :  { %v4050_v40 = vadd.f32 %v4049_v3, %v3880_v1 }
 0x679   :  { %v10021_v5 = vadd.f32 %v4385_v27, %v4217_v41 }
 0x67b   :  { %14255 = vst [vmem:[#allocation48_spill] sm:$0xff] %v10021_v5 }
 0x67e   :  { %v4218_v14 = vpop.f32.mrf.mxu2  ;;  %v3883_v26 = vpop.f32.mrf.mxu0 }
 0x67f   :  { %v4219_v9 = vadd.f32 %v4218_v14, %v4050_v40  ;;  %v4387_v7 = vpop.f32.mrf.mxu3  ;;  %v4052_v61 = vpop.f32.mrf.mxu1 }
 0x680   :  { %v4053_v44 = vadd.f32 %v4052_v61, %v3883_v26 }
 0x681   :  { %v10023_v2 = vadd.f32 %v4387_v7, %v4219_v9  ;;  %4438 = vmatmul.bf16.gmra.mxu0 %v14257_v8 }
 0x682   :  { %4607 = vmatmul.bf16.gmra.mxu1 %v14258_v25 }
 0x683   :  { %14256 = vst [vmem:[#allocation49_spill] sm:$0xff] %v10023_v2  ;;  %4776 = vmatmul.bf16.gmra.mxu2 %v14259_v31  ;;  %v14263_v2 = vld [vmem:[#allocation185_spill] sm:$0xff]  ;;  %v14264_v31 = vld [vmem:[#allocation186_spill] sm:$0xff] }
 0x684   :  { %4945 = vmatmul.bf16.gmra.mxu3 %v14260_v63  ;;  %v14265_v63 = vld [vmem:[#allocation187_spill] sm:$0xff] }
 0x686   :  { %v4221_v24 = vpop.f32.mrf.mxu2  ;;  %v3885_v1 = vpop.f32.mrf.mxu0 }
 0x687   :  { %v4222_v41 = vadd.f32 %v4221_v24, %v4053_v44  ;;  %v4390_v27 = vpop.f32.mrf.mxu3  ;;  %v4054_v3 = vpop.f32.mrf.mxu1  ;;  %v14266_v44 = vld [vmem:[#allocation188_spill] sm:$0xff] }
 0x688   :  { %v4055_v40 = vadd.f32 %v4054_v3, %v3885_v1 }
 0x689   :  { %v10029_v14 = vadd.f32 %v4390_v27, %v4222_v41 }
 0x68b   :  { %14261 = vst [vmem:[#allocation50_spill] sm:$0xff] %v10029_v14 }
 0x68e   :  { %v4223_v5 = vpop.f32.mrf.mxu2  ;;  %v3888_v26 = vpop.f32.mrf.mxu0 }
 0x68f   :  { %v4224_v9 = vadd.f32 %v4223_v5, %v4055_v40  ;;  %v4392_v7 = vpop.f32.mrf.mxu3  ;;  %v4057_v61 = vpop.f32.mrf.mxu1 }
 0x690   :  { %v4058_v25 = vadd.f32 %v4057_v61, %v3888_v26 }
 0x691   :  { %v10031_v8 = vadd.f32 %v4392_v7, %v4224_v9  ;;  %4443 = vmatmul.bf16.gmra.mxu0 %v14263_v2 }
 0x692   :  { %4612 = vmatmul.bf16.gmra.mxu1 %v14264_v31 }
 0x693   :  { %14262 = vst [vmem:[#allocation51_spill] sm:$0xff] %v10031_v8  ;;  %4781 = vmatmul.bf16.gmra.mxu2 %v14265_v63  ;;  %v14269_v8 = vld [vmem:[#allocation191_spill] sm:$0xff]  ;;  %v14270_v63 = vld [vmem:[#allocation192_spill] sm:$0xff] }
 0x694   :  { %4950 = vmatmul.bf16.gmra.mxu3 %v14266_v44  ;;  %v14271_v44 = vld [vmem:[#allocation193_spill] sm:$0xff] }
 0x696   :  { %v4226_v24 = vpop.f32.mrf.mxu2  ;;  %v3890_v1 = vpop.f32.mrf.mxu0 }
 0x697   :  { %v4227_v41 = vadd.f32 %v4226_v24, %v4058_v25  ;;  %v4395_v27 = vpop.f32.mrf.mxu3  ;;  %v4059_v3 = vpop.f32.mrf.mxu1  ;;  %v14272_v25 = vld [vmem:[#allocation194_spill] sm:$0xff] }
 0x698   :  { %v4060_v40 = vadd.f32 %v4059_v3, %v3890_v1 }
 0x699   :  { %v10037_v5 = vadd.f32 %v4395_v27, %v4227_v41 }
 0x69b   :  { %14267 = vst [vmem:[#allocation52_spill] sm:$0xff] %v10037_v5 }
 0x69e   :  { %v4228_v14 = vpop.f32.mrf.mxu2  ;;  %v3893_v26 = vpop.f32.mrf.mxu0 }
 0x69f   :  { %v4229_v9 = vadd.f32 %v4228_v14, %v4060_v40  ;;  %v4397_v7 = vpop.f32.mrf.mxu3  ;;  %v4062_v61 = vpop.f32.mrf.mxu1 }
 0x6a0   :  { %v4063_v31 = vadd.f32 %v4062_v61, %v3893_v26 }
 0x6a1   :  { %v10039_v2 = vadd.f32 %v4397_v7, %v4229_v9  ;;  %4448 = vmatmul.bf16.gmra.mxu0 %v14269_v8 }
 0x6a2   :  { %4617 = vmatmul.bf16.gmra.mxu1 %v14270_v63 }
 0x6a3   :  { %14268 = vst [vmem:[#allocation53_spill] sm:$0xff] %v10039_v2  ;;  %4786 = vmatmul.bf16.gmra.mxu2 %v14271_v44  ;;  %v14275_v2 = vld [vmem:[#allocation195_spill] sm:$0xff] }
 0x6a4   :  { %4955 = vmatmul.bf16.gmra.mxu3 %v14272_v25  ;;  %v14276_v25 = vld [vmem:[#allocation196_spill] sm:$0xff] }
 0x6a6   :  { %v4231_v24 = vpop.f32.mrf.mxu2  ;;  %v3895_v1 = vpop.f32.mrf.mxu0 }
 0x6a7   :  { %v4232_v41 = vadd.f32 %v4231_v24, %v4063_v31  ;;  %v4400_v27 = vpop.f32.mrf.mxu3  ;;  %v4064_v3 = vpop.f32.mrf.mxu1  ;;  %v14277_v31 = vld [vmem:[#allocation197_spill] sm:$0xff]  ;;  %v14278_v24 = vld [vmem:[#allocation198_spill] sm:$0xff] }
 0x6a8   :  { %v4065_v40 = vadd.f32 %v4064_v3, %v3895_v1 }
 0x6a9   :  { %v10045_v14 = vadd.f32 %v4400_v27, %v4232_v41 }
 0x6ab   :  { %14273 = vst [vmem:[#allocation54_spill] sm:$0xff] %v10045_v14 }
 0x6ae   :  { %v4233_v5 = vpop.f32.mrf.mxu2  ;;  %v4414_v26 = vpop.f32.mrf.mxu0 }
 0x6af   :  { %v4234_v9 = vadd.f32 %v4233_v5, %v4065_v40  ;;  %v4402_v7 = vpop.f32.mrf.mxu3  ;;  %v4415_v8 = vadd.f32 %v4414_v26, %v9797_v16  ;;  %v4583_v61 = vpop.f32.mrf.mxu1 }
 0x6b1   :  { %v10048_v63 = vadd.f32 %v4402_v7, %v4234_v9  ;;  %v4584_v44 = vadd.f32 %v4583_v61, %v4415_v8  ;;  %4453 = vmatmul.bf16.gmra.mxu0 %v14275_v2 }
 0x6b2   :  { %4622 = vmatmul.bf16.gmra.mxu1 %v14276_v25 }
 0x6b3   :  { %14274 = vst [vmem:[#allocation55_spill] sm:$0xff] %v10048_v63  ;;  %4791 = vmatmul.bf16.gmra.mxu2 %v14277_v31 }
 0x6b4   :  { %4960 = vmatmul.bf16.gmra.mxu3 %v14278_v24 }
 0x6b6   :  { %v4752_v41 = vpop.f32.mrf.mxu2  ;;  %v4416_v5 = vpop.f32.mrf.mxu0 }
 0x6b7   :  { %v4753_v27 = vadd.f32 %v4752_v41, %v4584_v44  ;;  %v4921_v1 = vpop.f32.mrf.mxu3  ;;  %v4417_v3 = vadd.f32 %v4416_v5, %v9799_v29  ;;  %v4585_v40 = vpop.f32.mrf.mxu1  ;;  %v14281_v44 = vld [vmem:[#allocation200_spill] sm:$0xff]  ;;  %v14282_v29 = vld [vmem:[#allocation201_spill] sm:$0xff] }
 0x6b9   :  { %v10055_v16 = vadd.f32 %v4921_v1, %v4753_v27  ;;  %v4586_v9 = vadd.f32 %v4585_v40, %v4417_v3 }
 0x6bb   :  { %14279 = vst [vmem:[#allocation56_spill] sm:$0xff] %v10055_v16 }
 0x6be   :  { %v4754_v7 = vpop.f32.mrf.mxu2  ;;  %v4419_v2 = vpop.f32.mrf.mxu0 }
 0x6bf   :  { %v4755_v26 = vadd.f32 %v4754_v7, %v4586_v9  ;;  %v4923_v8 = vpop.f32.mrf.mxu3  ;;  %v4420_v61 = vadd.f32 %v4419_v2, %v9805_v19  ;;  %v4588_v25 = vpop.f32.mrf.mxu1 }
 0x6c1   :  { %v10058_v31 = vadd.f32 %v4923_v8, %v4755_v26  ;;  %v4589_v24 = vadd.f32 %v4588_v25, %v4420_v61  ;;  %4458 = vmatmul.bf16.gmra.mxu0 %v9297_v36 }
 0x6c2   :  { %4627 = vmatmul.bf16.gmra.mxu1 %v9299_v47 }
 0x6c3   :  { %14280 = vst [vmem:[#allocation57_spill] sm:$0xff] %v10058_v31  ;;  %4796 = vmatmul.bf16.gmra.mxu2 %v14281_v44  ;;  %v14283_v44 = vld [vmem:[#allocation204_spill] sm:$0xff] }
 0x6c4   :  { %4965 = vmatmul.bf16.gmra.mxu3 %v14282_v29  ;;  %v14285_v29 = vld [vmem:[#allocation206_spill] sm:$0xff] }
 0x6c6   :  { %v4757_v41 = vpop.f32.mrf.mxu2  ;;  %v4421_v5 = vpop.f32.mrf.mxu0 }
 0x6c7   :  { %v4758_v27 = vadd.f32 %v4757_v41, %v4589_v24  ;;  %v4926_v1 = vpop.f32.mrf.mxu3  ;;  %v4422_v3 = vadd.f32 %v4421_v5, %v9807_v17  ;;  %v4590_v40 = vpop.f32.mrf.mxu1  ;;  %v14284_v24 = vld [vmem:[#allocation205_spill] sm:$0xff]  ;;  %v14286_v17 = vld [vmem:[#allocation207_spill] sm:$0xff] }
 0x6c9   :  { %v10065_v19 = vadd.f32 %v4926_v1, %v4758_v27  ;;  %v4591_v9 = vadd.f32 %v4590_v40, %v4422_v3 }
 0x6ce   :  { %v4759_v7 = vpop.f32.mrf.mxu2  ;;  %v4424_v36 = vpop.f32.mrf.mxu0 }
 0x6cf   :  { %v4760_v26 = vadd.f32 %v4759_v7, %v4591_v9  ;;  %v4928_v8 = vpop.f32.mrf.mxu3  ;;  %v4425_v47 = vadd.f32 %v4424_v36, %v9813_v33  ;;  %v4593_v2 = vpop.f32.mrf.mxu1 }
 0x6d1   :  { %v10068_v61 = vadd.f32 %v4928_v8, %v4760_v26  ;;  %v4594_v25 = vadd.f32 %v4593_v2, %v4425_v47  ;;  %4463 = vmatmul.bf16.gmra.mxu0 %v14283_v44 }
 0x6d2   :  { %4632 = vmatmul.bf16.gmra.mxu1 %v14284_v24 }
 0x6d3   :  { %4801 = vmatmul.bf16.gmra.mxu2 %v14285_v29 }
 0x6d4   :  { %4970 = vmatmul.bf16.gmra.mxu3 %v14286_v17 }
 0x6d6   :  { %v4762_v41 = vpop.f32.mrf.mxu2  ;;  %v4426_v5 = vpop.f32.mrf.mxu0 }
 0x6d7   :  { %v4763_v27 = vadd.f32 %v4762_v41, %v4594_v25  ;;  %v4931_v1 = vpop.f32.mrf.mxu3  ;;  %v4427_v3 = vadd.f32 %v4426_v5, %v9815_v50  ;;  %v4595_v40 = vpop.f32.mrf.mxu1 }
 0x6d9   :  { %v10075_v33 = vadd.f32 %v4931_v1, %v4763_v27  ;;  %v4596_v9 = vadd.f32 %v4595_v40, %v4427_v3 }
 0x6de   :  { %v4764_v7 = vpop.f32.mrf.mxu2  ;;  %v4429_v36 = vpop.f32.mrf.mxu0 }
 0x6df   :  { %v4765_v26 = vadd.f32 %v4764_v7, %v4596_v9  ;;  %v4933_v8 = vpop.f32.mrf.mxu3  ;;  %v4430_v47 = vadd.f32 %v4429_v36, %v9821_v51  ;;  %v4598_v2 = vpop.f32.mrf.mxu1  ;;  %v14288_v7 = vld [vmem:[#allocation212_spill] sm:$0xff] }
 0x6e1   :  { %v10078_v44 = vadd.f32 %v4933_v8, %v4765_v26  ;;  %v4599_v24 = vadd.f32 %v4598_v2, %v4430_v47  ;;  %4468 = vmatmul.bf16.gmra.mxu0 %v9333_v34 }
 0x6e2   :  { %4637 = vmatmul.bf16.gmra.mxu1 %v9335_v15 }
 0x6e3   :  { %14287 = vst [vmem:[#allocation58_spill] sm:$0xff] %v10078_v44  ;;  %4806 = vmatmul.bf16.gmra.mxu2 %v9337_v37 }
 0x6e4   :  { %4975 = vmatmul.bf16.gmra.mxu3 %v9340_v53 }
 0x6e6   :  { %v4767_v50 = vpop.f32.mrf.mxu2  ;;  %v4431_v17 = vpop.f32.mrf.mxu0 }
 0x6e7   :  { %v4768_v25 = vadd.f32 %v4767_v50, %v4599_v24  ;;  %v4936_v29 = vpop.f32.mrf.mxu3  ;;  %v4432_v41 = vadd.f32 %v4431_v17, %v9823_v22  ;;  %v4600_v27 = vpop.f32.mrf.mxu1  ;;  %v14289_v22 = vld [vmem:[#allocation213_spill] sm:$0xff] }
 0x6e9   :  { %v10085_v51 = vadd.f32 %v4936_v29, %v4768_v25  ;;  %v4601_v1 = vadd.f32 %v4600_v27, %v4432_v41 }
 0x6ee   :  { %v4769_v5 = vpop.f32.mrf.mxu2  ;;  %v4434_v34 = vpop.f32.mrf.mxu0 }
 0x6ef   :  { %v4770_v3 = vadd.f32 %v4769_v5, %v4601_v1  ;;  %v4938_v40 = vpop.f32.mrf.mxu3  ;;  %v4435_v15 = vadd.f32 %v4434_v34, %v9829_v49  ;;  %v4603_v9 = vpop.f32.mrf.mxu1  ;;  %v14291_v5 = vld [vmem:[#allocation216_spill] sm:$0xff] }
 0x6f1   :  { %v10088_v37 = vadd.f32 %v4938_v40, %v4770_v3  ;;  %v4604_v53 = vadd.f32 %v4603_v9, %v4435_v15  ;;  %4473 = vmatmul.bf16.gmra.mxu0 %v9351_v4 }
 0x6f2   :  { %4642 = vmatmul.bf16.gmra.mxu1 %v9353_v23 }
 0x6f3   :  { %4811 = vmatmul.bf16.gmra.mxu2 %v14288_v7 }
 0x6f4   :  { %4980 = vmatmul.bf16.gmra.mxu3 %v14289_v22 }
 0x6f6   :  { %v4772_v26 = vpop.f32.mrf.mxu2  ;;  %v4436_v47 = vpop.f32.mrf.mxu0 }
 0x6f7   :  { %v4773_v8 = vadd.f32 %v4772_v26, %v4604_v53  ;;  %v4941_v36 = vpop.f32.mrf.mxu3  ;;  %v4437_v2 = vadd.f32 %v4436_v47, %v9831_v20  ;;  %v4605_v24 = vpop.f32.mrf.mxu1  ;;  %v14292_v20 = vld [vmem:[#allocation217_spill] sm:$0xff] }
 0x6f9   :  { %v10095_v49 = vadd.f32 %v4941_v36, %v4773_v8  ;;  %v4606_v50 = vadd.f32 %v4605_v24, %v4437_v2  ;;  %v14295_v24 = vld [vmem:[#allocation220_spill] sm:$0xff] }
 0x6fe   :  { %v4774_v25 = vpop.f32.mrf.mxu2  ;;  %v4439_v4 = vpop.f32.mrf.mxu0 }
 0x6ff   :  { %v4775_v29 = vadd.f32 %v4774_v25, %v4606_v50  ;;  %v4943_v17 = vpop.f32.mrf.mxu3  ;;  %v4440_v23 = vadd.f32 %v4439_v4, %v9837_v52  ;;  %v4608_v41 = vpop.f32.mrf.mxu1  ;;  %v14296_v50 = vld [vmem:[#allocation221_spill] sm:$0xff]  ;;  %v14297_v25 = vld [vmem:[#allocation222_spill] sm:$0xff] }
 0x701   :  { %v10098_v27 = vadd.f32 %v4943_v17, %v4775_v29  ;;  %v4609_v1 = vadd.f32 %v4608_v41, %v4440_v23  ;;  %4478 = vmatmul.bf16.gmra.mxu0 %v9369_v30 }
 0x702   :  { %4647 = vmatmul.bf16.gmra.mxu1 %v9371_v10 }
 0x703   :  { %14290 = vst [vmem:[#allocation59_spill] sm:$0xff] %v10098_v27  ;;  %4816 = vmatmul.bf16.gmra.mxu2 %v14291_v5 }
 0x704   :  { %4985 = vmatmul.bf16.gmra.mxu3 %v14292_v20 }
 0x706   :  { %v4777_v3 = vpop.f32.mrf.mxu2  ;;  %v4441_v15 = vpop.f32.mrf.mxu0 }
 0x707   :  { %v4778_v40 = vadd.f32 %v4777_v3, %v4609_v1  ;;  %v4946_v34 = vpop.f32.mrf.mxu3  ;;  %v4442_v9 = vadd.f32 %v4441_v15, %v9839_v56  ;;  %v4610_v53 = vpop.f32.mrf.mxu1  ;;  %v14298_v56 = vld [vmem:[#allocation223_spill] sm:$0xff] }
 0x709   :  { %v10105_v52 = vadd.f32 %v4946_v34, %v4778_v40  ;;  %v4611_v7 = vadd.f32 %v4610_v53, %v4442_v9 }
 0x70b   :  { %14293 = vst [vmem:[#allocation60_spill] sm:$0xff] %v10105_v52 }
 0x70e   :  { %v4779_v22 = vpop.f32.mrf.mxu2  ;;  %v4444_v30 = vpop.f32.mrf.mxu0 }
 0x70f   :  { %v4780_v26 = vadd.f32 %v4779_v22, %v4611_v7  ;;  %v4948_v8 = vpop.f32.mrf.mxu3  ;;  %v4445_v10 = vadd.f32 %v4444_v30, %v9845_v42  ;;  %v4613_v36 = vpop.f32.mrf.mxu1 }
 0x711   :  { %v10108_v47 = vadd.f32 %v4948_v8, %v4780_v26  ;;  %v4614_v2 = vadd.f32 %v4613_v36, %v4445_v10  ;;  %4483 = vmatmul.bf16.gmra.mxu0 %v14295_v24 }
 0x712   :  { %4652 = vmatmul.bf16.gmra.mxu1 %v14296_v50 }
 0x713   :  { %14294 = vst [vmem:[#allocation61_spill] sm:$0xff] %v10108_v47  ;;  %4821 = vmatmul.bf16.gmra.mxu2 %v14297_v25 }
 0x714   :  { %4990 = vmatmul.bf16.gmra.mxu3 %v14298_v56  ;;  %v14303_v56 = vld [vmem:[#allocation228_spill] sm:$0xff] }
 0x716   :  { %v4782_v29 = vpop.f32.mrf.mxu2  ;;  %v4446_v23 = vpop.f32.mrf.mxu0 }
 0x717   :  { %v4783_v17 = vadd.f32 %v4782_v29, %v4614_v2  ;;  %v4951_v4 = vpop.f32.mrf.mxu3  ;;  %v4447_v41 = vadd.f32 %v4446_v23, %v9847_v21  ;;  %v4615_v1 = vpop.f32.mrf.mxu1 }
 0x719   :  { %v10115_v42 = vadd.f32 %v4951_v4, %v4783_v17  ;;  %v4616_v5 = vadd.f32 %v4615_v1, %v4447_v41 }
 0x71b   :  { %14299 = vst [vmem:[#allocation62_spill] sm:$0xff] %v10115_v42 }
 0x71e   :  { %v4784_v20 = vpop.f32.mrf.mxu2  ;;  %v4449_v34 = vpop.f32.mrf.mxu0 }
 0x71f   :  { %v4785_v3 = vadd.f32 %v4784_v20, %v4616_v5  ;;  %v4953_v40 = vpop.f32.mrf.mxu3  ;;  %v4450_v15 = vadd.f32 %v4449_v34, %v9853_v13  ;;  %v4618_v9 = vpop.f32.mrf.mxu1 }
 0x721   :  { %v10118_v53 = vadd.f32 %v4953_v40, %v4785_v3  ;;  %v4619_v7 = vadd.f32 %v4618_v9, %v4450_v15  ;;  %4488 = vmatmul.bf16.gmra.mxu0 %v9405_v38 }
 0x722   :  { %4657 = vmatmul.bf16.gmra.mxu1 %v9407_v55 }
 0x723   :  { %14300 = vst [vmem:[#allocation63_spill] sm:$0xff] %v10118_v53  ;;  %4826 = vmatmul.bf16.gmra.mxu2 %v9409_v0 }
 0x724   :  { %4995 = vmatmul.bf16.gmra.mxu3 %v9412_v62 }
 0x726   :  { %v4787_v21 = vpop.f32.mrf.mxu2  ;;  %v4451_v8 = vpop.f32.mrf.mxu0 }
 0x727   :  { %v4788_v22 = vadd.f32 %v4787_v21, %v4619_v7  ;;  %v4956_v26 = vpop.f32.mrf.mxu3  ;;  %v4452_v30 = vadd.f32 %v4451_v8, %v9855_v11  ;;  %v4620_v10 = vpop.f32.mrf.mxu1  ;;  %v14304_v11 = vld [vmem:[#allocation229_spill] sm:$0xff]  ;;  %v14307_v7 = vld [vmem:[#allocation232_spill] sm:$0xff] }
 0x729   :  { %v10125_v13 = vadd.f32 %v4956_v26, %v4788_v22  ;;  %v4621_v36 = vadd.f32 %v4620_v10, %v4452_v30 }
 0x72b   :  { %14301 = vst [vmem:[#allocation64_spill] sm:$0xff] %v10125_v13 }
 0x72e   :  { %v4789_v2 = vpop.f32.mrf.mxu2  ;;  %v4454_v38 = vpop.f32.mrf.mxu0 }
 0x72f   :  { %v4790_v24 = vadd.f32 %v4789_v2, %v4621_v36  ;;  %v4958_v50 = vpop.f32.mrf.mxu3  ;;  %v4455_v55 = vadd.f32 %v4454_v38, %v9861_v57  ;;  %v4623_v25 = vpop.f32.mrf.mxu1 }
 0x731   :  { %v10128_v0 = vadd.f32 %v4958_v50, %v4790_v24  ;;  %v4624_v62 = vadd.f32 %v4623_v25, %v4455_v55  ;;  %4493 = vmatmul.bf16.gmra.mxu0 %v9423_v48 }
 0x732   :  { %4662 = vmatmul.bf16.gmra.mxu1 %v9425_v60 }
 0x733   :  { %14302 = vst [vmem:[#allocation65_spill] sm:$0xff] %v10128_v0  ;;  %4831 = vmatmul.bf16.gmra.mxu2 %v14303_v56  ;;  %v14312_v56 = vld [vmem:[#allocation237_spill] sm:$0xff] }
 0x734   :  { %5000 = vmatmul.bf16.gmra.mxu3 %v14304_v11  ;;  %v14313_v11 = vld [vmem:[#allocation238_spill] sm:$0xff] }
 0x736   :  { %v4792_v29 = vpop.f32.mrf.mxu2  ;;  %v4456_v23 = vpop.f32.mrf.mxu0 }
 0x737   :  { %v4793_v17 = vadd.f32 %v4792_v29, %v4624_v62  ;;  %v4961_v4 = vpop.f32.mrf.mxu3  ;;  %v4457_v41 = vadd.f32 %v4456_v23, %v9863_v6  ;;  %v4625_v1 = vpop.f32.mrf.mxu1  ;;  %v14308_v6 = vld [vmem:[#allocation233_spill] sm:$0xff]  ;;  %v14311_v62 = vld [vmem:[#allocation236_spill] sm:$0xff] }
 0x739   :  { %v10135_v57 = vadd.f32 %v4961_v4, %v4793_v17  ;;  %v4626_v5 = vadd.f32 %v4625_v1, %v4457_v41 }
 0x73b   :  { %14305 = vst [vmem:[#allocation66_spill] sm:$0xff] %v10135_v57 }
 0x73e   :  { %v4794_v20 = vpop.f32.mrf.mxu2  ;;  %v4459_v48 = vpop.f32.mrf.mxu0 }
 0x73f   :  { %v4795_v3 = vadd.f32 %v4794_v20, %v4626_v5  ;;  %v4963_v40 = vpop.f32.mrf.mxu3  ;;  %v4460_v60 = vadd.f32 %v4459_v48, %v9869_v58  ;;  %v4628_v34 = vpop.f32.mrf.mxu1 }
 0x741   :  { %v10138_v15 = vadd.f32 %v4963_v40, %v4795_v3  ;;  %v4629_v9 = vadd.f32 %v4628_v34, %v4460_v60  ;;  %4498 = vmatmul.bf16.gmra.mxu0 %v9441_v43 }
 0x742   :  { %4667 = vmatmul.bf16.gmra.mxu1 %v9443_v59 }
 0x743   :  { %14306 = vst [vmem:[#allocation67_spill] sm:$0xff] %v10138_v15  ;;  %4836 = vmatmul.bf16.gmra.mxu2 %v14307_v7 }
 0x744   :  { %5005 = vmatmul.bf16.gmra.mxu3 %v14308_v6  ;;  %v14317_v6 = vld [vmem:[#allocation242_spill] sm:$0xff] }
 0x746   :  { %v4797_v21 = vpop.f32.mrf.mxu2  ;;  %v4461_v8 = vpop.f32.mrf.mxu0 }
 0x747   :  { %v4798_v22 = vadd.f32 %v4797_v21, %v4629_v9  ;;  %v4966_v26 = vpop.f32.mrf.mxu3  ;;  %v4462_v30 = vadd.f32 %v4461_v8, %v9871_v28  ;;  %v4630_v10 = vpop.f32.mrf.mxu1  ;;  %v14314_v28 = vld [vmem:[#allocation239_spill] sm:$0xff] }
 0x748   :  { %v14318_v21 = vld [vmem:[#allocation243_spill] sm:$0xff] }
 0x749   :  { %v10145_v58 = vadd.f32 %v4966_v26, %v4798_v22  ;;  %v4631_v36 = vadd.f32 %v4630_v10, %v4462_v30  ;;  %v14320_v10 = vld [vmem:[#allocation171_spill] sm:$0xff] }
 0x74b   :  { %14309 = vst [vmem:[#allocation68_spill] sm:$0xff] %v10145_v58 }
 0x74e   :  { %v4799_v2 = vpop.f32.mrf.mxu2  ;;  %v4464_v43 = vpop.f32.mrf.mxu0 }
 0x74f   :  { %v4800_v24 = vadd.f32 %v4799_v2, %v4631_v36  ;;  %v4968_v50 = vpop.f32.mrf.mxu3  ;;  %v4465_v59 = vadd.f32 %v4464_v43, %v9877_v35  ;;  %v4633_v38 = vpop.f32.mrf.mxu1 }
 0x751   :  { %v10148_v55 = vadd.f32 %v4968_v50, %v4800_v24  ;;  %v4634_v25 = vadd.f32 %v4633_v38, %v4465_v59  ;;  %4503 = vmatmul.bf16.gmra.mxu0 %v14311_v62  ;;  %v14322_v38 = vld [vmem:[#allocation172_spill] sm:$0xff] }
 0x752   :  { %4672 = vmatmul.bf16.gmra.mxu1 %v14312_v56 }
 0x753   :  { %14310 = vst [vmem:[#allocation69_spill] sm:$0xff] %v10148_v55  ;;  %4841 = vmatmul.bf16.gmra.mxu2 %v14313_v11 }
 0x754   :  { %5010 = vmatmul.bf16.gmra.mxu3 %v14314_v28  ;;  %v14324_v28 = vld [vmem:[#allocation247_spill] sm:$0xff] }
 0x756   :  { %v4802_v29 = vpop.f32.mrf.mxu2  ;;  %v4466_v23 = vpop.f32.mrf.mxu0 }
 0x757   :  { %v4803_v17 = vadd.f32 %v4802_v29, %v4634_v25  ;;  %v4971_v4 = vpop.f32.mrf.mxu3  ;;  %v4467_v41 = vadd.f32 %v4466_v23, %v9879_v39  ;;  %v4635_v1 = vpop.f32.mrf.mxu1  ;;  %v14319_v39 = vld [vmem:[#allocation244_spill] sm:$0xff] }
 0x758   :  { %v14325_v29 = vld [vmem:[#allocation248_spill] sm:$0xff] }
 0x759   :  { %v10155_v35 = vadd.f32 %v4971_v4, %v4803_v17  ;;  %v4636_v5 = vadd.f32 %v4635_v1, %v4467_v41  ;;  %v14326_v17 = vld [vmem:[#allocation249_spill] sm:$0xff]  ;;  %v14327_v4 = vld [vmem:[#allocation250_spill] sm:$0xff] }
 0x75b   :  { %14315 = vst [vmem:[#allocation70_spill] sm:$0xff] %v10155_v35 }
 0x75e   :  { %v4804_v20 = vpop.f32.mrf.mxu2  ;;  %v4469_v48 = vpop.f32.mrf.mxu0 }
 0x75f   :  { %v4805_v3 = vadd.f32 %v4804_v20, %v4636_v5  ;;  %v4973_v40 = vpop.f32.mrf.mxu3  ;;  %v4470_v60 = vadd.f32 %v4469_v48, %v9885_v12  ;;  %v4638_v34 = vpop.f32.mrf.mxu1  ;;  %v14328_v20 = vld [vmem:[#allocation27_spill] sm:$0xff] }
 0x761   :  { %v10158_v9 = vadd.f32 %v4973_v40, %v4805_v3  ;;  %v4639_v7 = vadd.f32 %v4638_v34, %v4470_v60  ;;  %4508 = vmatmul.bf16.gmra.mxu0 %v9477_v32 }
 0x762   :  { %4677 = vmatmul.bf16.gmra.mxu1 %v14317_v6 }
 0x763   :  { %14316 = vst [vmem:[#allocation71_spill] sm:$0xff] %v10158_v9  ;;  %4846 = vmatmul.bf16.gmra.mxu2 %v14318_v21 }
 0x764   :  { %5015 = vmatmul.bf16.gmra.mxu3 %v14319_v39  ;;  %v14330_v39 = vld [vmem:[#allocation28_spill] sm:$0xff] }
 0x766   :  { %v4807_v22 = vpop.f32.mrf.mxu2  ;;  %v4471_v30 = vpop.f32.mrf.mxu0 }
 0x767   :  { %v4808_v26 = vadd.f32 %v4807_v22, %v4639_v7  ;;  %v4976_v8 = vpop.f32.mrf.mxu3  ;;  %v4472_v36 = vadd.f32 %v4471_v30, %v14320_v10  ;;  %v4640_v2 = vpop.f32.mrf.mxu1  ;;  %v14332_v10 = vld [vmem:[#allocation253_spill] sm:$0xff] }
 0x769   :  { %v10165_v12 = vadd.f32 %v4976_v8, %v4808_v26  ;;  %v4641_v24 = vadd.f32 %v4640_v2, %v4472_v36  ;;  %v14333_v36 = vld [vmem:[#allocation254_spill] sm:$0xff]  ;;  %v14334_v2 = vld [vmem:[#allocation255_spill] sm:$0xff] }
 0x76b   :  { %14321 = vst [vmem:[#allocation72_spill] sm:$0xff] %v10165_v12 }
 0x76e   :  { %v4809_v50 = vpop.f32.mrf.mxu2  ;;  %v4474_v32 = vpop.f32.mrf.mxu0 }
 0x76f   :  { %v4810_v43 = vadd.f32 %v4809_v50, %v4641_v24  ;;  %v4978_v59 = vpop.f32.mrf.mxu3  ;;  %v4475_v25 = vadd.f32 %v4474_v32, %v14322_v38  ;;  %v4643_v62 = vpop.f32.mrf.mxu1  ;;  %v14335_v24 = vld [vmem:[#allocation256_spill] sm:$0xff]  ;;  %v14336_v38 = vld [vmem:[#allocation29_spill] sm:$0xff] }
 0x771   :  { %v10168_v56 = vadd.f32 %v4978_v59, %v4810_v43  ;;  %v4644_v11 = vadd.f32 %v4643_v62, %v4475_v25  ;;  %4513 = vmatmul.bf16.gmra.mxu0 %v14324_v28 }
 0x772   :  { %4682 = vmatmul.bf16.gmra.mxu1 %v14325_v29 }
 0x773   :  { %14323 = vst [vmem:[#allocation73_spill] sm:$0xff] %v10168_v56  ;;  %4851 = vmatmul.bf16.gmra.mxu2 %v14326_v17 }
 0x774   :  { %5020 = vmatmul.bf16.gmra.mxu3 %v14327_v4 }
 0x776   :  { %v4812_v23 = vpop.f32.mrf.mxu2  ;;  %v4476_v5 = vpop.f32.mrf.mxu0 }
 0x777   :  { %v4813_v41 = vadd.f32 %v4812_v23, %v4644_v11  ;;  %v4981_v1 = vpop.f32.mrf.mxu3  ;;  %v4477_v3 = vadd.f32 %v4476_v5, %v14328_v20  ;;  %v4645_v40 = vpop.f32.mrf.mxu1 }
 0x779   :  { %v10175_v48 = vadd.f32 %v4981_v1, %v4813_v41  ;;  %v4646_v60 = vadd.f32 %v4645_v40, %v4477_v3  ;;  %v14338_v41 = vld [vmem:[#allocation30_spill] sm:$0xff]  ;;  %v14340_v40 = vld [vmem:[#allocation259_spill] sm:$0xff] }
 0x77b   :  { %14329 = vst [vmem:[#allocation74_spill] sm:$0xff] %v10175_v48 }
 0x77e   :  { %v4814_v34 = vpop.f32.mrf.mxu2  ;;  %v4479_v21 = vpop.f32.mrf.mxu0 }
 0x77f   :  { %v4815_v7 = vadd.f32 %v4814_v34, %v4646_v60  ;;  %v4983_v6 = vpop.f32.mrf.mxu3  ;;  %v4480_v22 = vadd.f32 %v4479_v21, %v14330_v39  ;;  %v4648_v26 = vpop.f32.mrf.mxu1  ;;  %v14341_v60 = vld [vmem:[#allocation260_spill] sm:$0xff]  ;;  %v14342_v34 = vld [vmem:[#allocation261_spill] sm:$0xff] }
 0x781   :  { %v10178_v8 = vadd.f32 %v4983_v6, %v4815_v7  ;;  %v4649_v30 = vadd.f32 %v4648_v26, %v4480_v22  ;;  %4518 = vmatmul.bf16.gmra.mxu0 %v14332_v10  ;;  %v14343_v7 = vld [vmem:[#allocation262_spill] sm:$0xff]  ;;  %v14344_v26 = vld [vmem:[#allocation177_spill] sm:$0xff] }
 0x782   :  { %4687 = vmatmul.bf16.gmra.mxu1 %v14333_v36 }
 0x783   :  { %14331 = vst [vmem:[#allocation75_spill] sm:$0xff] %v10178_v8  ;;  %4856 = vmatmul.bf16.gmra.mxu2 %v14334_v2 }
 0x784   :  { %5025 = vmatmul.bf16.gmra.mxu3 %v14335_v24 }
 0x786   :  { %v4817_v50 = vpop.f32.mrf.mxu2  ;;  %v4481_v32 = vpop.f32.mrf.mxu0 }
 0x787   :  { %v4818_v43 = vadd.f32 %v4817_v50, %v4649_v30  ;;  %v4986_v59 = vpop.f32.mrf.mxu3  ;;  %v4482_v25 = vadd.f32 %v4481_v32, %v14336_v38  ;;  %v4650_v62 = vpop.f32.mrf.mxu1  ;;  %v14346_v32 = vld [vmem:[#allocation178_spill] sm:$0xff] }
 0x789   :  { %v10185_v11 = vadd.f32 %v4986_v59, %v4818_v43  ;;  %v4651_v28 = vadd.f32 %v4650_v62, %v4482_v25 }
 0x78b   :  { %14337 = vst [vmem:[#allocation76_spill] sm:$0xff] %v10185_v11 }
 0x78e   :  { %v4819_v29 = vpop.f32.mrf.mxu2  ;;  %v4484_v23 = vpop.f32.mrf.mxu0 }
 0x78f   :  { %v4820_v17 = vadd.f32 %v4819_v29, %v4651_v28  ;;  %v4988_v4 = vpop.f32.mrf.mxu3  ;;  %v4485_v1 = vadd.f32 %v4484_v23, %v14338_v41  ;;  %v4653_v5 = vpop.f32.mrf.mxu1  ;;  %v14348_v29 = vld [vmem:[#allocation265_spill] sm:$0xff]  ;;  %v14351_v23 = vld [vmem:[#allocation268_spill] sm:$0xff] }
 0x791   :  { %v10188_v20 = vadd.f32 %v4988_v4, %v4820_v17  ;;  %v4654_v3 = vadd.f32 %v4653_v5, %v4485_v1  ;;  %4523 = vmatmul.bf16.gmra.mxu0 %v14340_v40  ;;  %v14349_v17 = vld [vmem:[#allocation266_spill] sm:$0xff]  ;;  %v14350_v4 = vld [vmem:[#allocation267_spill] sm:$0xff] }
 0x792   :  { %4692 = vmatmul.bf16.gmra.mxu1 %v14341_v60  ;;  %v14352_v40 = vld [vmem:[#allocation31_spill] sm:$0xff] }
 0x793   :  { %14339 = vst [vmem:[#allocation77_spill] sm:$0xff] %v10188_v20  ;;  %4861 = vmatmul.bf16.gmra.mxu2 %v14342_v34 }
 0x794   :  { %5030 = vmatmul.bf16.gmra.mxu3 %v14343_v7 }
 0x796   :  { %v4822_v6 = vpop.f32.mrf.mxu2  ;;  %v4486_v22 = vpop.f32.mrf.mxu0 }
 0x797   :  { %v4823_v21 = vadd.f32 %v4822_v6, %v4654_v3  ;;  %v4991_v39 = vpop.f32.mrf.mxu3  ;;  %v4487_v30 = vadd.f32 %v4486_v22, %v14344_v26  ;;  %v4655_v10 = vpop.f32.mrf.mxu1 }
 0x799   :  { %v10195_v36 = vadd.f32 %v4991_v39, %v4823_v21  ;;  %v4656_v2 = vadd.f32 %v4655_v10, %v4487_v30  ;;  %v14354_v30 = vld [vmem:[#allocation32_spill] sm:$0xff] }
 0x79b   :  { %14345 = vst [vmem:[#allocation78_spill] sm:$0xff] %v10195_v36 }
 0x79e   :  { %v4824_v24 = vpop.f32.mrf.mxu2  ;;  %v4489_v59 = vpop.f32.mrf.mxu0 }
 0x79f   :  { %v4825_v50 = vadd.f32 %v4824_v24, %v4656_v2  ;;  %v4993_v43 = vpop.f32.mrf.mxu3  ;;  %v4490_v38 = vadd.f32 %v4489_v59, %v14346_v32  ;;  %v4658_v25 = vpop.f32.mrf.mxu1  ;;  %v14357_v59 = vld [vmem:[#allocation272_spill] sm:$0xff]  ;;  %v14358_v32 = vld [vmem:[#allocation273_spill] sm:$0xff] }
 0x7a1   :  { %v10198_v62 = vadd.f32 %v4993_v43, %v4825_v50  ;;  %v4659_v28 = vadd.f32 %v4658_v25, %v4490_v38  ;;  %4528 = vmatmul.bf16.gmra.mxu0 %v14348_v29  ;;  %v14356_v43 = vld [vmem:[#allocation271_spill] sm:$0xff]  ;;  %v14359_v38 = vld [vmem:[#allocation274_spill] sm:$0xff] }
 0x7a2   :  { %4697 = vmatmul.bf16.gmra.mxu1 %v14349_v17 }
 0x7a3   :  { %14347 = vst [vmem:[#allocation79_spill] sm:$0xff] %v10198_v62  ;;  %4866 = vmatmul.bf16.gmra.mxu2 %v14350_v4  ;;  %v14360_v4 = vld [vmem:[#allocation33_spill] sm:$0xff] }
 0x7a4   :  { %5035 = vmatmul.bf16.gmra.mxu3 %v14351_v23 }
 0x7a6   :  { %v4827_v41 = vpop.f32.mrf.mxu2  ;;  %v4491_v3 = vpop.f32.mrf.mxu0 }
 0x7a7   :  { %v4828_v1 = vadd.f32 %v4827_v41, %v4659_v28  ;;  %v4996_v5 = vpop.f32.mrf.mxu3  ;;  %v4492_v60 = vadd.f32 %v4491_v3, %v14352_v40  ;;  %v4660_v34 = vpop.f32.mrf.mxu1 }
 0x7a9   :  { %v10205_v7 = vadd.f32 %v4996_v5, %v4828_v1  ;;  %v4661_v6 = vadd.f32 %v4660_v34, %v4492_v60 }
 0x7ab   :  { %14353 = vst [vmem:[#allocation80_spill] sm:$0xff] %v10205_v7 }
 0x7ae   :  { %v4829_v21 = vpop.f32.mrf.mxu2  ;;  %v4494_v26 = vpop.f32.mrf.mxu0 }
 0x7af   :  { %v4830_v39 = vadd.f32 %v4829_v21, %v4661_v6  ;;  %v4998_v22 = vpop.f32.mrf.mxu3  ;;  %v4495_v10 = vadd.f32 %v4494_v26, %v14354_v30  ;;  %v4663_v2 = vpop.f32.mrf.mxu1  ;;  %v14362_v6 = vld [vmem:[#allocation34_spill] sm:$0xff]  ;;  %v14364_v30 = vld [vmem:[#allocation277_spill] sm:$0xff] }
 0x7b1   :  { %v10208_v24 = vadd.f32 %v4998_v22, %v4830_v39  ;;  %v4664_v50 = vadd.f32 %v4663_v2, %v4495_v10  ;;  %4533 = vmatmul.bf16.gmra.mxu0 %v14356_v43  ;;  %v14365_v10 = vld [vmem:[#allocation278_spill] sm:$0xff]  ;;  %v14366_v2 = vld [vmem:[#allocation279_spill] sm:$0xff] }
 0x7b2   :  { %4702 = vmatmul.bf16.gmra.mxu1 %v14357_v59 }
 0x7b3   :  { %14355 = vst [vmem:[#allocation81_spill] sm:$0xff] %v10208_v24  ;;  %4871 = vmatmul.bf16.gmra.mxu2 %v14358_v32 }
 0x7b4   :  { %5040 = vmatmul.bf16.gmra.mxu3 %v14359_v38 }
 0x7b6   :  { %v4832_v25 = vpop.f32.mrf.mxu2  ;;  %v4496_v17 = vpop.f32.mrf.mxu0 }
 0x7b7   :  { %v4833_v28 = vadd.f32 %v4832_v25, %v4664_v50  ;;  %v5001_v29 = vpop.f32.mrf.mxu3  ;;  %v4497_v23 = vadd.f32 %v4496_v17, %v14360_v4  ;;  %v4665_v41 = vpop.f32.mrf.mxu1  ;;  %v14367_v50 = vld [vmem:[#allocation280_spill] sm:$0xff]  ;;  %v14368_v25 = vld [vmem:[#allocation183_spill] sm:$0xff] }
 0x7b9   :  { %v10215_v1 = vadd.f32 %v5001_v29, %v4833_v28  ;;  %v4666_v5 = vadd.f32 %v4665_v41, %v4497_v23 }
 0x7bb   :  { %14361 = vst [vmem:[#allocation82_spill] sm:$0xff] %v10215_v1 }
 0x7be   :  { %v4834_v3 = vpop.f32.mrf.mxu2  ;;  %v4499_v34 = vpop.f32.mrf.mxu0 }
 0x7bf   :  { %v4835_v40 = vadd.f32 %v4834_v3, %v4666_v5  ;;  %v5003_v60 = vpop.f32.mrf.mxu3  ;;  %v4500_v21 = vadd.f32 %v4499_v34, %v14362_v6  ;;  %v4668_v39 = vpop.f32.mrf.mxu1 }
 0x7c1   :  { %v10218_v22 = vadd.f32 %v5003_v60, %v4835_v40  ;;  %v4669_v26 = vadd.f32 %v4668_v39, %v4500_v21  ;;  %4538 = vmatmul.bf16.gmra.mxu0 %v14364_v30  ;;  %v14371_v21 = vld [vmem:[#allocation283_spill] sm:$0xff]  ;;  %v14372_v39 = vld [vmem:[#allocation284_spill] sm:$0xff]  ;;  %v14374_v30 = vld [vmem:[#allocation286_spill] sm:$0xff] }
 0x7c2   :  { %4707 = vmatmul.bf16.gmra.mxu1 %v14365_v10 }
 0x7c3   :  { %14363 = vst [vmem:[#allocation83_spill] sm:$0xff] %v10218_v22  ;;  %4876 = vmatmul.bf16.gmra.mxu2 %v14366_v2 }
 0x7c4   :  { %5045 = vmatmul.bf16.gmra.mxu3 %v14367_v50 }
 0x7c6   :  { %v4837_v43 = vpop.f32.mrf.mxu2  ;;  %v4501_v38 = vpop.f32.mrf.mxu0 }
 0x7c7   :  { %v4838_v59 = vadd.f32 %v4837_v43, %v4669_v26  ;;  %v5006_v32 = vpop.f32.mrf.mxu3  ;;  %v4502_v28 = vadd.f32 %v4501_v38, %v14368_v25  ;;  %v4670_v29 = vpop.f32.mrf.mxu1  ;;  %v14373_v26 = vld [vmem:[#allocation285_spill] sm:$0xff] }
 0x7c9   :  { %v10225_v17 = vadd.f32 %v5006_v32, %v4838_v59  ;;  %v4671_v4 = vadd.f32 %v4670_v29, %v4502_v28 }
 0x7cb   :  { %14369 = vst [vmem:[#allocation84_spill] sm:$0xff] %v10225_v17 }
 0x7ce   :  { %v4839_v23 = vpop.f32.mrf.mxu2  ;;  %v4504_v3 = vpop.f32.mrf.mxu0 }
 0x7cf   :  { %v4840_v41 = vadd.f32 %v4839_v23, %v4671_v4  ;;  %v5008_v5 = vpop.f32.mrf.mxu3  ;;  %v4505_v40 = vadd.f32 %v4504_v3, %v9941_v46  ;;  %v4673_v60 = vpop.f32.mrf.mxu1 }
 0x7d1   :  { %v10228_v34 = vadd.f32 %v5008_v5, %v4840_v41  ;;  %v4674_v6 = vadd.f32 %v4673_v60, %v4505_v40  ;;  %4543 = vmatmul.bf16.gmra.mxu0 %v14371_v21  ;;  %v14377_v40 = vld [vmem:[#allocation289_spill] sm:$0xff]  ;;  %v14378_v60 = vld [vmem:[#allocation290_spill] sm:$0xff] }
 0x7d2   :  { %4712 = vmatmul.bf16.gmra.mxu1 %v14372_v39 }
 0x7d3   :  { %14370 = vst [vmem:[#allocation85_spill] sm:$0xff] %v10228_v34  ;;  %4881 = vmatmul.bf16.gmra.mxu2 %v14373_v26 }
 0x7d4   :  { %5050 = vmatmul.bf16.gmra.mxu3 %v14374_v30 }
 0x7d6   :  { %v4842_v10 = vpop.f32.mrf.mxu2  ;;  %v4506_v43 = vpop.f32.mrf.mxu0 }
 0x7d7   :  { %v4843_v2 = vadd.f32 %v4842_v10, %v4674_v6  ;;  %v5011_v50 = vpop.f32.mrf.mxu3  ;;  %v4507_v59 = vadd.f32 %v4506_v43, %v9943_v45  ;;  %v4675_v32 = vpop.f32.mrf.mxu1  ;;  %v14379_v6 = vld [vmem:[#allocation291_spill] sm:$0xff]  ;;  %v14380_v45 = vld [vmem:[#allocation292_spill] sm:$0xff] }
 0x7d9   :  { %v10235_v46 = vadd.f32 %v5011_v50, %v4843_v2  ;;  %v4676_v38 = vadd.f32 %v4675_v32, %v4507_v59 }
 0x7db   :  { %14375 = vst [vmem:[#allocation86_spill] sm:$0xff] %v10235_v46 }
 0x7de   :  { %v4844_v25 = vpop.f32.mrf.mxu2  ;;  %v4509_v4 = vpop.f32.mrf.mxu0 }
 0x7df   :  { %v4845_v28 = vadd.f32 %v4844_v25, %v4676_v38  ;;  %v5013_v29 = vpop.f32.mrf.mxu3  ;;  %v4510_v23 = vadd.f32 %v4509_v4, %v9949_v54  ;;  %v4678_v41 = vpop.f32.mrf.mxu1  ;;  %v14382_v25 = vld [vmem:[#allocation184_spill] sm:$0xff] }
 0x7e1   :  { %v10238_v5 = vadd.f32 %v5013_v29, %v4845_v28  ;;  %v4679_v3 = vadd.f32 %v4678_v41, %v4510_v23  ;;  %4548 = vmatmul.bf16.gmra.mxu0 %v14377_v40  ;;  %v14384_v41 = vld [vmem:[#allocation295_spill] sm:$0xff]  ;;  %v14386_v40 = vld [vmem:[#allocation297_spill] sm:$0xff] }
 0x7e2   :  { %4717 = vmatmul.bf16.gmra.mxu1 %v14378_v60 }
 0x7e3   :  { %14376 = vst [vmem:[#allocation87_spill] sm:$0xff] %v10238_v5  ;;  %4886 = vmatmul.bf16.gmra.mxu2 %v14379_v6 }
 0x7e4   :  { %5055 = vmatmul.bf16.gmra.mxu3 %v14380_v45 }
 0x7e6   :  { %v4847_v21 = vpop.f32.mrf.mxu2  ;;  %v4511_v30 = vpop.f32.mrf.mxu0 }
 0x7e7   :  { %v4848_v39 = vadd.f32 %v4847_v21, %v4679_v3  ;;  %v5016_v26 = vpop.f32.mrf.mxu3  ;;  %v4512_v10 = vadd.f32 %v4511_v30, %v9951_v18  ;;  %v4680_v2 = vpop.f32.mrf.mxu1  ;;  %v14385_v3 = vld [vmem:[#allocation296_spill] sm:$0xff]  ;;  %v14387_v18 = vld [vmem:[#allocation298_spill] sm:$0xff] }
 0x7e9   :  { %v10245_v54 = vadd.f32 %v5016_v26, %v4848_v39  ;;  %v4681_v50 = vadd.f32 %v4680_v2, %v4512_v10  ;;  %v14388_v39 = vld [vmem:[#allocation35_spill] sm:$0xff] }
 0x7eb   :  { %14381 = vst [vmem:[#allocation88_spill] sm:$0xff] %v10245_v54 }
 0x7ee   :  { %v4849_v43 = vpop.f32.mrf.mxu2  ;;  %v4514_v38 = vpop.f32.mrf.mxu0 }
 0x7ef   :  { %v4850_v59 = vadd.f32 %v4849_v43, %v4681_v50  ;;  %v5018_v32 = vpop.f32.mrf.mxu3  ;;  %v4515_v28 = vadd.f32 %v4514_v38, %v14382_v25  ;;  %v4683_v29 = vpop.f32.mrf.mxu1  ;;  %v14390_v38 = vld [vmem:[#allocation36_spill] sm:$0xff] }
 0x7f1   :  { %v10248_v4 = vadd.f32 %v5018_v32, %v4850_v59  ;;  %v4684_v23 = vadd.f32 %v4683_v29, %v4515_v28  ;;  %4553 = vmatmul.bf16.gmra.mxu0 %v14384_v41 }
 0x7f2   :  { %4722 = vmatmul.bf16.gmra.mxu1 %v14385_v3  ;;  %v14392_v3 = vld [vmem:[#allocation300_spill] sm:$0xff] }
 0x7f3   :  { %14383 = vst [vmem:[#allocation89_spill] sm:$0xff] %v10248_v4  ;;  %4891 = vmatmul.bf16.gmra.mxu2 %v14386_v40  ;;  %v14394_v40 = vld [vmem:[#allocation302_spill] sm:$0xff] }
 0x7f4   :  { %5060 = vmatmul.bf16.gmra.mxu3 %v14387_v18  ;;  %v14395_v18 = vld [vmem:[#allocation136_spill] sm:$0xff] }
 0x7f6   :  { %v4852_v60 = vpop.f32.mrf.mxu2  ;;  %v4516_v21 = vpop.f32.mrf.mxu0 }
 0x7f7   :  { %v4853_v6 = vadd.f32 %v4852_v60, %v4684_v23  ;;  %v5021_v45 = vpop.f32.mrf.mxu3  ;;  %v4517_v26 = vadd.f32 %v4516_v21, %v14388_v39  ;;  %v4685_v30 = vpop.f32.mrf.mxu1  ;;  %v14393_v23 = vld [vmem:[#allocation301_spill] sm:$0xff] }
 0x7f8   :  { %v14396_v39 = vld [vmem:[#allocation37_spill] sm:$0xff] }
 0x7f9   :  { %v10255_v10 = vadd.f32 %v5021_v45, %v4853_v6  ;;  %v4686_v2 = vadd.f32 %v4685_v30, %v4517_v26 }
 0x7fb   :  { %14389 = vst [vmem:[#allocation90_spill] sm:$0xff] %v10255_v10 }
 0x7fe   :  { %v4854_v50 = vpop.f32.mrf.mxu2  ;;  %v4519_v32 = vpop.f32.mrf.mxu0 }
 0x7ff   :  { %v4855_v43 = vadd.f32 %v4854_v50, %v4686_v2  ;;  %v5023_v59 = vpop.f32.mrf.mxu3  ;;  %v4520_v25 = vadd.f32 %v4519_v32, %v14390_v38  ;;  %v4688_v28 = vpop.f32.mrf.mxu1 }
 0x801   :  { %v10258_v29 = vadd.f32 %v5023_v59, %v4855_v43  ;;  %v4689_v41 = vadd.f32 %v4688_v28, %v4520_v25  ;;  %4558 = vmatmul.bf16.gmra.mxu0 %v14392_v3  ;;  %v14398_v25 = vld [vmem:[#allocation38_spill] sm:$0xff] }
 0x802   :  { %4727 = vmatmul.bf16.gmra.mxu1 %v14393_v23 }
 0x803   :  { %14391 = vst [vmem:[#allocation91_spill] sm:$0xff] %v10258_v29  ;;  %4896 = vmatmul.bf16.gmra.mxu2 %v14394_v40 }
 0x804   :  { %5065 = vmatmul.bf16.gmra.mxu3 %v14395_v18  ;;  %v14400_v18 = vld [vmem:[#allocation304_spill] sm:$0xff] }
 0x806   :  { %v4857_v60 = vpop.f32.mrf.mxu2  ;;  %v4521_v21 = vpop.f32.mrf.mxu0 }
 0x807   :  { %v4858_v6 = vadd.f32 %v4857_v60, %v4689_v41  ;;  %v5026_v45 = vpop.f32.mrf.mxu3  ;;  %v4522_v26 = vadd.f32 %v4521_v21, %v14396_v39  ;;  %v4690_v30 = vpop.f32.mrf.mxu1  ;;  %v14401_v41 = vld [vmem:[#allocation305_spill] sm:$0xff]  ;;  %v14402_v60 = vld [vmem:[#allocation306_spill] sm:$0xff] }
 0x808   :  { %v14403_v21 = vld [vmem:[#allocation142_spill] sm:$0xff] }
 0x809   :  { %v10265_v2 = vadd.f32 %v5026_v45, %v4858_v6  ;;  %v4691_v50 = vadd.f32 %v4690_v30, %v4522_v26  ;;  %v14404_v30 = vld [vmem:[#allocation189_spill] sm:$0xff] }
 0x80b   :  { %14397 = vst [vmem:[#allocation92_spill] sm:$0xff] %v10265_v2 }
 0x80e   :  { %v4859_v43 = vpop.f32.mrf.mxu2  ;;  %v4524_v38 = vpop.f32.mrf.mxu0 }
 0x80f   :  { %v4860_v59 = vadd.f32 %v4859_v43, %v4691_v50  ;;  %v5028_v32 = vpop.f32.mrf.mxu3  ;;  %v4525_v28 = vadd.f32 %v4524_v38, %v14398_v25  ;;  %v4693_v3 = vpop.f32.mrf.mxu1 }
 0x811   :  { %v10268_v23 = vadd.f32 %v5028_v32, %v4860_v59  ;;  %v4694_v40 = vadd.f32 %v4693_v3, %v4525_v28  ;;  %4563 = vmatmul.bf16.gmra.mxu0 %v14400_v18  ;;  %v14406_v18 = vld [vmem:[#allocation202_spill] sm:$0xff] }
 0x812   :  { %4732 = vmatmul.bf16.gmra.mxu1 %v14401_v41  ;;  %v5369_v41 = vmul.f32 %v14406_v18, %v14406_v18 }
 0x813   :  { %14399 = vst [vmem:[#allocation93_spill] sm:$0xff] %v10268_v23  ;;  %4901 = vmatmul.bf16.gmra.mxu2 %v14402_v60  ;;  %v14407_v60 = vld [vmem:[#allocation190_spill] sm:$0xff] }
 0x814   :  { %5070 = vmatmul.bf16.gmra.mxu3 %v14403_v21 }
 0x816   :  { %v4862_v6 = vpop.f32.mrf.mxu2  ;;  %v4526_v26 = vpop.f32.mrf.mxu0 }
 0x817   :  { %v4863_v45 = vadd.f32 %v4862_v6, %v4694_v40  ;;  %v5031_v39 = vpop.f32.mrf.mxu3  ;;  %v4527_v50 = vadd.f32 %v4526_v26, %v14404_v30  ;;  %v4695_v43 = vpop.f32.mrf.mxu1  ;;  %v14409_v40 = vld [vmem:[#allocation199_spill] sm:$0xff]  ;;  %v14411_v30 = vld [vmem:[#allocation308_spill] sm:$0xff] }
 0x818   :  { %v5367_v6 = vmul.f32 %v14409_v40, %v14409_v40  ;;  %v14410_v26 = vld [vmem:[#allocation203_spill] sm:$0xff] }
 0x819   :  { %v10275_v38 = vadd.f32 %v5031_v39, %v4863_v45  ;;  %v4696_v59 = vadd.f32 %v4695_v43, %v4527_v50  ;;  %v5371_v45 = vmul.f32 %v14410_v26, %v14410_v26  ;;  %v5216_v50 = vadd.f32 %v14406_v18, %v14409_v40  ;;  %v14412_v43 = vld [vmem:[#allocation309_spill] sm:$0xff] }
 0x81b   :  { %14405 = vst [vmem:[#allocation94_spill] sm:$0xff] %v10275_v38  ;;  %v14416_v38 = vld [vmem:[#allocation209_spill] sm:$0xff] }
 0x81e   :  { %v4864_v32 = vpop.f32.mrf.mxu2  ;;  %v4529_v3 = vpop.f32.mrf.mxu0 }
 0x81f   :  { %v4865_v25 = vadd.f32 %v4864_v32, %v4696_v59  ;;  %v5033_v28 = vpop.f32.mrf.mxu3  ;;  %v4530_v63 = vadd.f32 %v4529_v3, %v14407_v60  ;;  %v4698_v21 = vpop.f32.mrf.mxu1  ;;  %v14413_v59 = vld [vmem:[#allocation310_spill] sm:$0xff]  ;;  %v5495_v32 = vadd.f32 %v5369_v41, %v5367_v6  ;;  %v14414_v3 = vld [vmem:[#allocation208_spill] sm:$0xff]  ;;  %v5217_v60 = vadd.f32 %v5216_v50, %v14410_v26  ;;  %v14418_v6 = vld [vmem:[#allocation39_spill] sm:$0xff] }
 0x821   :  { %v10280_v14 = vadd.f32 %v5033_v28, %v4865_v25  ;;  %v4699_v39 = vadd.f32 %v4698_v21, %v4530_v63  ;;  %4568 = vmatmul.bf16.gmra.mxu0 %v14411_v30  ;;  %v5373_v25 = vmul.f32 %v14414_v3, %v14414_v3  ;;  %v14415_v28 = vld [vmem:[#allocation148_spill] sm:$0xff]  ;;  %v5375_v63 = vmul.f32 %v14416_v38, %v14416_v38 }
 0x822   :  { %4737 = vmatmul.bf16.gmra.mxu1 %v14412_v43  ;;  %v5218_v30 = vadd.f32 %v5217_v60, %v14414_v3 }
 0x823   :  { %14408 = vst [vmem:[#allocation95_spill] sm:$0xff] %v10280_v14  ;;  %4906 = vmatmul.bf16.gmra.mxu2 %v14413_v59  ;;  %v5496_v14 = vadd.f32 %v5495_v32, %v5371_v45  ;;  %v14417_v59 = vld [vmem:[#allocation210_spill] sm:$0xff]  ;;  %v14420_v32 = vld [vmem:[#allocation211_spill] sm:$0xff] }
 0x824   :  { %5075 = vmatmul.bf16.gmra.mxu3 %v14415_v28  ;;  %v5377_v41 = vmul.f32 %v14417_v59, %v14417_v59  ;;  %v5219_v28 = vadd.f32 %v5218_v30, %v14416_v38  ;;  %v5379_v26 = vmul.f32 %v14420_v32, %v14420_v32 }
 0x825   :  { %v5497_v23 = vadd.f32 %v5496_v14, %v5373_v25 }
 0x826   :  { %v4867_v21 = vpop.f32.mrf.mxu2  ;;  %v4531_v43 = vpop.f32.mrf.mxu0 }
 0x827   :  { %v4868_v18 = vadd.f32 %v4867_v21, %v4699_v39  ;;  %v5036_v40 = vpop.f32.mrf.mxu3  ;;  %v4532_v2 = vadd.f32 %v4531_v43, %v14418_v6  ;;  %v4700_v29 = vpop.f32.mrf.mxu1  ;;  %v5498_v45 = vadd.f32 %v5497_v23, %v5375_v63  ;;  %v5220_v39 = vadd.f32 %v5219_v28, %v14417_v59  ;;  %v14421_v21 = vld [vmem:[#allocation214_spill] sm:$0xff]  ;;  %v14422_v43 = vld [vmem:[#allocation215_spill] sm:$0xff] }
 0x828   :  { %v5381_v14 = vmul.f32 %v14421_v21, %v14421_v21  ;;  %v5383_v6 = vmul.f32 %v14422_v43, %v14422_v43 }
 0x829   :  { %v10302_v50 = vadd.f32 %v5036_v40, %v4868_v18  ;;  %v4701_v10 = vadd.f32 %v4700_v29, %v4532_v2  ;;  %v5499_v60 = vadd.f32 %v5498_v45, %v5377_v41  ;;  %v5221_v25 = vadd.f32 %v5220_v39, %v14420_v32  ;;  %v14423_v29 = vld [vmem:[#allocation218_spill] sm:$0xff]  ;;  %v14424_v41 = vld [vmem:[#allocation40_spill] sm:$0xff] }
 0x82a   :  { %v5385_v2 = vmul.f32 %v14423_v29, %v14423_v29 }
 0x82b   :  { %14419 = vst [vmem:[#allocation96_spill] sm:$0xff] %v10302_v50  ;;  %v5500_v3 = vadd.f32 %v5499_v60, %v5379_v26  ;;  %v5222_v18 = vadd.f32 %v5221_v25, %v14421_v21  ;;  %v14426_v60 = vld [vmem:[#allocation219_spill] sm:$0xff]  ;;  %v14427_v25 = vld [vmem:[#allocation224_spill] sm:$0xff]  ;;  %v14430_v21 = vld [vmem:[#allocation41_spill] sm:$0xff] }
 0x82c   :  { %v5387_v32 = vmul.f32 %v14426_v60, %v14426_v60 }
 0x82d   :  { %v5501_v38 = vadd.f32 %v5500_v3, %v5381_v14  ;;  %v5223_v59 = vadd.f32 %v5222_v18, %v14422_v43  ;;  %v5370_v3 = vmul.f32 %v10058_v31, %v10058_v31  ;;  %v5368_v18 = vmul.f32 %v10055_v16, %v10055_v16  ;;  %v14429_v43 = vld [vmem:[#allocation226_spill] sm:$0xff] }
 0x82e   :  { %v4869_v30 = vpop.f32.mrf.mxu2  ;;  %v4534_v63 = vpop.f32.mrf.mxu0 }
 0x82f   :  { %v4870_v23 = vadd.f32 %v4869_v30, %v4701_v10  ;;  %v5038_v40 = vpop.f32.mrf.mxu3  ;;  %v4535_v28 = vadd.f32 %v4534_v63, %v14424_v41  ;;  %v4703_v45 = vpop.f32.mrf.mxu1  ;;  %v5502_v26 = vadd.f32 %v5501_v38, %v5383_v6  ;;  %v5224_v10 = vadd.f32 %v5223_v59, %v14423_v29 }
 0x830   :  { %v5389_v30 = vmul.f32 %v14427_v25, %v14427_v25  ;;  %v5372_v38 = vmul.f32 %v10065_v19, %v10065_v19  ;;  %v5285_v59 = vadd.f32 %v10058_v31, %v10055_v16 }
 0x831   :  { %v10317_v39 = vadd.f32 %v5038_v40, %v4870_v23  ;;  %v4704_v50 = vadd.f32 %v4703_v45, %v4535_v28  ;;  %v5503_v14 = vadd.f32 %v5502_v26, %v5385_v2  ;;  %v5225_v63 = vadd.f32 %v5224_v10, %v14426_v60  ;;  %v14428_v23 = vld [vmem:[#allocation225_spill] sm:$0xff] }
 0x832   :  { %v5391_v40 = vmul.f32 %v14428_v23, %v14428_v23  ;;  %v5564_v28 = vadd.f32 %v5370_v3, %v5368_v18  ;;  %v5374_v45 = vmul.f32 %v10068_v61, %v10068_v61  ;;  %v5376_v3 = vmul.f32 %v10075_v33, %v10075_v33  ;;  %v14431_v18 = vld [vmem:[#allocation227_spill] sm:$0xff] }
 0x833   :  { %14425 = vst [vmem:[#allocation97_spill] sm:$0xff] %v10317_v39  ;;  %v5504_v6 = vadd.f32 %v5503_v14, %v5387_v32  ;;  %v5226_v2 = vadd.f32 %v5225_v63, %v14427_v25  ;;  %v5393_v32 = vmul.f32 %v14429_v43, %v14429_v43  ;;  %v5286_v14 = vadd.f32 %v5285_v59, %v10065_v19 }
 0x834   :  { %v5565_v16 = vadd.f32 %v5564_v28, %v5372_v38  ;;  %v14432_v38 = vld [vmem:[#allocation230_spill] sm:$0xff] }
 0x835   :  { %v5505_v29 = vadd.f32 %v5504_v6, %v5389_v30  ;;  %v5227_v31 = vadd.f32 %v5226_v2, %v14428_v23  ;;  %v5395_v30 = vmul.f32 %v14431_v18, %v14431_v18  ;;  %v5287_v6 = vadd.f32 %v5286_v14, %v10068_v61 }
 0x836   :  { %v4872_v41 = vpop.f32.mrf.mxu2  ;;  %v4536_v60 = vpop.f32.mrf.mxu0  ;;  %v5566_v25 = vadd.f32 %v5565_v16, %v5374_v45  ;;  %v5397_v2 = vmul.f32 %v14432_v38, %v14432_v38  ;;  %v5382_v14 = vmul.f32 %v10088_v37, %v10088_v37 }
 0x837   :  { %v4873_v26 = vadd.f32 %v4872_v41, %v4704_v50  ;;  %v5041_v10 = vpop.f32.mrf.mxu3  ;;  %v4537_v39 = vadd.f32 %v4536_v60, %v14430_v21  ;;  %v4705_v4 = vpop.f32.mrf.mxu1  ;;  %v5506_v50 = vadd.f32 %v5505_v29, %v5391_v40  ;;  %v5228_v59 = vadd.f32 %v5227_v31, %v14429_v43 }
 0x838   :  { %v5378_v21 = vmul.f32 %v10078_v44, %v10078_v44  ;;  %v5288_v28 = vadd.f32 %v5287_v6, %v10075_v33  ;;  %v5567_v40 = vadd.f32 %v5566_v25, %v5376_v3  ;;  %v14434_v3 = vld [vmem:[#allocation234_spill] sm:$0xff] }
 0x839   :  { %v10345_v63 = vadd.f32 %v5041_v10, %v4873_v26  ;;  %v4706_v41 = vadd.f32 %v4705_v4, %v4537_v39  ;;  %v5507_v60 = vadd.f32 %v5506_v50, %v5393_v32  ;;  %v5229_v29 = vadd.f32 %v5228_v59, %v14431_v18  ;;  %v14433_v4 = vld [vmem:[#allocation231_spill] sm:$0xff] }
 0x83a   :  { %v5380_v26 = vmul.f32 %v10085_v51, %v10085_v51  ;;  %v5399_v31 = vmul.f32 %v14433_v4, %v14433_v4  ;;  %v5289_v16 = vadd.f32 %v5288_v28, %v10078_v44  ;;  %v5568_v32 = vadd.f32 %v5567_v40, %v5378_v21  ;;  %v14436_v40 = vld [vmem:[#allocation235_spill] sm:$0xff] }
 0x83b   :  { %v5508_v10 = vadd.f32 %v5507_v60, %v5395_v30  ;;  %v5230_v45 = vadd.f32 %v5229_v29, %v14432_v38  ;;  %v5401_v18 = vmul.f32 %v14434_v3, %v14434_v3  ;;  %v14435_v60 = vld [vmem:[#allocation42_spill] sm:$0xff]  ;;  %v5384_v21 = vmul.f32 %v10095_v49, %v10095_v49 }
 0x83c   :  { %v5290_v30 = vadd.f32 %v5289_v16, %v10085_v51  ;;  %v5569_v44 = vadd.f32 %v5568_v32, %v5380_v26  ;;  %v14437_v26 = vld [vmem:[#allocation240_spill] sm:$0xff] }
 0x83d   :  { %v5509_v25 = vadd.f32 %v5508_v10, %v5397_v2  ;;  %v5231_v28 = vadd.f32 %v5230_v45, %v14433_v4  ;;  %v5403_v2 = vmul.f32 %v14436_v40, %v14436_v40  ;;  %v5405_v32 = vmul.f32 %v14437_v26, %v14437_v26 }
 0x83e   :  { %v4874_v39 = vpop.f32.mrf.mxu2  ;;  %v4539_v59 = vpop.f32.mrf.mxu0  ;;  %v5291_v10 = vadd.f32 %v5290_v30, %v10088_v37  ;;  %v5570_v38 = vadd.f32 %v5569_v44, %v5382_v14 }
 0x83f   :  { %v4875_v50 = vadd.f32 %v4874_v39, %v4706_v41  ;;  %v5043_v6 = vpop.f32.mrf.mxu3  ;;  %v4540_v43 = vadd.f32 %v4539_v59, %v14435_v60  ;;  %v4708_v23 = vpop.f32.mrf.mxu1  ;;  %v5510_v41 = vadd.f32 %v5509_v25, %v5399_v31  ;;  %v5232_v16 = vadd.f32 %v5231_v28, %v14434_v3 }
 0x840   :  { %v5386_v59 = vmul.f32 %v10098_v27, %v10098_v27  ;;  %v5388_v25 = vmul.f32 %v10105_v52, %v10105_v52  ;;  %v5390_v28 = vmul.f32 %v10108_v47, %v10108_v47 }
 0x841   :  { %v10372_v29 = vadd.f32 %v5043_v6, %v4875_v50  ;;  %v4709_v39 = vadd.f32 %v4708_v23, %v4540_v43  ;;  %v5511_v45 = vadd.f32 %v5510_v41, %v5401_v18  ;;  %v5292_v50 = vadd.f32 %v5291_v10, %v10095_v49  ;;  %v14438_v43 = vld [vmem:[#allocation241_spill] sm:$0xff] }
 0x842   :  { %v5233_v31 = vadd.f32 %v5232_v16, %v14436_v40  ;;  %v5571_v6 = vadd.f32 %v5570_v38, %v5384_v21  ;;  %v5407_v23 = vmul.f32 %v14438_v43, %v14438_v43  ;;  %v14439_v21 = vld [vmem:[#allocation245_spill] sm:$0xff] }
 0x843   :  { %v5512_v30 = vadd.f32 %v5511_v45, %v5403_v2  ;;  %v5293_v44 = vadd.f32 %v5292_v50, %v10098_v27  ;;  %v5409_v40 = vmul.f32 %v14439_v21, %v14439_v21  ;;  %v14440_v45 = vld [vmem:[#allocation43_spill] sm:$0xff] }
 0x844   :  { %v5234_v18 = vadd.f32 %v5233_v31, %v14437_v26  ;;  %v5572_v60 = vadd.f32 %v5571_v6, %v5386_v59  ;;  %v5392_v59 = vmul.f32 %v10115_v42, %v10115_v42  ;;  %v14441_v6 = vld [vmem:[#allocation246_spill] sm:$0xff] }
 0x845   :  { %v5513_v38 = vadd.f32 %v5512_v30, %v5405_v32  ;;  %v5294_v2 = vadd.f32 %v5293_v44, %v10105_v52  ;;  %v5411_v32 = vmul.f32 %v14441_v6, %v14441_v6  ;;  %v14491_v52 = vld [vmem:[#allocation47_spill] sm:$0xff] }
 0x846   :  { %v4877_v14 = vpop.f32.mrf.mxu2  ;;  %v4541_v16 = vpop.f32.mrf.mxu0  ;;  %v5235_v50 = vadd.f32 %v5234_v18, %v14438_v43  ;;  %v5573_v27 = vadd.f32 %v5572_v60, %v5388_v25  ;;  %v14442_v25 = vld [vmem:[#allocation251_spill] sm:$0xff] }
 0x847   :  { %v4878_v41 = vadd.f32 %v4877_v14, %v4709_v39  ;;  %v5046_v10 = vpop.f32.mrf.mxu3  ;;  %v4542_v3 = vadd.f32 %v4541_v16, %v14440_v45  ;;  %v4710_v4 = vpop.f32.mrf.mxu1  ;;  %v5514_v39 = vadd.f32 %v5513_v38, %v5407_v23  ;;  %v5295_v30 = vadd.f32 %v5294_v2, %v10108_v47 }
 0x848   :  { %v5236_v44 = vadd.f32 %v5235_v50, %v14439_v21  ;;  %v5574_v26 = vadd.f32 %v5573_v27, %v5390_v28  ;;  %v5394_v16 = vmul.f32 %v10118_v53, %v10118_v53  ;;  %v5413_v60 = vmul.f32 %v14442_v25, %v14442_v25 }
 0x849   :  { %v10399_v31 = vadd.f32 %v5046_v10, %v4878_v41  ;;  %v4711_v14 = vadd.f32 %v4710_v4, %v4542_v3  ;;  %v5515_v18 = vadd.f32 %v5514_v39, %v5409_v40  ;;  %v5296_v41 = vadd.f32 %v5295_v30, %v10115_v42  ;;  %v14443_v4 = vld [vmem:[#allocation252_spill] sm:$0xff]  ;;  %v14480_v42 = vld [vmem:[#allocation95_spill] sm:$0xff] }
 0x84a   :  { %v5237_v23 = vadd.f32 %v5236_v44, %v14441_v6  ;;  %v5575_v10 = vadd.f32 %v5574_v26, %v5392_v59  ;;  %v5396_v38 = vmul.f32 %v10125_v13, %v10125_v13  ;;  %v5415_v3 = vmul.f32 %v14443_v4, %v14443_v4  ;;  %v14444_v59 = vld [vmem:[#allocation257_spill] sm:$0xff] }
 0x84b   :  { %v5516_v2 = vadd.f32 %v5515_v18, %v5411_v32  ;;  %v5297_v27 = vadd.f32 %v5296_v41, %v10118_v53  ;;  %v5398_v50 = vmul.f32 %v10128_v0, %v10128_v0  ;;  %v5417_v6 = vmul.f32 %v14444_v59, %v14444_v59  ;;  %v14445_v18 = vld [vmem:[#allocation44_spill] sm:$0xff] }
 0x84c   :  { %v5238_v40 = vadd.f32 %v5237_v23, %v14442_v25  ;;  %v5576_v45 = vadd.f32 %v5575_v10, %v5394_v16  ;;  %v5400_v16 = vmul.f32 %v10135_v57, %v10135_v57  ;;  %v14446_v10 = vld [vmem:[#allocation258_spill] sm:$0xff] }
 0x84d   :  { %v5517_v26 = vadd.f32 %v5516_v2, %v5413_v60  ;;  %v5298_v32 = vadd.f32 %v5297_v27, %v10125_v13  ;;  %v5419_v60 = vmul.f32 %v14446_v10, %v14446_v10  ;;  %v5402_v27 = vmul.f32 %v10138_v15, %v10138_v15 }
 0x84e   :  { %v4879_v28 = vpop.f32.mrf.mxu2  ;;  %v4544_v44 = vpop.f32.mrf.mxu0  ;;  %v5239_v41 = vadd.f32 %v5238_v40, %v14443_v4  ;;  %v5577_v53 = vadd.f32 %v5576_v45, %v5396_v38  ;;  %v14447_v38 = vld [vmem:[#allocation263_spill] sm:$0xff] }
 0x84f   :  { %v4880_v39 = vadd.f32 %v4879_v28, %v4711_v14  ;;  %v5048_v30 = vpop.f32.mrf.mxu3  ;;  %v4545_v21 = vadd.f32 %v4544_v44, %v14445_v18  ;;  %v4713_v43 = vpop.f32.mrf.mxu1  ;;  %v5518_v14 = vadd.f32 %v5517_v26, %v5415_v3  ;;  %v5299_v2 = vadd.f32 %v5298_v32, %v10128_v0  ;;  %v14451_v4 = vld [vmem:[#allocation275_spill] sm:$0xff] }
 0x850   :  { %v5578_v25 = vadd.f32 %v5577_v53, %v5398_v50  ;;  %v5240_v44 = vadd.f32 %v5239_v41, %v14444_v59  ;;  %v5421_v45 = vmul.f32 %v14447_v38, %v14447_v38  ;;  %v5404_v3 = vmul.f32 %v10145_v58, %v10145_v58 }
 0x851   :  { %v10426_v23 = vadd.f32 %v5048_v30, %v4880_v39  ;;  %v4714_v28 = vadd.f32 %v4713_v43, %v4545_v21  ;;  %v5519_v40 = vadd.f32 %v5518_v14, %v5417_v6  ;;  %v5300_v39 = vadd.f32 %v5299_v2, %v10135_v57  ;;  %v14448_v21 = vld [vmem:[#allocation264_spill] sm:$0xff] }
 0x852   :  { %v5579_v30 = vadd.f32 %v5578_v25, %v5400_v16  ;;  %v5241_v26 = vadd.f32 %v5240_v44, %v14446_v10  ;;  %v5423_v50 = vmul.f32 %v14448_v21, %v14448_v21  ;;  %v5406_v6 = vmul.f32 %v10148_v55, %v10148_v55 }
 0x853   :  { %v5520_v32 = vadd.f32 %v5519_v40, %v5419_v60  ;;  %v5301_v53 = vadd.f32 %v5300_v39, %v10138_v15  ;;  %v14449_v40 = vld [vmem:[#allocation269_spill] sm:$0xff] }
 0x854   :  { %v5580_v18 = vadd.f32 %v5579_v30, %v5402_v27  ;;  %v5242_v25 = vadd.f32 %v5241_v26, %v14447_v38  ;;  %v5425_v39 = vmul.f32 %v14449_v40, %v14449_v40  ;;  %v5408_v27 = vmul.f32 %v10155_v35, %v10155_v35  ;;  %v14450_v26 = vld [vmem:[#allocation270_spill] sm:$0xff] }
 0x855   :  { %v5521_v16 = vadd.f32 %v5520_v32, %v5421_v45  ;;  %v5302_v44 = vadd.f32 %v5301_v53, %v10145_v58  ;;  %v5427_v45 = vmul.f32 %v14450_v26, %v14450_v26  ;;  %v5410_v53 = vmul.f32 %v10158_v9, %v10158_v9  ;;  %v14472_v58 = vld [vmem:[#allocation17_spill] sm:$0xff] }
 0x856   :  { %v4882_v43 = vpop.f32.mrf.mxu2  ;;  %v10445_v2 = vpop.f32.mrf.mxu0  ;;  %v5581_v10 = vadd.f32 %v5580_v18, %v5404_v3 }
 0x857   :  { %v4883_v41 = vadd.f32 %v4882_v43, %v4714_v28  ;;  %v5051_v14 = vpop.f32.mrf.mxu3  ;;  %v10449_v60 = vpop.f32.mrf.mxu1  ;;  %v5243_v28 = vadd.f32 %v5242_v25, %v14448_v21  ;;  %v5303_v43 = vadd.f32 %v5302_v44, %v10148_v55  ;;  %v5522_v59 = vadd.f32 %v5521_v16, %v5423_v50  ;;  %v14452_v44 = vld [vmem:[#allocation276_spill] sm:$0xff] }
 0x858   :  { %v5582_v32 = vadd.f32 %v5581_v10, %v5406_v6  ;;  %v5412_v25 = vmul.f32 %v10165_v12, %v10165_v12 }
 0x859   :  { %v10455_v30 = vadd.f32 %v5051_v14, %v4883_v41  ;;  %v5244_v38 = vadd.f32 %v5243_v28, %v14449_v40  ;;  %v5304_v3 = vadd.f32 %v5303_v43, %v10155_v35  ;;  %v5523_v18 = vadd.f32 %v5522_v59, %v5425_v39  ;;  %v14454_v35 = vld [vmem:[#allocation282_spill] sm:$0xff] }
 0x85a   :  { %v5429_v41 = vmul.f32 %v14451_v4, %v14451_v4  ;;  %v5583_v14 = vadd.f32 %v5582_v32, %v5408_v27  ;;  %v5431_v28 = vmul.f32 %v14452_v44, %v14452_v44  ;;  %v5414_v59 = vmul.f32 %v10168_v56, %v10168_v56 }
 0x85b   :  { %v5245_v50 = vadd.f32 %v5244_v38, %v14450_v26  ;;  %v5305_v16 = vadd.f32 %v5304_v3, %v10158_v9  ;;  %v5524_v6 = vadd.f32 %v5523_v18, %v5427_v45  ;;  %v14453_v26 = vld [vmem:[#allocation281_spill] sm:$0xff] }
 0x85c   :  { %v5584_v40 = vadd.f32 %v5583_v14, %v5410_v53  ;;  %v5433_v45 = vmul.f32 %v14453_v26, %v14453_v26  ;;  %v5416_v53 = vmul.f32 %v10175_v48, %v10175_v48 }
 0x85d   :  { %v5246_v43 = vadd.f32 %v5245_v50, %v14451_v4  ;;  %v5306_v38 = vadd.f32 %v5305_v16, %v10165_v12  ;;  %v5525_v3 = vadd.f32 %v5524_v6, %v5429_v41  ;;  %v5435_v50 = vmul.f32 %v14454_v35, %v14454_v35 }
 0x85e   :  { %v10471_v10 = vpop.f32.mrf.mxu2  ;;  %v10479_v27 = vpop.f32.mrf.mxu0  ;;  %v5585_v18 = vadd.f32 %v5584_v40, %v5412_v25  ;;  %v5418_v16 = vmul.f32 %v10178_v8, %v10178_v8  ;;  %v14455_v25 = vld [vmem:[#allocation287_spill] sm:$0xff] }
 0x85f   :  { %v10477_v39 = vpop.f32.mrf.mxu3  ;;  %v10483_v32 = vpop.f32.mrf.mxu1  ;;  %v5247_v14 = vadd.f32 %v5246_v43, %v14452_v44  ;;  %v5307_v21 = vadd.f32 %v5306_v38, %v10168_v56  ;;  %v5526_v9 = vadd.f32 %v5525_v3, %v5431_v28  ;;  %v5437_v12 = vmul.f32 %v14455_v25, %v14455_v25 }
 0x860   :  { %v5586_v4 = vadd.f32 %v5585_v18, %v5414_v59  ;;  %v5420_v43 = vmul.f32 %v10185_v11, %v10185_v11  ;;  %v14456_v18 = vld [vmem:[#allocation288_spill] sm:$0xff] }
 0x861   :  { %v5248_v41 = vadd.f32 %v5247_v14, %v14453_v26  ;;  %v5308_v6 = vadd.f32 %v5307_v21, %v10175_v48  ;;  %v5527_v40 = vadd.f32 %v5526_v9, %v5433_v45  ;;  %v5439_v14 = vmul.f32 %v14456_v18, %v14456_v18  ;;  %v14458_v48 = vld [vmem:[#allocation294_spill] sm:$0xff] }
 0x862   :  { %v5587_v55 = vadd.f32 %v5586_v4, %v5416_v53  ;;  %v5422_v9 = vmul.f32 %v10188_v20, %v10188_v20 }
 0x863   :  { %v5249_v28 = vadd.f32 %v5248_v41, %v14454_v35  ;;  %v5309_v38 = vadd.f32 %v5308_v6, %v10178_v8  ;;  %v5528_v3 = vadd.f32 %v5527_v40, %v5435_v50  ;;  %v14457_v35 = vld [vmem:[#allocation293_spill] sm:$0xff] }
 0x864   :  { %v5588_v26 = vadd.f32 %v5587_v55, %v5418_v16  ;;  %v5441_v50 = vmul.f32 %v14457_v35, %v14457_v35  ;;  %v5424_v55 = vmul.f32 %v10195_v36, %v10195_v36 }
 0x865   :  { %v5250_v45 = vadd.f32 %v5249_v28, %v14455_v25  ;;  %v5310_v53 = vadd.f32 %v5309_v38, %v10185_v11  ;;  %v5529_v6 = vadd.f32 %v5528_v3, %v5437_v12  ;;  %v5443_v28 = vmul.f32 %v14458_v48, %v14458_v48 }
 0x866   :  { %v10503_v59 = vpop.f32.mrf.mxu2  ;;  %v10511_v4 = vpop.f32.mrf.mxu0  ;;  %v5589_v40 = vadd.f32 %v5588_v26, %v5420_v43  ;;  %v5426_v38 = vmul.f32 %v10198_v62, %v10198_v62  ;;  %v14459_v43 = vld [vmem:[#allocation299_spill] sm:$0xff] }
 0x867   :  { %v10509_v21 = vpop.f32.mrf.mxu3  ;;  %v10515_v41 = vpop.f32.mrf.mxu1  ;;  %v5251_v16 = vadd.f32 %v5250_v45, %v14456_v18  ;;  %v5311_v44 = vadd.f32 %v5310_v53, %v10188_v20  ;;  %v5530_v8 = vadd.f32 %v5529_v6, %v5439_v14  ;;  %v5445_v11 = vmul.f32 %v14459_v43, %v14459_v43 }
 0x868   :  { %v5590_v25 = vadd.f32 %v5589_v40, %v5422_v9  ;;  %v5428_v45 = vmul.f32 %v10205_v7, %v10205_v7  ;;  %v14460_v40 = vld [vmem:[#allocation135_spill] sm:$0xff] }
 0x869   :  { %v5252_v12 = vadd.f32 %v5251_v16, %v14457_v35  ;;  %v5312_v3 = vadd.f32 %v5311_v44, %v10195_v36  ;;  %v5531_v26 = vadd.f32 %v5530_v8, %v5441_v50  ;;  %v5447_v16 = vmul.f32 %v14460_v40, %v14460_v40  ;;  %v14462_v36 = vld [vmem:[#allocation141_spill] sm:$0xff] }
 0x86a   :  { %v5591_v56 = vadd.f32 %v5590_v25, %v5424_v55  ;;  %v5430_v8 = vmul.f32 %v10208_v24, %v10208_v24 }
 0x86b   :  { %v5253_v14 = vadd.f32 %v5252_v12, %v14458_v48  ;;  %v5313_v53 = vadd.f32 %v5312_v3, %v10198_v62  ;;  %v5532_v6 = vadd.f32 %v5531_v26, %v5443_v28  ;;  %v14461_v48 = vld [vmem:[#allocation303_spill] sm:$0xff] }
 0x86c   :  { %v5592_v35 = vadd.f32 %v5591_v56, %v5426_v38  ;;  %v5449_v28 = vmul.f32 %v14461_v48, %v14461_v48  ;;  %v5432_v56 = vmul.f32 %v10215_v1, %v10215_v1 }
 0x86d   :  { %v5254_v50 = vadd.f32 %v5253_v14, %v14459_v43  ;;  %v5314_v55 = vadd.f32 %v5313_v53, %v10205_v7  ;;  %v5533_v3 = vadd.f32 %v5532_v6, %v5445_v11  ;;  %v5451_v14 = vmul.f32 %v14462_v36, %v14462_v36 }
 0x86e   :  { %v10535_v9 = vpop.f32.mrf.mxu2  ;;  %v10543_v25 = vpop.f32.mrf.mxu0  ;;  %v5593_v26 = vadd.f32 %v5592_v35, %v5428_v45  ;;  %v5434_v53 = vmul.f32 %v10218_v22, %v10218_v22  ;;  %v14463_v45 = vld [vmem:[#allocation307_spill] sm:$0xff] }
 0x86f   :  { %v10541_v44 = vpop.f32.mrf.mxu3  ;;  %v10547_v12 = vpop.f32.mrf.mxu1  ;;  %v5255_v38 = vadd.f32 %v5254_v50, %v14460_v40  ;;  %v5315_v18 = vadd.f32 %v5314_v55, %v10208_v24  ;;  %v5534_v62 = vadd.f32 %v5533_v3, %v5447_v16  ;;  %v5453_v7 = vmul.f32 %v14463_v45, %v14463_v45 }
 0x870   :  { %v5594_v43 = vadd.f32 %v5593_v26, %v5430_v8  ;;  %v5436_v50 = vmul.f32 %v10225_v17, %v10225_v17  ;;  %v14464_v26 = vld [vmem:[#allocation147_spill] sm:$0xff] }
 0x871   :  { %v5256_v11 = vadd.f32 %v5255_v38, %v14461_v48  ;;  %v5316_v6 = vadd.f32 %v5315_v18, %v10215_v1  ;;  %v5535_v35 = vadd.f32 %v5534_v62, %v5449_v28  ;;  %v5455_v38 = vmul.f32 %v14464_v26, %v14464_v26  ;;  %v14466_v1 = vld [vmem:[#allocation153_spill] sm:$0xff] }
 0x872   :  { %v5595_v20 = vadd.f32 %v5594_v43, %v5432_v56  ;;  %v5438_v62 = vmul.f32 %v10228_v34, %v10228_v34 }
 0x873   :  { %v5257_v16 = vadd.f32 %v5256_v11, %v14462_v36  ;;  %v5317_v55 = vadd.f32 %v5316_v6, %v10218_v22  ;;  %v5536_v3 = vadd.f32 %v5535_v35, %v5451_v14  ;;  %v14465_v36 = vld [vmem:[#allocation311_spill] sm:$0xff] }
 0x874   :  { %v5596_v48 = vadd.f32 %v5595_v20, %v5434_v53  ;;  %v5457_v14 = vmul.f32 %v14465_v36, %v14465_v36  ;;  %v5440_v20 = vmul.f32 %v10235_v46, %v10235_v46 }
 0x875   :  { %v5258_v28 = vadd.f32 %v5257_v16, %v14463_v45  ;;  %v5318_v56 = vadd.f32 %v5317_v55, %v10225_v17  ;;  %v5537_v6 = vadd.f32 %v5536_v3, %v5453_v7  ;;  %v5459_v16 = vmul.f32 %v14466_v1, %v14466_v1 }
 0x876   :  { %v10567_v8 = vpop.f32.mrf.mxu2  ;;  %v10575_v43 = vpop.f32.mrf.mxu0  ;;  %v5597_v35 = vadd.f32 %v5596_v48, %v5436_v50  ;;  %v5442_v55 = vmul.f32 %v10238_v5, %v10238_v5  ;;  %v14467_v50 = vld [vmem:[#allocation154_spill] sm:$0xff] }
 0x877   :  { %v10573_v18 = vpop.f32.mrf.mxu3  ;;  %v10579_v11 = vpop.f32.mrf.mxu1  ;;  %v5259_v53 = vadd.f32 %v5258_v28, %v14464_v26  ;;  %v5319_v40 = vadd.f32 %v5318_v56, %v10228_v34  ;;  %v5538_v22 = vadd.f32 %v5537_v6, %v5455_v38  ;;  %v5461_v17 = vmul.f32 %v14467_v50, %v14467_v50  ;;  %v14470_v26 = vld [vmem:[#allocation16_spill] sm:$0xff] }
 0x878   :  { %v5598_v45 = vadd.f32 %v5597_v35, %v5438_v62  ;;  %v5444_v28 = vmul.f32 %v10245_v54, %v10245_v54  ;;  %v14468_v35 = vld [vmem:[#allocation15_spill] sm:$0xff] }
 0x879   :  { %v5260_v7 = vadd.f32 %v5259_v53, %v14465_v36  ;;  %v5320_v3 = vadd.f32 %v5319_v40, %v10235_v46  ;;  %v5539_v48 = vadd.f32 %v5538_v22, %v5457_v14  ;;  %v5463_v53 = vmul.f32 %v14468_v35, %v14468_v35  ;;  %v14469_v40 = vld [vmem:[#allocation89_spill] sm:$0xff] }
 0x87a   :  { %v5599_v24 = vadd.f32 %v5598_v45, %v5440_v20  ;;  %v5446_v22 = vmul.f32 %v14469_v40, %v14469_v40 }
 0x87b   :  { %v5261_v38 = vadd.f32 %v5260_v7, %v14466_v1  ;;  %v5321_v56 = vadd.f32 %v5320_v3, %v10238_v5  ;;  %v5540_v6 = vadd.f32 %v5539_v48, %v5459_v16  ;;  %v5465_v16 = vmul.f32 %v14470_v26, %v14470_v26  ;;  %v14471_v5 = vld [vmem:[#allocation90_spill] sm:$0xff] }
 0x87c   :  { %v5600_v36 = vadd.f32 %v5599_v24, %v5442_v55  ;;  %v5448_v24 = vmul.f32 %v14471_v5, %v14471_v5 }
 0x87d   :  { %v5262_v20 = vadd.f32 %v5261_v38, %v14467_v50  ;;  %v5322_v7 = vadd.f32 %v5321_v56, %v10245_v54  ;;  %v5541_v3 = vadd.f32 %v5540_v6, %v5461_v17  ;;  %v5467_v38 = vmul.f32 %v14472_v58, %v14472_v58  ;;  %v14473_v56 = vld [vmem:[#allocation91_spill] sm:$0xff] }
 0x87e   :  { %v10599_v62 = vpop.f32.mrf.mxu2  ;;  %v10607_v45 = vpop.f32.mrf.mxu0  ;;  %v5601_v48 = vadd.f32 %v5600_v36, %v5444_v28  ;;  %v5450_v54 = vmul.f32 %v14473_v56, %v14473_v56  ;;  %v14474_v28 = vld [vmem:[#allocation18_spill] sm:$0xff] }
 0x87f   :  { %v10605_v14 = vpop.f32.mrf.mxu3  ;;  %v10611_v1 = vpop.f32.mrf.mxu1  ;;  %v5263_v55 = vadd.f32 %v5262_v20, %v14468_v35  ;;  %v5323_v46 = vadd.f32 %v5322_v7, %v14469_v40  ;;  %v5542_v34 = vadd.f32 %v5541_v3, %v5463_v53  ;;  %v5469_v15 = vmul.f32 %v14474_v28, %v14474_v28  ;;  %v14475_v20 = vld [vmem:[#allocation92_spill] sm:$0xff]  ;;  %v14476_v35 = vld [vmem:[#allocation159_spill] sm:$0xff] }
 0x880   :  { %v5602_v50 = vadd.f32 %v5601_v48, %v5446_v22  ;;  %v5452_v7 = vmul.f32 %v14475_v20, %v14475_v20 }
 0x881   :  { %v5264_v17 = vadd.f32 %v5263_v55, %v14470_v26  ;;  %v5324_v6 = vadd.f32 %v5323_v46, %v14471_v5  ;;  %v5543_v36 = vadd.f32 %v5542_v34, %v5465_v16  ;;  %v5471_v55 = vmul.f32 %v14476_v35, %v14476_v35  ;;  %v14477_v46 = vld [vmem:[#allocation93_spill] sm:$0xff]  ;;  %v14479_v5 = vld [vmem:[#allocation94_spill] sm:$0xff] }
 0x882   :  { %v5603_v57 = vadd.f32 %v5602_v50, %v5448_v24  ;;  %v5454_v34 = vmul.f32 %v14477_v46, %v14477_v46 }
 0x883   :  { %v5265_v53 = vadd.f32 %v5264_v17, %v14472_v58  ;;  %v5325_v3 = vadd.f32 %v5324_v6, %v14473_v56  ;;  %v5544_v48 = vadd.f32 %v5543_v36, %v5467_v38  ;;  %v14478_v56 = vld [vmem:[#allocation160_spill] sm:$0xff] }
 0x884   :  { %v5604_v26 = vadd.f32 %v5603_v57, %v5450_v54  ;;  %v5473_v38 = vmul.f32 %v14478_v56, %v14478_v56  ;;  %v5456_v57 = vmul.f32 %v14479_v5, %v14479_v5 }
 0x885   :  { %v5266_v24 = vadd.f32 %v5265_v53, %v14474_v28  ;;  %v5326_v17 = vadd.f32 %v5325_v3, %v14475_v20  ;;  %v5545_v6 = vadd.f32 %v5544_v48, %v5469_v15  ;;  %v5458_v53 = vmul.f32 %v14480_v42, %v14480_v42  ;;  %v14481_v28 = vld [vmem:[#allocation19_spill] sm:$0xff]  ;;  %v14482_v20 = vld [vmem:[#allocation96_spill] sm:$0xff] }
 0x886   :  { %v10631_v22 = vpop.f32.mrf.mxu2  ;;  %v10639_v50 = vpop.f32.mrf.mxu0  ;;  %v5605_v36 = vadd.f32 %v5604_v26, %v5452_v7  ;;  %v5475_v15 = vmul.f32 %v14481_v28, %v14481_v28  ;;  %v5460_v47 = vmul.f32 %v14482_v20, %v14482_v20 }
 0x887   :  { %v10637_v16 = vpop.f32.mrf.mxu3  ;;  %v10643_v58 = vpop.f32.mrf.mxu1  ;;  %v5267_v54 = vadd.f32 %v5266_v24, %v14476_v35  ;;  %v5327_v40 = vadd.f32 %v5326_v17, %v14477_v46  ;;  %v5546_v0 = vadd.f32 %v5545_v6, %v5471_v55  ;;  %v14483_v17 = vld [vmem:[#allocation20_spill] sm:$0xff]  ;;  %v14484_v6 = vld [vmem:[#allocation45_spill] sm:$0xff] }
 0x888   :  { %v5606_v13 = vadd.f32 %v5605_v36, %v5454_v34  ;;  %v5477_v55 = vmul.f32 %v14483_v17, %v14483_v17  ;;  %v4547_v36 = vadd.f32 %v10445_v2, %v14484_v6  ;;  %v14485_v35 = vld [vmem:[#allocation97_spill] sm:$0xff] }
 0x889   :  { %v5268_v3 = vadd.f32 %v5267_v54, %v14478_v56  ;;  %v5328_v48 = vadd.f32 %v5327_v40, %v14479_v5  ;;  %v5547_v26 = vadd.f32 %v5546_v0, %v5473_v38  ;;  %v5462_v0 = vmul.f32 %v14485_v35, %v14485_v35 }
 0x88a   :  { %v5607_v7 = vadd.f32 %v5606_v13, %v5456_v57  ;;  %v67_v38 = vlaneseq  ;;  %v5464_v5 = vmul.f32 %v10345_v63, %v10345_v63 }
 0x88b   :  { %v5269_v24 = vadd.f32 %v5268_v3, %v14481_v28  ;;  %v5329_v34 = vadd.f32 %v5328_v48, %v14480_v42  ;;  %v5548_v57 = vadd.f32 %v5547_v26, %v5475_v15  ;;  %v14486_v28 = vld [vmem:[#allocation21_spill] sm:$0xff]  ;;  %v14487_v42 = vld [vmem:[#allocation46_spill] sm:$0xff] }
 0x88c   :  { %v5608_v56 = vadd.f32 %v5607_v7, %v5458_v53  ;;  %v5479_v48 = vmul.f32 %v14486_v28, %v14486_v28  ;;  %v4550_v2 = vadd.f32 %v10479_v27, %v14487_v42  ;;  %vm10683_vm0 = vcmp.lt.s32.totalorder %v67_v38, 256  ;;  %v14490_v26 = vld [vmem:[#allocation22_spill] sm:$0xff] }
 0x88d   :  { %v5270_v3 = vadd.f32 %v5269_v24, %v14483_v17  ;;  %v5330_v53 = vadd.f32 %v5329_v34, %v14482_v20  ;;  %v5549_v15 = vadd.f32 %v5548_v57, %v5477_v55  ;;  %v5481_v24 = vmul.f32 %v14490_v26, %v14490_v26 }
 0x88e   :  { %v10665_v54 = vpop.f32.mrf.mxu2  ;;  %v10671_v40 = vpop.f32.mrf.mxu0  ;;  %v5609_v7 = vadd.f32 %v5608_v56, %v5460_v47  ;;  %v4716_v17 = vadd.f32 %v10449_v60, %v4547_v36  ;;  %v4552_v42 = vadd.f32 %v10511_v4, %v14491_v52  ;;  %v8634_v27 = vmov 0.0   ;;  %v14492_v4 = vld [vmem:[#allocation48_spill] sm:$0xff] }
 0x88f   :  { %v10669_v13 = vpop.f32.mrf.mxu3  ;;  %v10678_v6 = vpop.f32.mrf.mxu1  ;;  %71 = vst.msk [vmem:[#allocation3] sm:$0x3] %vm10683_vm0, %v8634_v27  ;;  %v5271_v47 = vadd.f32 %v5270_v3, %v14486_v28  ;;  %v5331_v56 = vadd.f32 %v5330_v53, %v14485_v35  ;;  %v5466_v55 = vmul.f32 %v10372_v29, %v10372_v29  ;;  %v5550_v38 = vadd.f32 %v5549_v15, %v5479_v48  ;;  %v14493_v15 = vld [vmem:[#allocation49_spill] sm:$0xff] }
 0x890   :  { %v5610_v34 = vadd.f32 %v5609_v7, %v5462_v0  ;;  %72 = vst.msk [vmem:[#allocation4] sm:$0x3] %vm10683_vm0, %v8634_v27  ;;  %v4885_v60 = vadd.f32 %v10471_v10, %v4716_v17  ;;  %v4719_v52 = vadd.f32 %v10483_v32, %v4550_v2  ;;  %v4555_v36 = vadd.f32 %v10543_v25, %v14492_v4  ;;  %v14494_v17 = vld [vmem:[#allocation165_spill] sm:$0xff]  ;;  %v14496_v4 = vld [vmem:[#allocation50_spill] sm:$0xff] }
 0x891   :  { %v5272_v57 = vadd.f32 %v5271_v47, %v14490_v26  ;;  %v5332_v3 = vadd.f32 %v5331_v56, %v10345_v63  ;;  %v5468_v0 = vmul.f32 %v10399_v31, %v10399_v31  ;;  %v5551_v7 = vadd.f32 %v5550_v38, %v5481_v24 }
 0x892   :  { %v5611_v53 = vadd.f32 %v5610_v34, %v5464_v5  ;;  %v4888_v28 = vadd.f32 %v10503_v59, %v4719_v52  ;;  %v4721_v48 = vadd.f32 %v10515_v41, %v4552_v42  ;;  %v4557_v10 = vadd.f32 %v10575_v43, %v14493_v15  ;;  %v14495_v34 = vld [vmem:[#allocation166_spill] sm:$0xff] }
 0x893   :  { %v5273_v2 = vadd.f32 %v5272_v57, %v14494_v17  ;;  %v5483_v25 = vmul.f32 %v14494_v17, %v14494_v17  ;;  %v5333_v27 = vadd.f32 %v5332_v3, %v10372_v29  ;;  %v5470_v59 = vmul.f32 %v10426_v23, %v10426_v23 }
 0x894   :  { %v5612_v5 = vadd.f32 %v5611_v53, %v5466_v55  ;;  %v10721_v41 = vadd.f32 %v10477_v39, %v4885_v60  ;;  %v4890_v43 = vadd.f32 %v10535_v9, %v4721_v48  ;;  %v4724_v24 = vadd.f32 %v10547_v12, %v4555_v36  ;;  %v14497_v48 = vld [vmem:[#allocation51_spill] sm:$0xff] }
 0x895   :  { %v5485_v38 = vmul.f32 %v14495_v34, %v14495_v34  ;;  %v5334_v52 = vadd.f32 %v5333_v27, %v10399_v31  ;;  %v4560_v57 = vadd.f32 %v10607_v45, %v14496_v4  ;;  %v5472_v3 = vmul.f32 %v10455_v30, %v10455_v30 }
 0x896   :  { %v4902_v32 = vpop.f32.mrf.mxu2  ;;  %v4566_v56 = vpop.f32.mrf.mxu0  ;;  %v5613_v55 = vadd.f32 %v5612_v5, %v5468_v0  ;;  %v10733_v39 = vadd.f32 %v10509_v21, %v4888_v28  ;;  %v4893_v9 = vadd.f32 %v10567_v8, %v4724_v24  ;;  %v4726_v12 = vadd.f32 %v10579_v11, %v4557_v10  ;;  %v14500_v24 = vld [vmem:[#allocation53_spill] sm:$0xff] }
 0x897   :  { %v10716_v47 = vpop.f32.mrf.mxu3  ;;  %v4735_v42 = vpop.f32.mrf.mxu1  ;;  %v5552_v60 = vadd.f32 %v5551_v7, %v5483_v25  ;;  %v5274_v36 = vadd.f32 %v5273_v2, %v14495_v34  ;;  %v5335_v53 = vadd.f32 %v5334_v52, %v10426_v23  ;;  %v4562_v0 = vadd.f32 %v10639_v50, %v14497_v48  ;;  %v14498_v7 = vld [vmem:[#allocation52_spill] sm:$0xff]  ;;  %v14499_v2 = vld [vmem:[#allocation23_spill] sm:$0xff] }
 0x898   :  { %v5614_v15 = vadd.f32 %v5613_v55, %v5470_v59  ;;  %v5474_v45 = vmul.f32 %v10721_v41, %v10721_v41  ;;  %v10744_v27 = vadd.f32 %v10541_v44, %v4890_v43  ;;  %v4895_v21 = vadd.f32 %v10599_v62, %v4726_v12 }
 0x899   :  { %v5553_v8 = vadd.f32 %v5552_v60, %v5485_v38  ;;  %v5336_v11 = vadd.f32 %v5335_v53, %v10455_v30  ;;  %v4729_v28 = vadd.f32 %v10611_v1, %v4560_v57  ;;  %v4565_v10 = vadd.f32 %v10671_v40, %v14498_v7  ;;  %v14502_v60 = vld [vmem:[#allocation24_spill] sm:$0xff] }
 0x89a   :  { %v5487_v50 = vmul.f32 %v14499_v2, %v14499_v2  ;;  %v5615_v25 = vadd.f32 %v5614_v15, %v5472_v3  ;;  %v5476_v5 = vmul.f32 %v10733_v39, %v10733_v39  ;;  %v10756_v44 = vadd.f32 %v10573_v18, %v4893_v9 }
 0x89b   :  { %v5337_v62 = vadd.f32 %v5336_v11, %v10721_v41  ;;  %v4898_v43 = vadd.f32 %v10631_v22, %v4729_v28  ;;  %v4731_v1 = vadd.f32 %v10643_v58, %v4562_v0  ;;  %v4567_v38 = vadd.f32 %v4566_v56, %v14500_v24  ;;  %v14501_v58 = vld [vmem:[#allocation54_spill] sm:$0xff] }
 0x89c   :  { %v5275_v55 = vadd.f32 %v5274_v36, %v14499_v2  ;;  %v5616_v4 = vadd.f32 %v5615_v25, %v5474_v45  ;;  %v5478_v57 = vmul.f32 %v10744_v27, %v10744_v27  ;;  %v10766_v18 = vadd.f32 %v10605_v14, %v4895_v21  ;;  %v14503_v21 = vld [vmem:[#allocation25_spill] sm:$0xff] }
 0x89d   :  { %v5338_v3 = vadd.f32 %v5337_v62, %v10733_v39  ;;  %v4900_v9 = vadd.f32 %v10665_v54, %v4731_v1  ;;  %v4734_v22 = vadd.f32 %v10678_v6, %v4565_v10  ;;  %v5554_v56 = vadd.f32 %v5553_v8, %v5487_v50 }
 0x89e   :  { %v4904_v59 = vpop.f32.mrf.mxu2  ;;  %v4569_v52 = vpop.f32.mrf.mxu0  ;;  %v5489_v53 = vmul.f32 %v14502_v60, %v14502_v60  ;;  %v5617_v36 = vadd.f32 %v5616_v4, %v5476_v5  ;;  %v5480_v48 = vmul.f32 %v10756_v44, %v10756_v44  ;;  %v10778_v15 = vadd.f32 %v10637_v16, %v4898_v43 }
 0x89f   :  { %v5073_v40 = vpop.f32.mrf.mxu3  ;;  %v4570_v12 = vadd.f32 %v4569_v52, %v14501_v58  ;;  %v4738_v0 = vpop.f32.mrf.mxu1  ;;  %v5339_v14 = vadd.f32 %v5338_v3, %v10744_v27  ;;  %v4903_v45 = vadd.f32 %v4902_v32, %v4734_v22  ;;  %v4736_v54 = vadd.f32 %v4735_v42, %v4567_v38  ;;  %v14504_v42 = vld [vmem:[#allocation26_spill] sm:$0xff]  ;;  %v14505_v58 = vld [vmem:[#allocation55_spill] sm:$0xff] }
 0x8a0   :  { %v5276_v6 = vadd.f32 %v5275_v55, %v14502_v60  ;;  %v5491_v8 = vmul.f32 %v14503_v21, %v14503_v21  ;;  %v5618_v11 = vadd.f32 %v5617_v36, %v5478_v57  ;;  %v5482_v28 = vmul.f32 %v10766_v18, %v10766_v18 }
 0x8a1   :  { %v5340_v7 = vadd.f32 %v5339_v14, %v10756_v44  ;;  %v10787_v10 = vadd.f32 %v10669_v13, %v4900_v9  ;;  %v4905_v50 = vadd.f32 %v4904_v59, %v4736_v54  ;;  %v4739_v25 = vadd.f32 %v4738_v0, %v4570_v12 }
 0x8a2   :  { %v5555_v16 = vadd.f32 %v5554_v56, %v5489_v53  ;;  %v5277_v32 = vadd.f32 %v5276_v6, %v14503_v21  ;;  %v5493_v5 = vmul.f32 %v14504_v42, %v14504_v42  ;;  %v5619_v62 = vadd.f32 %v5618_v11, %v5480_v48 }
 0x8a3   :  { %v5341_v1 = vadd.f32 %v5340_v7, %v10766_v18  ;;  %v5484_v24 = vmul.f32 %v10778_v15, %v10778_v15  ;;  %v10796_v38 = vadd.f32 %v10716_v47, %v4903_v45  ;;  %v5486_v9 = vmul.f32 %v10787_v10, %v10787_v10 }
 0x8a4   :  { %v5556_v55 = vadd.f32 %v5555_v16, %v5491_v8  ;;  %v5278_v4 = vadd.f32 %v5277_v32, %v14504_v42  ;;  %v5620_v57 = vadd.f32 %v5619_v62, %v5482_v28  ;;  %v10802_v22 = vadd.f32 %v5073_v40, %v4905_v50 }
 0x8a5   :  { %v5342_v3 = vadd.f32 %v5341_v1, %v10778_v15  ;;  %v5488_v36 = vmul.f32 %v10796_v38, %v10796_v38 }
 0x8a6   :  { %v4907_v43 = vpop.f32.mrf.mxu2  ;;  %v4571_v59 = vpop.f32.mrf.mxu0  ;;  %v5557_v56 = vadd.f32 %v5556_v55, %v5493_v5  ;;  %v5621_v53 = vadd.f32 %v5620_v57, %v5484_v24  ;;  %v5279_v0 = vrot.slane %v5278_v4, 4  ;;  %v5490_v40 = vmul.f32 %v10802_v22, %v10802_v22 }
 0x8a7   :  { %v4908_v13 = vadd.f32 %v4907_v43, %v4739_v25  ;;  %v5076_v52 = vpop.f32.mrf.mxu3  ;;  %v4572_v12 = vadd.f32 %v4571_v59, %v14505_v58  ;;  %v5343_v47 = vadd.f32 %v5342_v3, %v10787_v10  ;;  %v4740_v14 = vpop.f32.mrf.mxu1 }
 0x8a8   :  { %v5622_v45 = vadd.f32 %v5621_v53, %v5486_v9  ;;  %v5558_v8 = vrot.slane %v5557_v56, 4  ;;  %v5280_v32 = vadd.f32 %v5279_v0, %v5278_v4 }
 0x8a9   :  { %v10808_v48 = vadd.f32 %v5076_v52, %v4908_v13  ;;  %v5344_v54 = vadd.f32 %v5343_v47, %v10796_v38  ;;  %v4741_v6 = vadd.f32 %v4740_v14, %v4572_v12 }
 0x8aa   :  { %v5623_v28 = vadd.f32 %v5622_v45, %v5488_v36  ;;  %v5559_v1 = vadd.f32 %v5558_v8, %v5557_v56  ;;  %v5281_v59 = vrot.slane %v5280_v32, 2 }
 0x8ab   :  { %v5345_v7 = vadd.f32 %v5344_v54, %v10802_v22  ;;  %v5492_v50 = vmul.f32 %v10808_v48, %v10808_v48 }
 0x8ac   :  { %v5624_v5 = vadd.f32 %v5623_v28, %v5490_v40  ;;  %v5560_v3 = vrot.slane %v5559_v1, 2  ;;  %v5282_v12 = vadd.f32 %v5281_v59, %v5280_v32 }
 0x8ad   :  { %v5346_v62 = vadd.f32 %v5345_v7, %v10808_v48 }
 0x8ae   :  { %v4909_v11 = vpop.f32.mrf.mxu2  ;;  %v5625_v24 = vadd.f32 %v5624_v5, %v5492_v50  ;;  %v5561_v47 = vadd.f32 %v5560_v3, %v5559_v1  ;;  %v5283_v14 = vrot.slane %v5282_v12, 1 }
 0x8af   :  { %v4910_v25 = vadd.f32 %v4909_v11, %v4741_v6  ;;  %v5078_v16 = vpop.f32.mrf.mxu3  ;;  %v5215_v11 = vld [vmem:[#allocation3] sm:$0x3] }
 0x8b0   :  { %v5562_v54 = vrot.slane %v5561_v47, 1  ;;  %v5284_v8 = vadd.f32 %v5283_v14, %v5282_v12 }
 0x8b1   :  { %v10817_v43 = vadd.f32 %v5078_v16, %v4910_v25  ;;  %v5366_v16 = vld [vmem:[#allocation4] sm:$0x3] }
 0x8b2   :  { %v5563_v50 = vadd.f32 %v5562_v54, %v5561_v47 }
 0x8b3   :  { %v5347_v13 = vadd.f32 %v5346_v62, %v10817_v43  ;;  %v5494_v52 = vmul.f32 %v10817_v43, %v10817_v43 }
 0x8b5   :  { %v5348_v55 = vrot.slane %v5347_v13, 4  ;;  %v5626_v57 = vadd.f32 %v5625_v24, %v5494_v52 }
 0x8b7   :  { %v5349_v9 = vadd.f32 %v5348_v55, %v5347_v13  ;;  %v5627_v58 = vrot.slane %v5626_v57, 4 }
 0x8b9   :  { %v5350_v4 = vrot.slane %v5349_v9, 2  ;;  %v5628_v53 = vadd.f32 %v5627_v58, %v5626_v57 }
 0x8bb   :  { %v5351_v36 = vadd.f32 %v5350_v4, %v5349_v9  ;;  %v5629_v0 = vrot.slane %v5628_v53, 2 }
 0x8bd   :  { %v5352_v56 = vrot.slane %v5351_v36, 1  ;;  %v5630_v45 = vadd.f32 %v5629_v0, %v5628_v53 }
 0x8bf   :  { %v5353_v40 = vadd.f32 %v5352_v56, %v5351_v36  ;;  %v5631_v6 = vrot.slane %v5630_v45, 1  ;;  %v5650_v36 = vld [vmem:[#allocation10] sm:$0x3]  ;;  %v5663_v56 = vld [vmem:[%s13225_s3] sm:$0x3]  ;;  %s8635_s3 = smov [#allocation11]  }
 0x8c0   :  { %s6576_s7 = sshll.u32 %s8635_s3, 4  ;;  %s6577_s7 = int_to_ptr.vmem [resolvable:$true] %s6576_s7 }
 0x8c1   :  { %v5356_v28 = vrot.slane %v5353_v40, 7  ;;  %v5632_v7 = vadd.f32 %v5631_v6, %v5630_v45 }
 0x8c3   :  { %v5358_v25 = vsel %vm5357_vm1, %v5284_v8, %v5356_v28  ;;  %v5635_v32 = vrot.slane %v5632_v7, 7  ;;  %v14506_v28 = vld [vmem:[#allocation199_spill] sm:$0xff] }
 0x8c4   :  { %v5360_v5 = vadd.f32 %v5358_v25, %v5215_v11 }
 0x8c5   :  { %v5636_v62 = vsel %vm5357_vm1, %v5563_v50, %v5635_v32  ;;  %v14507_v50 = vld [vmem:[#allocation56_spill] sm:$0xff] }
 0x8c6   :  { %5365 = vst.msk [vmem:[#allocation3] sm:$0x3] %vm10683_vm0, %v5360_v5  ;;  %v5638_v1 = vadd.f32 %v5636_v62, %v5366_v16  ;;  %v14508_v16 = vld [vmem:[#allocation202_spill] sm:$0xff]  ;;  %v14509_v5 = vld [vmem:[#allocation57_spill] sm:$0xff] }
 0x8c8   :  { %5639 = vst.msk [vmem:[#allocation4] sm:$0x3] %vm10683_vm0, %v5638_v1 }
 0x8cd   :  { %v5643_v24 = vld [vmem:[#allocation3] sm:$0x3] }
 0x8ce   :  { %v5644_v13 = vmul.f32 0.0078125, %v5643_v24 }
 0x8cf   :  { %v5645_v52 = vld [vmem:[#allocation4] sm:$0x3] }
 0x8d0   :  { %v5646_v59 = vmul.f32 0.0078125, %v5645_v52  ;;  %v5647_v55 = vmul.f32 %v5644_v13, %v5644_v13  ;;  %v14511_v52 = vld [vmem:[#allocation208_spill] sm:$0xff] }
 0x8d2   :  { %v5648_v57 = vsub.f32 %v5646_v59, %v5647_v55 }
 0x8d4   :  { %v5649_v3 = vmax.f32 %v5648_v57, 0.0  ;;  %v14512_v57 = vld [vmem:[#allocation209_spill] sm:$0xff] }
 0x8d6   :  { %v5651_v9 = vadd.f32 1e-05, %v5649_v3 }
 0x8d8   :  { %8523 = vrsqrt.f32 %v5651_v9  ;;  %vm5658_vm3 = vweird.f32 %v5651_v9 }
 0x8de   :  { %v8524_v58 = vpop.eup %8523 }
 0x8df   :  { %v5653_v12 = vmul.f32 %v8524_v58, %v5651_v9  ;;  %vm5659_vm2 = vweird.f32 %v8524_v58 }
 0x8e0   :  { %vm5660_vm4 = vmor %vm5658_vm3, %vm5659_vm2 }
 0x8e1   :  { %v5654_v4 = vmul.f32 %v8524_v58, %v5653_v12 }
 0x8e3   :  { %v5655_v53 = vmul.f32 0.5, %v5654_v4 }
 0x8e5   :  { %v5656_v47 = vsub.f32 1.5, %v5655_v53  ;;  %v14514_v53 = vld [vmem:[#allocation58_spill] sm:$0xff] }
 0x8e7   :  { %v5657_v0 = vmul.f32 %v8524_v58, %v5656_v47  ;;  %v14515_v47 = vld [vmem:[#allocation211_spill] sm:$0xff] }
 0x8e9   :  { %v5661_v46 = vsel %vm5660_vm4, %v8524_v58, %v5657_v0  ;;  %v14513_v58 = vld [vmem:[#allocation210_spill] sm:$0xff] }
 0x8ea   :  { %v5662_v14 = vmul.f32 %v5661_v46, %v5650_v36  ;;  %v14516_v0 = vld [vmem:[#allocation214_spill] sm:$0xff] }
 0x8ec   :  { %v5664_v45 = vmul.f32 %v5662_v14, %v5644_v13  ;;  %v10829_v54 = vperm.slane %v5662_v14, 0  ;;  %v10831_v40 = vperm.slane %v5662_v14, 1 }
 0x8ee   :  { %v5665_v6 = vsub.f32 %v5663_v56, %v5664_v45  ;;  %v5925_v8 = vmul.f32 %v10829_v54, %v14504_v42  ;;  %v5926_v11 = vmul.f32 %v10831_v40, %v10817_v43  ;;  %v10839_v7 = vmul.f32 %v10829_v54, %v14506_v28  ;;  %v14510_v42 = vld [vmem:[#allocation203_spill] sm:$0xff] }
 0x8ef   :  { %v10843_v25 = vmul.f32 %v10831_v40, %v14507_v50  ;;  %v10847_v32 = vmul.f32 %v10829_v54, %v14508_v16  ;;  %v10851_v62 = vmul.f32 %v10831_v40, %v14509_v5  ;;  %v10855_v1 = vmul.f32 %v10829_v54, %v14510_v42  ;;  %v14517_v56 = vld [vmem:[#allocation215_spill] sm:$0xff] }
 0x8f0   :  { %v10857_v43 = vperm.slane %v5665_v6, 0  ;;  %v10859_v24 = vperm.slane %v5665_v6, 1  ;;  %v10863_v13 = vmul.f32 %v10831_v40, %v10065_v19  ;;  %v10867_v59 = vmul.f32 %v10829_v54, %v14511_v52  ;;  %v14519_v50 = vld [vmem:[#allocation59_spill] sm:$0xff] }
 0x8f1   :  { %v10871_v55 = vmul.f32 %v10831_v40, %v10068_v61  ;;  %v10875_v3 = vmul.f32 %v10829_v54, %v14512_v57  ;;  %v10879_v9 = vmul.f32 %v10831_v40, %v10075_v33  ;;  %v10883_v19 = vmul.f32 %v10829_v54, %v14513_v58  ;;  %v14520_v16 = vld [vmem:[#allocation219_spill] sm:$0xff]  ;;  %v14521_v57 = vld [vmem:[#allocation60_spill] sm:$0xff] }
 0x8f2   :  { %v6058_v12 = vadd.f32 %v10857_v43, %v5925_v8  ;;  %v6059_v4 = vadd.f32 %v10859_v24, %v5926_v11  ;;  %v10889_v61 = vmul.f32 %v10831_v40, %v14514_v53  ;;  %v10893_v36 = vmul.f32 %v10829_v54, %v14515_v47  ;;  %v14518_v11 = vld [vmem:[#allocation218_spill] sm:$0xff] }
 0x8f3   :  { %v10897_v33 = vmul.f32 %v10831_v40, %v10085_v51  ;;  %v10901_v46 = vmul.f32 %v10829_v54, %v14516_v0  ;;  %v10905_v14 = vmul.f32 %v10831_v40, %v10088_v37  ;;  %v10909_v45 = vmul.f32 %v10829_v54, %v14517_v56  ;;  %v14523_v0 = vld [vmem:[#allocation61_spill] sm:$0xff] }
 0x8f4   :  { %vm6186_vm5 = vcmp.ge.f32.partialorder %v6058_v12, 0.0  ;;  %vm6187_vm6 = vcmp.ge.f32.partialorder %v6059_v4, 0.0  ;;  %v6314_v6 = vmul.f32 0.01, %v6058_v12  ;;  %v6315_v8 = vmul.f32 0.01, %v6059_v4 }
 0x8f5   :  { %v10913_v51 = vmul.f32 %v10831_v40, %v10095_v49  ;;  %v10917_v28 = vmul.f32 %v10829_v54, %v14518_v11  ;;  %v10921_v37 = vmul.f32 %v10831_v40, %v14519_v50  ;;  %v10925_v5 = vmul.f32 %v10829_v54, %v14520_v16  ;;  %v14522_v49 = vld [vmem:[#allocation224_spill] sm:$0xff]  ;;  %v14524_v11 = vld [vmem:[#allocation225_spill] sm:$0xff]  ;;  %v14525_v16 = vld [vmem:[#allocation62_spill] sm:$0xff] }
 0x8f6   :  { %v6442_v42 = vsel %vm6186_vm5, %v6058_v12, %v6314_v6  ;;  %v6443_v52 = vsel %vm6187_vm6, %v6059_v4, %v6315_v8  ;;  %v10929_v58 = vmul.f32 %v10831_v40, %v14521_v57  ;;  %v10933_v53 = vmul.f32 %v10829_v54, %v14522_v49  ;;  %v14527_v4 = vld [vmem:[#allocation226_spill] sm:$0xff]  ;;  %v14529_v8 = vld [vmem:[#allocation63_spill] sm:$0xff]  ;;  %v14533_v49 = vld [vmem:[#allocation64_spill] sm:$0xff] }
 0x8f7   :  { %v6507_v47 = vpack.c.bf16 %v6443_v52, %v6442_v42  ;;  %v10937_v56 = vmul.f32 %v10831_v40, %v14523_v0  ;;  %v10941_v50 = vmul.f32 %v10829_v54, %v14524_v11  ;;  %v10945_v12 = vmul.f32 %v10831_v40, %v14525_v16  ;;  %v14531_v42 = vld [vmem:[#allocation227_spill] sm:$0xff]  ;;  %v14534_v11 = vld [vmem:[#allocation230_spill] sm:$0xff] }
 0x8f8   :  { %v10949_v6 = vmul.f32 %v10829_v54, %v14527_v4  ;;  %v10953_v57 = vmul.f32 %v10831_v40, %v14529_v8  ;;  %v10957_v52 = vmul.f32 %v10829_v54, %v14531_v42  ;;  %v10961_v0 = vmul.f32 %v10831_v40, %v14533_v49 }
 0x8f9   :  { %14526 = vst [vmem:[#allocation98_spill] sm:$0xff] %v10945_v12  ;;  %v10965_v16 = vmul.f32 %v10829_v54, %v14534_v11  ;;  %v14536_v12 = vld [vmem:[#allocation65_spill] sm:$0xff] }
 0x8fa   :  { %14528 = vst [vmem:[#allocation99_spill] sm:$0xff] %v10949_v6  ;;  %v10969_v4 = vmul.f32 %v10831_v40, %v14536_v12  ;;  %v14538_v6 = vld [vmem:[#allocation231_spill] sm:$0xff] }
 0x8fb   :  { %14530 = vst [vmem:[#allocation100_spill] sm:$0xff] %v10953_v57  ;;  %v10973_v8 = vmul.f32 %v10829_v54, %v14538_v6  ;;  %v14540_v57 = vld [vmem:[#allocation66_spill] sm:$0xff] }
 0x8fc   :  { %14532 = vst [vmem:[#allocation101_spill] sm:$0xff] %v10957_v52  ;;  %v10977_v42 = vmul.f32 %v10831_v40, %v14540_v57  ;;  %v14542_v52 = vld [vmem:[#allocation234_spill] sm:$0xff] }
 0x8fd   :  { %6571 = vst [vmem:[#allocation11 + $0x1f8] sm:$0xff] %v6507_v47  ;;  %v10981_v49 = vmul.f32 %v10829_v54, %v14542_v52  ;;  %v14544_v47 = vld [vmem:[#allocation67_spill] sm:$0xff] }
 0x8fe   :  { %14535 = vst [vmem:[#allocation102_spill] sm:$0xff] %v10965_v16  ;;  %v10985_v11 = vmul.f32 %v10831_v40, %v14544_v47  ;;  %v14546_v16 = vld [vmem:[#allocation235_spill] sm:$0xff] }
 0x8ff   :  { %14537 = vst [vmem:[#allocation103_spill] sm:$0xff] %v10969_v4  ;;  %v10989_v12 = vmul.f32 %v10829_v54, %v14546_v16  ;;  %v14548_v4 = vld [vmem:[#allocation68_spill] sm:$0xff] }
 0x900   :  { %14539 = vst [vmem:[#allocation104_spill] sm:$0xff] %v10973_v8  ;;  %v10993_v6 = vmul.f32 %v10831_v40, %v14548_v4  ;;  %v14550_v8 = vld [vmem:[#allocation240_spill] sm:$0xff] }
 0x901   :  { %14541 = vst [vmem:[#allocation105_spill] sm:$0xff] %v10977_v42  ;;  %v10997_v57 = vmul.f32 %v10829_v54, %v14550_v8  ;;  %v14552_v42 = vld [vmem:[#allocation69_spill] sm:$0xff] }
 0x902   :  { %14543 = vst [vmem:[#allocation106_spill] sm:$0xff] %v10981_v49  ;;  %v11001_v52 = vmul.f32 %v10831_v40, %v14552_v42  ;;  %v14554_v49 = vld [vmem:[#allocation241_spill] sm:$0xff] }
 0x903   :  { %14545 = vst [vmem:[#allocation107_spill] sm:$0xff] %v10985_v11  ;;  %v11005_v47 = vmul.f32 %v10829_v54, %v14554_v49  ;;  %v14556_v11 = vld [vmem:[#allocation70_spill] sm:$0xff] }
 0x904   :  { %14547 = vst [vmem:[#allocation108_spill] sm:$0xff] %v10989_v12  ;;  %v11009_v16 = vmul.f32 %v10831_v40, %v14556_v11  ;;  %v14558_v12 = vld [vmem:[#allocation245_spill] sm:$0xff] }
 0x905   :  { %14549 = vst [vmem:[#allocation109_spill] sm:$0xff] %v10993_v6  ;;  %v11013_v4 = vmul.f32 %v10829_v54, %v14558_v12  ;;  %v14560_v6 = vld [vmem:[#allocation71_spill] sm:$0xff] }
 0x906   :  { %14551 = vst [vmem:[#allocation110_spill] sm:$0xff] %v10997_v57  ;;  %v11017_v8 = vmul.f32 %v10831_v40, %v14560_v6  ;;  %v14562_v57 = vld [vmem:[#allocation246_spill] sm:$0xff] }
 0x907   :  { %14553 = vst [vmem:[#allocation111_spill] sm:$0xff] %v11001_v52  ;;  %v11021_v42 = vmul.f32 %v10829_v54, %v14562_v57  ;;  %v14564_v52 = vld [vmem:[#allocation72_spill] sm:$0xff] }
 0x908   :  { %14555 = vst [vmem:[#allocation112_spill] sm:$0xff] %v11005_v47  ;;  %v11025_v49 = vmul.f32 %v10831_v40, %v14564_v52  ;;  %v14566_v47 = vld [vmem:[#allocation251_spill] sm:$0xff] }
 0x909   :  { %14557 = vst [vmem:[#allocation113_spill] sm:$0xff] %v11009_v16  ;;  %v11029_v11 = vmul.f32 %v10829_v54, %v14566_v47  ;;  %v14568_v16 = vld [vmem:[#allocation73_spill] sm:$0xff] }
 0x90a   :  { %14559 = vst [vmem:[#allocation114_spill] sm:$0xff] %v11013_v4  ;;  %v11033_v12 = vmul.f32 %v10831_v40, %v14568_v16  ;;  %v14570_v4 = vld [vmem:[#allocation252_spill] sm:$0xff] }
 0x90b   :  { %14561 = vst [vmem:[#allocation115_spill] sm:$0xff] %v11017_v8  ;;  %v11037_v6 = vmul.f32 %v10829_v54, %v14570_v4  ;;  %v14572_v8 = vld [vmem:[#allocation74_spill] sm:$0xff] }
 0x90c   :  { %14563 = vst [vmem:[#allocation116_spill] sm:$0xff] %v11021_v42  ;;  %v11041_v57 = vmul.f32 %v10831_v40, %v14572_v8  ;;  %v14574_v42 = vld [vmem:[#allocation257_spill] sm:$0xff] }
 0x90d   :  { %14565 = vst [vmem:[#allocation117_spill] sm:$0xff] %v11025_v49  ;;  %v11045_v52 = vmul.f32 %v10829_v54, %v14574_v42  ;;  %v14576_v49 = vld [vmem:[#allocation75_spill] sm:$0xff] }
 0x90e   :  { %14567 = vst [vmem:[#allocation118_spill] sm:$0xff] %v11029_v11  ;;  %v11049_v47 = vmul.f32 %v10831_v40, %v14576_v49  ;;  %v14578_v11 = vld [vmem:[#allocation258_spill] sm:$0xff] }
 0x90f   :  { %14569 = vst [vmem:[#allocation119_spill] sm:$0xff] %v11033_v12  ;;  %v11053_v16 = vmul.f32 %v10829_v54, %v14578_v11  ;;  %v14580_v12 = vld [vmem:[#allocation76_spill] sm:$0xff] }
 0x910   :  { %14571 = vst [vmem:[#allocation120_spill] sm:$0xff] %v11037_v6  ;;  %v11057_v4 = vmul.f32 %v10831_v40, %v14580_v12  ;;  %v14582_v6 = vld [vmem:[#allocation263_spill] sm:$0xff] }
 0x911   :  { %14573 = vst [vmem:[#allocation121_spill] sm:$0xff] %v11041_v57  ;;  %v11061_v8 = vmul.f32 %v10829_v54, %v14582_v6  ;;  %v14584_v57 = vld [vmem:[#allocation77_spill] sm:$0xff] }
 0x912   :  { %14575 = vst [vmem:[#allocation122_spill] sm:$0xff] %v11045_v52  ;;  %v11065_v42 = vmul.f32 %v10831_v40, %v14584_v57  ;;  %v14586_v52 = vld [vmem:[#allocation264_spill] sm:$0xff] }
 0x913   :  { %14577 = vst [vmem:[#allocation123_spill] sm:$0xff] %v11049_v47  ;;  %v11069_v49 = vmul.f32 %v10829_v54, %v14586_v52  ;;  %v14588_v47 = vld [vmem:[#allocation78_spill] sm:$0xff] }
 0x914   :  { %14579 = vst [vmem:[#allocation124_spill] sm:$0xff] %v11053_v16  ;;  %v11073_v11 = vmul.f32 %v10831_v40, %v14588_v47  ;;  %v14590_v16 = vld [vmem:[#allocation269_spill] sm:$0xff] }
 0x915   :  { %14581 = vst [vmem:[#allocation125_spill] sm:$0xff] %v11057_v4  ;;  %v11077_v12 = vmul.f32 %v10829_v54, %v14590_v16  ;;  %v14592_v4 = vld [vmem:[#allocation79_spill] sm:$0xff] }
 0x916   :  { %14583 = vst [vmem:[#allocation126_spill] sm:$0xff] %v11061_v8  ;;  %v11081_v6 = vmul.f32 %v10831_v40, %v14592_v4  ;;  %v14594_v8 = vld [vmem:[#allocation270_spill] sm:$0xff] }
 0x917   :  { %14585 = vst [vmem:[#allocation127_spill] sm:$0xff] %v11065_v42  ;;  %v11085_v57 = vmul.f32 %v10829_v54, %v14594_v8  ;;  %v14596_v42 = vld [vmem:[#allocation80_spill] sm:$0xff] }
 0x918   :  { %14587 = vst [vmem:[#allocation128_spill] sm:$0xff] %v11069_v49  ;;  %v11089_v52 = vmul.f32 %v10831_v40, %v14596_v42  ;;  %v14598_v49 = vld [vmem:[#allocation275_spill] sm:$0xff] }
 0x919   :  { %14589 = vst [vmem:[#allocation129_spill] sm:$0xff] %v11073_v11  ;;  %v11093_v47 = vmul.f32 %v10829_v54, %v14598_v49  ;;  %v14600_v11 = vld [vmem:[#allocation81_spill] sm:$0xff] }
 0x91a   :  { %14591 = vst [vmem:[#allocation130_spill] sm:$0xff] %v11077_v12  ;;  %v11097_v16 = vmul.f32 %v10831_v40, %v14600_v11  ;;  %v14602_v12 = vld [vmem:[#allocation276_spill] sm:$0xff] }
 0x91b   :  { %14593 = vst [vmem:[#allocation131_spill] sm:$0xff] %v11081_v6  ;;  %v11101_v4 = vmul.f32 %v10829_v54, %v14602_v12  ;;  %v14604_v6 = vld [vmem:[#allocation82_spill] sm:$0xff] }
 0x91c   :  { %14595 = vst [vmem:[#allocation132_spill] sm:$0xff] %v11085_v57  ;;  %v11105_v8 = vmul.f32 %v10831_v40, %v14604_v6  ;;  %v14606_v57 = vld [vmem:[#allocation281_spill] sm:$0xff] }
 0x91d   :  { %14597 = vst [vmem:[#allocation133_spill] sm:$0xff] %v11089_v52  ;;  %v11109_v42 = vmul.f32 %v10829_v54, %v14606_v57  ;;  %v14608_v52 = vld [vmem:[#allocation83_spill] sm:$0xff] }
 0x91e   :  { %14599 = vst [vmem:[#allocation134_spill] sm:$0xff] %v11093_v47  ;;  %v11113_v49 = vmul.f32 %v10831_v40, %v14608_v52  ;;  %v14610_v47 = vld [vmem:[#allocation282_spill] sm:$0xff] }
 0x91f   :  { %14601 = vst [vmem:[#allocation137_spill] sm:$0xff] %v11097_v16  ;;  %v11117_v11 = vmul.f32 %v10829_v54, %v14610_v47  ;;  %v14612_v16 = vld [vmem:[#allocation84_spill] sm:$0xff] }
 0x920   :  { %14603 = vst [vmem:[#allocation138_spill] sm:$0xff] %v11101_v4  ;;  %v11121_v12 = vmul.f32 %v10831_v40, %v14612_v16  ;;  %v14614_v4 = vld [vmem:[#allocation287_spill] sm:$0xff] }
 0x921   :  { %14605 = vst [vmem:[#allocation139_spill] sm:$0xff] %v11105_v8  ;;  %v11125_v6 = vmul.f32 %v10829_v54, %v14614_v4  ;;  %v14616_v8 = vld [vmem:[#allocation85_spill] sm:$0xff] }
 0x922   :  { %14607 = vst [vmem:[#allocation140_spill] sm:$0xff] %v11109_v42  ;;  %v11129_v57 = vmul.f32 %v10831_v40, %v14616_v8  ;;  %v14618_v42 = vld [vmem:[#allocation288_spill] sm:$0xff] }
 0x923   :  { %14609 = vst [vmem:[#allocation143_spill] sm:$0xff] %v11113_v49  ;;  %v11133_v52 = vmul.f32 %v10829_v54, %v14618_v42  ;;  %v14620_v49 = vld [vmem:[#allocation86_spill] sm:$0xff] }
 0x924   :  { %14611 = vst [vmem:[#allocation144_spill] sm:$0xff] %v11117_v11  ;;  %v11137_v47 = vmul.f32 %v10831_v40, %v14620_v49  ;;  %v14622_v11 = vld [vmem:[#allocation293_spill] sm:$0xff] }
 0x925   :  { %14613 = vst [vmem:[#allocation145_spill] sm:$0xff] %v11121_v12  ;;  %v11141_v16 = vmul.f32 %v10829_v54, %v14622_v11  ;;  %v14624_v12 = vld [vmem:[#allocation87_spill] sm:$0xff] }
 0x926   :  { %14615 = vst [vmem:[#allocation146_spill] sm:$0xff] %v11125_v6  ;;  %v11145_v4 = vmul.f32 %v10831_v40, %v14624_v12  ;;  %v14626_v6 = vld [vmem:[#allocation294_spill] sm:$0xff] }
 0x927   :  { %14617 = vst [vmem:[#allocation149_spill] sm:$0xff] %v11129_v57  ;;  %v11149_v8 = vmul.f32 %v10829_v54, %v14626_v6  ;;  %v14628_v57 = vld [vmem:[#allocation88_spill] sm:$0xff] }
 0x928   :  { %14619 = vst [vmem:[#allocation150_spill] sm:$0xff] %v11133_v52  ;;  %v11153_v42 = vmul.f32 %v10831_v40, %v14628_v57  ;;  %v14630_v52 = vld [vmem:[#allocation299_spill] sm:$0xff] }
 0x929   :  { %14621 = vst [vmem:[#allocation151_spill] sm:$0xff] %v11137_v47  ;;  %v11157_v49 = vmul.f32 %v10829_v54, %v14630_v52  ;;  %v14632_v47 = vld [vmem:[#allocation89_spill] sm:$0xff] }
 0x92a   :  { %14623 = vst [vmem:[#allocation152_spill] sm:$0xff] %v11141_v16  ;;  %v11161_v11 = vmul.f32 %v10831_v40, %v14632_v47  ;;  %v14634_v16 = vld [vmem:[#allocation135_spill] sm:$0xff] }
 0x92b   :  { %14625 = vst [vmem:[#allocation155_spill] sm:$0xff] %v11145_v4  ;;  %v11165_v12 = vmul.f32 %v10829_v54, %v14634_v16  ;;  %v14636_v4 = vld [vmem:[#allocation90_spill] sm:$0xff] }
 0x92c   :  { %14627 = vst [vmem:[#allocation156_spill] sm:$0xff] %v11149_v8  ;;  %v11169_v6 = vmul.f32 %v10831_v40, %v14636_v4  ;;  %v14638_v8 = vld [vmem:[#allocation303_spill] sm:$0xff] }
 0x92d   :  { %14629 = vst [vmem:[#allocation157_spill] sm:$0xff] %v11153_v42  ;;  %v11173_v57 = vmul.f32 %v10829_v54, %v14638_v8  ;;  %v14640_v42 = vld [vmem:[#allocation91_spill] sm:$0xff] }
 0x92e   :  { %14631 = vst [vmem:[#allocation158_spill] sm:$0xff] %v11157_v49  ;;  %v11177_v52 = vmul.f32 %v10831_v40, %v14640_v42  ;;  %v14642_v49 = vld [vmem:[#allocation141_spill] sm:$0xff] }
 0x92f   :  { %14633 = vst [vmem:[#allocation161_spill] sm:$0xff] %v11161_v11  ;;  %v11181_v47 = vmul.f32 %v10829_v54, %v14642_v49  ;;  %v14644_v11 = vld [vmem:[#allocation92_spill] sm:$0xff] }
 0x930   :  { %14635 = vst [vmem:[#allocation162_spill] sm:$0xff] %v11165_v12  ;;  %v11185_v16 = vmul.f32 %v10831_v40, %v14644_v11  ;;  %v14646_v12 = vld [vmem:[#allocation307_spill] sm:$0xff] }
 0x931   :  { %14637 = vst [vmem:[#allocation163_spill] sm:$0xff] %v11169_v6  ;;  %v11189_v4 = vmul.f32 %v10829_v54, %v14646_v12  ;;  %v14648_v6 = vld [vmem:[#allocation93_spill] sm:$0xff] }
 0x932   :  { %14639 = vst [vmem:[#allocation164_spill] sm:$0xff] %v11173_v57  ;;  %v11193_v8 = vmul.f32 %v10831_v40, %v14648_v6  ;;  %v14649_v57 = vld [vmem:[#allocation147_spill] sm:$0xff] }
 0x933   :  { %14641 = vst [vmem:[#allocation167_spill] sm:$0xff] %v11177_v52  ;;  %v11197_v42 = vmul.f32 %v10829_v54, %v14649_v57  ;;  %v14651_v52 = vld [vmem:[#allocation94_spill] sm:$0xff]  ;;  %v11217_v57 = vmul.f32 %v10831_v40, %v14482_v20 }
 0x934   :  { %14643 = vst [vmem:[#allocation168_spill] sm:$0xff] %v11181_v47  ;;  %v11201_v49 = vmul.f32 %v10831_v40, %v14651_v52  ;;  %v14652_v47 = vld [vmem:[#allocation311_spill] sm:$0xff] }
 0x935   :  { %14645 = vst [vmem:[#allocation169_spill] sm:$0xff] %v11185_v16  ;;  %v11205_v11 = vmul.f32 %v10829_v54, %v14652_v47  ;;  %v14654_v16 = vld [vmem:[#allocation95_spill] sm:$0xff]  ;;  %v11225_v47 = vmul.f32 %v10831_v40, %v14485_v35 }
 0x936   :  { %14647 = vst [vmem:[#allocation170_spill] sm:$0xff] %v11189_v4  ;;  %v11209_v12 = vmul.f32 %v10831_v40, %v14654_v16  ;;  %v14655_v4 = vld [vmem:[#allocation153_spill] sm:$0xff] }
 0x937   :  { %14650 = vst [vmem:[#allocation173_spill] sm:$0xff] %v11197_v42  ;;  %v11213_v6 = vmul.f32 %v10829_v54, %v14655_v4  ;;  %v14657_v42 = vld [vmem:[#allocation154_spill] sm:$0xff]  ;;  %v11233_v4 = vmul.f32 %v10831_v40, %v10345_v63 }
 0x938   :  { %14653 = vst [vmem:[#allocation174_spill] sm:$0xff] %v11205_v11  ;;  %v11221_v52 = vmul.f32 %v10829_v54, %v14657_v42  ;;  %v14659_v11 = vld [vmem:[#allocation15_spill] sm:$0xff]  ;;  %v11241_v42 = vmul.f32 %v10831_v40, %v10372_v29 }
 0x939   :  { %14656 = vst [vmem:[#allocation175_spill] sm:$0xff] %v11213_v6  ;;  %v11229_v16 = vmul.f32 %v10829_v54, %v14659_v11  ;;  %v14661_v6 = vld [vmem:[#allocation16_spill] sm:$0xff]  ;;  %v11249_v11 = vmul.f32 %v10831_v40, %v10399_v31 }
 0x93a   :  { %14658 = vst [vmem:[#allocation176_spill] sm:$0xff] %v11221_v52  ;;  %v11237_v20 = vmul.f32 %v10829_v54, %v14661_v6  ;;  %v14663_v52 = vld [vmem:[#allocation17_spill] sm:$0xff]  ;;  %v11257_v6 = vmul.f32 %v10831_v40, %v10426_v23 }
 0x93b   :  { %14660 = vst [vmem:[#allocation179_spill] sm:$0xff] %v11229_v16  ;;  %v11245_v35 = vmul.f32 %v10829_v54, %v14663_v52  ;;  %v14665_v16 = vld [vmem:[#allocation18_spill] sm:$0xff]  ;;  %v11265_v52 = vmul.f32 %v10831_v40, %v10455_v30 }
 0x93c   :  { %14662 = vst [vmem:[#allocation180_spill] sm:$0xff] %v11237_v20  ;;  %v11253_v63 = vmul.f32 %v10829_v54, %v14665_v16  ;;  %v14667_v20 = vld [vmem:[#allocation159_spill] sm:$0xff]  ;;  %v11273_v16 = vmul.f32 %v10831_v40, %v10721_v41 }
 0x93d   :  { %14664 = vst [vmem:[#allocation181_spill] sm:$0xff] %v11245_v35  ;;  %v11261_v29 = vmul.f32 %v10829_v54, %v14667_v20  ;;  %v14669_v35 = vld [vmem:[#allocation160_spill] sm:$0xff]  ;;  %v11281_v20 = vmul.f32 %v10831_v40, %v10733_v39  ;;  %v11301_v39 = vmul.f32 %v10829_v54, %v14490_v26  ;;  %v11321_v26 = vmul.f32 %v10831_v40, %v10787_v10 }
 0x93e   :  { %14666 = vst [vmem:[#allocation182_spill] sm:$0xff] %v11253_v63  ;;  %v11269_v31 = vmul.f32 %v10829_v54, %v14669_v35  ;;  %v14671_v63 = vld [vmem:[#allocation19_spill] sm:$0xff]  ;;  %v11289_v35 = vmul.f32 %v10831_v40, %v10744_v27  ;;  %v11309_v27 = vmul.f32 %v10829_v54, %v14494_v17  ;;  %v11329_v17 = vmul.f32 %v10831_v40, %v10796_v38 }
 0x93f   :  { %14668 = vst [vmem:[#allocation185_spill] sm:$0xff] %v11261_v29  ;;  %v11277_v23 = vmul.f32 %v10829_v54, %v14671_v63  ;;  %v14672_v29 = vld [vmem:[#allocation20_spill] sm:$0xff]  ;;  %v11297_v63 = vmul.f32 %v10831_v40, %v10756_v44  ;;  %v11317_v44 = vmul.f32 %v10829_v54, %v14495_v34  ;;  %v11337_v34 = vmul.f32 %v10831_v40, %v10802_v22 }
 0x940   :  { %14670 = vst [vmem:[#allocation186_spill] sm:$0xff] %v11269_v31  ;;  %v11285_v30 = vmul.f32 %v10829_v54, %v14672_v29  ;;  %v14673_v31 = vld [vmem:[#allocation21_spill] sm:$0xff]  ;;  %v11305_v29 = vmul.f32 %v10831_v40, %v10766_v18  ;;  %v11325_v18 = vmul.f32 %v10829_v54, %v14499_v2  ;;  %v11341_v10 = vmul.f32 %v10829_v54, %v14503_v21 }
 0x941   :  { %v11293_v41 = vmul.f32 %v10829_v54, %v14673_v31  ;;  %v11313_v31 = vmul.f32 %v10831_v40, %v10778_v15  ;;  %v11333_v15 = vmul.f32 %v10829_v54, %v14502_v60  ;;  %v11345_v2 = vmul.f32 %v10831_v40, %v10808_v48 }
 0x942   :  { %v11349_v38 = vadd.f32 %v10857_v43, %v10839_v7  ;;  %v11353_v60 = vadd.f32 %v10859_v24, %v10843_v25  ;;  %v11357_v22 = vadd.f32 %v10857_v43, %v10847_v32  ;;  %v11361_v21 = vadd.f32 %v10859_v24, %v10851_v62 }
 0x943   :  { %v11365_v48 = vadd.f32 %v10857_v43, %v10855_v1  ;;  %v11369_v54 = vadd.f32 %v10859_v24, %v10863_v13  ;;  %v11373_v40 = vadd.f32 %v10857_v43, %v10867_v59  ;;  %v11377_v7 = vadd.f32 %v10859_v24, %v10871_v55 }
 0x944   :  { %v11381_v25 = vadd.f32 %v10857_v43, %v10875_v3  ;;  %v11385_v32 = vadd.f32 %v10859_v24, %v10879_v9  ;;  %v11389_v62 = vadd.f32 %v10857_v43, %v10883_v19  ;;  %v11393_v1 = vadd.f32 %v10859_v24, %v10889_v61 }
 0x945   :  { %v11397_v13 = vadd.f32 %v10857_v43, %v10893_v36  ;;  %v11401_v59 = vadd.f32 %v10859_v24, %v10897_v33  ;;  %v11405_v55 = vadd.f32 %v10857_v43, %v10901_v46  ;;  %v11409_v3 = vadd.f32 %v10859_v24, %v10905_v14 }
 0x946   :  { %v11413_v9 = vadd.f32 %v10857_v43, %v10909_v45  ;;  %v11417_v19 = vadd.f32 %v10859_v24, %v10913_v51  ;;  %v11421_v61 = vadd.f32 %v10857_v43, %v10917_v28  ;;  %v11425_v36 = vadd.f32 %v10859_v24, %v10921_v37  ;;  %v14677_v28 = vld [vmem:[#allocation98_spill] sm:$0xff] }
 0x947   :  { %v11429_v33 = vadd.f32 %v10857_v43, %v10925_v5  ;;  %v11433_v46 = vadd.f32 %v10859_v24, %v10929_v58  ;;  %v11437_v14 = vadd.f32 %v10857_v43, %v10933_v53  ;;  %v11441_v45 = vadd.f32 %v10859_v24, %v10937_v56  ;;  %v14679_v5 = vld [vmem:[#allocation99_spill] sm:$0xff] }
 0x948   :  { %v11445_v51 = vadd.f32 %v10857_v43, %v10941_v50  ;;  %v11449_v37 = vadd.f32 %v10859_v24, %v14677_v28  ;;  %v11453_v58 = vadd.f32 %v10857_v43, %v14679_v5  ;;  %v11465_v50 = vadd.f32 %v10859_v24, %v10961_v0 }
 0x949   :  { %14674 = vst [vmem:[#allocation187_spill] sm:$0xff] %v11433_v46  ;;  %v14681_v46 = vld [vmem:[#allocation100_spill] sm:$0xff]  ;;  %vm6060_vm7 = vcmp.ge.f32.partialorder %v11349_v38, 0.0  ;;  %vm6061_vm8 = vcmp.ge.f32.partialorder %v11353_v60, 0.0  ;;  %vm6062_vm9 = vcmp.ge.f32.partialorder %v11357_v22, 0.0  ;;  %vm6063_vm10 = vcmp.ge.f32.partialorder %v11361_v21, 0.0 }
 0x94a   :  { %14675 = vst [vmem:[#allocation188_spill] sm:$0xff] %v11437_v14  ;;  %v11457_v53 = vadd.f32 %v10859_v24, %v14681_v46  ;;  %v14683_v14 = vld [vmem:[#allocation101_spill] sm:$0xff]  ;;  %vm6064_vm11 = vcmp.ge.f32.partialorder %v11365_v48, 0.0  ;;  %vm6065_vm12 = vcmp.ge.f32.partialorder %v11369_v54, 0.0  ;;  %vm6066_vm13 = vcmp.ge.f32.partialorder %v11373_v40, 0.0 }
 0x94b   :  { %14676 = vst [vmem:[#allocation191_spill] sm:$0xff] %v11445_v51  ;;  %v11461_v56 = vadd.f32 %v10857_v43, %v14683_v14  ;;  %v14686_v51 = vld [vmem:[#allocation102_spill] sm:$0xff]  ;;  %vm6067_vm14 = vcmp.ge.f32.partialorder %v11377_v7, 0.0  ;;  %vm6068_vm15 = vcmp.ge.f32.partialorder %v11381_v25, 0.0  ;;  %vm6069_vm0 = vcmp.ge.f32.partialorder %v11385_v32, 0.0 }
 0x94c   :  { %14678 = vst [vmem:[#allocation192_spill] sm:$0xff] %v11449_v37  ;;  %v11469_v28 = vadd.f32 %v10857_v43, %v14686_v51  ;;  %v14688_v37 = vld [vmem:[#allocation103_spill] sm:$0xff]  ;;  %vm6070_vm1 = vcmp.ge.f32.partialorder %v11389_v62, 0.0  ;;  %vm6071_vm2 = vcmp.ge.f32.partialorder %v11393_v1, 0.0  ;;  %vm6072_vm3 = vcmp.ge.f32.partialorder %v11397_v13, 0.0 }
 0x94d   :  { %14680 = vst [vmem:[#allocation193_spill] sm:$0xff] %v11453_v58  ;;  %v11473_v5 = vadd.f32 %v10859_v24, %v14688_v37  ;;  %v14690_v58 = vld [vmem:[#allocation104_spill] sm:$0xff]  ;;  %vm6073_vm4 = vcmp.ge.f32.partialorder %v11401_v59, 0.0  ;;  %vm6074_vm5 = vcmp.ge.f32.partialorder %v11405_v55, 0.0  ;;  %vm6075_vm6 = vcmp.ge.f32.partialorder %v11409_v3, 0.0 }
 0x94e   :  { %14682 = vst [vmem:[#allocation194_spill] sm:$0xff] %v11457_v53  ;;  %v11477_v46 = vadd.f32 %v10857_v43, %v14690_v58  ;;  %v14692_v53 = vld [vmem:[#allocation105_spill] sm:$0xff] }
 0x94f   :  { %14684 = vst [vmem:[#allocation195_spill] sm:$0xff] %v11461_v56  ;;  %v11481_v14 = vadd.f32 %v10859_v24, %v14692_v53  ;;  %v14694_v56 = vld [vmem:[#allocation106_spill] sm:$0xff] }
 0x950   :  { %14685 = vst [vmem:[#allocation196_spill] sm:$0xff] %v11465_v50  ;;  %v11485_v0 = vadd.f32 %v10857_v43, %v14694_v56  ;;  %v14696_v50 = vld [vmem:[#allocation107_spill] sm:$0xff] }
 0x951   :  { %14687 = vst [vmem:[#allocation197_spill] sm:$0xff] %v11469_v28  ;;  %v11489_v51 = vadd.f32 %v10859_v24, %v14696_v50  ;;  %v14698_v28 = vld [vmem:[#allocation108_spill] sm:$0xff] }
 0x952   :  { %14689 = vst [vmem:[#allocation198_spill] sm:$0xff] %v11473_v5  ;;  %v11493_v37 = vadd.f32 %v10857_v43, %v14698_v28  ;;  %v14700_v5 = vld [vmem:[#allocation109_spill] sm:$0xff] }
 0x953   :  { %14691 = vst [vmem:[#allocation200_spill] sm:$0xff] %v11477_v46  ;;  %v11497_v58 = vadd.f32 %v10859_v24, %v14700_v5  ;;  %v14702_v46 = vld [vmem:[#allocation110_spill] sm:$0xff] }
 0x954   :  { %14693 = vst [vmem:[#allocation201_spill] sm:$0xff] %v11481_v14  ;;  %v11501_v53 = vadd.f32 %v10857_v43, %v14702_v46  ;;  %v14704_v14 = vld [vmem:[#allocation111_spill] sm:$0xff] }
 0x955   :  { %14695 = vst [vmem:[#allocation204_spill] sm:$0xff] %v11485_v0  ;;  %v11505_v56 = vadd.f32 %v10859_v24, %v14704_v14  ;;  %v14706_v0 = vld [vmem:[#allocation112_spill] sm:$0xff] }
 0x956   :  { %14697 = vst [vmem:[#allocation205_spill] sm:$0xff] %v11489_v51  ;;  %v11509_v50 = vadd.f32 %v10857_v43, %v14706_v0  ;;  %v14708_v51 = vld [vmem:[#allocation113_spill] sm:$0xff] }
 0x957   :  { %14699 = vst [vmem:[#allocation206_spill] sm:$0xff] %v11493_v37  ;;  %v11513_v28 = vadd.f32 %v10859_v24, %v14708_v51  ;;  %v14710_v37 = vld [vmem:[#allocation114_spill] sm:$0xff] }
 0x958   :  { %14701 = vst [vmem:[#allocation207_spill] sm:$0xff] %v11497_v58  ;;  %v11517_v5 = vadd.f32 %v10857_v43, %v14710_v37  ;;  %v14712_v58 = vld [vmem:[#allocation115_spill] sm:$0xff] }
 0x959   :  { %14703 = vst [vmem:[#allocation212_spill] sm:$0xff] %v11501_v53  ;;  %v11521_v46 = vadd.f32 %v10859_v24, %v14712_v58  ;;  %v14714_v53 = vld [vmem:[#allocation116_spill] sm:$0xff] }
 0x95a   :  { %14705 = vst [vmem:[#allocation213_spill] sm:$0xff] %v11505_v56  ;;  %v11525_v14 = vadd.f32 %v10857_v43, %v14714_v53  ;;  %v14716_v56 = vld [vmem:[#allocation117_spill] sm:$0xff] }
 0x95b   :  { %14707 = vst [vmem:[#allocation216_spill] sm:$0xff] %v11509_v50  ;;  %v11529_v0 = vadd.f32 %v10859_v24, %v14716_v56  ;;  %v14718_v50 = vld [vmem:[#allocation118_spill] sm:$0xff] }
 0x95c   :  { %14709 = vst [vmem:[#allocation217_spill] sm:$0xff] %v11513_v28  ;;  %v11533_v51 = vadd.f32 %v10857_v43, %v14718_v50  ;;  %v14720_v28 = vld [vmem:[#allocation119_spill] sm:$0xff] }
 0x95d   :  { %14711 = vst [vmem:[#allocation220_spill] sm:$0xff] %v11517_v5  ;;  %v11537_v37 = vadd.f32 %v10859_v24, %v14720_v28  ;;  %v14722_v5 = vld [vmem:[#allocation120_spill] sm:$0xff] }
 0x95e   :  { %14713 = vst [vmem:[#allocation221_spill] sm:$0xff] %v11521_v46  ;;  %v11541_v58 = vadd.f32 %v10857_v43, %v14722_v5  ;;  %v14724_v46 = vld [vmem:[#allocation121_spill] sm:$0xff] }
 0x95f   :  { %14715 = vst [vmem:[#allocation222_spill] sm:$0xff] %v11525_v14  ;;  %v11545_v53 = vadd.f32 %v10859_v24, %v14724_v46  ;;  %v14726_v14 = vld [vmem:[#allocation122_spill] sm:$0xff] }
 0x960   :  { %14717 = vst [vmem:[#allocation223_spill] sm:$0xff] %v11529_v0  ;;  %v11549_v56 = vadd.f32 %v10857_v43, %v14726_v14  ;;  %v14728_v0 = vld [vmem:[#allocation123_spill] sm:$0xff] }
 0x961   :  { %14719 = vst [vmem:[#allocation228_spill] sm:$0xff] %v11533_v51  ;;  %v11553_v50 = vadd.f32 %v10859_v24, %v14728_v0  ;;  %v14730_v51 = vld [vmem:[#allocation124_spill] sm:$0xff] }
 0x962   :  { %14721 = vst [vmem:[#allocation229_spill] sm:$0xff] %v11537_v37  ;;  %v11557_v28 = vadd.f32 %v10857_v43, %v14730_v51  ;;  %v14732_v37 = vld [vmem:[#allocation125_spill] sm:$0xff] }
 0x963   :  { %14723 = vst [vmem:[#allocation232_spill] sm:$0xff] %v11541_v58  ;;  %v11561_v5 = vadd.f32 %v10859_v24, %v14732_v37  ;;  %v14734_v58 = vld [vmem:[#allocation126_spill] sm:$0xff] }
 0x964   :  { %14725 = vst [vmem:[#allocation233_spill] sm:$0xff] %v11545_v53  ;;  %v11565_v46 = vadd.f32 %v10857_v43, %v14734_v58  ;;  %v14736_v53 = vld [vmem:[#allocation127_spill] sm:$0xff] }
 0x965   :  { %14727 = vst [vmem:[#allocation236_spill] sm:$0xff] %v11549_v56  ;;  %v11569_v14 = vadd.f32 %v10859_v24, %v14736_v53  ;;  %v14738_v56 = vld [vmem:[#allocation128_spill] sm:$0xff] }
 0x966   :  { %14729 = vst [vmem:[#allocation237_spill] sm:$0xff] %v11553_v50  ;;  %v11573_v0 = vadd.f32 %v10857_v43, %v14738_v56  ;;  %v14740_v50 = vld [vmem:[#allocation129_spill] sm:$0xff] }
 0x967   :  { %14731 = vst [vmem:[#allocation238_spill] sm:$0xff] %v11557_v28  ;;  %v11577_v51 = vadd.f32 %v10859_v24, %v14740_v50  ;;  %v14742_v28 = vld [vmem:[#allocation130_spill] sm:$0xff] }
 0x968   :  { %14733 = vst [vmem:[#allocation239_spill] sm:$0xff] %v11561_v5  ;;  %v11581_v37 = vadd.f32 %v10857_v43, %v14742_v28  ;;  %v14744_v5 = vld [vmem:[#allocation131_spill] sm:$0xff] }
 0x969   :  { %14735 = vst [vmem:[#allocation242_spill] sm:$0xff] %v11565_v46  ;;  %v11585_v58 = vadd.f32 %v10859_v24, %v14744_v5  ;;  %v14746_v46 = vld [vmem:[#allocation132_spill] sm:$0xff] }
 0x96a   :  { %14737 = vst [vmem:[#allocation243_spill] sm:$0xff] %v11569_v14  ;;  %v11589_v53 = vadd.f32 %v10857_v43, %v14746_v46  ;;  %v14748_v14 = vld [vmem:[#allocation133_spill] sm:$0xff] }
 0x96b   :  { %14739 = vst [vmem:[#allocation244_spill] sm:$0xff] %v11573_v0  ;;  %v11593_v56 = vadd.f32 %v10859_v24, %v14748_v14  ;;  %v14750_v0 = vld [vmem:[#allocation134_spill] sm:$0xff] }
 0x96c   :  { %14741 = vst [vmem:[#allocation171_spill] sm:$0xff] %v11577_v51  ;;  %v11597_v50 = vadd.f32 %v10857_v43, %v14750_v0  ;;  %v14752_v51 = vld [vmem:[#allocation137_spill] sm:$0xff] }
 0x96d   :  { %14743 = vst [vmem:[#allocation172_spill] sm:$0xff] %v11581_v37  ;;  %v11601_v28 = vadd.f32 %v10859_v24, %v14752_v51  ;;  %v14754_v37 = vld [vmem:[#allocation138_spill] sm:$0xff] }
 0x96e   :  { %14745 = vst [vmem:[#allocation247_spill] sm:$0xff] %v11585_v58  ;;  %v11605_v5 = vadd.f32 %v10857_v43, %v14754_v37  ;;  %v14756_v58 = vld [vmem:[#allocation139_spill] sm:$0xff] }
 0x96f   :  { %14747 = vst [vmem:[#allocation248_spill] sm:$0xff] %v11589_v53  ;;  %v11609_v46 = vadd.f32 %v10859_v24, %v14756_v58  ;;  %v14758_v53 = vld [vmem:[#allocation140_spill] sm:$0xff] }
 0x970   :  { %14749 = vst [vmem:[#allocation249_spill] sm:$0xff] %v11593_v56  ;;  %v11613_v14 = vadd.f32 %v10857_v43, %v14758_v53  ;;  %v14760_v56 = vld [vmem:[#allocation143_spill] sm:$0xff] }
 0x971   :  { %14751 = vst [vmem:[#allocation250_spill] sm:$0xff] %v11597_v50  ;;  %v11617_v0 = vadd.f32 %v10859_v24, %v14760_v56  ;;  %v14762_v50 = vld [vmem:[#allocation144_spill] sm:$0xff] }
 0x972   :  { %14753 = vst [vmem:[#allocation27_spill] sm:$0xff] %v11601_v28  ;;  %v11621_v51 = vadd.f32 %v10857_v43, %v14762_v50  ;;  %v14764_v28 = vld [vmem:[#allocation145_spill] sm:$0xff] }
 0x973   :  { %14755 = vst [vmem:[#allocation28_spill] sm:$0xff] %v11605_v5  ;;  %v11625_v37 = vadd.f32 %v10859_v24, %v14764_v28  ;;  %v14766_v5 = vld [vmem:[#allocation146_spill] sm:$0xff] }
 0x974   :  { %14757 = vst [vmem:[#allocation253_spill] sm:$0xff] %v11609_v46  ;;  %v11629_v58 = vadd.f32 %v10857_v43, %v14766_v5  ;;  %v14768_v46 = vld [vmem:[#allocation149_spill] sm:$0xff] }
 0x975   :  { %14759 = vst [vmem:[#allocation254_spill] sm:$0xff] %v11613_v14  ;;  %v11633_v53 = vadd.f32 %v10859_v24, %v14768_v46  ;;  %v14770_v14 = vld [vmem:[#allocation150_spill] sm:$0xff] }
 0x976   :  { %14761 = vst [vmem:[#allocation255_spill] sm:$0xff] %v11617_v0  ;;  %v11637_v56 = vadd.f32 %v10857_v43, %v14770_v14  ;;  %v14772_v0 = vld [vmem:[#allocation151_spill] sm:$0xff] }
 0x977   :  { %14763 = vst [vmem:[#allocation256_spill] sm:$0xff] %v11621_v51  ;;  %v11641_v50 = vadd.f32 %v10859_v24, %v14772_v0  ;;  %v14774_v51 = vld [vmem:[#allocation152_spill] sm:$0xff] }
 0x978   :  { %14765 = vst [vmem:[#allocation29_spill] sm:$0xff] %v11625_v37  ;;  %v11645_v28 = vadd.f32 %v10857_v43, %v14774_v51  ;;  %v14776_v37 = vld [vmem:[#allocation155_spill] sm:$0xff] }
 0x979   :  { %14767 = vst [vmem:[#allocation30_spill] sm:$0xff] %v11629_v58  ;;  %v11649_v5 = vadd.f32 %v10859_v24, %v14776_v37  ;;  %v14778_v58 = vld [vmem:[#allocation156_spill] sm:$0xff] }
 0x97a   :  { %14769 = vst [vmem:[#allocation259_spill] sm:$0xff] %v11633_v53  ;;  %v11653_v46 = vadd.f32 %v10857_v43, %v14778_v58  ;;  %v14780_v53 = vld [vmem:[#allocation157_spill] sm:$0xff] }
 0x97b   :  { %14771 = vst [vmem:[#allocation260_spill] sm:$0xff] %v11637_v56  ;;  %v11657_v14 = vadd.f32 %v10859_v24, %v14780_v53  ;;  %v14782_v56 = vld [vmem:[#allocation158_spill] sm:$0xff] }
 0x97c   :  { %14773 = vst [vmem:[#allocation261_spill] sm:$0xff] %v11641_v50  ;;  %v11661_v0 = vadd.f32 %v10857_v43, %v14782_v56  ;;  %v14784_v50 = vld [vmem:[#allocation161_spill] sm:$0xff] }
 0x97d   :  { %14775 = vst [vmem:[#allocation262_spill] sm:$0xff] %v11645_v28  ;;  %v11665_v51 = vadd.f32 %v10859_v24, %v14784_v50  ;;  %v14786_v28 = vld [vmem:[#allocation162_spill] sm:$0xff] }
 0x97e   :  { %14777 = vst [vmem:[#allocation177_spill] sm:$0xff] %v11649_v5  ;;  %v11669_v37 = vadd.f32 %v10857_v43, %v14786_v28  ;;  %v14788_v5 = vld [vmem:[#allocation163_spill] sm:$0xff] }
 0x97f   :  { %14779 = vst [vmem:[#allocation178_spill] sm:$0xff] %v11653_v46  ;;  %v11673_v58 = vadd.f32 %v10859_v24, %v14788_v5  ;;  %v14789_v46 = vld [vmem:[#allocation164_spill] sm:$0xff] }
 0x980   :  { %14781 = vst [vmem:[#allocation265_spill] sm:$0xff] %v11657_v14  ;;  %v11677_v53 = vadd.f32 %v10857_v43, %v14789_v46  ;;  %v14791_v14 = vld [vmem:[#allocation167_spill] sm:$0xff]  ;;  %v11697_v46 = vadd.f32 %v10859_v24, %v11193_v8 }
 0x981   :  { %14783 = vst [vmem:[#allocation266_spill] sm:$0xff] %v11661_v0  ;;  %v11681_v56 = vadd.f32 %v10859_v24, %v14791_v14  ;;  %v14792_v0 = vld [vmem:[#allocation168_spill] sm:$0xff] }
 0x982   :  { %14785 = vst [vmem:[#allocation267_spill] sm:$0xff] %v11665_v51  ;;  %v11685_v50 = vadd.f32 %v10857_v43, %v14792_v0  ;;  %v14794_v51 = vld [vmem:[#allocation169_spill] sm:$0xff]  ;;  %v11705_v0 = vadd.f32 %v10859_v24, %v11201_v49 }
 0x983   :  { %14787 = vst [vmem:[#allocation268_spill] sm:$0xff] %v11669_v37  ;;  %v11689_v28 = vadd.f32 %v10859_v24, %v14794_v51  ;;  %v14795_v37 = vld [vmem:[#allocation170_spill] sm:$0xff] }
 0x984   :  { %14790 = vst [vmem:[#allocation31_spill] sm:$0xff] %v11677_v53  ;;  %v11693_v5 = vadd.f32 %v10857_v43, %v14795_v37  ;;  %v14797_v53 = vld [vmem:[#allocation173_spill] sm:$0xff]  ;;  %v11713_v37 = vadd.f32 %v10859_v24, %v11209_v12 }
 0x985   :  { %14793 = vst [vmem:[#allocation32_spill] sm:$0xff] %v11685_v50  ;;  %v11701_v14 = vadd.f32 %v10857_v43, %v14797_v53  ;;  %v14800_v50 = vld [vmem:[#allocation174_spill] sm:$0xff]  ;;  %v11721_v53 = vadd.f32 %v10859_v24, %v11217_v57 }
 0x986   :  { %14796 = vst [vmem:[#allocation271_spill] sm:$0xff] %v11693_v5  ;;  %v11709_v51 = vadd.f32 %v10857_v43, %v14800_v50  ;;  %v14803_v5 = vld [vmem:[#allocation175_spill] sm:$0xff]  ;;  %v11729_v50 = vadd.f32 %v10859_v24, %v11225_v47 }
 0x987   :  { %14798 = vst [vmem:[#allocation272_spill] sm:$0xff] %v11701_v14  ;;  %v11717_v8 = vadd.f32 %v10857_v43, %v14803_v5  ;;  %v14806_v14 = vld [vmem:[#allocation176_spill] sm:$0xff]  ;;  %v11737_v5 = vadd.f32 %v10859_v24, %v11233_v4 }
 0x988   :  { %14799 = vst [vmem:[#allocation273_spill] sm:$0xff] %v11705_v0  ;;  %v11725_v49 = vadd.f32 %v10857_v43, %v14806_v14  ;;  %v11745_v14 = vadd.f32 %v10859_v24, %v11241_v42 }
 0x989   :  { %14801 = vst [vmem:[#allocation274_spill] sm:$0xff] %v11709_v51  ;;  %v14809_v51 = vld [vmem:[#allocation179_spill] sm:$0xff] }
 0x98a   :  { %14802 = vst [vmem:[#allocation33_spill] sm:$0xff] %v11713_v37  ;;  %v11733_v12 = vadd.f32 %v10857_v43, %v14809_v51  ;;  %v11753_v51 = vadd.f32 %v10859_v24, %v11249_v11 }
 0x98b   :  { %14804 = vst [vmem:[#allocation34_spill] sm:$0xff] %v11717_v8  ;;  %v14812_v8 = vld [vmem:[#allocation180_spill] sm:$0xff] }
 0x98c   :  { %14805 = vst [vmem:[#allocation277_spill] sm:$0xff] %v11721_v53  ;;  %v11741_v57 = vadd.f32 %v10857_v43, %v14812_v8  ;;  %v11761_v8 = vadd.f32 %v10859_v24, %v11257_v6  ;;  %v11781_v6 = vadd.f32 %v10857_v43, %v11277_v23  ;;  %v11801_v23 = vadd.f32 %v10859_v24, %v11297_v63 }
 0x98d   :  { %14807 = vst [vmem:[#allocation278_spill] sm:$0xff] %v11725_v49  ;;  %v14815_v49 = vld [vmem:[#allocation181_spill] sm:$0xff]  ;;  %v11821_v63 = vadd.f32 %v10857_v43, %v11317_v44  ;;  %v11841_v44 = vadd.f32 %v10859_v24, %v11337_v34  ;;  %v6190_v34 = vmul.f32 0.01, %v11357_v22 }
 0x98e   :  { %14808 = vst [vmem:[#allocation279_spill] sm:$0xff] %v11729_v50  ;;  %v11749_v47 = vadd.f32 %v10857_v43, %v14815_v49  ;;  %v11769_v49 = vadd.f32 %v10859_v24, %v11265_v52  ;;  %v11789_v52 = vadd.f32 %v10857_v43, %v11285_v30  ;;  %v11809_v30 = vadd.f32 %v10859_v24, %v11305_v29 }
 0x98f   :  { %14810 = vst [vmem:[#allocation280_spill] sm:$0xff] %v11733_v12  ;;  %v14818_v12 = vld [vmem:[#allocation182_spill] sm:$0xff]  ;;  %v11829_v29 = vadd.f32 %v10857_v43, %v11325_v18  ;;  %v11849_v18 = vadd.f32 %v10859_v24, %v11345_v2  ;;  %v6194_v2 = vmul.f32 0.01, %v11373_v40 }
 0x990   :  { %14811 = vst [vmem:[#allocation183_spill] sm:$0xff] %v11737_v5  ;;  %v11757_v4 = vadd.f32 %v10857_v43, %v14818_v12  ;;  %v11777_v12 = vadd.f32 %v10859_v24, %v11273_v16  ;;  %v11797_v16 = vadd.f32 %v10857_v43, %v11293_v41  ;;  %v11817_v41 = vadd.f32 %v10859_v24, %v11313_v31 }
 0x991   :  { %14813 = vst [vmem:[#allocation283_spill] sm:$0xff] %v11741_v57  ;;  %v14821_v57 = vld [vmem:[#allocation185_spill] sm:$0xff]  ;;  %v11837_v31 = vadd.f32 %v10857_v43, %v11333_v15  ;;  %v6189_v15 = vmul.f32 0.01, %v11353_v60 }
 0x992   :  { %14814 = vst [vmem:[#allocation284_spill] sm:$0xff] %v11745_v14  ;;  %v11765_v42 = vadd.f32 %v10857_v43, %v14821_v57  ;;  %v11785_v57 = vadd.f32 %v10859_v24, %v11281_v20  ;;  %v11805_v20 = vadd.f32 %v10857_v43, %v11301_v39  ;;  %v11825_v39 = vadd.f32 %v10859_v24, %v11321_v26  ;;  %v14857_v14 = vld [vmem:[#allocation194_spill] sm:$0xff] }
 0x993   :  { %14816 = vst [vmem:[#allocation285_spill] sm:$0xff] %v11749_v47  ;;  %v14824_v47 = vld [vmem:[#allocation186_spill] sm:$0xff]  ;;  %v11845_v26 = vadd.f32 %v10857_v43, %v11341_v10  ;;  %v6192_v10 = vmul.f32 0.01, %v11365_v48  ;;  %v11931_v5 = vmul.f32 0.01, %v14857_v14 }
 0x994   :  { %14817 = vst [vmem:[#allocation286_spill] sm:$0xff] %v11753_v51  ;;  %v11773_v11 = vadd.f32 %v10857_v43, %v14824_v47  ;;  %v11793_v47 = vadd.f32 %v10859_v24, %v11289_v35  ;;  %v11813_v35 = vadd.f32 %v10857_v43, %v11309_v27  ;;  %v11833_v27 = vadd.f32 %v10859_v24, %v11329_v17 }
 0x995   :  { %14819 = vst [vmem:[#allocation289_spill] sm:$0xff] %v11757_v4  ;;  %v6188_v17 = vmul.f32 0.01, %v11349_v38  ;;  %v6191_v43 = vmul.f32 0.01, %v11361_v21  ;;  %v14855_v4 = vld [vmem:[#allocation193_spill] sm:$0xff] }
 0x996   :  { %14820 = vst [vmem:[#allocation290_spill] sm:$0xff] %v11761_v8  ;;  %v6193_v24 = vmul.f32 0.01, %v11369_v54  ;;  %v11927_v51 = vmul.f32 0.01, %v14855_v4 }
 0x997   :  { %14822 = vst [vmem:[#allocation291_spill] sm:$0xff] %v11765_v42  ;;  %v14853_v42 = vld [vmem:[#allocation192_spill] sm:$0xff] }
 0x998   :  { %14823 = vst [vmem:[#allocation292_spill] sm:$0xff] %v11769_v49  ;;  %v11924_v8 = vmul.f32 0.01, %v14853_v42 }
 0x999   :  { %14825 = vst [vmem:[#allocation184_spill] sm:$0xff] %v11773_v11  ;;  %v14851_v11 = vld [vmem:[#allocation191_spill] sm:$0xff] }
 0x99a   :  { %14826 = vst [vmem:[#allocation295_spill] sm:$0xff] %v11777_v12  ;;  %v11917_v12 = vmul.f32 0.01, %v11441_v45  ;;  %v11921_v49 = vmul.f32 0.01, %v14851_v11 }
 0x99b   :  { %14827 = vst [vmem:[#allocation296_spill] sm:$0xff] %v11781_v6 }
 0x99c   :  { %14828 = vst [vmem:[#allocation297_spill] sm:$0xff] %v11785_v57  ;;  %v14848_v57 = vld [vmem:[#allocation188_spill] sm:$0xff] }
 0x99d   :  { %14829 = vst [vmem:[#allocation298_spill] sm:$0xff] %v11789_v52  ;;  %v11914_v6 = vmul.f32 0.01, %v14848_v57 }
 0x99e   :  { %14830 = vst [vmem:[#allocation35_spill] sm:$0xff] %v11793_v47  ;;  %v14846_v47 = vld [vmem:[#allocation187_spill] sm:$0xff] }
 0x99f   :  { %14831 = vst [vmem:[#allocation36_spill] sm:$0xff] %v11797_v16  ;;  %v11907_v16 = vmul.f32 0.01, %v11429_v33  ;;  %v11911_v52 = vmul.f32 0.01, %v14846_v47 }
 0x9a0   :  { %14832 = vst [vmem:[#allocation300_spill] sm:$0xff] %v11801_v23  ;;  %v11904_v23 = vmul.f32 0.01, %v11425_v36 }
 0x9a1   :  { %14833 = vst [vmem:[#allocation301_spill] sm:$0xff] %v11805_v20  ;;  %v11901_v20 = vmul.f32 0.01, %v11421_v61 }
 0x9a2   :  { %14834 = vst [vmem:[#allocation302_spill] sm:$0xff] %v11809_v30  ;;  %v11897_v30 = vmul.f32 0.01, %v11417_v19 }
 0x9a3   :  { %14835 = vst [vmem:[#allocation136_spill] sm:$0xff] %v11813_v35  ;;  %v11894_v35 = vmul.f32 0.01, %v11413_v9 }
 0x9a4   :  { %14836 = vst [vmem:[#allocation37_spill] sm:$0xff] %v11817_v41  ;;  %v11891_v41 = vmul.f32 0.01, %v11409_v3 }
 0x9a5   :  { %14837 = vst [vmem:[#allocation38_spill] sm:$0xff] %v11821_v63  ;;  %v11887_v63 = vmul.f32 0.01, %v11405_v55 }
 0x9a6   :  { %14838 = vst [vmem:[#allocation304_spill] sm:$0xff] %v11825_v39  ;;  %v11884_v39 = vmul.f32 0.01, %v11401_v59 }
 0x9a7   :  { %14839 = vst [vmem:[#allocation305_spill] sm:$0xff] %v11829_v29  ;;  %v11881_v29 = vmul.f32 0.01, %v11397_v13 }
 0x9a8   :  { %14840 = vst [vmem:[#allocation306_spill] sm:$0xff] %v11833_v27  ;;  %v11877_v27 = vmul.f32 0.01, %v11393_v1 }
 0x9a9   :  { %14841 = vst [vmem:[#allocation142_spill] sm:$0xff] %v11837_v31  ;;  %v11874_v31 = vmul.f32 0.01, %v11389_v62 }
 0x9aa   :  { %14842 = vst [vmem:[#allocation189_spill] sm:$0xff] %v11841_v44  ;;  %v11871_v44 = vmul.f32 0.01, %v11385_v32 }
 0x9ab   :  { %14843 = vst [vmem:[#allocation190_spill] sm:$0xff] %v11845_v26  ;;  %v11867_v26 = vmul.f32 0.01, %v11381_v25 }
 0x9ac   :  { %14844 = vst [vmem:[#allocation308_spill] sm:$0xff] %v11849_v18  ;;  %v11864_v18 = vmul.f32 0.01, %v11377_v7 }
 0x9ad   :  { %14845 = vst [vmem:[#allocation309_spill] sm:$0xff] %v11907_v16 }
 0x9ae   :  { %14847 = vst [vmem:[#allocation310_spill] sm:$0xff] %v11911_v52  ;;  %v14866_v52 = vld [vmem:[#allocation198_spill] sm:$0xff] }
 0x9af   :  { %14849 = vst [vmem:[#allocation148_spill] sm:$0xff] %v11914_v6  ;;  %v14859_v6 = vld [vmem:[#allocation195_spill] sm:$0xff]  ;;  %v11949_v37 = vmul.f32 0.01, %v14866_v52 }
 0x9b0   :  { %14850 = vst [vmem:[#allocation39_spill] sm:$0xff] %v11917_v12  ;;  %v11934_v50 = vmul.f32 0.01, %v14859_v6  ;;  %v14861_v12 = vld [vmem:[#allocation196_spill] sm:$0xff] }
 0x9b1   :  { %14852 = vst [vmem:[#allocation40_spill] sm:$0xff] %v11921_v49  ;;  %v11937_v53 = vmul.f32 0.01, %v14861_v12  ;;  %v11942_v49 = vsel %vm6060_vm7, %v11349_v38, %v6188_v17  ;;  %v14871_v38 = vld [vmem:[#allocation201_spill] sm:$0xff]  ;;  %vm6076_vm7 = vcmp.ge.f32.partialorder %v11413_v9, 0.0 }
 0x9b2   :  { %14854 = vst [vmem:[#allocation41_spill] sm:$0xff] %v11924_v8  ;;  %v14864_v8 = vld [vmem:[#allocation197_spill] sm:$0xff]  ;;  %v11961_v17 = vmul.f32 0.01, %v14871_v38 }
 0x9b3   :  { %14856 = vst [vmem:[#allocation42_spill] sm:$0xff] %v11927_v51  ;;  %v11946_v51 = vmul.f32 0.01, %v14864_v8 }
 0x9b4   :  { %14858 = vst [vmem:[#allocation43_spill] sm:$0xff] %v11931_v5  ;;  %v14868_v5 = vld [vmem:[#allocation200_spill] sm:$0xff] }
 0x9b5   :  { %14860 = vst [vmem:[#allocation44_spill] sm:$0xff] %v11934_v50  ;;  %v11952_v16 = vmul.f32 0.01, %v14868_v5 }
 0x9b6   :  { %14862 = vst [vmem:[#allocation96_spill] sm:$0xff] %v11937_v53  ;;  %v11957_v53 = vsel %vm6061_vm8, %v11353_v60, %v6189_v15  ;;  %v14878_v60 = vld [vmem:[#allocation206_spill] sm:$0xff]  ;;  %vm6077_vm8 = vcmp.ge.f32.partialorder %v11417_v19, 0.0 }
 0x9b7   :  { %14863 = vst [vmem:[#allocation45_spill] sm:$0xff] %v11942_v49  ;;  %v14873_v49 = vld [vmem:[#allocation204_spill] sm:$0xff]  ;;  %v11976_v15 = vmul.f32 0.01, %v14878_v60 }
 0x9b8   :  { %14865 = vst [vmem:[#allocation97_spill] sm:$0xff] %v11946_v51  ;;  %v11964_v50 = vmul.f32 0.01, %v14873_v49  ;;  %v14875_v51 = vld [vmem:[#allocation205_spill] sm:$0xff] }
 0x9b9   :  { %14867 = vst [vmem:[#allocation46_spill] sm:$0xff] %v11949_v37  ;;  %v11967_v0 = vmul.f32 0.01, %v14875_v51 }
 0x9ba   :  { %14869 = vst [vmem:[#allocation22_spill] sm:$0xff] %v11952_v16  ;;  %v11972_v16 = vsel %vm6062_vm9, %v11357_v22, %v6190_v34  ;;  %v14885_v22 = vld [vmem:[#allocation213_spill] sm:$0xff]  ;;  %vm6078_vm9 = vcmp.ge.f32.partialorder %v11421_v61, 0.0 }
 0x9bb   :  { %14870 = vst [vmem:[#allocation47_spill] sm:$0xff] %v11957_v53  ;;  %v14880_v53 = vld [vmem:[#allocation207_spill] sm:$0xff]  ;;  %v11991_v34 = vmul.f32 0.01, %v14885_v22 }
 0x9bc   :  { %14872 = vst [vmem:[#allocation48_spill] sm:$0xff] %v11961_v17  ;;  %v11979_v37 = vmul.f32 0.01, %v14880_v53  ;;  %v14882_v17 = vld [vmem:[#allocation212_spill] sm:$0xff] }
 0x9bd   :  { %14874 = vst [vmem:[#allocation49_spill] sm:$0xff] %v11964_v50  ;;  %v11982_v38 = vmul.f32 0.01, %v14882_v17 }
 0x9be   :  { %14876 = vst [vmem:[#allocation165_spill] sm:$0xff] %v11967_v0  ;;  %v11987_v0 = vsel %vm6063_vm10, %v11361_v21, %v6191_v43  ;;  %v14892_v21 = vld [vmem:[#allocation220_spill] sm:$0xff]  ;;  %vm6079_vm10 = vcmp.ge.f32.partialorder %v11425_v36, 0.0 }
 0x9bf   :  { %14877 = vst [vmem:[#allocation166_spill] sm:$0xff] %v11972_v16  ;;  %v14887_v16 = vld [vmem:[#allocation216_spill] sm:$0xff]  ;;  %v12006_v43 = vmul.f32 0.01, %v14892_v21 }
 0x9c0   :  { %14879 = vst [vmem:[#allocation50_spill] sm:$0xff] %v11976_v15  ;;  %v11994_v50 = vmul.f32 0.01, %v14887_v16  ;;  %v14889_v15 = vld [vmem:[#allocation217_spill] sm:$0xff] }
 0x9c1   :  { %14881 = vst [vmem:[#allocation51_spill] sm:$0xff] %v11979_v37  ;;  %v11997_v60 = vmul.f32 0.01, %v14889_v15 }
 0x9c2   :  { %14883 = vst [vmem:[#allocation52_spill] sm:$0xff] %v11982_v38  ;;  %v12002_v38 = vsel %vm6064_vm11, %v11365_v48, %v6192_v10  ;;  %v14899_v48 = vld [vmem:[#allocation223_spill] sm:$0xff]  ;;  %vm6080_vm11 = vcmp.ge.f32.partialorder %v11429_v33, 0.0 }
 0x9c3   :  { %14884 = vst [vmem:[#allocation23_spill] sm:$0xff] %v11987_v0  ;;  %v14894_v0 = vld [vmem:[#allocation221_spill] sm:$0xff]  ;;  %v12021_v10 = vmul.f32 0.01, %v14899_v48 }
 0x9c4   :  { %14886 = vst [vmem:[#allocation53_spill] sm:$0xff] %v11991_v34  ;;  %v12009_v37 = vmul.f32 0.01, %v14894_v0  ;;  %v14896_v34 = vld [vmem:[#allocation222_spill] sm:$0xff] }
 0x9c5   :  { %14888 = vst [vmem:[#allocation54_spill] sm:$0xff] %v11994_v50  ;;  %v12012_v22 = vmul.f32 0.01, %v14896_v34 }
 0x9c6   :  { %14890 = vst [vmem:[#allocation24_spill] sm:$0xff] %v11997_v60  ;;  %v12017_v60 = vsel %vm6065_vm12, %v11369_v54, %v6193_v24  ;;  %v14906_v54 = vld [vmem:[#allocation232_spill] sm:$0xff]  ;;  %vm6081_vm12 = vcmp.ge.f32.partialorder %v14846_v47, 0.0 }
 0x9c7   :  { %14891 = vst [vmem:[#allocation25_spill] sm:$0xff] %v12002_v38  ;;  %v14901_v38 = vld [vmem:[#allocation228_spill] sm:$0xff]  ;;  %v12036_v24 = vmul.f32 0.01, %v14906_v54  ;;  %v15054_v54 = vld [vmem:[#allocation42_spill] sm:$0xff] }
 0x9c8   :  { %14893 = vst [vmem:[#allocation26_spill] sm:$0xff] %v12006_v43  ;;  %v12024_v50 = vmul.f32 0.01, %v14901_v38  ;;  %v14903_v43 = vld [vmem:[#allocation229_spill] sm:$0xff] }
 0x9c9   :  { %14895 = vst [vmem:[#allocation55_spill] sm:$0xff] %v12009_v37  ;;  %v12027_v21 = vmul.f32 0.01, %v14903_v43 }
 0x9ca   :  { %14897 = vst [vmem:[#allocation199_spill] sm:$0xff] %v12012_v22  ;;  %v12032_v22 = vsel %vm6066_vm13, %v11373_v40, %v6194_v2  ;;  %v14913_v40 = vld [vmem:[#allocation237_spill] sm:$0xff]  ;;  %vm6082_vm13 = vcmp.ge.f32.partialorder %v14848_v57, 0.0 }
 0x9cb   :  { %14898 = vst [vmem:[#allocation56_spill] sm:$0xff] %v12017_v60  ;;  %v14908_v60 = vld [vmem:[#allocation233_spill] sm:$0xff]  ;;  %v12052_v2 = vmul.f32 0.01, %v14913_v40 }
 0x9cc   :  { %14900 = vst [vmem:[#allocation202_spill] sm:$0xff] %v12021_v10  ;;  %v12039_v37 = vmul.f32 0.01, %v14908_v60  ;;  %v14910_v10 = vld [vmem:[#allocation236_spill] sm:$0xff] }
 0x9cd   :  { %14902 = vst [vmem:[#allocation57_spill] sm:$0xff] %v12024_v50  ;;  %v12042_v48 = vmul.f32 0.01, %v14910_v10 }
 0x9ce   :  { %14904 = vst [vmem:[#allocation203_spill] sm:$0xff] %v12027_v21  ;;  %v12048_v21 = vsel %vm6067_vm14, %v11377_v7, %v11864_v18  ;;  %v14920_v7 = vld [vmem:[#allocation242_spill] sm:$0xff]  ;;  %vm6083_vm14 = vcmp.ge.f32.partialorder %v11441_v45, 0.0 }
 0x9cf   :  { %14905 = vst [vmem:[#allocation208_spill] sm:$0xff] %v12032_v22  ;;  %v14915_v22 = vld [vmem:[#allocation238_spill] sm:$0xff]  ;;  %v12068_v18 = vmul.f32 0.01, %v14920_v7 }
 0x9d0   :  { %14907 = vst [vmem:[#allocation209_spill] sm:$0xff] %v12036_v24  ;;  %v12055_v50 = vmul.f32 0.01, %v14915_v22  ;;  %v14917_v24 = vld [vmem:[#allocation239_spill] sm:$0xff] }
 0x9d1   :  { %14909 = vst [vmem:[#allocation210_spill] sm:$0xff] %v12039_v37  ;;  %v12058_v60 = vmul.f32 0.01, %v14917_v24 }
 0x9d2   :  { %14911 = vst [vmem:[#allocation58_spill] sm:$0xff] %v12042_v48  ;;  %v12064_v48 = vsel %vm6068_vm15, %v11381_v25, %v11867_v26  ;;  %v14927_v25 = vld [vmem:[#allocation171_spill] sm:$0xff]  ;;  %vm6084_vm15 = vcmp.ge.f32.partialorder %v14851_v11, 0.0 }
 0x9d3   :  { %14912 = vst [vmem:[#allocation211_spill] sm:$0xff] %v12048_v21  ;;  %v14922_v21 = vld [vmem:[#allocation243_spill] sm:$0xff]  ;;  %v12084_v26 = vmul.f32 0.01, %v14927_v25 }
 0x9d4   :  { %14914 = vst [vmem:[#allocation214_spill] sm:$0xff] %v12052_v2  ;;  %v12071_v37 = vmul.f32 0.01, %v14922_v21  ;;  %v14924_v2 = vld [vmem:[#allocation244_spill] sm:$0xff] }
 0x9d5   :  { %14916 = vst [vmem:[#allocation215_spill] sm:$0xff] %v12055_v50  ;;  %v12074_v22 = vmul.f32 0.01, %v14924_v2 }
 0x9d6   :  { %14918 = vst [vmem:[#allocation218_spill] sm:$0xff] %v12058_v60  ;;  %v12080_v60 = vsel %vm6069_vm0, %v11385_v32, %v11871_v44  ;;  %v14934_v32 = vld [vmem:[#allocation248_spill] sm:$0xff]  ;;  %vm6085_vm0 = vcmp.ge.f32.partialorder %v14853_v42, 0.0 }
 0x9d7   :  { %14919 = vst [vmem:[#allocation59_spill] sm:$0xff] %v12064_v48  ;;  %v14929_v48 = vld [vmem:[#allocation172_spill] sm:$0xff]  ;;  %v12100_v44 = vmul.f32 0.01, %v14934_v32 }
 0x9d8   :  { %14921 = vst [vmem:[#allocation219_spill] sm:$0xff] %v12068_v18  ;;  %v12087_v50 = vmul.f32 0.01, %v14929_v48  ;;  %v14931_v18 = vld [vmem:[#allocation247_spill] sm:$0xff]  ;;  %v15082_v32 = vld [vmem:[#allocation96_spill] sm:$0xff] }
 0x9d9   :  { %14923 = vst [vmem:[#allocation60_spill] sm:$0xff] %v12071_v37  ;;  %v12090_v21 = vmul.f32 0.01, %v14931_v18 }
 0x9da   :  { %14925 = vst [vmem:[#allocation224_spill] sm:$0xff] %v12074_v22  ;;  %v12096_v22 = vsel %vm6070_vm1, %v11389_v62, %v11874_v31  ;;  %v14941_v62 = vld [vmem:[#allocation27_spill] sm:$0xff]  ;;  %vm6086_vm1 = vcmp.ge.f32.partialorder %v14855_v4, 0.0 }
 0x9db   :  { %14926 = vst [vmem:[#allocation61_spill] sm:$0xff] %v12080_v60  ;;  %v14936_v60 = vld [vmem:[#allocation249_spill] sm:$0xff]  ;;  %v12116_v31 = vmul.f32 0.01, %v14941_v62 }
 0x9dc   :  { %14928 = vst [vmem:[#allocation225_spill] sm:$0xff] %v12084_v26  ;;  %v12103_v37 = vmul.f32 0.01, %v14936_v60  ;;  %v14938_v26 = vld [vmem:[#allocation250_spill] sm:$0xff] }
 0x9dd   :  { %14930 = vst [vmem:[#allocation62_spill] sm:$0xff] %v12087_v50  ;;  %v12106_v48 = vmul.f32 0.01, %v14938_v26 }
 0x9de   :  { %14932 = vst [vmem:[#allocation226_spill] sm:$0xff] %v12090_v21  ;;  %v12112_v21 = vsel %vm6071_vm2, %v11393_v1, %v11877_v27  ;;  %v14948_v1 = vld [vmem:[#allocation254_spill] sm:$0xff]  ;;  %vm6087_vm2 = vcmp.ge.f32.partialorder %v14857_v14, 0.0 }
 0x9df   :  { %14933 = vst [vmem:[#allocation63_spill] sm:$0xff] %v12096_v22  ;;  %v14943_v22 = vld [vmem:[#allocation28_spill] sm:$0xff]  ;;  %v12132_v27 = vmul.f32 0.01, %v14948_v1 }
 0x9e0   :  { %14935 = vst [vmem:[#allocation227_spill] sm:$0xff] %v12100_v44  ;;  %v12119_v50 = vmul.f32 0.01, %v14943_v22  ;;  %v14945_v44 = vld [vmem:[#allocation253_spill] sm:$0xff] }
 0x9e1   :  { %14937 = vst [vmem:[#allocation64_spill] sm:$0xff] %v12103_v37  ;;  %v12122_v60 = vmul.f32 0.01, %v14945_v44 }
 0x9e2   :  { %14939 = vst [vmem:[#allocation230_spill] sm:$0xff] %v12106_v48  ;;  %v12128_v48 = vsel %vm6072_vm3, %v11397_v13, %v11881_v29  ;;  %v14955_v13 = vld [vmem:[#allocation29_spill] sm:$0xff]  ;;  %vm6088_vm3 = vcmp.ge.f32.partialorder %v14859_v6, 0.0 }
 0x9e3   :  { %14940 = vst [vmem:[#allocation65_spill] sm:$0xff] %v12112_v21  ;;  %v14950_v21 = vld [vmem:[#allocation255_spill] sm:$0xff]  ;;  %v12148_v29 = vmul.f32 0.01, %v14955_v13 }
 0x9e4   :  { %14942 = vst [vmem:[#allocation231_spill] sm:$0xff] %v12116_v31  ;;  %v12135_v37 = vmul.f32 0.01, %v14950_v21  ;;  %v14952_v31 = vld [vmem:[#allocation256_spill] sm:$0xff] }
 0x9e5   :  { %14944 = vst [vmem:[#allocation66_spill] sm:$0xff] %v12119_v50  ;;  %v12138_v22 = vmul.f32 0.01, %v14952_v31 }
 0x9e6   :  { %14946 = vst [vmem:[#allocation234_spill] sm:$0xff] %v12122_v60  ;;  %v12144_v60 = vsel %vm6073_vm4, %v11401_v59, %v11884_v39  ;;  %v14962_v59 = vld [vmem:[#allocation260_spill] sm:$0xff]  ;;  %vm6089_vm4 = vcmp.ge.f32.partialorder %v14861_v12, 0.0 }
 0x9e7   :  { %14947 = vst [vmem:[#allocation67_spill] sm:$0xff] %v12128_v48  ;;  %v14957_v48 = vld [vmem:[#allocation30_spill] sm:$0xff]  ;;  %v12164_v39 = vmul.f32 0.01, %v14962_v59 }
 0x9e8   :  { %14949 = vst [vmem:[#allocation235_spill] sm:$0xff] %v12132_v27  ;;  %v12151_v50 = vmul.f32 0.01, %v14957_v48  ;;  %v14959_v27 = vld [vmem:[#allocation259_spill] sm:$0xff]  ;;  %v15110_v59 = vld [vmem:[#allocation22_spill] sm:$0xff] }
 0x9e9   :  { %14951 = vst [vmem:[#allocation68_spill] sm:$0xff] %v12135_v37  ;;  %v12154_v21 = vmul.f32 0.01, %v14959_v27 }
 0x9ea   :  { %14953 = vst [vmem:[#allocation240_spill] sm:$0xff] %v12138_v22  ;;  %v12160_v22 = vsel %vm6074_vm5, %v11405_v55, %v11887_v63  ;;  %v14969_v55 = vld [vmem:[#allocation177_spill] sm:$0xff]  ;;  %vm6090_vm5 = vcmp.ge.f32.partialorder %v14864_v8, 0.0 }
 0x9eb   :  { %14954 = vst [vmem:[#allocation69_spill] sm:$0xff] %v12144_v60  ;;  %v14964_v60 = vld [vmem:[#allocation261_spill] sm:$0xff]  ;;  %v12180_v63 = vmul.f32 0.01, %v14969_v55 }
 0x9ec   :  { %14956 = vst [vmem:[#allocation241_spill] sm:$0xff] %v12148_v29  ;;  %v12167_v37 = vmul.f32 0.01, %v14964_v60  ;;  %v14966_v29 = vld [vmem:[#allocation262_spill] sm:$0xff] }
 0x9ed   :  { %14958 = vst [vmem:[#allocation70_spill] sm:$0xff] %v12151_v50  ;;  %v12170_v48 = vmul.f32 0.01, %v14966_v29 }
 0x9ee   :  { %14960 = vst [vmem:[#allocation245_spill] sm:$0xff] %v12154_v21  ;;  %v12176_v21 = vsel %vm6075_vm6, %v11409_v3, %v11891_v41  ;;  %v14976_v3 = vld [vmem:[#allocation266_spill] sm:$0xff]  ;;  %vm6091_vm6 = vcmp.ge.f32.partialorder %v14866_v52, 0.0 }
 0x9ef   :  { %14961 = vst [vmem:[#allocation71_spill] sm:$0xff] %v12160_v22  ;;  %v14971_v22 = vld [vmem:[#allocation178_spill] sm:$0xff]  ;;  %v12196_v41 = vmul.f32 0.01, %v14976_v3 }
 0x9f0   :  { %14963 = vst [vmem:[#allocation246_spill] sm:$0xff] %v12164_v39  ;;  %v12183_v50 = vmul.f32 0.01, %v14971_v22  ;;  %v14973_v39 = vld [vmem:[#allocation265_spill] sm:$0xff] }
 0x9f1   :  { %14965 = vst [vmem:[#allocation72_spill] sm:$0xff] %v12167_v37  ;;  %v12186_v60 = vmul.f32 0.01, %v14973_v39 }
 0x9f2   :  { %14967 = vst [vmem:[#allocation251_spill] sm:$0xff] %v12170_v48  ;;  %v12192_v48 = vsel %vm6076_vm7, %v11413_v9, %v11894_v35  ;;  %v12212_v9 = vmul.f32 0.01, %v11673_v58  ;;  %v14984_v35 = vld [vmem:[#allocation31_spill] sm:$0xff]  ;;  %vm6092_vm7 = vcmp.ge.f32.partialorder %v14868_v5, 0.0 }
 0x9f3   :  { %14968 = vst [vmem:[#allocation73_spill] sm:$0xff] %v12176_v21  ;;  %v14978_v21 = vld [vmem:[#allocation267_spill] sm:$0xff] }
 0x9f4   :  { %14970 = vst [vmem:[#allocation252_spill] sm:$0xff] %v12180_v63  ;;  %v12199_v37 = vmul.f32 0.01, %v14978_v21  ;;  %v14980_v63 = vld [vmem:[#allocation268_spill] sm:$0xff] }
 0x9f5   :  { %14972 = vst [vmem:[#allocation74_spill] sm:$0xff] %v12183_v50  ;;  %v12202_v22 = vmul.f32 0.01, %v14980_v63 }
 0x9f6   :  { %14974 = vst [vmem:[#allocation257_spill] sm:$0xff] %v12186_v60  ;;  %v12208_v60 = vsel %vm6077_vm8, %v11417_v19, %v11897_v30  ;;  %v14988_v19 = vld [vmem:[#allocation32_spill] sm:$0xff] }
 0x9f7   :  { %14975 = vst [vmem:[#allocation75_spill] sm:$0xff] %v12192_v48  ;;  %v12215_v48 = vmul.f32 0.01, %v14984_v35  ;;  %v12228_v30 = vmul.f32 0.01, %v14988_v19 }
 0x9f8   :  { %14977 = vst [vmem:[#allocation258_spill] sm:$0xff] %v12196_v41  ;;  %v12218_v41 = vmul.f32 0.01, %v11681_v56 }
 0x9f9   :  { %14979 = vst [vmem:[#allocation76_spill] sm:$0xff] %v12199_v37 }
 0x9fa   :  { %14981 = vst [vmem:[#allocation263_spill] sm:$0xff] %v12202_v22  ;;  %v12224_v22 = vsel %vm6078_vm9, %v11421_v61, %v11901_v20  ;;  %v12244_v61 = vmul.f32 0.01, %v11697_v46  ;;  %v14995_v20 = vld [vmem:[#allocation272_spill] sm:$0xff] }
 0x9fb   :  { %14982 = vst [vmem:[#allocation77_spill] sm:$0xff] %v12208_v60  ;;  %v12231_v60 = vmul.f32 0.01, %v11689_v28 }
 0x9fc   :  { %14983 = vst [vmem:[#allocation264_spill] sm:$0xff] %v12212_v9  ;;  %v14991_v9 = vld [vmem:[#allocation271_spill] sm:$0xff] }
 0x9fd   :  { %14985 = vst [vmem:[#allocation78_spill] sm:$0xff] %v12215_v48  ;;  %v12234_v37 = vmul.f32 0.01, %v14991_v9 }
 0x9fe   :  { %14986 = vst [vmem:[#allocation269_spill] sm:$0xff] %v12218_v41  ;;  %v12240_v41 = vsel %vm6079_vm10, %v11425_v36, %v11904_v23  ;;  %v15001_v36 = vld [vmem:[#allocation274_spill] sm:$0xff] }
 0x9ff   :  { %14987 = vst [vmem:[#allocation79_spill] sm:$0xff] %v12224_v22  ;;  %v12247_v22 = vmul.f32 0.01, %v14995_v20  ;;  %v12260_v23 = vmul.f32 0.01, %v15001_v36 }
 0xa00   :  { %14989 = vst [vmem:[#allocation270_spill] sm:$0xff] %v12228_v30  ;;  %v14997_v30 = vld [vmem:[#allocation273_spill] sm:$0xff] }
 0xa01   :  { %14990 = vst [vmem:[#allocation80_spill] sm:$0xff] %v12231_v60  ;;  %v12250_v48 = vmul.f32 0.01, %v14997_v30  ;;  %v14999_v60 = vld [vmem:[#allocation309_spill] sm:$0xff] }
 0xa02   :  { %14992 = vst [vmem:[#allocation275_spill] sm:$0xff] %v12234_v37  ;;  %v12256_v37 = vsel %vm6080_vm11, %v11429_v33, %v14999_v60  ;;  %v15009_v30 = vld [vmem:[#allocation201_spill] sm:$0xff]  ;;  %v15010_v33 = vld [vmem:[#allocation206_spill] sm:$0xff] }
 0xa03   :  { %14993 = vst [vmem:[#allocation81_spill] sm:$0xff] %v12240_v41  ;;  %v15003_v41 = vld [vmem:[#allocation33_spill] sm:$0xff]  ;;  %vm6093_vm8 = vcmp.ge.f32.partialorder %v15009_v30, 0.0  ;;  %vm15118_vm10 = vcmp.ge.f32.partialorder %v15010_v33, 0.0 }
 0xa04   :  { %14994 = vst [vmem:[#allocation276_spill] sm:$0xff] %v12244_v61  ;;  %v12263_v50 = vmul.f32 0.01, %v15003_v41  ;;  %v15005_v61 = vld [vmem:[#allocation34_spill] sm:$0xff]  ;;  %v15011_v60 = vld [vmem:[#allocation277_spill] sm:$0xff]  ;;  %v15017_v41 = vld [vmem:[#allocation148_spill] sm:$0xff] }
 0xa05   :  { %14996 = vst [vmem:[#allocation82_spill] sm:$0xff] %v12247_v22  ;;  %v12266_v20 = vmul.f32 0.01, %v15005_v61  ;;  %v15007_v22 = vld [vmem:[#allocation310_spill] sm:$0xff] }
 0xa06   :  { %14998 = vst [vmem:[#allocation281_spill] sm:$0xff] %v12250_v48  ;;  %v12272_v48 = vsel %vm6081_vm12, %v14846_v47, %v15007_v22  ;;  %v12291_v47 = vsel %vm6082_vm13, %v14848_v57, %v15017_v41  ;;  %vm6097_vm12 = vcmp.ge.f32.partialorder %v14880_v53, 0.0  ;;  %v15019_v22 = vld [vmem:[#allocation213_spill] sm:$0xff]  ;;  %vm6101_vm13 = vcmp.ge.f32.partialorder %v14889_v15, 0.0  ;;  %v15028_v41 = vld [vmem:[#allocation220_spill] sm:$0xff] }
 0xa07   :  { %15000 = vst [vmem:[#allocation83_spill] sm:$0xff] %v12256_v37  ;;  %v12279_v37 = vmul.f32 0.01, %v15011_v60  ;;  %v15026_v60 = vld [vmem:[#allocation39_spill] sm:$0xff] }
 0xa08   :  { %15002 = vst [vmem:[#allocation282_spill] sm:$0xff] %v12260_v23  ;;  %v12310_v57 = vsel %vm6083_vm14, %v11441_v45, %v15026_v60  ;;  %v15037_v60 = vld [vmem:[#allocation223_spill] sm:$0xff] }
 0xa09   :  { %15004 = vst [vmem:[#allocation84_spill] sm:$0xff] %v12263_v50  ;;  %v15013_v50 = vld [vmem:[#allocation278_spill] sm:$0xff]  ;;  %vm6105_vm14 = vcmp.ge.f32.partialorder %v15037_v60, 0.0 }
 0xa0a   :  { %15006 = vst [vmem:[#allocation287_spill] sm:$0xff] %v12266_v20  ;;  %v12282_v23 = vmul.f32 0.01, %v15013_v50  ;;  %v15015_v20 = vld [vmem:[#allocation279_spill] sm:$0xff] }
 0xa0b   :  { %15008 = vst [vmem:[#allocation85_spill] sm:$0xff] %v12272_v48  ;;  %v12285_v61 = vmul.f32 0.01, %v15015_v20  ;;  %v15020_v48 = vld [vmem:[#allocation280_spill] sm:$0xff] }
 0xa0c   :  { %15012 = vst [vmem:[#allocation288_spill] sm:$0xff] %v12279_v37  ;;  %v12298_v37 = vmul.f32 0.01, %v15020_v48  ;;  %v15035_v48 = vld [vmem:[#allocation40_spill] sm:$0xff] }
 0xa0d   :  { %15014 = vst [vmem:[#allocation86_spill] sm:$0xff] %v12282_v23  ;;  %v15022_v23 = vld [vmem:[#allocation183_spill] sm:$0xff]  ;;  %v12329_v45 = vsel %vm6084_vm15, %v14851_v11, %v15035_v48  ;;  %v15046_v48 = vld [vmem:[#allocation233_spill] sm:$0xff] }
 0xa0e   :  { %15016 = vst [vmem:[#allocation293_spill] sm:$0xff] %v12285_v61  ;;  %v12301_v20 = vmul.f32 0.01, %v15022_v23  ;;  %v15024_v61 = vld [vmem:[#allocation283_spill] sm:$0xff]  ;;  %vm6109_vm15 = vcmp.ge.f32.partialorder %v15046_v48, 0.0 }
 0xa0f   :  { %15018 = vst [vmem:[#allocation87_spill] sm:$0xff] %v12291_v47  ;;  %v12304_v50 = vmul.f32 0.01, %v15024_v61  ;;  %v15029_v47 = vld [vmem:[#allocation284_spill] sm:$0xff] }
 0xa10   :  { %15021 = vst [vmem:[#allocation294_spill] sm:$0xff] %v12298_v37  ;;  %v12317_v37 = vmul.f32 0.01, %v15029_v47  ;;  %v15044_v47 = vld [vmem:[#allocation41_spill] sm:$0xff] }
 0xa11   :  { %15023 = vst [vmem:[#allocation88_spill] sm:$0xff] %v12301_v20  ;;  %v15031_v20 = vld [vmem:[#allocation285_spill] sm:$0xff]  ;;  %v12348_v11 = vsel %vm6085_vm0, %v14853_v42, %v15044_v47  ;;  %v12367_v42 = vsel %vm6086_vm1, %v14855_v4, %v15054_v54  ;;  %vm6113_vm0 = vcmp.ge.f32.partialorder %v14917_v24, 0.0  ;;  %v15056_v47 = vld [vmem:[#allocation243_spill] sm:$0xff]  ;;  %vm6117_vm1 = vcmp.ge.f32.partialorder %v14927_v25, 0.0  ;;  %v15065_v54 = vld [vmem:[#allocation172_spill] sm:$0xff] }
 0xa12   :  { %15025 = vst [vmem:[#allocation299_spill] sm:$0xff] %v12304_v50  ;;  %v12320_v61 = vmul.f32 0.01, %v15031_v20  ;;  %v15033_v50 = vld [vmem:[#allocation286_spill] sm:$0xff] }
 0xa13   :  { %15027 = vst [vmem:[#allocation89_spill] sm:$0xff] %v12310_v57  ;;  %v12323_v23 = vmul.f32 0.01, %v15033_v50  ;;  %v15038_v57 = vld [vmem:[#allocation289_spill] sm:$0xff] }
 0xa14   :  { %15030 = vst [vmem:[#allocation135_spill] sm:$0xff] %v12317_v37  ;;  %v12336_v37 = vmul.f32 0.01, %v15038_v57 }
 0xa15   :  { %15032 = vst [vmem:[#allocation90_spill] sm:$0xff] %v12320_v61  ;;  %v15040_v61 = vld [vmem:[#allocation290_spill] sm:$0xff] }
 0xa16   :  { %15034 = vst [vmem:[#allocation303_spill] sm:$0xff] %v12323_v23  ;;  %v12339_v50 = vmul.f32 0.01, %v15040_v61  ;;  %v15042_v23 = vld [vmem:[#allocation291_spill] sm:$0xff] }
 0xa17   :  { %15036 = vst [vmem:[#allocation91_spill] sm:$0xff] %v12329_v45  ;;  %v12342_v20 = vmul.f32 0.01, %v15042_v23  ;;  %v15047_v45 = vld [vmem:[#allocation238_spill] sm:$0xff] }
 0xa18   :  { %15039 = vst [vmem:[#allocation141_spill] sm:$0xff] %v12336_v37  ;;  %v15048_v37 = vld [vmem:[#allocation292_spill] sm:$0xff] }
 0xa19   :  { %15041 = vst [vmem:[#allocation92_spill] sm:$0xff] %v12339_v50  ;;  %v12355_v61 = vmul.f32 0.01, %v15048_v37  ;;  %v15050_v50 = vld [vmem:[#allocation184_spill] sm:$0xff]  ;;  %v15063_v37 = vld [vmem:[#allocation43_spill] sm:$0xff] }
 0xa1a   :  { %15043 = vst [vmem:[#allocation307_spill] sm:$0xff] %v12342_v20  ;;  %v12358_v23 = vmul.f32 0.01, %v15050_v50  ;;  %v15052_v20 = vld [vmem:[#allocation295_spill] sm:$0xff]  ;;  %v12386_v4 = vsel %vm6087_vm2, %v14857_v14, %v15063_v37  ;;  %v15074_v14 = vld [vmem:[#allocation249_spill] sm:$0xff] }
 0xa1b   :  { %15045 = vst [vmem:[#allocation93_spill] sm:$0xff] %v12348_v11  ;;  %v12361_v57 = vmul.f32 0.01, %v15052_v20  ;;  %v15057_v11 = vld [vmem:[#allocation296_spill] sm:$0xff]  ;;  %vm6121_vm2 = vcmp.ge.f32.partialorder %v15074_v14, 0.0 }
 0xa1c   :  { %15049 = vst [vmem:[#allocation147_spill] sm:$0xff] %v12355_v61  ;;  %v12374_v61 = vmul.f32 0.01, %v15057_v11  ;;  %v15072_v11 = vld [vmem:[#allocation44_spill] sm:$0xff] }
 0xa1d   :  { %15051 = vst [vmem:[#allocation94_spill] sm:$0xff] %v12358_v23  ;;  %v15059_v23 = vld [vmem:[#allocation297_spill] sm:$0xff]  ;;  %v12405_v37 = vsel %vm6088_vm3, %v14859_v6, %v15072_v11  ;;  %v12424_v6 = vsel %vm6089_vm4, %v14861_v12, %v15082_v32  ;;  %vm6125_vm3 = vcmp.ge.f32.partialorder %v14945_v44, 0.0  ;;  %v15084_v11 = vld [vmem:[#allocation255_spill] sm:$0xff]  ;;  %vm6129_vm4 = vcmp.ge.f32.partialorder %v14955_v13, 0.0  ;;  %v15093_v32 = vld [vmem:[#allocation30_spill] sm:$0xff] }
 0xa1e   :  { %15053 = vst [vmem:[#allocation311_spill] sm:$0xff] %v12361_v57  ;;  %v12377_v20 = vmul.f32 0.01, %v15059_v23  ;;  %v15061_v57 = vld [vmem:[#allocation298_spill] sm:$0xff] }
 0xa1f   :  { %15055 = vst [vmem:[#allocation95_spill] sm:$0xff] %v12367_v42  ;;  %v12380_v50 = vmul.f32 0.01, %v15061_v57  ;;  %v15066_v42 = vld [vmem:[#allocation35_spill] sm:$0xff] }
 0xa20   :  { %15058 = vst [vmem:[#allocation153_spill] sm:$0xff] %v12374_v61  ;;  %v12393_v61 = vmul.f32 0.01, %v15066_v42 }
 0xa21   :  { %15060 = vst [vmem:[#allocation154_spill] sm:$0xff] %v12377_v20  ;;  %v15068_v20 = vld [vmem:[#allocation36_spill] sm:$0xff] }
 0xa22   :  { %15062 = vst [vmem:[#allocation15_spill] sm:$0xff] %v12380_v50  ;;  %v12396_v57 = vmul.f32 0.01, %v15068_v20  ;;  %v15070_v50 = vld [vmem:[#allocation300_spill] sm:$0xff] }
 0xa23   :  { %15064 = vst [vmem:[#allocation16_spill] sm:$0xff] %v12386_v4  ;;  %v12399_v23 = vmul.f32 0.01, %v15070_v50  ;;  %v15075_v4 = vld [vmem:[#allocation28_spill] sm:$0xff] }
 0xa24   :  { %15067 = vst [vmem:[#allocation17_spill] sm:$0xff] %v12393_v61  ;;  %v15076_v61 = vld [vmem:[#allocation301_spill] sm:$0xff] }
 0xa25   :  { %15069 = vst [vmem:[#allocation18_spill] sm:$0xff] %v12396_v57  ;;  %v12412_v20 = vmul.f32 0.01, %v15076_v61  ;;  %v15078_v57 = vld [vmem:[#allocation302_spill] sm:$0xff]  ;;  %v15091_v61 = vld [vmem:[#allocation97_spill] sm:$0xff] }
 0xa26   :  { %15071 = vst [vmem:[#allocation159_spill] sm:$0xff] %v12399_v23  ;;  %v12415_v50 = vmul.f32 0.01, %v15078_v57  ;;  %v15080_v23 = vld [vmem:[#allocation136_spill] sm:$0xff]  ;;  %v12443_v12 = vsel %vm6090_vm5, %v14864_v8, %v15091_v61  ;;  %v15102_v61 = vld [vmem:[#allocation261_spill] sm:$0xff]  ;;  %vm15114_vm5 = vcmp.ge.f32.partialorder %v14873_v49, 0.0 }
 0xa27   :  { %15073 = vst [vmem:[#allocation160_spill] sm:$0xff] %v12405_v37  ;;  %v12418_v42 = vmul.f32 0.01, %v15080_v23  ;;  %v15085_v37 = vld [vmem:[#allocation37_spill] sm:$0xff] }
 0xa28   :  { %15077 = vst [vmem:[#allocation19_spill] sm:$0xff] %v12412_v20  ;;  %v12431_v20 = vmul.f32 0.01, %v15085_v37  ;;  %v15100_v37 = vld [vmem:[#allocation46_spill] sm:$0xff] }
 0xa29   :  { %15079 = vst [vmem:[#allocation20_spill] sm:$0xff] %v12415_v50  ;;  %v15087_v50 = vld [vmem:[#allocation38_spill] sm:$0xff]  ;;  %v12462_v8 = vsel %vm6091_vm6, %v14866_v52, %v15100_v37  ;;  %v12481_v52 = vsel %vm6092_vm7, %v14868_v5, %v15110_v59  ;;  %vm6137_vm6 = vcmp.ge.f32.partialorder %v14973_v39, 0.0  ;;  %v15112_v37 = vld [vmem:[#allocation48_spill] sm:$0xff]  ;;  %v15115_v59 = vld [vmem:[#allocation165_spill] sm:$0xff]  ;;  %vm15116_vm7 = vcmp.ge.f32.partialorder %v14875_v51, 0.0 }
 0xa2a   :  { %15081 = vst [vmem:[#allocation21_spill] sm:$0xff] %v12418_v42  ;;  %v12434_v23 = vmul.f32 0.01, %v15087_v50  ;;  %v15089_v42 = vld [vmem:[#allocation304_spill] sm:$0xff] }
 0xa2b   :  { %15083 = vst [vmem:[#allocation98_spill] sm:$0xff] %v12424_v6  ;;  %v12437_v57 = vmul.f32 0.01, %v15089_v42  ;;  %v15094_v6 = vld [vmem:[#allocation305_spill] sm:$0xff] }
 0xa2c   :  { %15086 = vst [vmem:[#allocation99_spill] sm:$0xff] %v12431_v20  ;;  %v12450_v20 = vmul.f32 0.01, %v15094_v6 }
 0xa2d   :  { %15088 = vst [vmem:[#allocation100_spill] sm:$0xff] %v12434_v23  ;;  %v15096_v23 = vld [vmem:[#allocation306_spill] sm:$0xff] }
 0xa2e   :  { %15090 = vst [vmem:[#allocation101_spill] sm:$0xff] %v12437_v57  ;;  %v12453_v42 = vmul.f32 0.01, %v15096_v23  ;;  %v15098_v57 = vld [vmem:[#allocation142_spill] sm:$0xff] }
 0xa2f   :  { %15092 = vst [vmem:[#allocation102_spill] sm:$0xff] %v12443_v12  ;;  %v12456_v50 = vmul.f32 0.01, %v15098_v57  ;;  %v15103_v12 = vld [vmem:[#allocation178_spill] sm:$0xff] }
 0xa30   :  { %15095 = vst [vmem:[#allocation103_spill] sm:$0xff] %v12450_v20  ;;  %v15104_v20 = vld [vmem:[#allocation189_spill] sm:$0xff] }
 0xa31   :  { %15097 = vst [vmem:[#allocation104_spill] sm:$0xff] %v12453_v42  ;;  %v12469_v23 = vmul.f32 0.01, %v15104_v20  ;;  %v15106_v42 = vld [vmem:[#allocation190_spill] sm:$0xff]  ;;  %vm6183_vm11 = vcmp.ge.f32.partialorder %v15104_v20, 0.0 }
 0xa32   :  { %15099 = vst [vmem:[#allocation105_spill] sm:$0xff] %v12456_v50  ;;  %v12472_v57 = vmul.f32 0.01, %v15106_v42  ;;  %v15108_v50 = vld [vmem:[#allocation308_spill] sm:$0xff] }
 0xa33   :  { %15101 = vst [vmem:[#allocation106_spill] sm:$0xff] %v12462_v8  ;;  %v12475_v6 = vmul.f32 0.01, %v15108_v50  ;;  %v12491_v8 = vsel %vm6093_vm8, %v15009_v30, %v15112_v37  ;;  %vm6141_vm8 = vcmp.ge.f32.partialorder %v11673_v58, 0.0  ;;  %v15120_v30 = vld [vmem:[#allocation52_spill] sm:$0xff]  ;;  %v15126_v37 = vld [vmem:[#allocation54_spill] sm:$0xff] }
 0xa34   :  { %15105 = vst [vmem:[#allocation107_spill] sm:$0xff] %v12469_v23 }
 0xa35   :  { %15107 = vst [vmem:[#allocation108_spill] sm:$0xff] %v12472_v57  ;;  %v15117_v57 = vld [vmem:[#allocation50_spill] sm:$0xff] }
 0xa36   :  { %15109 = vst [vmem:[#allocation109_spill] sm:$0xff] %v12475_v6  ;;  %v15113_v6 = vld [vmem:[#allocation49_spill] sm:$0xff]  ;;  %v12509_v23 = vsel %vm15118_vm10, %v15010_v33, %v15117_v57  ;;  %vm15124_vm10 = vcmp.ge.f32.partialorder %v15019_v22, 0.0 }
 0xa37   :  { %15111 = vst [vmem:[#allocation110_spill] sm:$0xff] %v12481_v52  ;;  %v12497_v5 = vsel %vm15114_vm5, %v14873_v49, %v15113_v6  ;;  %v12503_v52 = vsel %vm15116_vm7, %v14875_v51, %v15115_v59  ;;  %v15119_v49 = vld [vmem:[#allocation51_spill] sm:$0xff]  ;;  %vm15121_vm7 = vcmp.ge.f32.partialorder %v14882_v17, 0.0  ;;  %v15123_v57 = vld [vmem:[#allocation53_spill] sm:$0xff]  ;;  %vm15127_vm5 = vcmp.ge.f32.partialorder %v14887_v16, 0.0 }
 0xa38   :  { %v12519_v51 = vsel %vm6097_vm12, %v14880_v53, %v15119_v49  ;;  %v12525_v33 = vsel %vm15121_vm7, %v14882_v17, %v15120_v30  ;;  %v12531_v6 = vsel %vm15124_vm10, %v15019_v22, %v15123_v57  ;;  %v12537_v59 = vsel %vm15127_vm5, %v14887_v16, %v15126_v37  ;;  %v15129_v53 = vld [vmem:[#allocation272_spill] sm:$0xff]  ;;  %v15132_v49 = vld [vmem:[#allocation26_spill] sm:$0xff]  ;;  %v15135_v30 = vld [vmem:[#allocation55_spill] sm:$0xff] }
 0xa39   :  { %15122 = vst [vmem:[#allocation111_spill] sm:$0xff] %v12525_v33  ;;  %vm6145_vm12 = vcmp.ge.f32.partialorder %v11689_v28, 0.0  ;;  %v15130_v17 = vld [vmem:[#allocation24_spill] sm:$0xff]  ;;  %vm15133_vm10 = vcmp.ge.f32.partialorder %v15028_v41, 0.0  ;;  %vm15136_vm5 = vcmp.ge.f32.partialorder %v14894_v0, 0.0  ;;  %v15138_v37 = vld [vmem:[#allocation199_spill] sm:$0xff] }
 0xa3a   :  { %15125 = vst [vmem:[#allocation112_spill] sm:$0xff] %v12531_v6  ;;  %v12547_v22 = vsel %vm6101_vm13, %v14889_v15, %v15130_v17  ;;  %v12553_v16 = vsel %vm15133_vm10, %v15028_v41, %v15132_v49  ;;  %v12559_v57 = vsel %vm15136_vm5, %v14894_v0, %v15135_v30  ;;  %vm15139_vm7 = vcmp.ge.f32.partialorder %v14896_v34, 0.0  ;;  %v15141_v15 = vld [vmem:[#allocation273_spill] sm:$0xff]  ;;  %v15143_v41 = vld [vmem:[#allocation34_spill] sm:$0xff] }
 0xa3b   :  { %15128 = vst [vmem:[#allocation113_spill] sm:$0xff] %v12537_v59  ;;  %v12565_v59 = vsel %vm15139_vm7, %v14896_v34, %v15138_v37  ;;  %vm6149_vm13 = vcmp.ge.f32.partialorder %v15141_v15, 0.0  ;;  %v15142_v17 = vld [vmem:[#allocation33_spill] sm:$0xff]  ;;  %v15144_v49 = vld [vmem:[#allocation202_spill] sm:$0xff]  ;;  %vm15147_vm5 = vcmp.ge.f32.partialorder %v14901_v38, 0.0  ;;  %v15149_v37 = vld [vmem:[#allocation203_spill] sm:$0xff] }
 0xa3c   :  { %15131 = vst [vmem:[#allocation114_spill] sm:$0xff] %v12547_v22  ;;  %v12575_v0 = vsel %vm6105_vm14, %v15037_v60, %v15144_v49  ;;  %v15146_v30 = vld [vmem:[#allocation57_spill] sm:$0xff]  ;;  %vm15150_vm7 = vcmp.ge.f32.partialorder %v14903_v43, 0.0  ;;  %v15157_v49 = vld [vmem:[#allocation278_spill] sm:$0xff] }
 0xa3d   :  { %15134 = vst [vmem:[#allocation115_spill] sm:$0xff] %v12553_v16  ;;  %v12581_v34 = vsel %vm15147_vm5, %v14901_v38, %v15146_v30  ;;  %v15153_v16 = vld [vmem:[#allocation232_spill] sm:$0xff]  ;;  %v15156_v60 = vld [vmem:[#allocation277_spill] sm:$0xff]  ;;  %v15160_v30 = vld [vmem:[#allocation210_spill] sm:$0xff]  ;;  %vm15169_vm5 = vcmp.ge.f32.partialorder %v15047_v45, 0.0 }
 0xa3e   :  { %15137 = vst [vmem:[#allocation116_spill] sm:$0xff] %v12559_v57  ;;  %v15152_v57 = vld [vmem:[#allocation209_spill] sm:$0xff]  ;;  %vm15154_vm10 = vcmp.ge.f32.partialorder %v15153_v16, 0.0  ;;  %vm6153_vm14 = vcmp.ge.f32.partialorder %v15156_v60, 0.0  ;;  %v15159_v38 = vld [vmem:[#allocation280_spill] sm:$0xff] }
 0xa3f   :  { %15140 = vst [vmem:[#allocation117_spill] sm:$0xff] %v12565_v59  ;;  %v12587_v59 = vsel %vm15150_vm7, %v14903_v43, %v15149_v37  ;;  %v12593_v22 = vsel %vm15154_vm10, %v15153_v16, %v15152_v57  ;;  %v12603_v43 = vsel %vm6109_vm15, %v15046_v48, %v15160_v30  ;;  %v15162_v37 = vld [vmem:[#allocation58_spill] sm:$0xff]  ;;  %vm15163_vm7 = vcmp.ge.f32.partialorder %v14910_v10, 0.0  ;;  %v15171_v48 = vld [vmem:[#allocation183_spill] sm:$0xff] }
 0xa40   :  { %15145 = vst [vmem:[#allocation118_spill] sm:$0xff] %v12575_v0  ;;  %v15158_v0 = vld [vmem:[#allocation279_spill] sm:$0xff]  ;;  %v12609_v16 = vsel %vm15163_vm7, %v14910_v10, %v15162_v37  ;;  %v15165_v57 = vld [vmem:[#allocation214_spill] sm:$0xff]  ;;  %vm15166_vm10 = vcmp.ge.f32.partialorder %v14913_v40, 0.0  ;;  %vm6157_vm15 = vcmp.ge.f32.partialorder %v15171_v48, 0.0  ;;  %v15174_v10 = vld [vmem:[#allocation285_spill] sm:$0xff] }
 0xa41   :  { %15148 = vst [vmem:[#allocation119_spill] sm:$0xff] %v12581_v34  ;;  %v15172_v30 = vld [vmem:[#allocation283_spill] sm:$0xff]  ;;  %v15175_v37 = vld [vmem:[#allocation218_spill] sm:$0xff]  ;;  %vm15184_vm7 = vcmp.ge.f32.partialorder %v14924_v2, 0.0 }
 0xa42   :  { %15151 = vst [vmem:[#allocation120_spill] sm:$0xff] %v12587_v59  ;;  %v15168_v59 = vld [vmem:[#allocation215_spill] sm:$0xff] }
 0xa43   :  { %15155 = vst [vmem:[#allocation121_spill] sm:$0xff] %v12593_v22  ;;  %v12615_v22 = vsel %vm15166_vm10, %v14913_v40, %v15165_v57  ;;  %v12621_v34 = vsel %vm15169_vm5, %v15047_v45, %v15168_v59  ;;  %v12631_v40 = vsel %vm6113_vm0, %v14917_v24, %v15175_v37  ;;  %v15177_v57 = vld [vmem:[#allocation219_spill] sm:$0xff]  ;;  %vm15178_vm10 = vcmp.ge.f32.partialorder %v14920_v7, 0.0  ;;  %v15180_v59 = vld [vmem:[#allocation60_spill] sm:$0xff]  ;;  %v15186_v24 = vld [vmem:[#allocation286_spill] sm:$0xff] }
 0xa44   :  { %15161 = vst [vmem:[#allocation122_spill] sm:$0xff] %v12603_v43  ;;  %v15173_v43 = vld [vmem:[#allocation284_spill] sm:$0xff]  ;;  %v12637_v45 = vsel %vm15178_vm10, %v14920_v7, %v15177_v57  ;;  %vm15181_vm5 = vcmp.ge.f32.partialorder %v15056_v47, 0.0  ;;  %vm6161_vm0 = vcmp.ge.f32.partialorder %v15186_v24, 0.0  ;;  %v15187_v37 = vld [vmem:[#allocation289_spill] sm:$0xff]  ;;  %v15189_v7 = vld [vmem:[#allocation291_spill] sm:$0xff] }
 0xa45   :  { %15164 = vst [vmem:[#allocation123_spill] sm:$0xff] %v12609_v16  ;;  %v15190_v57 = vld [vmem:[#allocation225_spill] sm:$0xff] }
 0xa46   :  { %15167 = vst [vmem:[#allocation124_spill] sm:$0xff] %v12615_v22  ;;  %v15183_v22 = vld [vmem:[#allocation224_spill] sm:$0xff] }
 0xa47   :  { %15170 = vst [vmem:[#allocation125_spill] sm:$0xff] %v12621_v34  ;;  %v12643_v34 = vsel %vm15181_vm5, %v15056_v47, %v15180_v59  ;;  %v12649_v16 = vsel %vm15184_vm7, %v14924_v2, %v15183_v22  ;;  %v12659_v47 = vsel %vm6117_vm1, %v14927_v25, %v15190_v57  ;;  %v15192_v59 = vld [vmem:[#allocation62_spill] sm:$0xff]  ;;  %vm15193_vm5 = vcmp.ge.f32.partialorder %v15065_v54, 0.0  ;;  %v15202_v25 = vld [vmem:[#allocation292_spill] sm:$0xff] }
 0xa48   :  { %15176 = vst [vmem:[#allocation126_spill] sm:$0xff] %v12631_v40  ;;  %v15188_v40 = vld [vmem:[#allocation290_spill] sm:$0xff]  ;;  %v12665_v2 = vsel %vm15193_vm5, %v15065_v54, %v15192_v59  ;;  %vm15196_vm7 = vcmp.ge.f32.partialorder %v14931_v18, 0.0  ;;  %vm6165_vm1 = vcmp.ge.f32.partialorder %v15202_v25, 0.0  ;;  %v15203_v57 = vld [vmem:[#allocation184_spill] sm:$0xff]  ;;  %vm15215_vm5 = vcmp.ge.f32.partialorder %v15075_v4, 0.0 }
 0xa49   :  { %15179 = vst [vmem:[#allocation127_spill] sm:$0xff] %v12637_v45  ;;  %v15195_v22 = vld [vmem:[#allocation226_spill] sm:$0xff]  ;;  %v15199_v45 = vld [vmem:[#allocation248_spill] sm:$0xff] }
 0xa4a   :  { %15182 = vst [vmem:[#allocation128_spill] sm:$0xff] %v12643_v34  ;;  %v15198_v34 = vld [vmem:[#allocation227_spill] sm:$0xff]  ;;  %vm15200_vm10 = vcmp.ge.f32.partialorder %v15199_v45, 0.0  ;;  %v15205_v54 = vld [vmem:[#allocation296_spill] sm:$0xff] }
 0xa4b   :  { %15185 = vst [vmem:[#allocation129_spill] sm:$0xff] %v12649_v16  ;;  %v12671_v16 = vsel %vm15196_vm7, %v14931_v18, %v15195_v22  ;;  %v12677_v6 = vsel %vm15200_vm10, %v15199_v45, %v15198_v34  ;;  %v15206_v59 = vld [vmem:[#allocation64_spill] sm:$0xff]  ;;  %v15208_v22 = vld [vmem:[#allocation230_spill] sm:$0xff]  ;;  %vm15209_vm7 = vcmp.ge.f32.partialorder %v14938_v26, 0.0  ;;  %v15211_v45 = vld [vmem:[#allocation231_spill] sm:$0xff]  ;;  %vm15212_vm10 = vcmp.ge.f32.partialorder %v14941_v62, 0.0 }
 0xa4c   :  { %15191 = vst [vmem:[#allocation130_spill] sm:$0xff] %v12659_v47  ;;  %v15204_v47 = vld [vmem:[#allocation295_spill] sm:$0xff]  ;;  %v12687_v18 = vsel %vm6121_vm2, %v15074_v14, %v15206_v59  ;;  %v12693_v34 = vsel %vm15209_vm7, %v14938_v26, %v15208_v22  ;;  %v15217_v14 = vld [vmem:[#allocation297_spill] sm:$0xff]  ;;  %v15218_v59 = vld [vmem:[#allocation298_spill] sm:$0xff]  ;;  %vm15230_vm7 = vcmp.ge.f32.partialorder %v14952_v31, 0.0 }
 0xa4d   :  { %15194 = vst [vmem:[#allocation131_spill] sm:$0xff] %v12665_v2  ;;  %vm6169_vm2 = vcmp.ge.f32.partialorder %v15217_v14, 0.0  ;;  %v15220_v26 = vld [vmem:[#allocation36_spill] sm:$0xff]  ;;  %v15221_v22 = vld [vmem:[#allocation234_spill] sm:$0xff] }
 0xa4e   :  { %15197 = vst [vmem:[#allocation132_spill] sm:$0xff] %v12671_v16  ;;  %v15214_v16 = vld [vmem:[#allocation66_spill] sm:$0xff] }
 0xa4f   :  { %15201 = vst [vmem:[#allocation133_spill] sm:$0xff] %v12677_v6  ;;  %v12699_v6 = vsel %vm15212_vm10, %v14941_v62, %v15211_v45  ;;  %v12705_v2 = vsel %vm15215_vm5, %v15075_v4, %v15214_v16  ;;  %v12715_v62 = vsel %vm6125_vm3, %v14945_v44, %v15221_v22  ;;  %v15223_v45 = vld [vmem:[#allocation235_spill] sm:$0xff]  ;;  %vm15224_vm10 = vcmp.ge.f32.partialorder %v14948_v1, 0.0  ;;  %v15226_v16 = vld [vmem:[#allocation68_spill] sm:$0xff]  ;;  %v15233_v22 = vld [vmem:[#allocation301_spill] sm:$0xff] }
 0xa50   :  { %15207 = vst [vmem:[#allocation134_spill] sm:$0xff] %v12687_v18  ;;  %v15219_v18 = vld [vmem:[#allocation35_spill] sm:$0xff]  ;;  %v12721_v4 = vsel %vm15224_vm10, %v14948_v1, %v15223_v45  ;;  %vm15227_vm5 = vcmp.ge.f32.partialorder %v15084_v11, 0.0  ;;  %v15232_v44 = vld [vmem:[#allocation300_spill] sm:$0xff]  ;;  %v15236_v45 = vld [vmem:[#allocation241_spill] sm:$0xff]  ;;  %vm15253_vm3 = vcmp.ge.f32.partialorder %v15102_v61, 0.0 }
 0xa51   :  { %15210 = vst [vmem:[#allocation137_spill] sm:$0xff] %v12693_v34  ;;  %v15235_v1 = vld [vmem:[#allocation136_spill] sm:$0xff] }
 0xa52   :  { %15213 = vst [vmem:[#allocation138_spill] sm:$0xff] %v12699_v6  ;;  %v15229_v6 = vld [vmem:[#allocation240_spill] sm:$0xff] }
 0xa53   :  { %15216 = vst [vmem:[#allocation139_spill] sm:$0xff] %v12705_v2  ;;  %v12727_v2 = vsel %vm15227_vm5, %v15084_v11, %v15226_v16  ;;  %v12733_v34 = vsel %vm15230_vm7, %v14952_v31, %v15229_v6  ;;  %v12743_v11 = vsel %vm6129_vm4, %v14955_v13, %v15236_v45  ;;  %v15238_v16 = vld [vmem:[#allocation70_spill] sm:$0xff]  ;;  %vm15239_vm5 = vcmp.ge.f32.partialorder %v15093_v32, 0.0  ;;  %v15241_v6 = vld [vmem:[#allocation245_spill] sm:$0xff] }
 0xa54   :  { %15222 = vst [vmem:[#allocation140_spill] sm:$0xff] %v12715_v62  ;;  %v15234_v62 = vld [vmem:[#allocation302_spill] sm:$0xff]  ;;  %v12749_v31 = vsel %vm15239_vm5, %v15093_v32, %v15238_v16  ;;  %vm15242_vm7 = vcmp.ge.f32.partialorder %v14959_v27, 0.0  ;;  %v15248_v13 = vld [vmem:[#allocation37_spill] sm:$0xff]  ;;  %v15252_v16 = vld [vmem:[#allocation72_spill] sm:$0xff]  ;;  %vm15260_vm5 = vcmp.ge.f32.partialorder %v15103_v12, 0.0 }
 0xa55   :  { %15225 = vst [vmem:[#allocation143_spill] sm:$0xff] %v12721_v4  ;;  %v15245_v4 = vld [vmem:[#allocation260_spill] sm:$0xff]  ;;  %vm6177_vm4 = vcmp.ge.f32.partialorder %v15248_v13, 0.0  ;;  %v15249_v45 = vld [vmem:[#allocation38_spill] sm:$0xff]  ;;  %v15251_v32 = vld [vmem:[#allocation305_spill] sm:$0xff] }
 0xa56   :  { %15228 = vst [vmem:[#allocation144_spill] sm:$0xff] %v12727_v2  ;;  %v15244_v2 = vld [vmem:[#allocation246_spill] sm:$0xff]  ;;  %vm15246_vm10 = vcmp.ge.f32.partialorder %v15245_v4, 0.0 }
 0xa57   :  { %15231 = vst [vmem:[#allocation145_spill] sm:$0xff] %v12733_v34  ;;  %v12755_v34 = vsel %vm15242_vm7, %v14959_v27, %v15241_v6  ;;  %v12761_v33 = vsel %vm15246_vm10, %v15245_v4, %v15244_v2  ;;  %v12771_v27 = vsel %vm15253_vm3, %v15102_v61, %v15252_v16  ;;  %v15254_v6 = vld [vmem:[#allocation251_spill] sm:$0xff]  ;;  %vm15255_vm7 = vcmp.ge.f32.partialorder %v14966_v29, 0.0  ;;  %v15256_v4 = vld [vmem:[#allocation252_spill] sm:$0xff]  ;;  %v15262_v61 = vld [vmem:[#allocation306_spill] sm:$0xff] }
 0xa58   :  { %15237 = vst [vmem:[#allocation146_spill] sm:$0xff] %v12743_v11  ;;  %v15250_v11 = vld [vmem:[#allocation304_spill] sm:$0xff]  ;;  %v12777_v2 = vsel %vm15255_vm7, %v14966_v29, %v15254_v6  ;;  %vm15257_vm10 = vcmp.ge.f32.partialorder %v14969_v55, 0.0  ;;  %vm6181_vm3 = vcmp.ge.f32.partialorder %v15262_v61, 0.0  ;;  %v15263_v16 = vld [vmem:[#allocation142_spill] sm:$0xff]  ;;  %v15264_v29 = vld [vmem:[#allocation257_spill] sm:$0xff] }
 0xa59   :  { %15240 = vst [vmem:[#allocation149_spill] sm:$0xff] %v12749_v31  ;;  %vm6182_vm9 = vcmp.ge.f32.partialorder %v15263_v16, 0.0  ;;  %v15265_v6 = vld [vmem:[#allocation258_spill] sm:$0xff]  ;;  %vm15270_vm7 = vcmp.ge.f32.partialorder %v14980_v63, 0.0 }
 0xa5a   :  { %15243 = vst [vmem:[#allocation150_spill] sm:$0xff] %v12755_v34  ;;  %v15259_v34 = vld [vmem:[#allocation74_spill] sm:$0xff] }
 0xa5b   :  { %15247 = vst [vmem:[#allocation151_spill] sm:$0xff] %v12761_v33  ;;  %v12783_v33 = vsel %vm15257_vm10, %v14969_v55, %v15256_v4  ;;  %v12789_v31 = vsel %vm15260_vm5, %v15103_v12, %v15259_v34  ;;  %v12799_v55 = vsel %vm6137_vm6, %v14973_v39, %v15264_v29  ;;  %vm15266_vm10 = vcmp.ge.f32.partialorder %v14976_v3, 0.0  ;;  %v15267_v34 = vld [vmem:[#allocation76_spill] sm:$0xff]  ;;  %v15272_v29 = vld [vmem:[#allocation78_spill] sm:$0xff] }
 0xa5c   :  { %15258 = vst [vmem:[#allocation152_spill] sm:$0xff] %v12783_v33  ;;  %v12805_v12 = vsel %vm15266_vm10, %v14976_v3, %v15265_v6  ;;  %vm15268_vm5 = vcmp.ge.f32.partialorder %v14978_v21, 0.0  ;;  %vm6185_vm6 = vcmp.ge.f32.partialorder %v15108_v50, 0.0  ;;  %v15271_v39 = vld [vmem:[#allocation264_spill] sm:$0xff]  ;;  %vm15273_vm10 = vcmp.ge.f32.partialorder %v14984_v35, 0.0  ;;  %v15274_v6 = vld [vmem:[#allocation269_spill] sm:$0xff] }
 0xa5d   :  { %15261 = vst [vmem:[#allocation155_spill] sm:$0xff] %v12789_v31  ;;  %v12811_v4 = vsel %vm15268_vm5, %v14978_v21, %v15267_v34  ;;  %v15269_v31 = vld [vmem:[#allocation263_spill] sm:$0xff]  ;;  %v12824_v3 = vsel %vm6141_vm8, %v11673_v58, %v15271_v39  ;;  %v12830_v21 = vsel %vm15273_vm10, %v14984_v35, %v15272_v29  ;;  %vm15275_vm5 = vcmp.ge.f32.partialorder %v11681_v56, 0.0  ;;  %v15278_v58 = vld [vmem:[#allocation80_spill] sm:$0xff] }
 0xa5e   :  { %v12817_v33 = vsel %vm15270_vm7, %v14980_v63, %v15269_v31  ;;  %v12836_v63 = vsel %vm15275_vm5, %v11681_v56, %v15274_v6  ;;  %v15276_v31 = vld [vmem:[#allocation270_spill] sm:$0xff]  ;;  %vm15277_vm7 = vcmp.ge.f32.partialorder %v14988_v19, 0.0  ;;  %v12848_v39 = vsel %vm6145_vm12, %v11689_v28, %v15278_v58  ;;  %v15279_v35 = vld [vmem:[#allocation275_spill] sm:$0xff]  ;;  %v15281_v56 = vld [vmem:[#allocation276_spill] sm:$0xff] }
 0xa5f   :  { %v12842_v34 = vsel %vm15277_vm7, %v14988_v19, %v15276_v31  ;;  %vm15280_vm8 = vcmp.ge.f32.partialorder %v14991_v9, 0.0  ;;  %vm15282_vm10 = vcmp.ge.f32.partialorder %v11697_v46, 0.0  ;;  %v15283_v19 = vld [vmem:[#allocation82_spill] sm:$0xff]  ;;  %vm15284_vm5 = vcmp.ge.f32.partialorder %v15129_v53, 0.0  ;;  %v15285_v28 = vld [vmem:[#allocation281_spill] sm:$0xff] }
 0xa60   :  { %v12854_v29 = vsel %vm15280_vm8, %v14991_v9, %v15279_v35  ;;  %v12860_v6 = vsel %vm15282_vm10, %v11697_v46, %v15281_v56  ;;  %v12866_v31 = vsel %vm15284_vm5, %v15129_v53, %v15283_v19  ;;  %v12872_v58 = vsel %vm6149_vm13, %v15141_v15, %v15285_v28  ;;  %v15286_v9 = vld [vmem:[#allocation282_spill] sm:$0xff]  ;;  %v15288_v46 = vld [vmem:[#allocation84_spill] sm:$0xff]  ;;  %v15290_v53 = vld [vmem:[#allocation287_spill] sm:$0xff] }
 0xa61   :  { %vm15287_vm12 = vcmp.ge.f32.partialorder %v15001_v36, 0.0  ;;  %vm15289_vm7 = vcmp.ge.f32.partialorder %v15142_v17, 0.0  ;;  %vm15291_vm8 = vcmp.ge.f32.partialorder %v15143_v41, 0.0  ;;  %v15292_v15 = vld [vmem:[#allocation288_spill] sm:$0xff]  ;;  %vm15294_vm13 = vcmp.ge.f32.partialorder %v15157_v49, 0.0 }
 0xa62   :  { %v12878_v35 = vsel %vm15287_vm12, %v15001_v36, %v15286_v9  ;;  %v12884_v56 = vsel %vm15289_vm7, %v15142_v17, %v15288_v46  ;;  %v12890_v19 = vsel %vm15291_vm8, %v15143_v41, %v15290_v53  ;;  %v12896_v28 = vsel %vm6153_vm14, %v15156_v60, %v15292_v15  ;;  %v15293_v36 = vld [vmem:[#allocation86_spill] sm:$0xff]  ;;  %v15295_v17 = vld [vmem:[#allocation293_spill] sm:$0xff]  ;;  %v15301_v60 = vld [vmem:[#allocation88_spill] sm:$0xff] }
 0xa63   :  { %v12902_v9 = vsel %vm15294_vm13, %v15157_v49, %v15293_v36  ;;  %vm15296_vm10 = vcmp.ge.f32.partialorder %v15158_v0, 0.0  ;;  %v15298_v41 = vld [vmem:[#allocation294_spill] sm:$0xff]  ;;  %vm15299_vm5 = vcmp.ge.f32.partialorder %v15159_v38, 0.0  ;;  %v12920_v15 = vsel %vm6157_vm15, %v15171_v48, %v15301_v60  ;;  %v15303_v49 = vld [vmem:[#allocation299_spill] sm:$0xff] }
 0xa64   :  { %v12908_v46 = vsel %vm15296_vm10, %v15158_v0, %v15295_v17  ;;  %v12914_v53 = vsel %vm15299_vm5, %v15159_v38, %v15298_v41  ;;  %15302 = vst [vmem:[#allocation158_spill] sm:$0xff] %v12920_v15  ;;  %vm15304_vm14 = vcmp.ge.f32.partialorder %v15172_v30, 0.0  ;;  %v15306_v0 = vld [vmem:[#allocation135_spill] sm:$0xff]  ;;  %vm15307_vm12 = vcmp.ge.f32.partialorder %v15173_v43, 0.0  ;;  %v15309_v38 = vld [vmem:[#allocation90_spill] sm:$0xff]  ;;  %v15439_v15 = vld [vmem:[#allocation140_spill] sm:$0xff] }
 0xa65   :  { %15297 = vst [vmem:[#allocation156_spill] sm:$0xff] %v12908_v46  ;;  %v12926_v36 = vsel %vm15304_vm14, %v15172_v30, %v15303_v49  ;;  %v12932_v17 = vsel %vm15307_vm12, %v15173_v43, %v15306_v0  ;;  %vm15310_vm7 = vcmp.ge.f32.partialorder %v15174_v10, 0.0  ;;  %v15312_v48 = vld [vmem:[#allocation303_spill] sm:$0xff]  ;;  %v15314_v30 = vld [vmem:[#allocation141_spill] sm:$0xff]  ;;  %vm15315_vm15 = vcmp.ge.f32.partialorder %v15187_v37, 0.0  ;;  %v15317_v43 = vld [vmem:[#allocation92_spill] sm:$0xff] }
 0xa66   :  { %15300 = vst [vmem:[#allocation157_spill] sm:$0xff] %v12914_v53  ;;  %v12938_v41 = vsel %vm15310_vm7, %v15174_v10, %v15309_v38  ;;  %v12944_v60 = vsel %vm6161_vm0, %v15186_v24, %v15312_v48  ;;  %v12950_v49 = vsel %vm15315_vm15, %v15187_v37, %v15314_v30  ;;  %vm15318_vm8 = vcmp.ge.f32.partialorder %v15188_v40, 0.0  ;;  %v15320_v10 = vld [vmem:[#allocation307_spill] sm:$0xff]  ;;  %v15325_v37 = vld [vmem:[#allocation94_spill] sm:$0xff] }
 0xa67   :  { %15305 = vst [vmem:[#allocation161_spill] sm:$0xff] %v12926_v36  ;;  %v12956_v0 = vsel %vm15318_vm8, %v15188_v40, %v15317_v43  ;;  %vm15321_vm13 = vcmp.ge.f32.partialorder %v15189_v7, 0.0  ;;  %v15323_v24 = vld [vmem:[#allocation147_spill] sm:$0xff]  ;;  %vm15326_vm0 = vcmp.ge.f32.partialorder %v15203_v57, 0.0  ;;  %vm15329_vm10 = vcmp.ge.f32.partialorder %v15204_v47, 0.0 }
 0xa68   :  { %15308 = vst [vmem:[#allocation162_spill] sm:$0xff] %v12932_v17  ;;  %v12962_v38 = vsel %vm15321_vm13, %v15189_v7, %v15320_v10  ;;  %v12968_v48 = vsel %vm6165_vm1, %v15202_v25, %v15323_v24  ;;  %v12974_v30 = vsel %vm15326_vm0, %v15203_v57, %v15325_v37  ;;  %v15328_v40 = vld [vmem:[#allocation311_spill] sm:$0xff]  ;;  %v15331_v7 = vld [vmem:[#allocation153_spill] sm:$0xff]  ;;  %vm15332_vm5 = vcmp.ge.f32.partialorder %v15205_v54, 0.0  ;;  %v15334_v25 = vld [vmem:[#allocation154_spill] sm:$0xff] }
 0xa69   :  { %15311 = vst [vmem:[#allocation163_spill] sm:$0xff] %v12938_v41  ;;  %v12980_v43 = vsel %vm15329_vm10, %v15204_v47, %v15328_v40  ;;  %v12986_v10 = vsel %vm15332_vm5, %v15205_v54, %v15331_v7  ;;  %v12992_v24 = vsel %vm6169_vm2, %v15217_v14, %v15334_v25  ;;  %v15336_v57 = vld [vmem:[#allocation15_spill] sm:$0xff]  ;;  %vm15337_vm1 = vcmp.ge.f32.partialorder %v15218_v59, 0.0  ;;  %v15339_v47 = vld [vmem:[#allocation17_spill] sm:$0xff]  ;;  %v15342_v54 = vld [vmem:[#allocation18_spill] sm:$0xff] }
 0xa6a   :  { %15313 = vst [vmem:[#allocation164_spill] sm:$0xff] %v12944_v60  ;;  %v12998_v37 = vsel %vm15337_vm1, %v15218_v59, %v15336_v57  ;;  %vm15340_vm14 = vcmp.ge.f32.partialorder %v15219_v18, 0.0  ;;  %vm15343_vm12 = vcmp.ge.f32.partialorder %v15220_v26, 0.0  ;;  %v15345_v14 = vld [vmem:[#allocation159_spill] sm:$0xff]  ;;  %vm15346_vm2 = vcmp.ge.f32.partialorder %v15232_v44, 0.0  ;;  %v15431_v41 = vld [vmem:[#allocation130_spill] sm:$0xff] }
 0xa6b   :  { %15316 = vst [vmem:[#allocation167_spill] sm:$0xff] %v12950_v49  ;;  %v13004_v40 = vsel %vm15340_vm14, %v15219_v18, %v15339_v47  ;;  %v13010_v7 = vsel %vm15343_vm12, %v15220_v26, %v15342_v54  ;;  %v13016_v25 = vsel %vm15346_vm2, %v15232_v44, %v15345_v14  ;;  %v15348_v59 = vld [vmem:[#allocation19_spill] sm:$0xff]  ;;  %vm15349_vm7 = vcmp.ge.f32.partialorder %v15233_v22, 0.0  ;;  %v15351_v18 = vld [vmem:[#allocation20_spill] sm:$0xff]  ;;  %v15354_v26 = vld [vmem:[#allocation21_spill] sm:$0xff] }
 0xa6c   :  { %15319 = vst [vmem:[#allocation168_spill] sm:$0xff] %v12956_v0  ;;  %v13022_v57 = vsel %vm15349_vm7, %v15233_v22, %v15348_v59  ;;  %vm15352_vm15 = vcmp.ge.f32.partialorder %v15234_v62, 0.0  ;;  %vm15355_vm8 = vcmp.ge.f32.partialorder %v15235_v1, 0.0  ;;  %v15357_v44 = vld [vmem:[#allocation99_spill] sm:$0xff]  ;;  %v15359_v22 = vld [vmem:[#allocation100_spill] sm:$0xff]  ;;  %vm15360_vm13 = vcmp.ge.f32.partialorder %v15249_v45, 0.0 }
 0xa6d   :  { %15322 = vst [vmem:[#allocation169_spill] sm:$0xff] %v12962_v38  ;;  %v13028_v47 = vsel %vm15352_vm15, %v15234_v62, %v15351_v18  ;;  %v13034_v54 = vsel %vm15355_vm8, %v15235_v1, %v15354_v26  ;;  %v13040_v14 = vsel %vm6177_vm4, %v15248_v13, %v15357_v44  ;;  %v13046_v59 = vsel %vm15360_vm13, %v15249_v45, %v15359_v22  ;;  %v15362_v62 = vld [vmem:[#allocation101_spill] sm:$0xff]  ;;  %v15365_v1 = vld [vmem:[#allocation103_spill] sm:$0xff]  ;;  %v15368_v13 = vld [vmem:[#allocation104_spill] sm:$0xff] }
 0xa6e   :  { %15324 = vst [vmem:[#allocation170_spill] sm:$0xff] %v12968_v48  ;;  %vm15363_vm0 = vcmp.ge.f32.partialorder %v15250_v11, 0.0  ;;  %vm15366_vm10 = vcmp.ge.f32.partialorder %v15251_v32, 0.0  ;;  %v13064_v44 = vsel %vm6181_vm3, %v15262_v61, %v15368_v13  ;;  %v15370_v45 = vld [vmem:[#allocation105_spill] sm:$0xff]  ;;  %vm15375_vm4 = vcmp.ge.f32.partialorder %v15106_v42, 0.0  ;;  %v15423_v0 = vld [vmem:[#allocation122_spill] sm:$0xff] }
 0xa6f   :  { %15327 = vst [vmem:[#allocation173_spill] sm:$0xff] %v12974_v30  ;;  %v13052_v18 = vsel %vm15363_vm0, %v15250_v11, %v15362_v62  ;;  %v13058_v26 = vsel %vm15366_vm10, %v15251_v32, %v15365_v1  ;;  %v13070_v22 = vsel %vm6182_vm9, %v15263_v16, %v15370_v45  ;;  %v15372_v11 = vld [vmem:[#allocation107_spill] sm:$0xff]  ;;  %v15374_v32 = vld [vmem:[#allocation108_spill] sm:$0xff]  ;;  %v15377_v61 = vld [vmem:[#allocation109_spill] sm:$0xff] }
 0xa70   :  { %15330 = vst [vmem:[#allocation174_spill] sm:$0xff] %v12980_v43  ;;  %v13076_v62 = vsel %vm6183_vm11, %v15104_v20, %v15372_v11  ;;  %v13082_v1 = vsel %vm15375_vm4, %v15106_v42, %v15374_v32  ;;  %v13088_v13 = vsel %vm6185_vm6, %v15108_v50, %v15377_v61  ;;  %v15379_v16 = vld [vmem:[#allocation45_spill] sm:$0xff]  ;;  %v15380_v45 = vld [vmem:[#allocation47_spill] sm:$0xff]  ;;  %v15384_v11 = vld [vmem:[#allocation56_spill] sm:$0xff] }
 0xa71   :  { %15333 = vst [vmem:[#allocation175_spill] sm:$0xff] %v12986_v10  ;;  %v15383_v20 = vld [vmem:[#allocation25_spill] sm:$0xff]  ;;  %v15387_v42 = vld [vmem:[#allocation59_spill] sm:$0xff] }
 0xa72   :  { %15335 = vst [vmem:[#allocation176_spill] sm:$0xff] %v12992_v24  ;;  %v15388_v32 = vld [vmem:[#allocation61_spill] sm:$0xff]  ;;  %v15391_v50 = vld [vmem:[#allocation67_spill] sm:$0xff] }
 0xa73   :  { %15338 = vst [vmem:[#allocation179_spill] sm:$0xff] %v12998_v37  ;;  %v15392_v61 = vld [vmem:[#allocation69_spill] sm:$0xff]  ;;  %v15397_v37 = vld [vmem:[#allocation79_spill] sm:$0xff] }
 0xa74   :  { %15341 = vst [vmem:[#allocation180_spill] sm:$0xff] %v13004_v40  ;;  %v15395_v40 = vld [vmem:[#allocation75_spill] sm:$0xff] }
 0xa75   :  { %15344 = vst [vmem:[#allocation181_spill] sm:$0xff] %v13010_v7  ;;  %v15393_v7 = vld [vmem:[#allocation71_spill] sm:$0xff] }
 0xa76   :  { %15347 = vst [vmem:[#allocation182_spill] sm:$0xff] %v13016_v25  ;;  %v15399_v24 = vld [vmem:[#allocation83_spill] sm:$0xff] }
 0xa77   :  { %15350 = vst [vmem:[#allocation185_spill] sm:$0xff] %v13022_v57  ;;  %v15390_v57 = vld [vmem:[#allocation65_spill] sm:$0xff] }
 0xa78   :  { %15353 = vst [vmem:[#allocation186_spill] sm:$0xff] %v13028_v47  ;;  %v15389_v47 = vld [vmem:[#allocation63_spill] sm:$0xff] }
 0xa79   :  { %15356 = vst [vmem:[#allocation187_spill] sm:$0xff] %v13034_v54  ;;  %v6449_v25 = vpack.c.bf16 %v15390_v57, %v15389_v47  ;;  %v15403_v57 = vld [vmem:[#allocation91_spill] sm:$0xff]  ;;  %v15404_v47 = vld [vmem:[#allocation93_spill] sm:$0xff] }
 0xa7a   :  { %15358 = vst [vmem:[#allocation188_spill] sm:$0xff] %v13040_v14  ;;  %v15386_v14 = vld [vmem:[#allocation211_spill] sm:$0xff]  ;;  %v6456_v43 = vpack.c.bf16 %v15404_v47, %v15403_v57  ;;  %v15414_v47 = vld [vmem:[#allocation113_spill] sm:$0xff] }
 0xa7b   :  { %15361 = vst [vmem:[#allocation191_spill] sm:$0xff] %v13046_v59  ;;  %v15385_v59 = vld [vmem:[#allocation208_spill] sm:$0xff] }
 0xa7c   :  { %15364 = vst [vmem:[#allocation192_spill] sm:$0xff] %v13052_v18  ;;  %v6447_v54 = vpack.c.bf16 %v15386_v14, %v15385_v59  ;;  %v15400_v14 = vld [vmem:[#allocation85_spill] sm:$0xff] }
 0xa7d   :  { %15367 = vst [vmem:[#allocation193_spill] sm:$0xff] %v13058_v26  ;;  %v15382_v26 = vld [vmem:[#allocation23_spill] sm:$0xff]  ;;  %v6454_v59 = vpack.c.bf16 %v15400_v14, %v15399_v24  ;;  %v6462_v14 = vpack.c.bf16 %v12519_v51, %v12509_v23 }
 0xa7e   :  { %15369 = vst [vmem:[#allocation194_spill] sm:$0xff] %v13064_v44  ;;  %v15381_v44 = vld [vmem:[#allocation166_spill] sm:$0xff]  ;;  %v15424_v51 = vld [vmem:[#allocation123_spill] sm:$0xff] }
 0xa7f   :  { %15371 = vst [vmem:[#allocation195_spill] sm:$0xff] %v13070_v22  ;;  %v6444_v22 = vpack.c.bf16 %v15380_v45, %v15379_v16  ;;  %v6445_v18 = vpack.c.bf16 %v15382_v26, %v15381_v44  ;;  %v15394_v16 = vld [vmem:[#allocation73_spill] sm:$0xff] }
 0xa80   :  { %15373 = vst [vmem:[#allocation196_spill] sm:$0xff] %v13076_v62  ;;  %v6446_v62 = vpack.c.bf16 %v15384_v11, %v15383_v20  ;;  %v6451_v45 = vpack.c.bf16 %v15394_v16, %v15393_v7  ;;  %v15396_v26 = vld [vmem:[#allocation77_spill] sm:$0xff]  ;;  %v15407_v7 = vld [vmem:[#allocation160_spill] sm:$0xff]  ;;  %v15408_v16 = vld [vmem:[#allocation98_spill] sm:$0xff] }
 0xa81   :  { %15376 = vst [vmem:[#allocation197_spill] sm:$0xff] %v13082_v1  ;;  %v6448_v1 = vpack.c.bf16 %v15388_v32, %v15387_v42  ;;  %v6452_v44 = vpack.c.bf16 %v15396_v26, %v15395_v40  ;;  %v15398_v20 = vld [vmem:[#allocation81_spill] sm:$0xff]  ;;  %v15401_v42 = vld [vmem:[#allocation87_spill] sm:$0xff]  ;;  %v6458_v48 = vpack.c.bf16 %v15408_v16, %v15407_v7  ;;  %v15409_v40 = vld [vmem:[#allocation102_spill] sm:$0xff] }
 0xa82   :  { %15378 = vst [vmem:[#allocation198_spill] sm:$0xff] %v13088_v13  ;;  %v6450_v13 = vpack.c.bf16 %v15392_v61, %v15391_v50  ;;  %v6453_v11 = vpack.c.bf16 %v15398_v20, %v15397_v37  ;;  %v15402_v32 = vld [vmem:[#allocation89_spill] sm:$0xff]  ;;  %v15405_v50 = vld [vmem:[#allocation95_spill] sm:$0xff]  ;;  %v15406_v61 = vld [vmem:[#allocation16_spill] sm:$0xff] }
 0xa83   :  { %6508 = vst [vmem:[#allocation11] sm:$0xff] %v6444_v22  ;;  %v6455_v10 = vpack.c.bf16 %v15402_v32, %v15401_v42  ;;  %v6457_v30 = vpack.c.bf16 %v15406_v61, %v15405_v50  ;;  %v15410_v26 = vld [vmem:[#allocation106_spill] sm:$0xff]  ;;  %v6461_v22 = vpack.c.bf16 %v12503_v52, %v12497_v5  ;;  %v15412_v42 = vld [vmem:[#allocation111_spill] sm:$0xff]  ;;  %v15413_v32 = vld [vmem:[#allocation112_spill] sm:$0xff] }
 0xa84   :  { %6509 = vst [vmem:[#allocation11 + $0x8] sm:$0xff] %v6445_v18  ;;  %v6459_v37 = vpack.c.bf16 %v15410_v26, %v15409_v40  ;;  %v15411_v20 = vld [vmem:[#allocation110_spill] sm:$0xff]  ;;  %v6463_v57 = vpack.c.bf16 %v15413_v32, %v15412_v42  ;;  %v15416_v18 = vld [vmem:[#allocation115_spill] sm:$0xff]  ;;  %v15417_v7 = vld [vmem:[#allocation116_spill] sm:$0xff] }
 0xa85   :  { %v6460_v24 = vpack.c.bf16 %v12491_v8, %v15411_v20  ;;  %6510 = vst [vmem:[#allocation11 + $0x10] sm:$0xff] %v6446_v62  ;;  %v15415_v50 = vld [vmem:[#allocation114_spill] sm:$0xff]  ;;  %v6465_v16 = vpack.c.bf16 %v15417_v7, %v15416_v18  ;;  %v15418_v40 = vld [vmem:[#allocation117_spill] sm:$0xff]  ;;  %v15420_v8 = vld [vmem:[#allocation119_spill] sm:$0xff] }
 0xa86   :  { %v6464_v61 = vpack.c.bf16 %v15415_v50, %v15414_v47  ;;  %v15419_v26 = vld [vmem:[#allocation118_spill] sm:$0xff]  ;;  %6511 = vst [vmem:[#allocation11 + $0x18] sm:$0xff] %v6447_v54  ;;  %v15421_v20 = vld [vmem:[#allocation120_spill] sm:$0xff]  ;;  %v15422_v5 = vld [vmem:[#allocation121_spill] sm:$0xff] }
 0xa87   :  { %v6466_v38 = vpack.c.bf16 %v15419_v26, %v15418_v40  ;;  %v6467_v52 = vpack.c.bf16 %v15421_v20, %v15420_v8  ;;  %v6468_v23 = vpack.c.bf16 %v15423_v0, %v15422_v5  ;;  %v15425_v62 = vld [vmem:[#allocation124_spill] sm:$0xff]  ;;  %v15426_v42 = vld [vmem:[#allocation125_spill] sm:$0xff]  ;;  %v15427_v32 = vld [vmem:[#allocation126_spill] sm:$0xff]  ;;  %6512 = vst [vmem:[#allocation11 + $0x20] sm:$0xff] %v6448_v1 }
 0xa88   :  { %v6469_v49 = vpack.c.bf16 %v15425_v62, %v15424_v51  ;;  %v6470_v60 = vpack.c.bf16 %v15427_v32, %v15426_v42  ;;  %v15428_v47 = vld [vmem:[#allocation127_spill] sm:$0xff]  ;;  %v15429_v50 = vld [vmem:[#allocation128_spill] sm:$0xff]  ;;  %v15430_v7 = vld [vmem:[#allocation129_spill] sm:$0xff]  ;;  %6513 = vst [vmem:[#allocation11 + $0x28] sm:$0xff] %v6449_v25 }
 0xa89   :  { %v6471_v18 = vpack.c.bf16 %v15429_v50, %v15428_v47  ;;  %v6472_v40 = vpack.c.bf16 %v15431_v41, %v15430_v7  ;;  %v15432_v54 = vld [vmem:[#allocation131_spill] sm:$0xff]  ;;  %v15433_v26 = vld [vmem:[#allocation132_spill] sm:$0xff]  ;;  %v15434_v8 = vld [vmem:[#allocation133_spill] sm:$0xff]  ;;  %6514 = vst [vmem:[#allocation11 + $0x30] sm:$0xff] %v6450_v13  ;;  %v6485_v13 = vpack.c.bf16 %v12836_v63, %v12830_v21 }
 0xa8a   :  { %v6473_v17 = vpack.c.bf16 %v15433_v26, %v15432_v54  ;;  %v15435_v20 = vld [vmem:[#allocation134_spill] sm:$0xff]  ;;  %v15436_v0 = vld [vmem:[#allocation137_spill] sm:$0xff]  ;;  %v15438_v62 = vld [vmem:[#allocation139_spill] sm:$0xff]  ;;  %6515 = vst [vmem:[#allocation11 + $0x38] sm:$0xff] %v6451_v45 }
 0xa8b   :  { %v6474_v36 = vpack.c.bf16 %v15435_v20, %v15434_v8  ;;  %v15437_v5 = vld [vmem:[#allocation138_spill] sm:$0xff]  ;;  %v6476_v42 = vpack.c.bf16 %v15439_v15, %v15438_v62  ;;  %v15440_v1 = vld [vmem:[#allocation143_spill] sm:$0xff]  ;;  %v15441_v32 = vld [vmem:[#allocation144_spill] sm:$0xff]  ;;  %v6483_v15 = vpack.c.bf16 %v12811_v4, %v12805_v12  ;;  %v6484_v62 = vpack.c.bf16 %v12824_v3, %v12817_v33  ;;  %6516 = vst [vmem:[#allocation11 + $0x40] sm:$0xff] %v6452_v44 }
 0xa8c   :  { %v6475_v51 = vpack.c.bf16 %v15437_v5, %v15436_v0  ;;  %v6477_v53 = vpack.c.bf16 %v15441_v32, %v15440_v1  ;;  %v15442_v47 = vld [vmem:[#allocation145_spill] sm:$0xff]  ;;  %v15443_v50 = vld [vmem:[#allocation146_spill] sm:$0xff]  ;;  %v15446_v26 = vld [vmem:[#allocation151_spill] sm:$0xff]  ;;  %v6486_v1 = vpack.c.bf16 %v12848_v39, %v12842_v34  ;;  %v6490_v12 = vpack.c.bf16 %v12896_v28, %v12890_v19  ;;  %6517 = vst [vmem:[#allocation11 + $0x48] sm:$0xff] %v6453_v11 }
 0xa8d   :  { %v6478_v46 = vpack.c.bf16 %v15443_v50, %v15442_v47  ;;  %v15444_v41 = vld [vmem:[#allocation149_spill] sm:$0xff]  ;;  %v15445_v7 = vld [vmem:[#allocation150_spill] sm:$0xff]  ;;  %v6480_v8 = vpack.c.bf16 %v12771_v27, %v15446_v26  ;;  %v15447_v25 = vld [vmem:[#allocation152_spill] sm:$0xff]  ;;  %v6487_v27 = vpack.c.bf16 %v12860_v6, %v12854_v29  ;;  %6518 = vst [vmem:[#allocation11 + $0x50] sm:$0xff] %v6454_v59 }
 0xa8e   :  { %v6479_v54 = vpack.c.bf16 %v15445_v7, %v15444_v41  ;;  %v6481_v20 = vpack.c.bf16 %v15447_v25, %v12777_v2  ;;  %v15448_v0 = vld [vmem:[#allocation155_spill] sm:$0xff]  ;;  %v6488_v2 = vpack.c.bf16 %v12872_v58, %v12866_v31  ;;  %v15449_v33 = vld [vmem:[#allocation156_spill] sm:$0xff]  ;;  %v15450_v3 = vld [vmem:[#allocation157_spill] sm:$0xff]  ;;  %6519 = vst [vmem:[#allocation11 + $0x58] sm:$0xff] %v6455_v10 }
 0xa8f   :  { %v6482_v5 = vpack.c.bf16 %v12799_v55, %v15448_v0  ;;  %v6489_v55 = vpack.c.bf16 %v12884_v56, %v12878_v35  ;;  %v6491_v4 = vpack.c.bf16 %v15449_v33, %v12902_v9  ;;  %v15451_v21 = vld [vmem:[#allocation158_spill] sm:$0xff]  ;;  %v15452_v34 = vld [vmem:[#allocation161_spill] sm:$0xff]  ;;  %v15454_v29 = vld [vmem:[#allocation163_spill] sm:$0xff]  ;;  %6520 = vst [vmem:[#allocation11 + $0x60] sm:$0xff] %v6456_v43 }
 0xa90   :  { %v6492_v63 = vpack.c.bf16 %v15451_v21, %v15450_v3  ;;  %v15453_v39 = vld [vmem:[#allocation162_spill] sm:$0xff]  ;;  %v15455_v6 = vld [vmem:[#allocation164_spill] sm:$0xff]  ;;  %v15456_v31 = vld [vmem:[#allocation167_spill] sm:$0xff]  ;;  %6521 = vst [vmem:[#allocation11 + $0x68] sm:$0xff] %v6457_v30 }
 0xa91   :  { %v6493_v45 = vpack.c.bf16 %v15453_v39, %v15452_v34  ;;  %v6494_v44 = vpack.c.bf16 %v15455_v6, %v15454_v29  ;;  %v15457_v58 = vld [vmem:[#allocation168_spill] sm:$0xff]  ;;  %v15458_v56 = vld [vmem:[#allocation169_spill] sm:$0xff]  ;;  %v15459_v32 = vld [vmem:[#allocation170_spill] sm:$0xff]  ;;  %6522 = vst [vmem:[#allocation11 + $0x70] sm:$0xff] %v6458_v48 }
 0xa92   :  { %v6495_v35 = vpack.c.bf16 %v15457_v58, %v15456_v31  ;;  %v6496_v19 = vpack.c.bf16 %v15459_v32, %v15458_v56  ;;  %v15460_v28 = vld [vmem:[#allocation173_spill] sm:$0xff]  ;;  %v15461_v11 = vld [vmem:[#allocation174_spill] sm:$0xff]  ;;  %v15462_v9 = vld [vmem:[#allocation175_spill] sm:$0xff]  ;;  %6523 = vst [vmem:[#allocation11 + $0x78] sm:$0xff] %v6459_v37 }
 0xa93   :  { %v6497_v47 = vpack.c.bf16 %v15461_v11, %v15460_v28  ;;  %v15463_v50 = vld [vmem:[#allocation176_spill] sm:$0xff]  ;;  %v15464_v7 = vld [vmem:[#allocation179_spill] sm:$0xff]  ;;  %v15466_v0 = vld [vmem:[#allocation181_spill] sm:$0xff]  ;;  %6524 = vst [vmem:[#allocation11 + $0x80] sm:$0xff] %v6460_v24 }
 0xa94   :  { %v6498_v41 = vpack.c.bf16 %v15463_v50, %v15462_v9  ;;  %v15465_v26 = vld [vmem:[#allocation180_spill] sm:$0xff]  ;;  %v15467_v33 = vld [vmem:[#allocation182_spill] sm:$0xff]  ;;  %v15468_v59 = vld [vmem:[#allocation185_spill] sm:$0xff]  ;;  %6525 = vst [vmem:[#allocation11 + $0x88] sm:$0xff] %v6461_v22 }
 0xa95   :  { %v6499_v25 = vpack.c.bf16 %v15465_v26, %v15464_v7  ;;  %v6500_v3 = vpack.c.bf16 %v15467_v33, %v15466_v0  ;;  %v15469_v21 = vld [vmem:[#allocation186_spill] sm:$0xff]  ;;  %v15470_v39 = vld [vmem:[#allocation187_spill] sm:$0xff]  ;;  %v15471_v29 = vld [vmem:[#allocation188_spill] sm:$0xff]  ;;  %6526 = vst [vmem:[#allocation11 + $0x90] sm:$0xff] %v6462_v14 }
 0xa96   :  { %v6501_v34 = vpack.c.bf16 %v15469_v21, %v15468_v59  ;;  %v6502_v6 = vpack.c.bf16 %v15471_v29, %v15470_v39  ;;  %v15472_v31 = vld [vmem:[#allocation191_spill] sm:$0xff]  ;;  %v15473_v58 = vld [vmem:[#allocation192_spill] sm:$0xff]  ;;  %v15474_v32 = vld [vmem:[#allocation193_spill] sm:$0xff]  ;;  %6527 = vst [vmem:[#allocation11 + $0x98] sm:$0xff] %v6463_v57 }
 0xa97   :  { %v6503_v56 = vpack.c.bf16 %v15473_v58, %v15472_v31  ;;  %v15475_v28 = vld [vmem:[#allocation194_spill] sm:$0xff]  ;;  %v15476_v10 = vld [vmem:[#allocation195_spill] sm:$0xff]  ;;  %v15477_v9 = vld [vmem:[#allocation196_spill] sm:$0xff]  ;;  %6528 = vst [vmem:[#allocation11 + $0xa0] sm:$0xff] %v6464_v61 }
 0xa98   :  { %v6504_v11 = vpack.c.bf16 %v15475_v28, %v15474_v32  ;;  %v6505_v50 = vpack.c.bf16 %v15477_v9, %v15476_v10  ;;  %v15478_v7 = vld [vmem:[#allocation197_spill] sm:$0xff]  ;;  %v15479_v26 = vld [vmem:[#allocation198_spill] sm:$0xff]  ;;  %6529 = vst [vmem:[#allocation11 + $0xa8] sm:$0xff] %v6465_v16 }
 0xa99   :  { %v6506_v0 = vpack.c.bf16 %v15479_v26, %v15478_v7  ;;  %6530 = vst [vmem:[#allocation11 + $0xb0] sm:$0xff] %v6466_v38 }
 0xa9a   :  { %6531 = vst [vmem:[#allocation11 + $0xb8] sm:$0xff] %v6467_v52 }
 0xa9b   :  { %6532 = vst [vmem:[#allocation11 + $0xc0] sm:$0xff] %v6468_v23 }
 0xa9c   :  { %6533 = vst [vmem:[#allocation11 + $0xc8] sm:$0xff] %v6469_v49 }
 0xa9d   :  { %6534 = vst [vmem:[#allocation11 + $0xd0] sm:$0xff] %v6470_v60 }
 0xa9e   :  { %6535 = vst [vmem:[#allocation11 + $0xd8] sm:$0xff] %v6471_v18 }
 0xa9f   :  { %6536 = vst [vmem:[#allocation11 + $0xe0] sm:$0xff] %v6472_v40 }
 0xaa0   :  { %6537 = vst [vmem:[#allocation11 + $0xe8] sm:$0xff] %v6473_v17 }
 0xaa1   :  { %6538 = vst [vmem:[#allocation11 + $0xf0] sm:$0xff] %v6474_v36 }
 0xaa2   :  { %6539 = vst [vmem:[#allocation11 + $0xf8] sm:$0xff] %v6475_v51 }
 0xaa3   :  { %6540 = vst [vmem:[#allocation11 + $0x100] sm:$0xff] %v6476_v42 }
 0xaa4   :  { %6541 = vst [vmem:[#allocation11 + $0x108] sm:$0xff] %v6477_v53 }
 0xaa5   :  { %6542 = vst [vmem:[#allocation11 + $0x110] sm:$0xff] %v6478_v46 }
 0xaa6   :  { %6543 = vst [vmem:[#allocation11 + $0x118] sm:$0xff] %v6479_v54 }
 0xaa7   :  { %6544 = vst [vmem:[#allocation11 + $0x120] sm:$0xff] %v6480_v8 }
 0xaa8   :  { %6545 = vst [vmem:[#allocation11 + $0x128] sm:$0xff] %v6481_v20 }
 0xaa9   :  { %6546 = vst [vmem:[#allocation11 + $0x130] sm:$0xff] %v6482_v5 }
 0xaaa   :  { %6547 = vst [vmem:[#allocation11 + $0x138] sm:$0xff] %v6483_v15 }
 0xaab   :  { %6548 = vst [vmem:[#allocation11 + $0x140] sm:$0xff] %v6484_v62 }
 0xaac   :  { %6549 = vst [vmem:[#allocation11 + $0x148] sm:$0xff] %v6485_v13 }
 0xaad   :  { %6550 = vst [vmem:[#allocation11 + $0x150] sm:$0xff] %v6486_v1 }
 0xaae   :  { %6551 = vst [vmem:[#allocation11 + $0x158] sm:$0xff] %v6487_v27 }
 0xaaf   :  { %6552 = vst [vmem:[#allocation11 + $0x160] sm:$0xff] %v6488_v2 }
 0xab0   :  { %6553 = vst [vmem:[#allocation11 + $0x168] sm:$0xff] %v6489_v55 }
 0xab1   :  { %6554 = vst [vmem:[#allocation11 + $0x170] sm:$0xff] %v6490_v12 }
 0xab2   :  { %6555 = vst [vmem:[#allocation11 + $0x178] sm:$0xff] %v6491_v4 }
 0xab3   :  { %6556 = vst [vmem:[#allocation11 + $0x180] sm:$0xff] %v6492_v63 }
 0xab4   :  { %6557 = vst [vmem:[#allocation11 + $0x188] sm:$0xff] %v6493_v45 }
 0xab5   :  { %6558 = vst [vmem:[#allocation11 + $0x190] sm:$0xff] %v6494_v44 }
 0xab6   :  { %6559 = vst [vmem:[#allocation11 + $0x198] sm:$0xff] %v6495_v35 }
 0xab7   :  { %6560 = vst [vmem:[#allocation11 + $0x1a0] sm:$0xff] %v6496_v19 }
 0xab8   :  { %6561 = vst [vmem:[#allocation11 + $0x1a8] sm:$0xff] %v6497_v47 }
 0xab9   :  { %6562 = vst [vmem:[#allocation11 + $0x1b0] sm:$0xff] %v6498_v41 }
 0xaba   :  { %6563 = vst [vmem:[#allocation11 + $0x1b8] sm:$0xff] %v6499_v25 }
 0xabb   :  { %6564 = vst [vmem:[#allocation11 + $0x1c0] sm:$0xff] %v6500_v3 }
 0xabc   :  { %6565 = vst [vmem:[#allocation11 + $0x1c8] sm:$0xff] %v6501_v34 }
 0xabd   :  { %6566 = vst [vmem:[#allocation11 + $0x1d0] sm:$0xff] %v6502_v6 }
 0xabe   :  { %6567 = vst [vmem:[#allocation11 + $0x1d8] sm:$0xff] %v6503_v56 }
 0xabf   :  { %6568 = vst [vmem:[#allocation11 + $0x1e0] sm:$0xff] %v6504_v11 }
 0xac0   :  { %6569 = vst [vmem:[#allocation11 + $0x1e8] sm:$0xff] %v6505_v50 }
 0xac1   :  { %6570 = vst [vmem:[#allocation11 + $0x1f0] sm:$0xff] %v6506_v0 }
 0xac2   :  { %6584 = dma.vmem_to_hbm [thread:$0]  %s6577_s7, 8192, %s6579_s10, [#allocation7], %s8628_s23, %s8628_s23, %s8629_s24  }
 0xac3   :  { %8625 = dma.done.wait [#allocation7], 8192  }
 0xac4   :  { %8626 = vsyncadd [#allocation7], 4294959104 }
 0xac5   :  { %6589 = vsyncpa [#allocation6], 1 }
 0xac6   :  { %6590 = vsyncpa [#allocation9], 1 }
 0xac7   :  { %6591 = vsyncpa [#allocation7], 1 }

</bundles_post_ra>
